<compile_context>
chip_gen: v5e
topology: v5e:2x2
jax: 0.10.0
libtpu: 0.0.40
codegen_flags: <defaults>
</compile_context>

<pallas_src>
import jax
import jax.numpy as jnp
from jax.experimental import pallas as pl
from jax.experimental.pallas import tpu as pltpu


def se_block_kernel(v_ref, w1t_ref, b1_ref, x_ref, w2q_ref, w2s_ref, o_ref):
    # squeeze 1x1 conv (C_se -> C_mid), lane-major:
    #   [1, C_se](bf16) @ [C_se, C_mid](bf16) -> [1, C_mid] f32
    s = jnp.dot(v_ref[...].astype(jnp.bfloat16), w1t_ref[...],
                preferred_element_type=jnp.float32)
    s = s + b1_ref[...]                       # f32 bias, lane-dense row
    s = 1.0 / (1.0 + jnp.exp(-s))             # exact sigmoid (EUP slack -> free)

    # gate w2's columns with s (sublane broadcast of a lane-dense row) while
    # dequantizing the int8 weights on the fly: g = q * s  (scale applied later)
    g = (w2q_ref[...].astype(jnp.float32) * s).astype(jnp.bfloat16)   # [C_out, C_mid]

    # expand 1x1 conv (C_mid -> C_out, no bias):
    #   [C_out, C_mid](bf16) @ [C_mid, HW](bf16) -> [C_out, HW] f32
    o = jnp.dot(g, x_ref[...].astype(jnp.bfloat16),
                preferred_element_type=jnp.float32)

    # per-output-channel int8 dequant scale on the f32 accumulator
    o_ref[...] = o * w2s_ref[...]


def prepare_weights(w1, b1, w2):
    """One-time weight prep (do this at weight-load time, NOT per call)."""
    w1t = jnp.asarray(w1).T.astype(jnp.bfloat16)                  # [C_se, C_mid]
    b1_row = jnp.asarray(b1).reshape(1, -1).astype(jnp.float32)   # [1, C_mid] lane-major
    # symmetric per-output-channel int8 quantization of w2
    absmax = jnp.max(jnp.abs(w2), axis=1, keepdims=True)          # [C_out, 1]
    w2_scale = (jnp.maximum(absmax, 1e-30) / 127.0).astype(jnp.float32)
    w2_q = jnp.clip(jnp.round(w2 / w2_scale), -127.0, 127.0).astype(jnp.int8)
    return w1t, b1_row, w2_q, w2_scale


def se_block(x904, x901, w1t, b1_row, w2_q, w2_scale):
    """x904: [1, C_se, 1, 1] f32, x901: [1, C_mid, H, W] f32 (NCHW).
    w1t: [C_se, C_mid] bf16, b1_row: [1, C_mid] f32,
    w2_q: [C_out, C_mid] int8, w2_scale: [C_out, 1] f32 (from prepare_weights).
    Returns [1, C_out, H, W] f32 (NCHW)."""
    n, c_mid, h, w = x901.shape
    c_se = x904.shape[1]
    c_out = w2_q.shape[0]
    hw = h * w
    assert n == 1

    # free reshapes (no data movement for NCHW arrays)
    v = x904.reshape(1, c_se)        # [1, C_se]   lane-major
    x_cm = x901.reshape(c_mid, hw)   # [C_mid, HW]

    flops = 2 * c_se * c_mid + 4 * c_mid + c_out * c_mid + 2 * c_out * c_mid * hw
    bytes_accessed = (v.size * 4 + w1t.size * 2 + b1_row.size * 4
                      + x_cm.size * 4 + w2_q.size * 1 + w2_scale.size * 4
                      + c_out * hw * 4)

    out = pl.pallas_call(
        se_block_kernel,
        out_shape=jax.ShapeDtypeStruct((c_out, hw), jnp.float32),
        grid=(1,),
        in_specs=[
            pl.BlockSpec((1, c_se), lambda i: (0, 0)),        # v        [1, C_se]
            pl.BlockSpec((c_se, c_mid), lambda i: (0, 0)),    # w1^T     bf16
            pl.BlockSpec((1, c_mid), lambda i: (0, 0)),       # b1 row   f32
            pl.BlockSpec((c_mid, hw), lambda i: (0, 0)),      # x        [C_mid, HW]
            pl.BlockSpec((c_out, c_mid), lambda i: (0, 0)),   # w2 int8
            pl.BlockSpec((c_out, 1), lambda i: (0, 0)),       # w2 scale f32
        ],
        out_specs=pl.BlockSpec((c_out, hw), lambda i: (0, 0)),
        compiler_params=pltpu.CompilerParams(
            dimension_semantics=("arbitrary",)),
        cost_estimate=pl.CostEstimate(flops=flops,
                                      bytes_accessed=bytes_accessed,
                                      transcendentals=c_mid),
    )(v, w1t, b1_row, x_cm, w2_q, w2_scale)

    # free reshape back to NCHW
    return out.reshape(1, c_out, h, w)


def reference(x904, x901, w1, b1, w2):
    """Plain-JAX f32 reference mirroring the PyTorch module (1x1 convs as matmuls)."""
    c_se = x904.shape[1]
    v = x904.reshape(1, c_se)
    s = jax.nn.sigmoid(v @ w1.T + b1[None, :])        # [1, C_mid]
    x907 = x901 * s.reshape(1, -1, 1, 1)              # broadcast NCHW
    return jnp.einsum("oc,nchw->nohw", w2, x907)


if __name__ == "__main__":
    key = jax.random.PRNGKey(0)
    k1, k2, k3, k4, k5 = jax.random.split(key, 5)

    C_SE, C_MID, C_OUT, H, W = 96, 2304, 384, 7, 7

    x901 = jax.random.normal(k1, (1, C_MID, H, W), dtype=jnp.float32)
    x904 = jax.random.normal(k2, (1, C_SE, 1, 1), dtype=jnp.float32)

    # Deterministic parameter init (PyTorch-default-like uniform scale).
    bound1 = 1.0 / (C_SE ** 0.5)
    w1 = jax.random.uniform(k3, (C_MID, C_SE), jnp.float32, -bound1, bound1)
    b1 = jax.random.uniform(k4, (C_MID,), jnp.float32, -bound1, bound1)
    bound2 = 1.0 / (C_MID ** 0.5)
    w2 = jax.random.uniform(k5, (C_OUT, C_MID), jnp.float32, -bound2, bound2)

    # one-time weight preparation (w1^T bf16, bias row f32, w2 int8 + scales)
    w1t, b1_row, w2_q, w2_scale = prepare_weights(w1, b1, w2)

    run = jax.jit(se_block)
    out = jax.block_until_ready(run(x904, x901, w1t, b1_row, w2_q, w2_scale))
    assert out.shape == (1, C_OUT, H, W), out.shape

    ref = reference(x904, x901, w1, b1, w2)
    # bf16 w1/x + per-channel int8 w2 vs. pure-f32 reference -> relaxed tolerance
    err = float(jnp.max(jnp.abs(out - ref)))
    assert jnp.allclose(out, ref, atol=2e-2, rtol=2e-2), err

    print("KERNEL_OK")
</pallas_src>

<mosaic_0001>
module attributes {stable_mosaic.version = 11 : i64} {
  func.func @se_block_kernel(%arg0: i32, %arg1: memref<1x96xf32, #tpu.memory_space<vmem>>, %arg2: memref<96x2304xbf16, #tpu.memory_space<vmem>>, %arg3: memref<1x2304xf32, #tpu.memory_space<vmem>>, %arg4: memref<2304x49xf32, #tpu.memory_space<vmem>>, %arg5: memref<384x2304xi8, #tpu.memory_space<vmem>>, %arg6: memref<384x1xf32, #tpu.memory_space<vmem>>, %arg7: memref<384x49xf32, #tpu.memory_space<vmem>>) attributes {dimension_semantics = [#tpu.dimension_semantics<arbitrary>], iteration_bounds = array<i64: 1>, scalar_prefetch = 0 : i64, scratch_operands = 0 : i64, tpu.core_type = #tpu.core_type<tc>, window_params = [{pipeline_mode = #tpu.pipeline_mode<synchronous>, transform_indices = @transform_0, window_bounds = array<i64: 1, 96>}, {pipeline_mode = #tpu.pipeline_mode<synchronous>, transform_indices = @transform_1, window_bounds = array<i64: 96, 2304>}, {pipeline_mode = #tpu.pipeline_mode<synchronous>, transform_indices = @transform_2, window_bounds = array<i64: 1, 2304>}, {pipeline_mode = #tpu.pipeline_mode<synchronous>, transform_indices = @transform_3, window_bounds = array<i64: 2304, 49>}, {pipeline_mode = #tpu.pipeline_mode<synchronous>, transform_indices = @transform_4, window_bounds = array<i64: 384, 2304>}, {pipeline_mode = #tpu.pipeline_mode<synchronous>, transform_indices = @transform_5, window_bounds = array<i64: 384, 1>}, {pipeline_mode = #tpu.pipeline_mode<synchronous>, transform_indices = @transform_6, window_bounds = array<i64: 384, 49>}]} {
    %c0 = arith.constant 0 : index
    %c0_0 = arith.constant 0 : index
    %0 = vector.load %arg1[%c0, %c0_0] : memref<1x96xf32, #tpu.memory_space<vmem>>, vector<1x96xf32>
    %1 = arith.truncf %0 : vector<1x96xf32> to vector<1x96xbf16>
    %c0_1 = arith.constant 0 : index
    %c0_2 = arith.constant 0 : index
    %2 = vector.load %arg2[%c0_1, %c0_2] : memref<96x2304xbf16, #tpu.memory_space<vmem>>, vector<96x2304xbf16>
    %cst = arith.constant dense<0.000000e+00> : vector<1x2304xf32>
    %3 = tpu.matmul %1, %2, %cst {dimension_numbers = #tpu.dot_dimension_numbers<[1], [0], [0], [1], [0, 0, 1, 1], [], []>} : vector<1x96xbf16>, vector<96x2304xbf16>, vector<1x2304xf32> -> vector<1x2304xf32>
    %c0_3 = arith.constant 0 : index
    %c0_4 = arith.constant 0 : index
    %4 = vector.load %arg3[%c0_3, %c0_4] : memref<1x2304xf32, #tpu.memory_space<vmem>>, vector<1x2304xf32>
    %5 = arith.addf %3, %4 : vector<1x2304xf32>
    %cst_5 = arith.constant 0.000000e+00 : f32
    %6 = vector.broadcast %cst_5 : f32 to vector<1x2304xf32>
    %7 = arith.subf %6, %5 : vector<1x2304xf32>
    %8 = math.exp %7 : vector<1x2304xf32>
    %cst_6 = arith.constant 1.000000e+00 : f32
    %9 = vector.broadcast %cst_6 : f32 to vector<1x2304xf32>
    %10 = arith.addf %9, %8 : vector<1x2304xf32>
    %cst_7 = arith.constant 1.000000e+00 : f32
    %11 = vector.broadcast %cst_7 : f32 to vector<1x2304xf32>
    %12 = arith.divf %11, %10 : vector<1x2304xf32>
    %c0_8 = arith.constant 0 : index
    %c0_9 = arith.constant 0 : index
    %13 = vector.load %arg5[%c0_8, %c0_9] : memref<384x2304xi8, #tpu.memory_space<vmem>>, vector<384x2304xi8>
    %14 = arith.sitofp %13 : vector<384x2304xi8> to vector<384x2304xf32>
    %15 = vector.broadcast %12 : vector<1x2304xf32> to vector<384x2304xf32>
    %16 = arith.mulf %14, %15 : vector<384x2304xf32>
    %17 = arith.truncf %16 : vector<384x2304xf32> to vector<384x2304xbf16>
    %c0_10 = arith.constant 0 : index
    %c0_11 = arith.constant 0 : index
    %18 = vector.load %arg4[%c0_10, %c0_11] : memref<2304x49xf32, #tpu.memory_space<vmem>>, vector<2304x49xf32>
    %19 = arith.truncf %18 : vector<2304x49xf32> to vector<2304x49xbf16>
    %cst_12 = arith.constant dense<0.000000e+00> : vector<384x49xf32>
    %20 = tpu.matmul %17, %19, %cst_12 {dimension_numbers = #tpu.dot_dimension_numbers<[1], [0], [0], [1], [0, 0, 1, 1], [], []>} : vector<384x2304xbf16>, vector<2304x49xbf16>, vector<384x49xf32> -> vector<384x49xf32>
    %c0_13 = arith.constant 0 : index
    %c0_14 = arith.constant 0 : index
    %21 = vector.load %arg6[%c0_13, %c0_14] : memref<384x1xf32, #tpu.memory_space<vmem>>, vector<384x1xf32>
    %22 = vector.broadcast %21 : vector<384x1xf32> to vector<384x49xf32>
    %23 = arith.mulf %20, %22 : vector<384x49xf32>
    %c0_15 = arith.constant 0 : index
    %c0_16 = arith.constant 0 : index
    %24 = vector.load %arg7[%c0_15, %c0_16] : memref<384x49xf32, #tpu.memory_space<vmem>>, vector<384x49xf32>
    tpu.vector_store %arg7[%c0_15, %c0_16], %23 {strides = array<i32>} : memref<384x49xf32, #tpu.memory_space<vmem>>, vector<384x49xf32>,
    return
  }
  func.func @transform_0(%arg0: i32) -> (i32, i32) {
    %c0_i32 = arith.constant 0 : i32
    %c0_i32_0 = arith.constant 0 : i32
    %c0_i32_1 = arith.constant 0 : i32
    return %c0_i32, %c0_i32_0 : i32, i32
  }
  func.func @transform_1(%arg0: i32) -> (i32, i32) {
    %c0_i32 = arith.constant 0 : i32
    %c0_i32_0 = arith.constant 0 : i32
    %c0_i32_1 = arith.constant 0 : i32
    return %c0_i32, %c0_i32_0 : i32, i32
  }
  func.func @transform_2(%arg0: i32) -> (i32, i32) {
    %c0_i32 = arith.constant 0 : i32
    %c0_i32_0 = arith.constant 0 : i32
    %c0_i32_1 = arith.constant 0 : i32
    return %c0_i32, %c0_i32_0 : i32, i32
  }
  func.func @transform_3(%arg0: i32) -> (i32, i32) {
    %c0_i32 = arith.constant 0 : i32
    %c0_i32_0 = arith.constant 0 : i32
    %c0_i32_1 = arith.constant 0 : i32
    return %c0_i32, %c0_i32_0 : i32, i32
  }
  func.func @transform_4(%arg0: i32) -> (i32, i32) {
    %c0_i32 = arith.constant 0 : i32
    %c0_i32_0 = arith.constant 0 : i32
    %c0_i32_1 = arith.constant 0 : i32
    return %c0_i32, %c0_i32_0 : i32, i32
  }
  func.func @transform_5(%arg0: i32) -> (i32, i32) {
    %c0_i32 = arith.constant 0 : i32
    %c0_i32_0 = arith.constant 0 : i32
    %c0_i32_1 = arith.constant 0 : i32
    return %c0_i32, %c0_i32_0 : i32, i32
  }
  func.func @transform_6(%arg0: i32) -> (i32, i32) {
    %c0_i32 = arith.constant 0 : i32
    %c0_i32_0 = arith.constant 0 : i32
    %c0_i32_1 = arith.constant 0 : i32
    return %c0_i32, %c0_i32_0 : i32, i32
  }
}

</mosaic_0001>

<bundles_post_ra>
// kernel: se_block.1
= control target key start
LH: loop header
LB: loop body
LE: loop exit
PB: predicated region body
PF: predicated region fallthrough
CT: control target
= control target key end

     0   :  { %vm716_vm0 = vcmask 785408   ;;  %s14843_s1 = inlined_call_operand.vmem [shape: bf16[96,2304], index: 1, kind: input, shape index: {}]   ;;  %s14844_s0 = inlined_call_operand.vmem [shape: f32[1,96], index: 0, kind: input, shape index: {}]   ;;  %s14845_s3 = inlined_call_operand.vmem [shape: f32[2304,49], index: 3, kind: input, shape index: {}]   ;;  %s14846_s2 = inlined_call_operand.vmem [shape: f32[1,2304], index: 2, kind: input, shape index: {}]   ;;  %s14847_s4 = inlined_call_operand.vmem [shape: s8[384,2304], index: 4, kind: input, shape index: {}]   ;;  %s14848_s5 = inlined_call_operand.vmem [shape: f32[384,1], index: 5, kind: input, shape index: {}]   ;;  %s14849_s6 = inlined_call_operand.vmem [shape: f32[384,49], index: 6, kind: output, shape index: {}]  }
   0x1   :  { %v8059_v0 = vld [vmem:[%s14843_s1 + $0x2d0] sm:$0xf]  ;;  %v8246_v1 = vld [vmem:[%s14843_s1 + $0x314] sm:$0xf0]  ;;  %v8237_v2 = vld [vmem:[%s14843_s1 + $0x2d4] sm:$0xf] }
   0x2   :  { %v8060_v3 = vor.u32 %v8246_v1, %v8059_v0  ;;  %v8061_v4 = vld [vmem:[%s14843_s1 + $0x318] sm:$0xf0]  ;;  %v7987_v5 = vld [vmem:[%s14843_s1 + $0x240] sm:$0xf]  ;;  %v8228_v6 = vld [vmem:[%s14843_s1 + $0x284] sm:$0xf0] }
   0x3   :  { %v8064_v7 = vor.u32 %v8237_v2, %v8061_v4  ;;  %v8219_v8 = vld [vmem:[%s14843_s1 + $0x244] sm:$0xf]  ;;  %v7989_v9 = vld [vmem:[%s14843_s1 + $0x288] sm:$0xf0]  ;;  %v7988_v10 = vor.u32 %v8228_v6, %v7987_v5  ;;  %v7915_v12 = vld [vmem:[%s14843_s1 + $0x1b0] sm:$0xf] }
   0x4   :  { %722 = vmatpush.bf16.msra.mxu0 %v8060_v3  ;;  %v7992_v11 = vor.u32 %v8219_v8, %v7989_v9  ;;  %v8210_v13 = vld [vmem:[%s14843_s1 + $0x1f4] sm:$0xf0]  ;;  %v8201_v14 = vld [vmem:[%s14843_s1 + $0x1b4] sm:$0xf]  ;;  %v7917_v15 = vld [vmem:[%s14843_s1 + $0x1f8] sm:$0xf0] }
   0x5   :  { %735 = vmatpush.bf16.msra.mxu1 %v8064_v7  ;;  %v7916_v16 = vor.u32 %v8210_v13, %v7915_v12  ;;  %v7843_v17 = vld [vmem:[%s14843_s1 + $0x120] sm:$0xf]  ;;  %v8192_v18 = vld [vmem:[%s14843_s1 + $0x164] sm:$0xf0]  ;;  %v7920_v19 = vor.u32 %v8201_v14, %v7917_v15  ;;  %v8183_v20 = vld [vmem:[%s14843_s1 + $0x124] sm:$0xf] }
   0x6   :  { %v8067_v21 = vld [vmem:[%s14843_s1 + $0x2d8] sm:$0xf]  ;;  %v8247_v22 = vld [vmem:[%s14843_s1 + $0x31c] sm:$0xf0]  ;;  %v7845_v23 = vld [vmem:[%s14843_s1 + $0x168] sm:$0xf0]  ;;  %v7844_v28 = vor.u32 %v8192_v18, %v7843_v17 }
   0x7   :  { %v8068_v24 = vor.u32 %v8247_v22, %v8067_v21  ;;  %v8238_v25 = vld [vmem:[%s14843_s1 + $0x2dc] sm:$0xf]  ;;  %v8069_v26 = vld [vmem:[%s14843_s1 + $0x320] sm:$0xf0]  ;;  %v7995_v29 = vld [vmem:[%s14843_s1 + $0x248] sm:$0xf]  ;;  %v7848_v32 = vor.u32 %v8183_v20, %v7845_v23 }
   0x8   :  { %723 = vmatpush.bf16.msra.mxu0 %v7988_v10  ;;  %v8072_v27 = vor.u32 %v8238_v25, %v8069_v26  ;;  %v8229_v30 = vld [vmem:[%s14843_s1 + $0x28c] sm:$0xf0]  ;;  %v8220_v31 = vld [vmem:[%s14843_s1 + $0x24c] sm:$0xf]  ;;  %v8174_v34 = vld [vmem:[%s14843_s1 + $0xd4] sm:$0xf0] }
   0x9   :  { %736 = vmatpush.bf16.msra.mxu1 %v7992_v11  ;;  %748 = vmatpush.bf16.msra.mxu2 %v8068_v24  ;;  %v7771_v33 = vld [vmem:[%s14843_s1 + $0x90] sm:$0xf]  ;;  %v7996_v35 = vor.u32 %v8229_v30, %v7995_v29  ;;  %v7997_v36 = vld [vmem:[%s14843_s1 + $0x290] sm:$0xf0]  ;;  %v7773_v38 = vld [vmem:[%s14843_s1 + $0xd8] sm:$0xf0] }
   0xa   :  { %761 = vmatpush.bf16.msra.mxu3 %v8072_v27  ;;  %v8165_v37 = vld [vmem:[%s14843_s1 + $0x94] sm:$0xf]  ;;  %v8000_v39 = vor.u32 %v8220_v31, %v7997_v36  ;;  %v7923_v40 = vld [vmem:[%s14843_s1 + $0x1b8] sm:$0xf]  ;;  %v8211_v41 = vld [vmem:[%s14843_s1 + $0x1fc] sm:$0xf0]  ;;  %v7772_v44 = vor.u32 %v8174_v34, %v7771_v33 }
   0xb   :  { %v8202_v42 = vld [vmem:[%s14843_s1 + $0x1bc] sm:$0xf]  ;;  %v7925_v43 = vld [vmem:[%s14843_s1 + $0x200] sm:$0xf0]  ;;  %v7699_v45 = vld [vmem:[%s14843_s1] sm:$0xf]  ;;  %v7924_v48 = vor.u32 %v8211_v41, %v7923_v40  ;;  %v7776_v49 = vor.u32 %v8165_v37, %v7773_v38 }
   0xc   :  { %724 = vmatpush.bf16.msra.mxu0 %v7916_v16  ;;  %v8156_v46 = vld [vmem:[%s14843_s1 + $0x44] sm:$0xf0]  ;;  %v8147_v47 = vld [vmem:[%s14843_s1 + $0x4] sm:$0xf]  ;;  %v7701_v50 = vld [vmem:[%s14843_s1 + $0x48] sm:$0xf0]  ;;  %v7928_v51 = vor.u32 %v8202_v42, %v7925_v43 }
   0xd   :  { %737 = vmatpush.bf16.msra.mxu1 %v7920_v19  ;;  %749 = vmatpush.bf16.msra.mxu2 %v7996_v35  ;;  %v7851_v52 = vld [vmem:[%s14843_s1 + $0x128] sm:$0xf]  ;;  %v8193_v53 = vld [vmem:[%s14843_s1 + $0x16c] sm:$0xf0]  ;;  %v8075_v54 = vld [vmem:[%s14843_s1 + $0x2e0] sm:$0xf]  ;;  %v7700_v60 = vor.u32 %v8156_v46, %v7699_v45  ;;  %v7704_v63 = vor.u32 %v8147_v47, %v7701_v50 }
   0xe   :  { %762 = vmatpush.bf16.msra.mxu3 %v8000_v39  ;;  %v8248_v55 = vld [vmem:[%s14843_s1 + $0x324] sm:$0xf0]  ;;  %v8239_v56 = vld [vmem:[%s14843_s1 + $0x2e4] sm:$0xf]  ;;  %v8077_v57 = vld [vmem:[%s14843_s1 + $0x328] sm:$0xf0]  ;;  %v7852_v62 = vor.u32 %v8193_v53, %v7851_v52 }
   0xf   :  { %v8184_v58 = vld [vmem:[%s14843_s1 + $0x12c] sm:$0xf]  ;;  %v7853_v59 = vld [vmem:[%s14843_s1 + $0x170] sm:$0xf0]  ;;  %v24_v61 = vld [vmem:[%s14844_s0] sm:$0x1]  ;;  %v8076_v0 = vor.u32 %v8248_v55, %v8075_v54  ;;  %v8080_v3 = vor.u32 %v8239_v56, %v8077_v57 }
  0x10   :  { %725 = vmatpush.bf16.msra.mxu0 %v7844_v28  ;;  %v7779_v1 = vld [vmem:[%s14843_s1 + $0x98] sm:$0xf]  ;;  %v8175_v2 = vld [vmem:[%s14843_s1 + $0xdc] sm:$0xf0]  ;;  %v8003_v4 = vld [vmem:[%s14843_s1 + $0x250] sm:$0xf]  ;;  %v7856_v7 = vor.u32 %v8184_v58, %v7853_v59  ;;  %v8538_v8 = vpack.c.bf16 %v24_v61, %v24_v61 }
  0x11   :  { %738 = vmatpush.bf16.msra.mxu1 %v7848_v32  ;;  %750 = vmatpush.bf16.msra.mxu2 %v7924_v48  ;;  %v8230_v5 = vld [vmem:[%s14843_s1 + $0x294] sm:$0xf0]  ;;  %v8221_v6 = vld [vmem:[%s14843_s1 + $0x254] sm:$0xf]  ;;  %v8005_v9 = vld [vmem:[%s14843_s1 + $0x298] sm:$0xf0]  ;;  %v7780_v13 = vor.u32 %v8175_v2, %v7779_v1 }
  0x12   :  { %763 = vmatpush.bf16.msra.mxu3 %v7928_v51  ;;  %v8166_v10 = vld [vmem:[%s14843_s1 + $0x9c] sm:$0xf]  ;;  %v7781_v11 = vld [vmem:[%s14843_s1 + $0xe0] sm:$0xf0]  ;;  %v7931_v12 = vld [vmem:[%s14843_s1 + $0x1c0] sm:$0xf]  ;;  %v8004_v14 = vor.u32 %v8230_v5, %v8003_v4  ;;  %v8008_v18 = vor.u32 %v8221_v6, %v8005_v9 }
  0x13   :  { %v8212_v15 = vld [vmem:[%s14843_s1 + $0x204] sm:$0xf0]  ;;  %v8157_v17 = vld [vmem:[%s14843_s1 + $0x4c] sm:$0xf0]  ;;  %v8203_v19 = vld [vmem:[%s14843_s1 + $0x1c4] sm:$0xf]  ;;  %v7784_v20 = vor.u32 %v8166_v10, %v7781_v11 }
  0x14   :  { %726 = vmatpush.bf16.msra.mxu0 %v7772_v44  ;;  %v7707_v16 = vld [vmem:[%s14843_s1 + $0x8] sm:$0xf]  ;;  %v8249_v22 = vld [vmem:[%s14843_s1 + $0x32c] sm:$0xf0]  ;;  %v7933_v23 = vld [vmem:[%s14843_s1 + $0x208] sm:$0xf0]  ;;  %v7932_v29 = vor.u32 %v8212_v15, %v7931_v12 }
  0x15   :  { %739 = vmatpush.bf16.msra.mxu1 %v7776_v49  ;;  %751 = vmatpush.bf16.msra.mxu2 %v7852_v62  ;;  %v8083_v21 = vld [vmem:[%s14843_s1 + $0x2e8] sm:$0xf]  ;;  %v8148_v24 = vld [vmem:[%s14843_s1 + $0xc] sm:$0xf]  ;;  %v7709_v25 = vld [vmem:[%s14843_s1 + $0x50] sm:$0xf0]  ;;  %v7708_v26 = vor.u32 %v8157_v17, %v7707_v16  ;;  %v7936_v32 = vor.u32 %v8203_v19, %v7933_v23 }
  0x16   :  { %764 = vmatpush.bf16.msra.mxu3 %v7856_v7  ;;  %v8240_v27 = vld [vmem:[%s14843_s1 + $0x2ec] sm:$0xf]  ;;  %v8085_v28 = vld [vmem:[%s14843_s1 + $0x330] sm:$0xf0]  ;;  %v7859_v30 = vld [vmem:[%s14843_s1 + $0x130] sm:$0xf]  ;;  %v8084_v31 = vor.u32 %v8249_v22, %v8083_v21  ;;  %v7712_v34 = vor.u32 %v8148_v24, %v7709_v25 }
  0x17   :  { %v8194_v33 = vld [vmem:[%s14843_s1 + $0x174] sm:$0xf0]  ;;  %v8231_v36 = vld [vmem:[%s14843_s1 + $0x29c] sm:$0xf0]  ;;  %v8185_v37 = vld [vmem:[%s14843_s1 + $0x134] sm:$0xf]  ;;  %v8088_v39 = vor.u32 %v8240_v27, %v8085_v28 }
  0x18   :  { %727 = vmatpush.bf16.msra.mxu0 %v7700_v60  ;;  %v8011_v35 = vld [vmem:[%s14843_s1 + $0x258] sm:$0xf]  ;;  %v7861_v38 = vld [vmem:[%s14843_s1 + $0x178] sm:$0xf0]  ;;  %v8013_v41 = vld [vmem:[%s14843_s1 + $0x2a0] sm:$0xf0]  ;;  %v7860_v42 = vor.u32 %v8194_v33, %v7859_v30 }
  0x19   :  { %740 = vmatpush.bf16.msra.mxu1 %v7704_v63  ;;  %752 = vmatpush.bf16.msra.mxu2 %v7780_v13  ;;  %v8222_v40 = vld [vmem:[%s14843_s1 + $0x25c] sm:$0xf]  ;;  %v7787_v43 = vld [vmem:[%s14843_s1 + $0xa0] sm:$0xf]  ;;  %v8012_v44 = vor.u32 %v8231_v36, %v8011_v35  ;;  %v7864_v45 = vor.u32 %v8185_v37, %v7861_v38  ;;  %v8176_v46 = vld [vmem:[%s14843_s1 + $0xe4] sm:$0xf0] }
  0x1a   :  { %765 = vmatpush.bf16.msra.mxu3 %v7784_v20  ;;  %v7939_v47 = vld [vmem:[%s14843_s1 + $0x1c8] sm:$0xf]  ;;  %v8213_v48 = vld [vmem:[%s14843_s1 + $0x20c] sm:$0xf0]  ;;  %v8167_v49 = vld [vmem:[%s14843_s1 + $0xa4] sm:$0xf]  ;;  %v8016_v51 = vor.u32 %v8222_v40, %v8013_v41  ;;  %v7788_v54 = vor.u32 %v8176_v46, %v7787_v43 }
  0x1b   :  { %8129 = vmatmul.msk.bf16.vlgmr.msra.gmra.mxu0 %vm716_vm0, %v8538_v8  ;;  %v7789_v50 = vld [vmem:[%s14843_s1 + $0xe8] sm:$0xf0]  ;;  %v7941_v53 = vld [vmem:[%s14843_s1 + $0x210] sm:$0xf0]  ;;  %v7715_v55 = vld [vmem:[%s14843_s1 + $0x10] sm:$0xf]  ;;  %v7940_v58 = vor.u32 %v8213_v48, %v7939_v47 }
  0x1c   :  { %774 = vmatpush.bf16.msrb.mxu0 %v8076_v0  ;;  %8130 = vmatmul.msk.bf16.vlgmr.msra.gmra.mxu1 %vm716_vm0, %v8538_v8  ;;  %v8204_v52 = vld [vmem:[%s14843_s1 + $0x1cc] sm:$0xf]  ;;  %v8158_v56 = vld [vmem:[%s14843_s1 + $0x54] sm:$0xf0]  ;;  %v8149_v57 = vld [vmem:[%s14843_s1 + $0x14] sm:$0xf]  ;;  %v7792_v59 = vor.u32 %v8167_v49, %v7789_v50 }
  0x1d   :  { %787 = vmatpush.bf16.msrb.mxu1 %v8080_v3  ;;  %753 = vmatpush.bf16.msra.mxu2 %v7708_v26  ;;  %v7717_v60 = vld [vmem:[%s14843_s1 + $0x58] sm:$0xf0]  ;;  %v7867_v61 = vld [vmem:[%s14843_s1 + $0x138] sm:$0xf]  ;;  %v8195_v62 = vld [vmem:[%s14843_s1 + $0x17c] sm:$0xf0]  ;;  %v7944_v2 = vor.u32 %v8204_v52, %v7941_v53  ;;  %v7716_v6 = vor.u32 %v8158_v56, %v7715_v55 }
  0x1e   :  { %766 = vmatpush.bf16.msra.mxu3 %v7712_v34  ;;  %v8091_v63 = vld [vmem:[%s14843_s1 + $0x2f0] sm:$0xf]  ;;  %v8250_v0 = vld [vmem:[%s14843_s1 + $0x334] sm:$0xf0]  ;;  %v8241_v1 = vld [vmem:[%s14843_s1 + $0x2f4] sm:$0xf]  ;;  %v7868_v7 = vor.u32 %v8195_v62, %v7867_v61  ;;  %v7720_v9 = vor.u32 %v8149_v57, %v7717_v60 }
  0x1f   :  { %v8093_v3 = vld [vmem:[%s14843_s1 + $0x338] sm:$0xf0]  ;;  %v7869_v5 = vld [vmem:[%s14843_s1 + $0x180] sm:$0xf0]  ;;  %v8092_v10 = vor.u32 %v8250_v0, %v8091_v63  ;;  %v7795_v11 = vld [vmem:[%s14843_s1 + $0xa8] sm:$0xf] }
  0x20   :  { %775 = vmatpush.bf16.msrb.mxu0 %v8004_v14  ;;  %8131 = vmatmul.msk.bf16.vlgmr.msra.gmra.mxu2 %vm716_vm0, %v8538_v8  ;;  %v8186_v4 = vld [vmem:[%s14843_s1 + $0x13c] sm:$0xf]  ;;  %v8177_v12 = vld [vmem:[%s14843_s1 + $0xec] sm:$0xf0]  ;;  %v8096_v13 = vor.u32 %v8241_v1, %v8093_v3  ;;  %v8019_v14 = vld [vmem:[%s14843_s1 + $0x260] sm:$0xf] }
  0x21   :  { %788 = vmatpush.bf16.msrb.mxu1 %v8008_v18  ;;  %800 = vmatpush.bf16.msrb.mxu2 %v8084_v31  ;;  %v8232_v15 = vld [vmem:[%s14843_s1 + $0x2a4] sm:$0xf0]  ;;  %v8223_v16 = vld [vmem:[%s14843_s1 + $0x264] sm:$0xf]  ;;  %v7872_v17 = vor.u32 %v8186_v4, %v7869_v5  ;;  %v8021_v18 = vld [vmem:[%s14843_s1 + $0x2a8] sm:$0xf0]  ;;  %v7796_v22 = vor.u32 %v8177_v12, %v7795_v11 }
  0x22   :  { %813 = vmatpush.bf16.msrb.mxu3 %v8088_v39  ;;  %v8168_v19 = vld [vmem:[%s14843_s1 + $0xac] sm:$0xf]  ;;  %v7797_v20 = vld [vmem:[%s14843_s1 + $0xf0] sm:$0xf0]  ;;  %v7947_v21 = vld [vmem:[%s14843_s1 + $0x1d0] sm:$0xf]  ;;  %v8020_v23 = vor.u32 %v8232_v15, %v8019_v14  ;;  %v8024_v27 = vor.u32 %v8223_v16, %v8021_v18 }
  0x23   :  { %8132 = vmatmul.msk.bf16.vlgmr.msra.gmra.mxu3 %vm716_vm0, %v8538_v8  ;;  %v8214_v24 = vld [vmem:[%s14843_s1 + $0x214] sm:$0xf0]  ;;  %v8159_v26 = vld [vmem:[%s14843_s1 + $0x5c] sm:$0xf0]  ;;  %v8205_v28 = vld [vmem:[%s14843_s1 + $0x1d4] sm:$0xf] }
  0x24   :  { %776 = vmatpush.bf16.msrb.mxu0 %v7932_v29  ;;  %v7723_v25 = vld [vmem:[%s14843_s1 + $0x18] sm:$0xf]  ;;  %v7800_v29 = vor.u32 %v8168_v19, %v7797_v20  ;;  %v8251_v31 = vld [vmem:[%s14843_s1 + $0x33c] sm:$0xf0]  ;;  %v8150_v33 = vld [vmem:[%s14843_s1 + $0x1c] sm:$0xf]  ;;  %v7948_v38 = vor.u32 %v8214_v24, %v7947_v21 }
  0x25   :  { %789 = vmatpush.bf16.msrb.mxu1 %v7936_v32  ;;  %801 = vmatpush.bf16.msrb.mxu2 %v8012_v44  ;;  %v8099_v30 = vld [vmem:[%s14843_s1 + $0x2f8] sm:$0xf]  ;;  %v7949_v32 = vld [vmem:[%s14843_s1 + $0x218] sm:$0xf0]  ;;  %v7725_v34 = vld [vmem:[%s14843_s1 + $0x60] sm:$0xf0]  ;;  %v7724_v35 = vor.u32 %v8159_v26, %v7723_v25 }
  0x26   :  { %814 = vmatpush.bf16.msrb.mxu3 %v8016_v51  ;;  %v8242_v36 = vld [vmem:[%s14843_s1 + $0x2fc] sm:$0xf]  ;;  %v8101_v37 = vld [vmem:[%s14843_s1 + $0x340] sm:$0xf0]  ;;  %v7875_v39 = vld [vmem:[%s14843_s1 + $0x140] sm:$0xf]  ;;  %v8100_v40 = vor.u32 %v8251_v31, %v8099_v30  ;;  %v7952_v41 = vor.u32 %v8205_v28, %v7949_v32  ;;  %v7728_v43 = vor.u32 %v8150_v33, %v7725_v34 }
  0x27   :  { %v8027_v44 = vld [vmem:[%s14843_s1 + $0x268] sm:$0xf]  ;;  %v8187_v46 = vld [vmem:[%s14843_s1 + $0x144] sm:$0xf]  ;;  %v7877_v47 = vld [vmem:[%s14843_s1 + $0x188] sm:$0xf0]  ;;  %v8104_v48 = vor.u32 %v8242_v36, %v8101_v37 }
  0x28   :  { %777 = vmatpush.bf16.msrb.mxu0 %v7860_v42  ;;  %v8196_v42 = vld [vmem:[%s14843_s1 + $0x184] sm:$0xf0]  ;;  %v8224_v49 = vld [vmem:[%s14843_s1 + $0x26c] sm:$0xf]  ;;  %v8029_v50 = vld [vmem:[%s14843_s1 + $0x2b0] sm:$0xf0] }
  0x29   :  { %790 = vmatpush.bf16.msrb.mxu1 %v7864_v45  ;;  %802 = vmatpush.bf16.msrb.mxu2 %v7940_v58  ;;  %v8233_v45 = vld [vmem:[%s14843_s1 + $0x2ac] sm:$0xf0]  ;;  %v7876_v51 = vor.u32 %v8196_v42, %v7875_v39  ;;  %v8178_v55 = vld [vmem:[%s14843_s1 + $0xf4] sm:$0xf0]  ;;  %v8215_v57 = vld [vmem:[%s14843_s1 + $0x21c] sm:$0xf0]  ;;  %v8032_v60 = vor.u32 %v8224_v49, %v8029_v50 }
  0x2a   :  { %815 = vmatpush.bf16.msrb.mxu3 %v7944_v2  ;;  %v7803_v52 = vld [vmem:[%s14843_s1 + $0xb0] sm:$0xf]  ;;  %v8028_v53 = vor.u32 %v8233_v45, %v8027_v44  ;;  %v7955_v56 = vld [vmem:[%s14843_s1 + $0x1d8] sm:$0xf]  ;;  %v8169_v58 = vld [vmem:[%s14843_s1 + $0xb4] sm:$0xf] }
  0x2b   :  { %v8206_v61 = vld [vmem:[%s14843_s1 + $0x1dc] sm:$0xf]  ;;  %v7957_v62 = vld [vmem:[%s14843_s1 + $0x220] sm:$0xf0]  ;;  %v7804_v63 = vor.u32 %v8178_v55, %v7803_v52  ;;  %v7731_v0 = vld [vmem:[%s14843_s1 + $0x20] sm:$0xf]  ;;  %v7956_v3 = vor.u32 %v8215_v57, %v7955_v56 }
  0x2c   :  { %778 = vmatpush.bf16.msrb.mxu0 %v7788_v54  ;;  %v7880_v54 = vor.u32 %v8187_v46, %v7877_v47  ;;  %v8160_v1 = vld [vmem:[%s14843_s1 + $0x64] sm:$0xf0]  ;;  %v8151_v2 = vld [vmem:[%s14843_s1 + $0x24] sm:$0xf]  ;;  %v7733_v5 = vld [vmem:[%s14843_s1 + $0x68] sm:$0xf0]  ;;  %v7960_v12 = vor.u32 %v8206_v61, %v7957_v62 }
  0x2d   :  { %791 = vmatpush.bf16.msrb.mxu1 %v7792_v59  ;;  %803 = vmatpush.bf16.msrb.mxu2 %v7868_v7  ;;  %v7805_v59 = vld [vmem:[%s14843_s1 + $0xf8] sm:$0xf0]  ;;  %v8197_v7 = vld [vmem:[%s14843_s1 + $0x18c] sm:$0xf0]  ;;  %v8243_v11 = vld [vmem:[%s14843_s1 + $0x304] sm:$0xf]  ;;  %v7732_v16 = vor.u32 %v8160_v1, %v7731_v0  ;;  %v7736_v18 = vor.u32 %v8151_v2, %v7733_v5 }
  0x2e   :  { %816 = vmatpush.bf16.msrb.mxu3 %v7872_v17  ;;  %v7808_v4 = vor.u32 %v8169_v58, %v7805_v59  ;;  %v8188_v14 = vld [vmem:[%s14843_s1 + $0x14c] sm:$0xf]  ;;  %v7885_v15 = vld [vmem:[%s14843_s1 + $0x190] sm:$0xf0]  ;;  %v7811_v20 = vld [vmem:[%s14843_s1 + $0xb8] sm:$0xf] }
  0x2f   :  { %v8179_v21 = vld [vmem:[%s14843_s1 + $0xfc] sm:$0xf0]  ;;  %v8234_v24 = vld [vmem:[%s14843_s1 + $0x2b4] sm:$0xf0]  ;;  %v8225_v25 = vld [vmem:[%s14843_s1 + $0x274] sm:$0xf]  ;;  %v7888_v26 = vor.u32 %v8188_v14, %v7885_v15 }
  0x30   :  { %779 = vmatpush.bf16.msrb.mxu0 %v7716_v6  ;;  %v7883_v6 = vld [vmem:[%s14843_s1 + $0x148] sm:$0xf]  ;;  %v8170_v28 = vld [vmem:[%s14843_s1 + $0xbc] sm:$0xf]  ;;  %v7963_v30 = vld [vmem:[%s14843_s1 + $0x1e0] sm:$0xf]  ;;  %v7812_v31 = vor.u32 %v8179_v21, %v7811_v20 }
  0x31   :  { %792 = vmatpush.bf16.msrb.mxu1 %v7720_v9  ;;  %804 = vmatpush.bf16.msrb.mxu2 %v7796_v22  ;;  %v8107_v9 = vld [vmem:[%s14843_s1 + $0x300] sm:$0xf]  ;;  %v7884_v17 = vor.u32 %v8197_v7, %v7883_v6  ;;  %v8216_v33 = vld [vmem:[%s14843_s1 + $0x224] sm:$0xf0]  ;;  %v8207_v37 = vld [vmem:[%s14843_s1 + $0x1e4] sm:$0xf] }
  0x32   :  { %817 = vmatpush.bf16.msrb.mxu3 %v7800_v29  ;;  %v7813_v29 = vld [vmem:[%s14843_s1 + $0x100] sm:$0xf0]  ;;  %v7739_v34 = vld [vmem:[%s14843_s1 + $0x28] sm:$0xf]  ;;  %v8152_v42 = vld [vmem:[%s14843_s1 + $0x2c] sm:$0xf]  ;;  %v7964_v47 = vor.u32 %v8216_v33, %v7963_v30 }
  0x33   :  { %8133 = vmatmul.msk.bf16.vlgmr.msrb.gmra.mxu0 %vm716_vm0, %v8538_v8  ;;  %v8115_v39 = vld [vmem:[%s14843_s1 + $0x308] sm:$0xf]  ;;  %v8244_v45 = vld [vmem:[%s14843_s1 + $0x30c] sm:$0xf]  ;;  %v8117_v46 = vld [vmem:[%s14843_s1 + $0x350] sm:$0xf0] }
  0x34   :  { %826 = vmatpush.bf16.msra.mxu0 %v8092_v10  ;;  %8134 = vmatmul.msk.bf16.vlgmr.msrb.gmra.mxu1 %vm716_vm0, %v8538_v8  ;;  %v8252_v10 = vld [vmem:[%s14843_s1 + $0x344] sm:$0xf0]  ;;  %v8189_v55 = vld [vmem:[%s14843_s1 + $0x154] sm:$0xf]  ;;  %v7893_v56 = vld [vmem:[%s14843_s1 + $0x198] sm:$0xf0]  ;;  %v8120_v57 = vor.u32 %v8244_v45, %v8117_v46 }
  0x35   :  { %839 = vmatpush.bf16.msra.mxu1 %v8096_v13  ;;  %805 = vmatpush.bf16.msrb.mxu2 %v7724_v35  ;;  %v8109_v13 = vld [vmem:[%s14843_s1 + $0x348] sm:$0xf0]  ;;  %v8108_v19 = vor.u32 %v8252_v10, %v8107_v9  ;;  %v8161_v35 = vld [vmem:[%s14843_s1 + $0x6c] sm:$0xf0]  ;;  %v8226_v58 = vld [vmem:[%s14843_s1 + $0x27c] sm:$0xf] }
  0x36   :  { %818 = vmatpush.bf16.msrb.mxu3 %v7728_v43  ;;  %v8112_v22 = vor.u32 %v8243_v11, %v8109_v13  ;;  %v7741_v43 = vld [vmem:[%s14843_s1 + $0x70] sm:$0xf0]  ;;  %v7740_v44 = vor.u32 %v8161_v35, %v7739_v34  ;;  %v8045_v59 = vld [vmem:[%s14843_s1 + $0x2c0] sm:$0xf0]  ;;  %v7819_v61 = vld [vmem:[%s14843_s1 + $0xc0] sm:$0xf] }
  0x37   :  { %v7744_v52 = vor.u32 %v8152_v42, %v7741_v43  ;;  %v8180_v0 = vld [vmem:[%s14843_s1 + $0x104] sm:$0xf0]  ;;  %v8217_v2 = vld [vmem:[%s14843_s1 + $0x22c] sm:$0xf0]  ;;  %v8048_v5 = vor.u32 %v8226_v58, %v8045_v59  ;;  %v8208_v6 = vld [vmem:[%s14843_s1 + $0x1ec] sm:$0xf] }
  0x38   :  { %827 = vmatpush.bf16.msra.mxu0 %v8020_v23  ;;  %8135 = vmatmul.msk.bf16.vlgmr.msrb.gmra.mxu2 %vm716_vm0, %v8538_v8  ;;  %v8035_v23 = vld [vmem:[%s14843_s1 + $0x270] sm:$0xf]  ;;  %v7971_v1 = vld [vmem:[%s14843_s1 + $0x1e8] sm:$0xf]  ;;  %v7973_v7 = vld [vmem:[%s14843_s1 + $0x230] sm:$0xf0]  ;;  %v7820_v9 = vor.u32 %v8180_v0, %v7819_v61 }
  0x39   :  { %840 = vmatpush.bf16.msra.mxu1 %v8024_v27  ;;  %852 = vmatpush.bf16.msra.mxu2 %v8100_v40  ;;  %v8037_v27 = vld [vmem:[%s14843_s1 + $0x2b8] sm:$0xf0]  ;;  %v8036_v32 = vor.u32 %v8234_v24, %v8035_v23  ;;  %v8253_v40 = vld [vmem:[%s14843_s1 + $0x34c] sm:$0xf0]  ;;  %v8162_v11 = vld [vmem:[%s14843_s1 + $0x74] sm:$0xf0]  ;;  %v7972_v13 = vor.u32 %v8217_v2, %v7971_v1  ;;  %v7976_v21 = vor.u32 %v8208_v6, %v7973_v7 }
  0x3a   :  { %865 = vmatpush.bf16.msra.mxu3 %v8104_v48  ;;  %v8040_v36 = vor.u32 %v8225_v25, %v8037_v27  ;;  %v7891_v48 = vld [vmem:[%s14843_s1 + $0x150] sm:$0xf]  ;;  %v8116_v49 = vor.u32 %v8253_v40, %v8115_v39  ;;  %v7749_v15 = vld [vmem:[%s14843_s1 + $0x78] sm:$0xf0]  ;;  %v8245_v20 = vld [vmem:[%s14843_s1 + $0x314] sm:$0xf] }
  0x3b   :  { %8136 = vmatmul.msk.bf16.vlgmr.msrb.gmra.mxu3 %vm716_vm0, %v8538_v8  ;;  %v7747_v10 = vld [vmem:[%s14843_s1 + $0x30] sm:$0xf]  ;;  %v8190_v23 = vld [vmem:[%s14843_s1 + $0x15c] sm:$0xf]  ;;  %v7901_v24 = vld [vmem:[%s14843_s1 + $0x1a0] sm:$0xf0] }
  0x3c   :  { %828 = vmatpush.bf16.msra.mxu0 %v7948_v38  ;;  %v7816_v38 = vor.u32 %v8170_v28, %v7813_v29  ;;  %v7748_v25 = vor.u32 %v8162_v11, %v7747_v10  ;;  %v8051_v30 = vld [vmem:[%s14843_s1 + $0x280] sm:$0xf]  ;;  %v8227_v33 = vld [vmem:[%s14843_s1 + $0x284] sm:$0xf]  ;;  %v8053_v34 = vld [vmem:[%s14843_s1 + $0x2c8] sm:$0xf0] }
  0x3d   :  { %841 = vmatpush.bf16.msra.mxu1 %v7952_v41  ;;  %853 = vmatpush.bf16.msra.mxu2 %v8028_v53  ;;  %v7965_v41 = vld [vmem:[%s14843_s1 + $0x228] sm:$0xf0]  ;;  %v8043_v53 = vld [vmem:[%s14843_s1 + $0x278] sm:$0xf]  ;;  %v8209_v39 = vld [vmem:[%s14843_s1 + $0x1f4] sm:$0xf] }
  0x3e   :  { %866 = vmatpush.bf16.msra.mxu3 %v8032_v60  ;;  %v7968_v50 = vor.u32 %v8207_v37, %v7965_v41  ;;  %v7979_v37 = vld [vmem:[%s14843_s1 + $0x1f0] sm:$0xf]  ;;  %v7981_v40 = vld [vmem:[%s14843_s1 + $0x238] sm:$0xf0]  ;;  %v7907_v43 = vld [vmem:[%s14843_s1 + $0x160] sm:$0xf] }
  0x3f   :  { %v7984_v42 = vor.u32 %v8209_v39, %v7981_v40  ;;  %v8191_v45 = vld [vmem:[%s14843_s1 + $0x164] sm:$0xf]  ;;  %v7909_v46 = vld [vmem:[%s14843_s1 + $0x1a8] sm:$0xf0]  ;;  %v8173_v58 = vld [vmem:[%s14843_s1 + $0xd4] sm:$0xf] }
  0x40   :  { %829 = vmatpush.bf16.msra.mxu0 %v7876_v51  ;;  %v8198_v51 = vld [vmem:[%s14843_s1 + $0x194] sm:$0xf0]  ;;  %v7837_v59 = vld [vmem:[%s14843_s1 + $0x118] sm:$0xf0]  ;;  %v7757_v1 = vld [vmem:[%s14843_s1 + $0x80] sm:$0xf0] }
  0x41   :  { %842 = vmatpush.bf16.msra.mxu1 %v7880_v54  ;;  %854 = vmatpush.bf16.msra.mxu2 %v7956_v3  ;;  %v8235_v54 = vld [vmem:[%s14843_s1 + $0x2bc] sm:$0xf0]  ;;  %v7892_v60 = vor.u32 %v8198_v51, %v7891_v48  ;;  %v8171_v3 = vld [vmem:[%s14843_s1 + $0xc4] sm:$0xf]  ;;  %v7912_v48 = vor.u32 %v8191_v45, %v7909_v46  ;;  %v8172_v51 = vld [vmem:[%s14843_s1 + $0xcc] sm:$0xf] }
  0x42   :  { %867 = vmatpush.bf16.msra.mxu3 %v7960_v12  ;;  %v8044_v62 = vor.u32 %v8235_v54, %v8043_v53  ;;  %v8153_v12 = vld [vmem:[%s14843_s1 + $0x34] sm:$0xf]  ;;  %v7835_v54 = vld [vmem:[%s14843_s1 + $0xd0] sm:$0xf]  ;;  %v7755_v61 = vld [vmem:[%s14843_s1 + $0x38] sm:$0xf] }
  0x43   :  { %v7752_v27 = vor.u32 %v8153_v12, %v7749_v15  ;;  %v7829_v53 = vld [vmem:[%s14843_s1 + $0x110] sm:$0xf0]  ;;  %v7763_v2 = vld [vmem:[%s14843_s1 + $0x40] sm:$0xf]  ;;  %v8155_v6 = vld [vmem:[%s14843_s1 + $0x44] sm:$0xf] }
  0x44   :  { %830 = vmatpush.bf16.msra.mxu0 %v7804_v63  ;;  %v7896_v63 = vor.u32 %v8189_v55, %v7893_v56  ;;  %v8182_v55 = vld [vmem:[%s14843_s1 + $0x114] sm:$0xf0]  ;;  %v7832_v56 = vor.u32 %v8172_v51, %v7829_v53  ;;  %v7765_v7 = vld [vmem:[%s14843_s1 + $0x88] sm:$0xf0]  ;;  %v4584_v12 = vld [vmem:[%s14845_s3 + $0xf0] sm:$0xff] }
  0x45   :  { %843 = vmatpush.bf16.msra.mxu1 %v7808_v4  ;;  %855 = vmatpush.bf16.msra.mxu2 %v7884_v17  ;;  %v7821_v4 = vld [vmem:[%s14843_s1 + $0x108] sm:$0xf0]  ;;  %v8199_v17 = vld [vmem:[%s14843_s1 + $0x19c] sm:$0xf0]  ;;  %v7768_v10 = vor.u32 %v8155_v6, %v7765_v7  ;;  %v4569_v11 = vld [vmem:[%s14845_s3 + $0x78] sm:$0xff] }
  0x46   :  { %868 = vmatpush.bf16.msra.mxu3 %v7888_v26  ;;  %v7824_v14 = vor.u32 %v8171_v3, %v7821_v4  ;;  %v8164_v3 = vld [vmem:[%s14843_s1 + $0x84] sm:$0xf0]  ;;  %v9140_v39 = vld [vmem:[%s14846_s2] sm:$0xff]  ;;  %v4633_v6 = vld [vmem:[%s14845_s3 + $0x278] sm:$0xff] }
  0x47   :  { %v4558_v40 = vld [vmem:[%s14845_s3 + $0x20] sm:$0xff]  ;;  %v680_v46 = vperm.slane %v9140_v39, 0  ;;  %v4648_v7 = vld [vmem:[%s14845_s3 + $0x2f0] sm:$0xff] }
  0x48   :  { %831 = vmatpush.bf16.msra.mxu0 %v7732_v16  ;;  %v7899_v16 = vld [vmem:[%s14843_s1 + $0x158] sm:$0xf] }
  0x49   :  { %844 = vmatpush.bf16.msra.mxu1 %v7736_v18  ;;  %856 = vmatpush.bf16.msra.mxu2 %v7812_v31  ;;  %v8123_v18 = vld [vmem:[%s14843_s1 + $0x310] sm:$0xf]  ;;  %v7900_v26 = vor.u32 %v8199_v17, %v7899_v16  ;;  %v8236_v31 = vld [vmem:[%s14843_s1 + $0x2c4] sm:$0xf0]  ;;  %v4566_v16 = vld [vmem:[%s14845_s3 + $0x60] sm:$0xff] }
  0x4a   :  { %869 = vmatpush.bf16.msra.mxu3 %v7816_v38  ;;  %v8052_v35 = vor.u32 %v8236_v31, %v8051_v30  ;;  %v8218_v38 = vld [vmem:[%s14843_s1 + $0x234] sm:$0xf0]  ;;  %v4567_v17 = vld [vmem:[%s14845_s3 + $0x68] sm:$0xff] }
  0x4b   :  { %8137 = vmatmul.msk.bf16.vlgmr.msra.gmra.mxu0 %vm716_vm0, %v8538_v8  ;;  %v7980_v41 = vor.u32 %v8218_v38, %v7979_v37  ;;  %v4579_v31 = vld [vmem:[%s14845_s3 + $0xc8] sm:$0xff]  ;;  %v4577_v37 = vld [vmem:[%s14845_s3 + $0xb8] sm:$0xff] }
  0x4c   :  { %878 = vmatpush.bf16.msrb.mxu0 %v8108_v19  ;;  %8138 = vmatmul.msk.bf16.vlgmr.msra.gmra.mxu1 %vm716_vm0, %v8538_v8  ;;  %v8254_v19 = vld [vmem:[%s14843_s1 + $0x354] sm:$0xf0] }
  0x4d   :  { %891 = vmatpush.bf16.msrb.mxu1 %v8112_v22  ;;  %857 = vmatpush.bf16.msra.mxu2 %v7740_v44  ;;  %v8125_v22 = vld [vmem:[%s14843_s1 + $0x358] sm:$0xf0]  ;;  %v8124_v28 = vor.u32 %v8254_v19, %v8123_v18  ;;  %v8200_v44 = vld [vmem:[%s14843_s1 + $0x1a4] sm:$0xf0]  ;;  %v4582_v18 = vld [vmem:[%s14845_s3 + $0xe0] sm:$0xff]  ;;  %v4848_v19 = vpack.c.bf16 %v4567_v17, %v4566_v16 }
  0x4e   :  { %870 = vmatpush.bf16.msra.mxu3 %v7744_v52  ;;  %v8128_v29 = vor.u32 %v8245_v20, %v8125_v22  ;;  %v4583_v20 = vld [vmem:[%s14845_s3 + $0xe8] sm:$0xff]  ;;  %v4564_v22 = vld [vmem:[%s14845_s3 + $0x50] sm:$0xff]  ;;  %v9195_v17 = vld [vmem:[%s14847_s4] sm:$0xff] }
  0x50   :  { %879 = vmatpush.bf16.msrb.mxu0 %v8036_v32  ;;  %8139 = vmatmul.msk.bf16.vlgmr.msra.gmra.mxu2 %vm716_vm0, %v8538_v8  ;;  %v7904_v32 = vor.u32 %v8190_v23, %v7901_v24  ;;  %v4565_v23 = vld [vmem:[%s14845_s3 + $0x58] sm:$0xff]  ;;  %v4580_v24 = vld [vmem:[%s14845_s3 + $0xd0] sm:$0xff] }
  0x51   :  { %892 = vmatpush.bf16.msrb.mxu1 %v8040_v36  ;;  %904 = vmatpush.bf16.msrb.mxu2 %v8116_v49  ;;  %v8056_v36 = vor.u32 %v8227_v33, %v8053_v34  ;;  %v7827_v49 = vld [vmem:[%s14843_s1 + $0xc8] sm:$0xf]  ;;  %v4560_v33 = vld [vmem:[%s14845_s3 + $0x30] sm:$0xff]  ;;  %v4561_v34 = vld [vmem:[%s14845_s3 + $0x38] sm:$0xff] }
  0x52   :  { %917 = vmatpush.bf16.msrb.mxu3 %v8120_v57  ;;  %v7836_v57 = vor.u32 %v8182_v55, %v7835_v54 }
  0x53   :  { %8140 = vmatmul.msk.bf16.vlgmr.msra.gmra.mxu3 %vm716_vm0, %v8538_v8 }
  0x54   :  { %880 = vmatpush.bf16.msrb.mxu0 %v7964_v47  ;;  %v7908_v47 = vor.u32 %v8200_v44, %v7907_v43  ;;  %v4575_v44 = vld [vmem:[%s14845_s3 + $0xa8] sm:$0xff] }
  0x55   :  { %893 = vmatpush.bf16.msrb.mxu1 %v7968_v50  ;;  %905 = vmatpush.bf16.msrb.mxu2 %v8044_v62  ;;  %v8181_v50 = vld [vmem:[%s14843_s1 + $0x10c] sm:$0xf0]  ;;  %v8163_v62 = vld [vmem:[%s14843_s1 + $0x7c] sm:$0xf0] }
  0x56   :  { %918 = vmatpush.bf16.msrb.mxu3 %v8048_v5  ;;  %v7828_v52 = vor.u32 %v8181_v50, %v7827_v49  ;;  %v7756_v0 = vor.u32 %v8163_v62, %v7755_v61  ;;  %v7764_v5 = vor.u32 %v8164_v3, %v7763_v2  ;;  %v4557_v49 = vld [vmem:[%s14845_s3 + $0x18] sm:$0xff]  ;;  %v4572_v50 = vld [vmem:[%s14845_s3 + $0x90] sm:$0xff] }
  0x58   :  { %881 = vmatpush.bf16.msrb.mxu0 %v7892_v60  ;;  %v7840_v60 = vor.u32 %v8173_v58, %v7837_v59  ;;  %v4554_v58 = vld [vmem:[%s14845_s3] sm:$0xff]  ;;  %v4555_v59 = vld [vmem:[%s14845_s3 + $0x8] sm:$0xff] }
  0x59   :  { %894 = vmatpush.bf16.msrb.mxu1 %v7896_v63  ;;  %906 = vmatpush.bf16.msrb.mxu2 %v7972_v13  ;;  %v8154_v63 = vld [vmem:[%s14843_s1 + $0x3c] sm:$0xf]  ;;  %v4842_v62 = vpack.c.bf16 %v4555_v59, %v4554_v58 }
  0x5a   :  { %919 = vmatpush.bf16.msrb.mxu3 %v7976_v21  ;;  %v7760_v4 = vor.u32 %v8154_v63, %v7757_v1  ;;  %v4585_v13 = vld [vmem:[%s14845_s3 + $0xf8] sm:$0xff]  ;;  %v4856_v21 = vpack.c.bf16 %v4583_v20, %v4582_v18  ;;  %v4571_v63 = vld [vmem:[%s14845_s3 + $0x88] sm:$0xff]  ;;  %v1386_v18 = vld [vmem:[%s14847_s4 + $0x2d0] sm:$0xff]  ;;  %v1530_v20 = vunpack.c.1.s8 %v9195_v17 }
  0x5b   :  { %v4857_v15 = vpack.c.bf16 %v4585_v13, %v4584_v12 }
  0x5c   :  { %882 = vmatpush.bf16.msrb.mxu0 %v7820_v9  ;;  %v4568_v9 = vld [vmem:[%s14845_s3 + $0x70] sm:$0xff] }
  0x5d   :  { %895 = vmatpush.bf16.msrb.mxu1 %v7824_v14  ;;  %907 = vmatpush.bf16.msrb.mxu2 %v7900_v26  ;;  %v4849_v14 = vpack.c.bf16 %v4569_v11, %v4568_v9  ;;  %v4581_v26 = vld [vmem:[%s14845_s3 + $0xd8] sm:$0xff] }
  0x5e   :  { %920 = vmatpush.bf16.msrb.mxu3 %v7904_v32  ;;  %v4649_v11 = vld [vmem:[%s14845_s3 + $0x2f8] sm:$0xff] }
  0x5f   :  { %v4889_v12 = vpack.c.bf16 %v4649_v11, %v4648_v7 }
  0x60   :  { %883 = vmatpush.bf16.msrb.mxu0 %v7748_v25  ;;  %v4847_v25 = vpack.c.bf16 %v4565_v23, %v4564_v22  ;;  %v9205_v22 = vld [vmem:[%s14847_s4 + $0x8] sm:$0xff] }
  0x61   :  { %896 = vmatpush.bf16.msrb.mxu1 %v7752_v27  ;;  %908 = vmatpush.bf16.msrb.mxu2 %v7828_v52  ;;  %v4855_v27 = vpack.c.bf16 %v4581_v26, %v4580_v24  ;;  %v4573_v52 = vld [vmem:[%s14845_s3 + $0x98] sm:$0xff]  ;;  %v1926_v26 = vunpack.c.3.s8 %v1386_v18 }
  0x62   :  { %921 = vmatpush.bf16.msrb.mxu3 %v7832_v56  ;;  %v4851_v54 = vpack.c.bf16 %v4573_v52, %v4572_v50 }
  0x63   :  { %8141 = vmatmul.msk.bf16.vlgmr.msrb.gmra.mxu0 %vm716_vm0, %v8538_v8 }
  0x64   :  { %930 = vmatpush.bf16.msra.mxu0 %v8124_v28  ;;  %8142 = vmatmul.msk.bf16.vlgmr.msrb.gmra.mxu1 %vm716_vm0, %v8538_v8  ;;  %v4562_v28 = vld [vmem:[%s14845_s3 + $0x40] sm:$0xff] }
  0x65   :  { %943 = vmatpush.bf16.msra.mxu1 %v8128_v29  ;;  %909 = vmatpush.bf16.msrb.mxu2 %v7756_v0  ;;  %v4563_v29 = vld [vmem:[%s14845_s3 + $0x48] sm:$0xff] }
  0x66   :  { %922 = vmatpush.bf16.msrb.mxu3 %v7760_v4  ;;  %v4846_v30 = vpack.c.bf16 %v4563_v29, %v4562_v28 }
  0x68   :  { %931 = vmatpush.bf16.msra.mxu0 %v8052_v35  ;;  %8143 = vmatmul.msk.bf16.vlgmr.msrb.gmra.mxu2 %vm716_vm0, %v8538_v8  ;;  %v4576_v35 = vld [vmem:[%s14845_s3 + $0xb0] sm:$0xff] }
  0x69   :  { %944 = vmatpush.bf16.msra.mxu1 %v8056_v36  ;;  %8255 = vmatpush.bf16.msra.mxu2 %v4849_v14  ;;  %v4845_v36 = vpack.c.bf16 %v4561_v34, %v4560_v33  ;;  %v4853_v38 = vpack.c.bf16 %v4577_v37, %v4576_v35  ;;  %v2394_v34 = vcvt.s32.f32 %v1530_v20  ;;  %v4646_v37 = vld [vmem:[%s14845_s3 + $0x2e0] sm:$0xff]  ;;  %v1548_v20 = vunpack.c.2.s8 %v9195_v17 }
  0x6a   :  { %8263 = vmatpush.bf16.msra.mxu3 %v4857_v15 }
  0x6b   :  { %8144 = vmatmul.msk.bf16.vlgmr.msrb.gmra.mxu3 %vm716_vm0, %v8538_v8 }
  0x6c   :  { %932 = vmatpush.bf16.msra.mxu0 %v7980_v41  ;;  %v4559_v41 = vld [vmem:[%s14845_s3 + $0x28] sm:$0xff] }
  0x6d   :  { %945 = vmatpush.bf16.msra.mxu1 %v7984_v42  ;;  %8256 = vmatpush.bf16.msra.mxu2 %v4848_v19  ;;  %v4574_v42 = vld [vmem:[%s14845_s3 + $0xa0] sm:$0xff]  ;;  %v4844_v43 = vpack.c.bf16 %v4559_v41, %v4558_v40 }
  0x6e   :  { %8264 = vmatpush.bf16.msra.mxu3 %v4856_v21  ;;  %v4852_v45 = vpack.c.bf16 %v4575_v44, %v4574_v42 }
  0x70   :  { %933 = vmatpush.bf16.msra.mxu0 %v7908_v47  ;;  %v681_v47 = vperm.slane %v9140_v39, 1 }
  0x71   :  { %946 = vmatpush.bf16.msra.mxu1 %v7912_v48  ;;  %8257 = vmatpush.bf16.msra.mxu2 %v4847_v25  ;;  %v4556_v48 = vld [vmem:[%s14845_s3 + $0x10] sm:$0xff] }
  0x72   :  { %8265 = vmatpush.bf16.msra.mxu3 %v4855_v27  ;;  %v4843_v51 = vpack.c.bf16 %v4557_v49, %v4556_v48 }
  0x74   :  { %934 = vmatpush.bf16.msra.mxu0 %v7836_v57 }
  0x75   :  { %947 = vmatpush.bf16.msra.mxu1 %v7840_v60  ;;  %8258 = vmatpush.bf16.msra.mxu2 %v4846_v30  ;;  %v4570_v60 = vld [vmem:[%s14845_s3 + $0x80] sm:$0xff] }
  0x76   :  { %v4850_v1 = vpack.c.bf16 %v4571_v63, %v4570_v60 }
  0x78   :  { %935 = vmatpush.bf16.msra.mxu0 %v7764_v5  ;;  %v4632_v5 = vld [vmem:[%s14845_s3 + $0x270] sm:$0xff] }
  0x79   :  { %948 = vmatpush.bf16.msra.mxu1 %v7768_v10  ;;  %8259 = vmatpush.bf16.msra.mxu2 %v4845_v36  ;;  %v4881_v10 = vpack.c.bf16 %v4633_v6, %v4632_v5 }
  0x7b   :  { %8145 = vmatmul.msk.bf16.vlgmr.msra.gmra.mxu0 %vm716_vm0, %v8538_v8 }
  0x7c   :  { %4986 = vmatpush.bf16.msrb.mxu0 %v4849_v14  ;;  %8146 = vmatmul.msk.bf16.vlgmr.msra.gmra.mxu1 %vm716_vm0, %v8538_v8  ;;  %v4578_v8 = vld [vmem:[%s14845_s3 + $0xc0] sm:$0xff] }
  0x7d   :  { %5115 = vmatpush.bf16.msrb.mxu1 %v4857_v15  ;;  %v4854_v32 = vpack.c.bf16 %v4579_v31, %v4578_v8  ;;  %8260 = vmatpush.bf16.msra.mxu2 %v4844_v43  ;;  %v1513_v8 = vunpack.c.0.s8 %v9205_v22  ;;  %v4630_v31 = vld [vmem:[%s14845_s3 + $0x260] sm:$0xff] }
  0x7f   :  { %8266 = vmatpush.bf16.msra.mxu3 %v4854_v32  ;;  %v2377_v52 = vcvt.s32.f32 %v1513_v8 }
  0x80   :  { %4987 = vmatpush.bf16.msrb.mxu0 %v4848_v19  ;;  %v1512_v19 = vunpack.c.0.s8 %v9195_v17 }
  0x81   :  { %5116 = vmatpush.bf16.msrb.mxu1 %v4856_v21  ;;  %8261 = vmatpush.bf16.msra.mxu2 %v4843_v51  ;;  %v1908_v21 = vunpack.c.2.s8 %v1386_v18  ;;  %v4601_v18 = vld [vmem:[%s14845_s3 + $0x178] sm:$0xff] }
  0x82   :  { %v2376_v29 = vcvt.s32.f32 %v1512_v19 }
  0x83   :  { %8267 = vmatpush.bf16.msra.mxu3 %v4853_v38  ;;  %v2772_v35 = vcvt.s32.f32 %v1908_v21  ;;  %v1566_v21 = vunpack.c.3.s8 %v9195_v17 }
  0x84   :  { %4988 = vmatpush.bf16.msrb.mxu0 %v4847_v25 }
  0x85   :  { %5117 = vmatpush.bf16.msrb.mxu1 %v4855_v27  ;;  %8262 = vmatpush.bf16.msra.mxu2 %v4842_v62  ;;  %v1387_v27 = vld [vmem:[%s14847_s4 + $0x2d8] sm:$0xff] }
  0x86   :  { %v1909_v42 = vunpack.c.2.s8 %v1387_v27  ;;  %v1927_v49 = vunpack.c.3.s8 %v1387_v27  ;;  %v1549_v27 = vunpack.c.2.s8 %v9205_v22 }
  0x87   :  { %8268 = vmatpush.bf16.msra.mxu3 %v4852_v45 }
  0x88   :  { %4989 = vmatpush.bf16.msrb.mxu0 %v4846_v30  ;;  %v1531_v30 = vunpack.c.1.s8 %v9205_v22  ;;  %v2773_v58 = vcvt.s32.f32 %v1909_v42 }
  0x89   :  { %5118 = vmatpush.bf16.msrb.mxu1 %v4854_v32  ;;  %5502 = vmatpush.bf16.msrb.mxu2 %v4881_v10  ;;  %v4631_v32 = vld [vmem:[%s14845_s3 + $0x268] sm:$0xff] }
  0x8b   :  { %8269 = vmatpush.bf16.msra.mxu3 %v4851_v54 }
  0x8c   :  { %4990 = vmatpush.bf16.msrb.mxu0 %v4845_v36  ;;  %v4880_v36 = vpack.c.bf16 %v4631_v32, %v4630_v31  ;;  %v2412_v32 = vcvt.s32.f32 %v1548_v20 }
  0x8d   :  { %5119 = vmatpush.bf16.msrb.mxu1 %v4853_v38  ;;  %v4647_v38 = vld [vmem:[%s14845_s3 + $0x2e8] sm:$0xff] }
  0x8e   :  { %5503 = vmatpush.bf16.msrb.mxu2 %v4880_v36  ;;  %v2413_v36 = vcvt.s32.f32 %v1549_v27 }
  0x8f   :  { %8270 = vmatpush.bf16.msra.mxu3 %v4850_v1 }
  0x90   :  { %4991 = vmatpush.bf16.msrb.mxu0 %v4844_v43  ;;  %v4888_v43 = vpack.c.bf16 %v4647_v38, %v4646_v37 }
  0x91   :  { %5120 = vmatpush.bf16.msrb.mxu1 %v4852_v45 }
  0x93   :  { %5631 = vmatpush.bf16.msrb.mxu3 %v4889_v12 }
  0x94   :  { %4992 = vmatpush.bf16.msrb.mxu0 %v4843_v51  ;;  %v2790_v51 = vcvt.s32.f32 %v1926_v26  ;;  %v4617_v26 = vld [vmem:[%s14845_s3 + $0x1f8] sm:$0xff] }
  0x95   :  { %5121 = vmatpush.bf16.msrb.mxu1 %v4851_v54 }
  0x97   :  { %5632 = vmatpush.bf16.msrb.mxu3 %v4888_v43 }
  0x98   :  { %v729_v53 = vpop.f32.mrf.mxu0  ;;  %4993 = vmatpush.bf16.msrb.mxu0 %v4842_v62 }
  0x99   :  { %v730_v55 = vadd.f32 %v729_v53, %v680_v46  ;;  %v742_v56 = vpop.f32.mrf.mxu1  ;;  %5122 = vmatpush.bf16.msrb.mxu1 %v4850_v1 }
  0x9a   :  { %v743_v57 = vadd.f32 %v742_v56, %v681_v47 }
  0x9b   :  { %v954_v61 = vsub.f32 0.0, %v730_v55  ;;  %v2395_v55 = vcvt.s32.f32 %v1531_v30 }
  0x9c   :  { %v955_v0 = vsub.f32 0.0, %v743_v57 }
  0x9d   :  { %v972_v2 = vmul.f32 1.442695, %v954_v61  ;;  %v2791_v61 = vcvt.s32.f32 %v1927_v49 }
  0x9e   :  { %v974_v3 = vmul.f32 1.442695, %v955_v0 }
  0x9f   :  { %8275 = vpow2.f32 %v972_v2 }
  0xa0   :  { %8277 = vpow2.f32 %v974_v3  ;;  %v731_v4 = vpop.f32.mrf.mxu0 }
  0xa1   :  { %v744_v9 = vpop.f32.mrf.mxu1 }
  0xa3   :  { %v9253_v19 = vpop.f32.mrf.mxu2 }
  0xa5   :  { %v8276_v13 = vpop.eup %8275 }
  0xa6   :  { %v8278_v14 = vpop.eup %8277  ;;  %v1008_v15 = vadd.f32 1.0, %v8276_v13  ;;  %v9269_v31 = vpop.f32.mrf.mxu3 }
  0xa7   :  { %v1009_v16 = vadd.f32 1.0, %v8278_v14  ;;  %v9240_v14 = vld [vmem:[%s14847_s4 + $0x360] sm:$0xff] }
  0xa8   :  { %8279 = vrcp.f32 %v1008_v15  ;;  %v1037_v40 = vand.u32 2147483648, %v1008_v15  ;;  %v1035_v45 = vand.u32 2147483647, %v1008_v15  ;;  %vm1031_vm3 = vweird.f32 %v1008_v15 }
  0xa9   :  { %8281 = vrcp.f32 %v1009_v16  ;;  %v1052_v46 = vand.u32 2147483648, %v1009_v16  ;;  %v1050_v48 = vand.u32 2147483647, %v1009_v16  ;;  %vm1046_vm5 = vweird.f32 %v1009_v16 }
  0xaa   :  { %v1038_v53 = vor.u32 1.1754944e-38, %v1037_v40  ;;  %vm1036_vm6 = vcmp.eq.f32.partialorder %v1035_v45, 8.507059e+37 }
  0xab   :  { %v1053_v57 = vor.u32 1.1754944e-38, %v1052_v46  ;;  %vm1051_vm8 = vcmp.eq.f32.partialorder %v1050_v48, 8.507059e+37 }
  0xae   :  { %v8280_v23 = vpop.eup %8279  ;;  %v770_v49 = vpop.f32.mrf.mxu3 }
  0xaf   :  { %v8282_v24 = vpop.eup %8281  ;;  %v1027_v25 = vmul.f32 %v8280_v23, %v1008_v15  ;;  %vm1032_vm1 = vweird.f32 %v8280_v23  ;;  %v9245_v15 = vld [vmem:[%s14847_s4 + $0x368] sm:$0xff] }
  0xb0   :  { %v1042_v28 = vmul.f32 %v8282_v24, %v1009_v16  ;;  %vm1047_vm2 = vweird.f32 %v8282_v24  ;;  %vm1033_vm4 = vmor %vm1031_vm3, %vm1032_vm1  ;;  %v4600_v16 = vld [vmem:[%s14845_s3 + $0x170] sm:$0xff]  ;;  %v1963_v17 = vunpack.c.1.s8 %v9245_v15 }
  0xb1   :  { %v1028_v33 = vsub.f32 1.0, %v1027_v25  ;;  %vm1048_vm7 = vmor %vm1046_vm5, %vm1047_vm2  ;;  %v4616_v25 = vld [vmem:[%s14845_s3 + $0x1f0] sm:$0xff]  ;;  %v4865_v8 = vpack.c.bf16 %v4601_v18, %v4600_v16  ;;  %v9323_v16 = vpop.f32.mrf.mxu1 }
  0xb2   :  { %v1043_v41 = vsub.f32 1.0, %v1042_v28  ;;  %v1567_v28 = vunpack.c.3.s8 %v9205_v22  ;;  %v4873_v30 = vpack.c.bf16 %v4617_v26, %v4616_v25  ;;  %v2827_v40 = vcvt.s32.f32 %v1963_v17 }
  0xb3   :  { %v1029_v44 = vmul.f32 %v8280_v23, %v1028_v33  ;;  %v2430_v33 = vcvt.s32.f32 %v1566_v21  ;;  %5244 = vmatpush.bf16.msra.mxu0 %v4865_v8 }
  0xb4   :  { %v1044_v47 = vmul.f32 %v8282_v24, %v1043_v41  ;;  %v2431_v37 = vcvt.s32.f32 %v1567_v28  ;;  %5373 = vmatpush.bf16.msra.mxu1 %v4873_v30  ;;  %v757_v41 = vpop.f32.mrf.mxu2 }
  0xb5   :  { %v1030_v50 = vadd.f32 %v8280_v23, %v1029_v44 }
  0xb6   :  { %v1045_v54 = vadd.f32 %v8282_v24, %v1044_v47 }
  0xb7   :  { %v1034_v56 = vsel %vm1033_vm4, %v8280_v23, %v1030_v50  ;;  %v1944_v23 = vunpack.c.0.s8 %v9240_v14 }
  0xb8   :  { %v1039_v59 = vsel %vm1036_vm6, %v1038_v53, %v1034_v56  ;;  %v1049_v60 = vsel %vm1048_vm7, %v8282_v24, %v1045_v54  ;;  %v1962_v24 = vunpack.c.1.s8 %v9240_v14 }
  0xb9   :  { %v9225_v62 = vperm.slane %v1039_v59, 0  ;;  %v1054_v63 = vsel %vm1051_vm8, %v1053_v57, %v1049_v60  ;;  %v4628_v59 = vld [vmem:[%s14845_s3 + $0x250] sm:$0xff]  ;;  %v4629_v60 = vld [vmem:[%s14845_s3 + $0x258] sm:$0xff] }
  0xba   :  { %v9227_v0 = vperm.slane %v1054_v63, 0  ;;  %v9301_v63 = vpop.f32.mrf.mxu0 }
  0xbb   :  { %v3258_v1 = vmul.f32 %v9225_v62, %v2376_v29  ;;  %v3276_v2 = vmul.f32 %v9225_v62, %v2394_v34  ;;  %v3654_v3 = vmul.f32 %v9225_v62, %v2772_v35  ;;  %v3672_v4 = vmul.f32 %v9225_v62, %v2790_v51 }
  0xbc   :  { %v3259_v5 = vmul.f32 %v9227_v0, %v2377_v52  ;;  %v3277_v6 = vmul.f32 %v9227_v0, %v2395_v55  ;;  %v3655_v7 = vmul.f32 %v9227_v0, %v2773_v58  ;;  %v3673_v9 = vmul.f32 %v9227_v0, %v2791_v61  ;;  %v9282_v52 = vld [vmem:[%s14847_s4 + $0x90] sm:$0xff]  ;;  %v9287_v55 = vld [vmem:[%s14847_s4 + $0x98] sm:$0xff] }
  0xbd   :  { %v4122_v10 = vpack.c.bf16 %v3276_v2, %v3258_v1  ;;  %v4320_v11 = vpack.c.bf16 %v3672_v4, %v3654_v3  ;;  %v1945_v29 = vunpack.c.0.s8 %v9245_v15  ;;  %v2808_v34 = vcvt.s32.f32 %v1944_v23  ;;  %v4644_v61 = vld [vmem:[%s14845_s3 + $0x2d0] sm:$0xff] }
  0xbe   :  { %v4123_v12 = vpack.c.bf16 %v3277_v6, %v3259_v5  ;;  %v4321_v13 = vpack.c.bf16 %v3673_v9, %v3655_v7  ;;  %v2826_v35 = vcvt.s32.f32 %v1962_v24  ;;  %v3294_v22 = vmul.f32 %v9225_v62, %v2412_v32  ;;  %v4645_v5 = vld [vmem:[%s14845_s3 + $0x2d8] sm:$0xff]  ;;  %v4598_v6 = vld [vmem:[%s14845_s3 + $0x160] sm:$0xff]  ;;  %v4599_v7 = vld [vmem:[%s14845_s3 + $0x168] sm:$0xff] }
  0xbf   :  { %4994 = vmatmul.bf16.vlgmr.msrb.gmra.mxu0 %v4122_v10  ;;  %5049 = vmatmul.bf16.vlgmr.msra.gmra.mxu2 %v4320_v11  ;;  %v2809_v38 = vcvt.s32.f32 %v1945_v29  ;;  %v3312_v42 = vmul.f32 %v9225_v62, %v2430_v33  ;;  %v3690_v43 = vmul.f32 %v9225_v62, %v2808_v34  ;;  %v3295_v45 = vmul.f32 %v9227_v0, %v2413_v36  ;;  %v796_v36 = vpop.f32.mrf.mxu1 }
  0xc0   :  { %5123 = vmatmul.bf16.vlgmr.msrb.gmra.mxu1 %v4123_v12  ;;  %5178 = vmatmul.bf16.vlgmr.msra.gmra.mxu3 %v4321_v13  ;;  %v3708_v44 = vmul.f32 %v9225_v62, %v2826_v35  ;;  %v3313_v46 = vmul.f32 %v9227_v0, %v2431_v37  ;;  %v3709_v48 = vmul.f32 %v9227_v0, %v2827_v40  ;;  %v1584_v56 = vunpack.c.0.s8 %v9282_v52  ;;  %v4614_v13 = vld [vmem:[%s14845_s3 + $0x1e0] sm:$0xff] }
  0xc1   :  { %v3691_v47 = vmul.f32 %v9227_v0, %v2809_v38  ;;  %v4140_v50 = vpack.c.bf16 %v3312_v42, %v3294_v22  ;;  %v1602_v57 = vunpack.c.1.s8 %v9282_v52  ;;  %v1980_v58 = vunpack.c.2.s8 %v9240_v14  ;;  %v9336_v22 = vld [vmem:[%s14847_s4 + $0x3f0] sm:$0xff]  ;;  %v9341_v42 = vld [vmem:[%s14847_s4 + $0x3f8] sm:$0xff] }
  0xc2   :  { %v4338_v51 = vpack.c.bf16 %v3708_v44, %v3690_v43  ;;  %v4141_v53 = vpack.c.bf16 %v3313_v46, %v3295_v45  ;;  %v1998_v1 = vunpack.c.3.s8 %v9240_v14  ;;  %v1585_v2 = vunpack.c.0.s8 %v9287_v55  ;;  %v4615_v14 = vld [vmem:[%s14845_s3 + $0x1e8] sm:$0xff]  ;;  %v783_v28 = vpop.f32.mrf.mxu0  ;;  %v9343_v43 = vpop.f32.mrf.mxu2 }
  0xc3   :  { %v4339_v54 = vpack.c.bf16 %v3709_v48, %v3691_v47  ;;  %v1603_v3 = vunpack.c.1.s8 %v9287_v55  ;;  %v4879_v4 = vpack.c.bf16 %v4629_v60, %v4628_v59  ;;  %v1981_v9 = vunpack.c.2.s8 %v9245_v15 }
  0xc4   :  { %v1999_v10 = vunpack.c.3.s8 %v9245_v15  ;;  %v4887_v11 = vpack.c.bf16 %v4645_v5, %v4644_v61  ;;  %v4864_v12 = vpack.c.bf16 %v4599_v7, %v4598_v6  ;;  %v4872_v18 = vpack.c.bf16 %v4615_v14, %v4614_v13  ;;  %v9368_v14 = vld [vmem:[%s14847_s4 + $0x120] sm:$0xff] }
  0xc5   :  { %5504 = vmatpush.bf16.msrb.mxu2 %v4879_v4  ;;  %v2448_v20 = vcvt.s32.f32 %v1584_v56  ;;  %v2466_v21 = vcvt.s32.f32 %v1602_v57  ;;  %v2844_v23 = vcvt.s32.f32 %v1980_v58  ;;  %v2862_v15 = vcvt.s32.f32 %v1998_v1 }
  0xc6   :  { %5633 = vmatpush.bf16.msrb.mxu3 %v4887_v11  ;;  %5245 = vmatpush.bf16.msra.mxu0 %v4864_v12  ;;  %v2449_v24 = vcvt.s32.f32 %v1585_v2  ;;  %v2467_v25 = vcvt.s32.f32 %v1603_v3  ;;  %v2845_v26 = vcvt.s32.f32 %v1981_v9  ;;  %v2863_v27 = vcvt.s32.f32 %v1999_v10 }
  0xc7   :  { %5374 = vmatpush.bf16.msra.mxu1 %v4872_v18  ;;  %v3330_v29 = vmul.f32 %v9225_v62, %v2448_v20  ;;  %v3348_v17 = vmul.f32 %v9225_v62, %v2466_v21  ;;  %v3726_v8 = vmul.f32 %v9225_v62, %v2844_v23  ;;  %v3744_v30 = vmul.f32 %v9225_v62, %v2862_v15  ;;  %v9375_v23 = vld [vmem:[%s14847_s4 + $0x128] sm:$0xff] }
  0xc8   :  { %v3331_v32 = vmul.f32 %v9227_v0, %v2449_v24  ;;  %v3349_v33 = vmul.f32 %v9227_v0, %v2467_v25  ;;  %v3727_v34 = vmul.f32 %v9227_v0, %v2845_v26  ;;  %v3745_v35 = vmul.f32 %v9227_v0, %v2863_v27  ;;  %v4596_v25 = vld [vmem:[%s14845_s3 + $0x150] sm:$0xff]  ;;  %v4597_v26 = vld [vmem:[%s14845_s3 + $0x158] sm:$0xff]  ;;  %v4626_v27 = vld [vmem:[%s14845_s3 + $0x240] sm:$0xff] }
  0xc9   :  { %v4158_v37 = vpack.c.bf16 %v3348_v17, %v3330_v29  ;;  %v4356_v38 = vpack.c.bf16 %v3744_v30, %v3726_v8  ;;  %v1620_v44 = vunpack.c.2.s8 %v9282_v52  ;;  %v1638_v45 = vunpack.c.3.s8 %v9282_v52  ;;  %v9370_v18 = vpop.f32.mrf.mxu1 }
  0xca   :  { %v4159_v40 = vpack.c.bf16 %v3349_v33, %v3331_v32  ;;  %v4357_v41 = vpack.c.bf16 %v3745_v35, %v3727_v34  ;;  %v2016_v46 = vunpack.c.0.s8 %v9336_v22  ;;  %v2034_v47 = vunpack.c.1.s8 %v9336_v22  ;;  %v9355_v1 = vpop.f32.mrf.mxu0  ;;  %v809_v2 = vpop.f32.mrf.mxu2  ;;  %14850 = vst [vmem:[#allocation2_spill] sm:$0xff] %v9370_v18  ;;  %v4627_v33 = vld [vmem:[%s14845_s3 + $0x248] sm:$0xff]  ;;  %v4612_v34 = vld [vmem:[%s14845_s3 + $0x1d0] sm:$0xff]  ;;  %v4613_v35 = vld [vmem:[%s14845_s3 + $0x1d8] sm:$0xff] }
  0xcb   :  { %v1621_v48 = vunpack.c.2.s8 %v9287_v55  ;;  %v1639_v49 = vunpack.c.3.s8 %v9287_v55  ;;  %v2502_v56 = vcvt.s32.f32 %v1638_v45  ;;  %v1656_v15 = vunpack.c.0.s8 %v9368_v14 }
  0xcc   :  { %v2880_v57 = vcvt.s32.f32 %v2016_v46  ;;  %v2898_v58 = vcvt.s32.f32 %v2034_v47  ;;  %v1674_v24 = vunpack.c.1.s8 %v9368_v14  ;;  %v2052_v17 = vunpack.c.2.s8 %v9336_v22 }
  0xcd   :  { %v2485_v59 = vcvt.s32.f32 %v1621_v48  ;;  %v2503_v52 = vcvt.s32.f32 %v1639_v49  ;;  %v3384_v55 = vmul.f32 %v9225_v62, %v2502_v56  ;;  %v2070_v8 = vunpack.c.3.s8 %v9336_v22  ;;  %v9412_v22 = vld [vmem:[%s14846_s2 + $0x8] sm:$0xff] }
  0xce   :  { %v3762_v4 = vmul.f32 %v9225_v62, %v2880_v57  ;;  %v3780_v5 = vmul.f32 %v9225_v62, %v2898_v58  ;;  %v1657_v30 = vunpack.c.0.s8 %v9375_v23  ;;  %v4863_v32 = vpack.c.bf16 %v4597_v26, %v4596_v25 }
  0xcf   :  { %4999 = vmatmul.bf16.gmra.mxu0 %v4140_v50  ;;  %5054 = vmatmul.bf16.gmra.mxu2 %v4338_v51  ;;  %v2017_v50 = vunpack.c.0.s8 %v9341_v42  ;;  %v2035_v51 = vunpack.c.1.s8 %v9341_v42  ;;  %v3367_v6 = vmul.f32 %v9227_v0, %v2485_v59  ;;  %v3385_v7 = vmul.f32 %v9227_v0, %v2503_v52 }
  0xd0   :  { %5128 = vmatmul.bf16.gmra.mxu1 %v4141_v53  ;;  %5183 = vmatmul.bf16.gmra.mxu3 %v4339_v54  ;;  %v9353_v53 = vpop.f32.mrf.mxu3  ;;  %v2484_v54 = vcvt.s32.f32 %v1620_v44  ;;  %v4374_v13 = vpack.c.bf16 %v3780_v5, %v3762_v4  ;;  %v1675_v36 = vunpack.c.1.s8 %v9375_v23  ;;  %v2520_v44 = vcvt.s32.f32 %v1656_v15 }
  0xd1   :  { %v2881_v60 = vcvt.s32.f32 %v2017_v50  ;;  %v2899_v61 = vcvt.s32.f32 %v2035_v51  ;;  %v4177_v20 = vpack.c.bf16 %v3385_v7, %v3367_v6  ;;  %5246 = vmatpush.bf16.msra.mxu0 %v4863_v32  ;;  %v2538_v45 = vcvt.s32.f32 %v1674_v24  ;;  %v848_v51 = vpop.f32.mrf.mxu1  ;;  %v9436_v24 = vld [vmem:[%s14847_s4 + $0x488] sm:$0xff] }
  0xd2   :  { %v3366_v3 = vmul.f32 %v9225_v62, %v2484_v54  ;;  %v835_v28 = vpop.f32.mrf.mxu0  ;;  %v4878_v46 = vpack.c.bf16 %v4627_v33, %v4626_v27  ;;  %v4871_v47 = vpack.c.bf16 %v4613_v35, %v4612_v34  ;;  %v2916_v48 = vcvt.s32.f32 %v2052_v17 }
  0xd3   :  { %v3763_v9 = vmul.f32 %v9227_v0, %v2881_v60  ;;  %v3781_v10 = vmul.f32 %v9227_v0, %v2899_v61  ;;  %v859_v29 = vpop.f32.mrf.mxu2  ;;  %v2521_v49 = vcvt.s32.f32 %v1657_v30  ;;  %v2539_v54 = vcvt.s32.f32 %v1675_v36 }
  0xd4   :  { %v4176_v12 = vpack.c.bf16 %v3384_v55, %v3366_v3  ;;  %5505 = vmatpush.bf16.msrb.mxu2 %v4878_v46  ;;  %5375 = vmatpush.bf16.msra.mxu1 %v4871_v47  ;;  %v690_v58 = vperm.slane %v9412_v22, 2  ;;  %v3402_v59 = vmul.f32 %v9225_v62, %v2520_v44  ;;  %v3420_v61 = vmul.f32 %v9225_v62, %v2538_v45 }
  0xd5   :  { %v4375_v21 = vpack.c.bf16 %v3781_v10, %v3763_v9  ;;  %v3798_v2 = vmul.f32 %v9225_v62, %v2916_v48  ;;  %v3403_v55 = vmul.f32 %v9227_v0, %v2521_v49  ;;  %v3421_v4 = vmul.f32 %v9227_v0, %v2539_v54  ;;  %v4594_v48 = vld [vmem:[%s14845_s3 + $0x140] sm:$0xff] }
  0xd6   :  { %v9416_v52 = vadd.f32 %v859_v29, %v690_v58  ;;  %v691_v7 = vperm.slane %v9412_v22, 3  ;;  %v4194_v10 = vpack.c.bf16 %v3420_v61, %v3402_v59  ;;  %v1692_v25 = vunpack.c.2.s8 %v9368_v14 }
  0xd7   :  { %v1710_v26 = vunpack.c.3.s8 %v9368_v14  ;;  %v1693_v29 = vunpack.c.2.s8 %v9375_v23  ;;  %v692_v17 = vperm.slane %v9412_v22, 4  ;;  %v2089_v30 = vunpack.c.0.s8 %v9436_v24 }
  0xd8   :  { %v822_v11 = vpop.f32.mrf.mxu3  ;;  %14851 = vst [vmem:[#allocation3_spill] sm:$0xff] %v9416_v52  ;;  %v2107_v32 = vunpack.c.1.s8 %v9436_v24  ;;  %v2556_v35 = vcvt.s32.f32 %v1692_v25  ;;  %v693_v14 = vperm.slane %v9412_v22, 5 }
  0xd9   :  { %v2953_v45 = vcvt.s32.f32 %v2089_v30  ;;  %v2125_v30 = vunpack.c.2.s8 %v9436_v24 }
  0xda   :  { %v2971_v46 = vcvt.s32.f32 %v2107_v32  ;;  %v3438_v51 = vmul.f32 %v9225_v62, %v2556_v35  ;;  %v2143_v32 = vunpack.c.3.s8 %v9436_v24 }
  0xdb   :  { %v861_v60 = vpop.f32.mrf.mxu2 }
  0xdc   :  { %v3835_v60 = vmul.f32 %v9227_v0, %v2953_v45  ;;  %v3853_v61 = vmul.f32 %v9227_v0, %v2971_v46  ;;  %v3007_v45 = vcvt.s32.f32 %v2143_v32  ;;  %v4640_v46 = vld [vmem:[%s14845_s3 + $0x2b0] sm:$0xff] }
  0xdf   :  { %5004 = vmatmul.bf16.gmra.mxu0 %v4158_v37  ;;  %5059 = vmatmul.bf16.gmra.mxu2 %v4356_v38  ;;  %v2053_v37 = vunpack.c.2.s8 %v9341_v42  ;;  %v2071_v38 = vunpack.c.3.s8 %v9341_v42  ;;  %v2934_v42 = vcvt.s32.f32 %v2070_v8  ;;  %v1711_v8 = vunpack.c.3.s8 %v9375_v23 }
  0xe0   :  { %5133 = vmatmul.bf16.gmra.mxu1 %v4159_v40  ;;  %5188 = vmatmul.bf16.gmra.mxu3 %v4357_v41  ;;  %v4642_v40 = vld [vmem:[%s14845_s3 + $0x2c0] sm:$0xff]  ;;  %v4643_v41 = vld [vmem:[%s14845_s3 + $0x2c8] sm:$0xff]  ;;  %v872_v9 = vpop.f32.mrf.mxu3  ;;  %v885_v15 = vpop.f32.mrf.mxu0 }
  0xe1   :  { %v4886_v50 = vpack.c.bf16 %v4643_v41, %v4642_v40  ;;  %v2917_v56 = vcvt.s32.f32 %v2053_v37  ;;  %v2935_v57 = vcvt.s32.f32 %v2071_v38  ;;  %v3816_v3 = vmul.f32 %v9225_v62, %v2934_v42  ;;  %v898_v36 = vpop.f32.mrf.mxu1  ;;  %v4595_v42 = vld [vmem:[%s14845_s3 + $0x148] sm:$0xff] }
  0xe2   :  { %v9447_v34 = vadd.f32 %v885_v15, %v692_v17  ;;  %v2574_v37 = vcvt.s32.f32 %v1710_v26  ;;  %v2557_v41 = vcvt.s32.f32 %v1693_v29  ;;  %v2575_v44 = vcvt.s32.f32 %v1711_v8 }
  0xe3   :  { %5634 = vmatpush.bf16.msrb.mxu3 %v4886_v50  ;;  %v3799_v5 = vmul.f32 %v9227_v0, %v2917_v56  ;;  %v3817_v6 = vmul.f32 %v9227_v0, %v2935_v57  ;;  %v4392_v11 = vpack.c.bf16 %v3816_v3, %v3798_v2  ;;  %v9450_v47 = vadd.f32 %v898_v36, %v693_v14 }
  0xe4   :  { %14853 = vst [vmem:[#allocation5_spill] sm:$0xff] %v9447_v34  ;;  %v4862_v49 = vpack.c.bf16 %v4595_v42, %v4594_v48  ;;  %v3456_v54 = vmul.f32 %v9225_v62, %v2574_v37  ;;  %v3439_v58 = vmul.f32 %v9227_v0, %v2557_v41  ;;  %v3457_v59 = vmul.f32 %v9227_v0, %v2575_v44 }
  0xe5   :  { %14854 = vst [vmem:[#allocation6_spill] sm:$0xff] %v9450_v47  ;;  %v694_v2 = vperm.slane %v9412_v22, 6  ;;  %v695_v29 = vperm.slane %v9412_v22, 7  ;;  %v4624_v22 = vld [vmem:[%s14845_s3 + $0x230] sm:$0xff]  ;;  %v2989_v44 = vcvt.s32.f32 %v2125_v30 }
  0xe6   :  { %5247 = vmatpush.bf16.msra.mxu0 %v4862_v49 }
  0xe8   :  { %v874_v33 = vpop.f32.mrf.mxu3  ;;  %v887_v23 = vpop.f32.mrf.mxu0 }
  0xe9   :  { %v900_v3 = vpop.f32.mrf.mxu1  ;;  %v4641_v23 = vld [vmem:[%s14845_s3 + $0x2b8] sm:$0xff] }
  0xea   :  { %v4885_v49 = vpack.c.bf16 %v4641_v23, %v4640_v46  ;;  %v4623_v46 = vld [vmem:[%s14845_s3 + $0x228] sm:$0xff]  ;;  %v4638_v23 = vld [vmem:[%s14845_s3 + $0x2a0] sm:$0xff] }
  0xeb   :  { %v911_v50 = vpop.f32.mrf.mxu2 }
  0xec   :  { %5635 = vmatpush.bf16.msrb.mxu3 %v4885_v49 }
  0xef   :  { %5009 = vmatmul.bf16.gmra.mxu0 %v4176_v12  ;;  %5064 = vmatmul.bf16.gmra.mxu2 %v4374_v13  ;;  %v9426_v12 = vadd.f32 %v872_v9, %v691_v7  ;;  %v4195_v13 = vpack.c.bf16 %v3421_v4, %v3403_v55  ;;  %v4212_v55 = vpack.c.bf16 %v3456_v54, %v3438_v51  ;;  %v9475_v9 = vld [vmem:[%s14847_s4 + $0x1b8] sm:$0xff] }
  0xf0   :  { %5138 = vmatmul.bf16.gmra.mxu1 %v4177_v20  ;;  %5193 = vmatmul.bf16.gmra.mxu3 %v4375_v21  ;;  %v4393_v20 = vpack.c.bf16 %v3817_v6, %v3799_v5  ;;  %v9431_v21 = vld [vmem:[%s14847_s4 + $0x480] sm:$0xff]  ;;  %v9470_v5 = vld [vmem:[%s14847_s4 + $0x1b0] sm:$0xff]  ;;  %v4213_v6 = vpack.c.bf16 %v3457_v59, %v3439_v58  ;;  %v4411_v7 = vpack.c.bf16 %v3853_v61, %v3835_v60  ;;  %v1729_v26 = vunpack.c.0.s8 %v9475_v9  ;;  %v924_v17 = vpop.f32.mrf.mxu3 }
  0xf1   :  { %14852 = vst [vmem:[#allocation4_spill] sm:$0xff] %v9426_v12  ;;  %v2088_v27 = vunpack.c.0.s8 %v9431_v21  ;;  %v2106_v28 = vunpack.c.1.s8 %v9431_v21  ;;  %v2124_v15 = vunpack.c.2.s8 %v9431_v21  ;;  %v2142_v25 = vunpack.c.3.s8 %v9431_v21 }
  0xf2   :  { %v1747_v8 = vunpack.c.1.s8 %v9475_v9  ;;  %v2593_v37 = vcvt.s32.f32 %v1729_v26  ;;  %v3871_v59 = vmul.f32 %v9227_v0, %v2989_v44  ;;  %v3889_v60 = vmul.f32 %v9227_v0, %v3007_v45 }
  0xf3   :  { %v2952_v38 = vcvt.s32.f32 %v2088_v27  ;;  %v2970_v40 = vcvt.s32.f32 %v2106_v28  ;;  %v4610_v27 = vld [vmem:[%s14845_s3 + $0x1c0] sm:$0xff]  ;;  %v4611_v28 = vld [vmem:[%s14845_s3 + $0x1c8] sm:$0xff]  ;;  %v2988_v14 = vcvt.s32.f32 %v2124_v15  ;;  %v3006_v36 = vcvt.s32.f32 %v2142_v25 }
  0xf4   :  { %v4870_v21 = vpack.c.bf16 %v4611_v28, %v4610_v27  ;;  %v2611_v24 = vcvt.s32.f32 %v1747_v8  ;;  %v1765_v26 = vunpack.c.2.s8 %v9475_v9  ;;  %v1783_v27 = vunpack.c.3.s8 %v9475_v9  ;;  %v4608_v9 = vld [vmem:[%s14845_s3 + $0x1b0] sm:$0xff] }
  0xf5   :  { %v3834_v56 = vmul.f32 %v9225_v62, %v2952_v38  ;;  %v3852_v57 = vmul.f32 %v9225_v62, %v2970_v40  ;;  %v9494_v38 = vadd.f32 %v924_v17, %v695_v29  ;;  %v4625_v40 = vld [vmem:[%s14845_s3 + $0x238] sm:$0xff]  ;;  %v3870_v51 = vmul.f32 %v9225_v62, %v2988_v14 }
  0xf6   :  { %5376 = vmatpush.bf16.msra.mxu1 %v4870_v21  ;;  %v4877_v42 = vpack.c.bf16 %v4625_v40, %v4624_v22  ;;  %v3888_v54 = vmul.f32 %v9225_v62, %v3006_v36  ;;  %v3493_v58 = vmul.f32 %v9227_v0, %v2611_v24  ;;  %v682_v17 = vperm.slane %v9140_v39, 2  ;;  %v4593_v21 = vld [vmem:[%s14845_s3 + $0x138] sm:$0xff]  ;;  %v4622_v22 = vld [vmem:[%s14845_s3 + $0x220] sm:$0xff] }
  0xf7   :  { %v4410_v4 = vpack.c.bf16 %v3852_v57, %v3834_v56  ;;  %14856 = vst [vmem:[#allocation8_spill] sm:$0xff] %v9494_v38  ;;  %v3475_v56 = vmul.f32 %v9227_v0, %v2593_v37  ;;  %v683_v8 = vperm.slane %v9140_v39, 3  ;;  %v2629_v14 = vcvt.s32.f32 %v1765_v26  ;;  %v4609_v39 = vld [vmem:[%s14845_s3 + $0x1b8] sm:$0xff] }
  0xf8   :  { %v9502_v41 = vpop.f32.mrf.mxu0  ;;  %v926_v57 = vpop.f32.mrf.mxu3  ;;  %5506 = vmatpush.bf16.msrb.mxu2 %v4877_v42  ;;  %v2647_v40 = vcvt.s32.f32 %v1783_v27  ;;  %v4869_v45 = vpack.c.bf16 %v4609_v39, %v4608_v9  ;;  %v756_v42 = vadd.f32 %v9253_v19, %v682_v17 }
  0xf9   :  { %14857 = vst [vmem:[#allocation9_spill] sm:$0xff] %v9502_v41  ;;  %v9518_v3 = vpop.f32.mrf.mxu1  ;;  %v769_v49 = vadd.f32 %v9269_v31, %v683_v8  ;;  %v4876_v57 = vpack.c.bf16 %v4623_v46, %v4622_v22 }
  0xfa   :  { %14858 = vst [vmem:[#allocation10_spill] sm:$0xff] %v9518_v3  ;;  %5377 = vmatpush.bf16.msra.mxu1 %v4869_v45  ;;  %v956_v31 = vsub.f32 0.0, %v756_v42 }
  0xfc   :  { %5507 = vmatpush.bf16.msrb.mxu2 %v4876_v57 }
  0xff   :  { %5014 = vmatmul.bf16.gmra.mxu0 %v4194_v10  ;;  %5069 = vmatmul.bf16.gmra.mxu2 %v4392_v11  ;;  %v9477_v10 = vadd.f32 %v911_v50, %v694_v2  ;;  %v1728_v11 = vunpack.c.0.s8 %v9470_v5  ;;  %v4428_v2 = vpack.c.bf16 %v3888_v54, %v3870_v51 }
 0x100   :  { %5143 = vmatmul.bf16.gmra.mxu1 %v4195_v13  ;;  %5198 = vmatmul.bf16.gmra.mxu3 %v4393_v20  ;;  %v1746_v13 = vunpack.c.1.s8 %v9470_v5  ;;  %v913_v20 = vpop.f32.mrf.mxu2 }
 0x101   :  { %14855 = vst [vmem:[#allocation7_spill] sm:$0xff] %v9477_v10  ;;  %v2592_v33 = vcvt.s32.f32 %v1728_v11  ;;  %v9528_v11 = vld [vmem:[%s14847_s4 + $0x518] sm:$0xff]  ;;  %v1782_v20 = vunpack.c.3.s8 %v9470_v5  ;;  %v952_v36 = vpop.f32.mrf.mxu1 }
 0x102   :  { %v2610_v35 = vcvt.s32.f32 %v1746_v13  ;;  %v1764_v13 = vunpack.c.2.s8 %v9470_v5  ;;  %v2161_v28 = vunpack.c.0.s8 %v9528_v11  ;;  %v2179_v29 = vunpack.c.1.s8 %v9528_v11  ;;  %v4592_v5 = vld [vmem:[%s14845_s3 + $0x130] sm:$0xff] }
 0x103   :  { %v3474_v48 = vmul.f32 %v9225_v62, %v2592_v33  ;;  %v2646_v32 = vcvt.s32.f32 %v1782_v20  ;;  %v4861_v37 = vpack.c.bf16 %v4593_v21, %v4592_v5  ;;  %v2215_v5 = vunpack.c.3.s8 %v9528_v11 }
 0x104   :  { %v3492_v50 = vmul.f32 %v9225_v62, %v2610_v35  ;;  %v2628_v30 = vcvt.s32.f32 %v1764_v13  ;;  %v3025_v24 = vcvt.s32.f32 %v2161_v28  ;;  %v3043_v44 = vcvt.s32.f32 %v2179_v29 }
 0x105   :  { %5248 = vmatpush.bf16.msra.mxu0 %v4861_v37  ;;  %v3528_v51 = vmul.f32 %v9225_v62, %v2646_v32  ;;  %v2197_v32 = vunpack.c.2.s8 %v9528_v11  ;;  %v3079_v22 = vcvt.s32.f32 %v2215_v5  ;;  %v4606_v11 = vld [vmem:[%s14845_s3 + $0x1a0] sm:$0xff] }
 0x106   :  { %v4230_v61 = vpack.c.bf16 %v3492_v50, %v3474_v48  ;;  %v4639_v48 = vld [vmem:[%s14845_s3 + $0x2a8] sm:$0xff]  ;;  %v3510_v50 = vmul.f32 %v9225_v62, %v2628_v30  ;;  %v3925_v19 = vmul.f32 %v9227_v0, %v3043_v44 }
 0x107   :  { %v3061_v39 = vcvt.s32.f32 %v2197_v32 }
 0x10f   :  { %5019 = vmatmul.bf16.gmra.mxu0 %v4212_v55  ;;  %5074 = vmatmul.bf16.gmra.mxu2 %v4410_v4  ;;  %v939_v55 = vpop.f32.mrf.mxu0  ;;  %v4231_v4 = vpack.c.bf16 %v3493_v58, %v3475_v56  ;;  %v4884_v58 = vpack.c.bf16 %v4639_v48, %v4638_v23 }
 0x110   :  { %5148 = vmatmul.bf16.gmra.mxu1 %v4213_v6  ;;  %5203 = vmatmul.bf16.gmra.mxu3 %v4411_v7  ;;  %v4429_v6 = vpack.c.bf16 %v3889_v60, %v3871_v59  ;;  %v9523_v7 = vld [vmem:[%s14847_s4 + $0x510] sm:$0xff]  ;;  %v3511_v59 = vmul.f32 %v9227_v0, %v2629_v14  ;;  %v3529_v60 = vmul.f32 %v9227_v0, %v2647_v40  ;;  %v4590_v14 = vld [vmem:[%s14845_s3 + $0x120] sm:$0xff]  ;;  %v4607_v40 = vld [vmem:[%s14845_s3 + $0x1a8] sm:$0xff] }
 0x111   :  { %v2160_v15 = vunpack.c.0.s8 %v9523_v7  ;;  %v2178_v25 = vunpack.c.1.s8 %v9523_v7  ;;  %5636 = vmatpush.bf16.msrb.mxu3 %v4884_v58  ;;  %v4248_v55 = vpack.c.bf16 %v3528_v51, %v3510_v50  ;;  %v2196_v29 = vunpack.c.2.s8 %v9523_v7  ;;  %v4620_v58 = vld [vmem:[%s14845_s3 + $0x210] sm:$0xff] }
 0x112   :  { %v4249_v13 = vpack.c.bf16 %v3529_v60, %v3511_v59  ;;  %v2214_v17 = vunpack.c.3.s8 %v9523_v7  ;;  %v4591_v7 = vld [vmem:[%s14845_s3 + $0x128] sm:$0xff]  ;;  %v4868_v48 = vpack.c.bf16 %v4607_v40, %v4606_v11  ;;  %v3943_v51 = vmul.f32 %v9227_v0, %v3061_v39  ;;  %v4621_v59 = vld [vmem:[%s14845_s3 + $0x218] sm:$0xff] }
 0x113   :  { %v3024_v33 = vcvt.s32.f32 %v2160_v15  ;;  %v3042_v35 = vcvt.s32.f32 %v2178_v25  ;;  %v9582_v15 = vld [vmem:[%s14847_s4 + $0x248] sm:$0xff]  ;;  %v976_v25 = vmul.f32 1.442695, %v956_v31  ;;  %v4860_v44 = vpack.c.bf16 %v4591_v7, %v4590_v14 }
 0x114   :  { %v1801_v8 = vunpack.c.0.s8 %v9582_v15  ;;  %v1819_v30 = vunpack.c.1.s8 %v9582_v15  ;;  %5378 = vmatpush.bf16.msra.mxu1 %v4868_v48  ;;  %v4875_v31 = vpack.c.bf16 %v4621_v59, %v4620_v58 }
 0x115   :  { %v3906_v54 = vmul.f32 %v9225_v62, %v3024_v33  ;;  %v3924_v56 = vmul.f32 %v9225_v62, %v3042_v35  ;;  %8283 = vpow2.f32 %v976_v25  ;;  %v3060_v33 = vcvt.s32.f32 %v2196_v29  ;;  %5249 = vmatpush.bf16.msra.mxu0 %v4860_v44  ;;  %v4636_v25 = vld [vmem:[%s14845_s3 + $0x290] sm:$0xff] }
 0x116   :  { %v3078_v35 = vcvt.s32.f32 %v2214_v17  ;;  %v2665_v36 = vcvt.s32.f32 %v1801_v8  ;;  %v2683_v37 = vcvt.s32.f32 %v1819_v30  ;;  %v8347_v17 = vld [vmem:[%s14846_s2] sm:$0xff]  ;;  %5508 = vmatpush.bf16.msrb.mxu2 %v4875_v31 }
 0x117   :  { %v3942_v46 = vmul.f32 %v9225_v62, %v3060_v33  ;;  %v684_v8 = vperm.slane %v8347_v17, 4 }
 0x118   :  { %v3960_v23 = vmul.f32 %v9225_v62, %v3078_v35  ;;  %v3565_v50 = vmul.f32 %v9227_v0, %v2683_v37  ;;  %v1855_v35 = vunpack.c.3.s8 %v9582_v15 }
 0x119   :  { %v782_v37 = vadd.f32 %v9301_v63, %v684_v8  ;;  %v4589_v63 = vld [vmem:[%s14845_s3 + $0x118] sm:$0xff] }
 0x11b   :  { %v8284_v42 = vpop.eup %8283  ;;  %v958_v58 = vsub.f32 0.0, %v782_v37  ;;  %v4586_v37 = vld [vmem:[%s14845_s3 + $0x100] sm:$0xff] }
 0x11f   :  { %5024 = vmatmul.bf16.gmra.mxu0 %v4230_v61  ;;  %5079 = vmatmul.bf16.gmra.mxu2 %v4428_v2  ;;  %v3907_v61 = vmul.f32 %v9227_v0, %v3025_v24  ;;  %v957_v2 = vsub.f32 0.0, %v769_v49  ;;  %v3547_v49 = vmul.f32 %v9227_v0, %v2665_v36 }
 0x120   :  { %5153 = vmatmul.bf16.gmra.mxu1 %v4231_v4  ;;  %5208 = vmatmul.bf16.gmra.mxu3 %v4429_v6  ;;  %v4446_v4 = vpack.c.bf16 %v3924_v56, %v3906_v54  ;;  %v9577_v6 = vld [vmem:[%s14847_s4 + $0x240] sm:$0xff]  ;;  %v3961_v54 = vmul.f32 %v9227_v0, %v3079_v22 }
 0x121   :  { %v4447_v20 = vpack.c.bf16 %v3925_v19, %v3907_v61  ;;  %v1800_v26 = vunpack.c.0.s8 %v9577_v6  ;;  %v978_v27 = vmul.f32 1.442695, %v957_v2  ;;  %v1818_v28 = vunpack.c.1.s8 %v9577_v6 }
 0x122   :  { %v4464_v19 = vpack.c.bf16 %v3960_v23, %v3942_v46  ;;  %v9618_v2 = vadd.f32 1.0, %v8284_v42  ;;  %v1836_v30 = vunpack.c.2.s8 %v9577_v6  ;;  %v1854_v32 = vunpack.c.3.s8 %v9577_v6 }
 0x123   :  { %v2664_v21 = vcvt.s32.f32 %v1800_v26  ;;  %8285 = vpow2.f32 %v978_v27  ;;  %v2682_v9 = vcvt.s32.f32 %v1818_v28  ;;  %v4637_v26 = vld [vmem:[%s14845_s3 + $0x298] sm:$0xff]  ;;  %v9638_v28 = vld [vmem:[%s14847_s4 + $0x5a8] sm:$0xff]  ;;  %v685_v6 = vperm.slane %v8347_v17, 5 }
 0x124   :  { %v4883_v29 = vpack.c.bf16 %v4637_v26, %v4636_v25  ;;  %8287 = vrcp.f32 %v9618_v2  ;;  %v2233_v14 = vunpack.c.0.s8 %v9638_v28  ;;  %v2251_v7 = vunpack.c.1.s8 %v9638_v28 }
 0x125   :  { %v3546_v24 = vmul.f32 %v9225_v62, %v2664_v21  ;;  %v3564_v45 = vmul.f32 %v9225_v62, %v2682_v9  ;;  %v1837_v9 = vunpack.c.2.s8 %v9582_v15  ;;  %v2700_v11 = vcvt.s32.f32 %v1836_v30 }
 0x126   :  { %5637 = vmatpush.bf16.msrb.mxu3 %v4883_v29  ;;  %v2719_v23 = vcvt.s32.f32 %v1855_v35  ;;  %v3097_v48 = vcvt.s32.f32 %v2233_v14  ;;  %v3115_v42 = vcvt.s32.f32 %v2251_v7  ;;  %v980_v14 = vmul.f32 1.442695, %v958_v58 }
 0x127   :  { %v4266_v61 = vpack.c.bf16 %v3564_v45, %v3546_v24  ;;  %v2718_v24 = vcvt.s32.f32 %v1854_v32  ;;  %v2701_v46 = vcvt.s32.f32 %v1837_v9  ;;  %vm1061_vm9 = vweird.f32 %v9618_v2 }
 0x128   :  { %v3601_v25 = vmul.f32 %v9227_v0, %v2719_v23  ;;  %v3979_v26 = vmul.f32 %v9227_v0, %v3097_v48  ;;  %v3997_v29 = vmul.f32 %v9227_v0, %v3115_v42  ;;  %v8348_v23 = vld [vmem:[%s14847_s4 + $0x2d0] sm:$0xff] }
 0x129   :  { %v8286_v56 = vpop.eup %8285  ;;  %v1872_v48 = vunpack.c.0.s8 %v8348_v23 }
 0x12a   :  { %v9633_v27 = vadd.f32 1.0, %v8286_v56  ;;  %v4605_v56 = vld [vmem:[%s14845_s3 + $0x198] sm:$0xff] }
 0x12c   :  { %8289 = vrcp.f32 %v9633_v27  ;;  %vm1076_vm11 = vweird.f32 %v9633_v27 }
 0x12d   :  { %8291 = vpow2.f32 %v980_v14  ;;  %v4619_v14 = vld [vmem:[%s14845_s3 + $0x208] sm:$0xff] }
 0x12f   :  { %5029 = vmatmul.bf16.gmra.mxu0 %v4248_v55  ;;  %5084 = vmatmul.bf16.gmra.mxu2 %v4446_v4  ;;  %v4267_v4 = vpack.c.bf16 %v3565_v50, %v3547_v49  ;;  %v4588_v49 = vld [vmem:[%s14845_s3 + $0x110] sm:$0xff] }
 0x130   :  { %5158 = vmatmul.bf16.gmra.mxu1 %v4249_v13  ;;  %5213 = vmatmul.bf16.gmra.mxu3 %v4447_v20  ;;  %v4465_v13 = vpack.c.bf16 %v3961_v54, %v3943_v51  ;;  %v9625_v20 = vld [vmem:[%s14847_s4 + $0x5a0] sm:$0xff]  ;;  %v4604_v50 = vld [vmem:[%s14845_s3 + $0x190] sm:$0xff]  ;;  %v795_v51 = vadd.f32 %v9323_v16, %v685_v6  ;;  %v4859_v54 = vpack.c.bf16 %v4589_v63, %v4588_v49  ;;  %v1890_v49 = vunpack.c.1.s8 %v8348_v23 }
 0x131   :  { %v2232_v5 = vunpack.c.0.s8 %v9625_v20  ;;  %v2250_v21 = vunpack.c.1.s8 %v9625_v20  ;;  %v4867_v59 = vpack.c.bf16 %v4605_v56, %v4604_v50  ;;  %v2268_v63 = vunpack.c.2.s8 %v9625_v20 }
 0x132   :  { %5250 = vmatpush.bf16.msra.mxu0 %v4859_v54  ;;  %v959_v17 = vsub.f32 0.0, %v795_v51  ;;  %v2286_v50 = vunpack.c.3.s8 %v9625_v20  ;;  %v8349_v51 = vld [vmem:[%s14847_s4 + $0x2d8] sm:$0xff]  ;;  %v1067_v20 = vand.u32 2147483648, %v9618_v2 }
 0x133   :  { %v3096_v44 = vcvt.s32.f32 %v2232_v5  ;;  %v3114_v45 = vcvt.s32.f32 %v2250_v21  ;;  %5379 = vmatpush.bf16.msra.mxu1 %v4867_v59  ;;  %v1873_v54 = vunpack.c.0.s8 %v8349_v51  ;;  %v1891_v58 = vunpack.c.1.s8 %v8349_v51 }
 0x134   :  { %v2269_v59 = vunpack.c.2.s8 %v9638_v28 }
 0x135   :  { %v3978_v31 = vmul.f32 %v9225_v62, %v3096_v44  ;;  %v4603_v44 = vld [vmem:[%s14845_s3 + $0x188] sm:$0xff] }
 0x13c   :  { %v4995_v57 = vpop.f32.mrf.mxu0 }
 0x13d   :  { %v5124_v60 = vpop.f32.mrf.mxu1 }
 0x13e   :  { %v9620_v55 = vadd.f32 %v5124_v60, %v4995_v57  ;;  %v9671_v57 = vpop.eup %8287 }
 0x13f   :  { %5034 = vmatmul.bf16.gmra.mxu0 %v4266_v61  ;;  %5089 = vmatmul.bf16.gmra.mxu2 %v4464_v19  ;;  %v9673_v60 = vpop.eup %8289  ;;  %v3582_v61 = vmul.f32 %v9225_v62, %v2700_v11  ;;  %v3600_v19 = vmul.f32 %v9225_v62, %v2718_v24  ;;  %v1057_v30 = vmul.f32 %v9671_v57, %v9618_v2  ;;  %v4602_v11 = vld [vmem:[%s14845_s3 + $0x180] sm:$0xff]  ;;  %vm1062_vm10 = vweird.f32 %v9671_v57 }
 0x140   :  { %5163 = vmatmul.bf16.gmra.mxu1 %v4267_v4  ;;  %5218 = vmatmul.bf16.gmra.mxu3 %v4465_v13  ;;  %v3996_v4 = vmul.f32 %v9225_v62, %v3114_v45  ;;  %v3583_v13 = vmul.f32 %v9227_v0, %v2701_v46  ;;  %v1072_v32 = vmul.f32 %v9673_v60, %v9633_v27  ;;  %vm1077_vm12 = vweird.f32 %v9673_v60  ;;  %vm9745_vm13 = vmor %vm1061_vm9, %vm1062_vm10 }
 0x141   :  { %v1058_v45 = vsub.f32 1.0, %v1057_v30  ;;  %v4866_v42 = vpack.c.bf16 %v4603_v44, %v4602_v11  ;;  %v2737_v30 = vcvt.s32.f32 %v1873_v54  ;;  %v8292_v11 = vpop.eup %8291  ;;  %v1082_v44 = vand.u32 2147483648, %v9633_v27  ;;  %vm9757_vm14 = vmor %vm1076_vm11, %vm1077_vm12 }
 0x142   :  { %v5050_v33 = vpop.f32.mrf.mxu2  ;;  %v4482_v35 = vpack.c.bf16 %v3996_v4, %v3978_v31  ;;  %v4285_v6 = vpack.c.bf16 %v3601_v25, %v3583_v13  ;;  %v1073_v46 = vsub.f32 1.0, %v1072_v32 }
 0x143   :  { %v5179_v36 = vpop.f32.mrf.mxu3  ;;  %5380 = vmatpush.bf16.msra.mxu1 %v4866_v42  ;;  %v1059_v4 = vmul.f32 %v9671_v57, %v1058_v45  ;;  %v3619_v51 = vmul.f32 %v9227_v0, %v2737_v30 }
 0x144   :  { %v9654_v39 = vadd.f32 %v5179_v36, %v5050_v33  ;;  %v4997_v22 = vpop.f32.mrf.mxu0  ;;  %v4284_v33 = vpack.c.bf16 %v3600_v19, %v3582_v61  ;;  %v4483_v36 = vpack.c.bf16 %v3997_v29, %v3979_v26  ;;  %v2287_v61 = vunpack.c.3.s8 %v9638_v28 }
 0x145   :  { %v5126_v40 = vpop.f32.mrf.mxu1  ;;  %v1065_v19 = vand.u32 2147483647, %v9618_v2  ;;  %v2736_v26 = vcvt.s32.f32 %v1872_v48  ;;  %v3132_v28 = vcvt.s32.f32 %v2268_v63 }
 0x146   :  { %v9656_v15 = vadd.f32 %v5126_v40, %v4997_v22  ;;  %v4587_v22 = vld [vmem:[%s14845_s3 + $0x108] sm:$0xff]  ;;  %v982_v40 = vmul.f32 1.442695, %v959_v17  ;;  %v2754_v17 = vcvt.s32.f32 %v1890_v49 }
 0x147   :  { %v4858_v24 = vpack.c.bf16 %v4587_v22, %v4586_v37  ;;  %v4635_v22 = vld [vmem:[%s14845_s3 + $0x288] sm:$0xff]  ;;  %v3618_v48 = vmul.f32 %v9225_v62, %v2736_v26  ;;  %v4014_v49 = vmul.f32 %v9225_v62, %v3132_v28  ;;  %vm9765_vm15 = vcmp.eq.f32.partialorder %v1065_v19, 8.507059e+37 }
 0x148   :  { %8293 = vpow2.f32 %v982_v40  ;;  %v1060_v40 = vadd.f32 %v9671_v57, %v1059_v4  ;;  %v3636_v42 = vmul.f32 %v9225_v62, %v2754_v17  ;;  %v1083_v4 = vor.u32 1.1754944e-38, %v1082_v44 }
 0x149   :  { %5251 = vmatpush.bf16.msra.mxu0 %v4858_v24 }
 0x14a   :  { %v5052_v16 = vpop.f32.mrf.mxu2  ;;  %v1064_v26 = vsel %vm9745_vm13, %v9671_v57, %v1060_v40  ;;  %v4302_v17 = vpack.c.bf16 %v3636_v42, %v3618_v48  ;;  %v9793_v57 = vld [vmem:[%s14847_s4 + $0x638] sm:$0xff] }
 0x14b   :  { %v5181_v8 = vpop.f32.mrf.mxu3  ;;  %v2323_v44 = vunpack.c.1.s8 %v9793_v57 }
 0x14c   :  { %v9687_v5 = vadd.f32 %v5181_v8, %v5052_v16  ;;  %v5000_v21 = vpop.f32.mrf.mxu0  ;;  %v1074_v16 = vmul.f32 %v9673_v60, %v1073_v46  ;;  %v3150_v8 = vcvt.s32.f32 %v2286_v50 }
 0x14d   :  { %v5129_v9 = vpop.f32.mrf.mxu1 }
 0x14e   :  { %v9689_v7 = vadd.f32 %v5129_v9, %v5000_v21  ;;  %v2755_v21 = vcvt.s32.f32 %v1891_v58  ;;  %v3133_v9 = vcvt.s32.f32 %v2269_v59  ;;  %v1075_v24 = vadd.f32 %v9673_v60, %v1074_v16  ;;  %v8294_v46 = vpop.eup %8293 }
 0x14f   :  { %5039 = vmatmul.bf16.gmra.mxu0 %v4284_v33  ;;  %5094 = vmatmul.bf16.gmra.mxu2 %v4482_v35  ;;  %v3151_v33 = vcvt.s32.f32 %v2287_v61  ;;  %v4618_v35 = vld [vmem:[%s14845_s3 + $0x200] sm:$0xff]  ;;  %v4032_v63 = vmul.f32 %v9225_v62, %v3150_v8  ;;  %v9786_v8 = vadd.f32 1.0, %v8292_v11 }
 0x150   :  { %5168 = vmatmul.bf16.gmra.mxu1 %v4285_v6  ;;  %5223 = vmatmul.bf16.gmra.mxu3 %v4483_v36  ;;  %v4634_v6 = vld [vmem:[%s14845_s3 + $0x280] sm:$0xff]  ;;  %v1080_v36 = vand.u32 2147483647, %v9633_v27  ;;  %v4874_v37 = vpack.c.bf16 %v4619_v14, %v4618_v35  ;;  %v3637_v54 = vmul.f32 %v9227_v0, %v2755_v21  ;;  %v1068_v27 = vor.u32 1.1754944e-38, %v1067_v20  ;;  %v9784_v20 = vld [vmem:[%s14847_s4 + $0x630] sm:$0xff]  ;;  %v9805_v35 = vld [vmem:[%s14847_s4 + $0x18] sm:$0xff] }
 0x151   :  { %v4882_v45 = vpack.c.bf16 %v4635_v22, %v4634_v6  ;;  %v4033_v58 = vmul.f32 %v9227_v0, %v3151_v33  ;;  %v1079_v19 = vsel %vm9757_vm14, %v9673_v60, %v1075_v24  ;;  %v4500_v28 = vpack.c.bf16 %v4032_v63, %v4014_v49  ;;  %v9798_v60 = vld [vmem:[%s14847_s4 + $0x10] sm:$0xff] }
 0x152   :  { %v5055_v56 = vpop.f32.mrf.mxu2  ;;  %5509 = vmatpush.bf16.msrb.mxu2 %v4874_v37  ;;  %vm9769_vm0 = vcmp.eq.f32.partialorder %v1080_v36, 8.507059e+37  ;;  %v4303_v21 = vpack.c.bf16 %v3637_v54, %v3619_v51  ;;  %v9800_v33 = vadd.f32 1.0, %v8294_v46  ;;  %v1069_v14 = vsel %vm9765_vm15, %v1068_v27, %v1064_v26 }
 0x153   :  { %v5184_v31 = vpop.f32.mrf.mxu3  ;;  %5638 = vmatpush.bf16.msrb.mxu3 %v4882_v45  ;;  %v1084_v6 = vsel %vm9769_vm0, %v1083_v4, %v1079_v19  ;;  %v2304_v36 = vunpack.c.0.s8 %v9784_v20  ;;  %v2322_v37 = vunpack.c.1.s8 %v9784_v20  ;;  %v2305_v22 = vunpack.c.0.s8 %v9793_v57 }
 0x154   :  { %v9719_v13 = vadd.f32 %v5184_v31, %v5055_v56  ;;  %v5002_v25 = vpop.f32.mrf.mxu0  ;;  %v4015_v56 = vmul.f32 %v9227_v0, %v3133_v9  ;;  %v1514_v11 = vunpack.c.0.s8 %v9798_v60  ;;  %v1532_v40 = vunpack.c.1.s8 %v9798_v60 }
 0x155   :  { %v5131_v29 = vpop.f32.mrf.mxu1  ;;  %8295 = vrcp.f32 %v9786_v8  ;;  %v1515_v45 = vunpack.c.0.s8 %v9805_v35  ;;  %v1533_v46 = vunpack.c.1.s8 %v9805_v35  ;;  %v9821_v48 = vperm.slane %v1069_v14, 0 }
 0x156   :  { %v9721_v32 = vadd.f32 %v5131_v29, %v5002_v25  ;;  %v4501_v9 = vpack.c.bf16 %v4033_v58, %v4015_v56  ;;  %8297 = vrcp.f32 %v9800_v33  ;;  %v9823_v42 = vperm.slane %v1084_v6, 0 }
 0x157   :  { %v3168_v50 = vcvt.s32.f32 %v2304_v36  ;;  %v3186_v51 = vcvt.s32.f32 %v2322_v37  ;;  %v3169_v54 = vcvt.s32.f32 %v2305_v22  ;;  %v2378_v56 = vcvt.s32.f32 %v1514_v11 }
 0x158   :  { %v2396_v58 = vcvt.s32.f32 %v1532_v40  ;;  %v2379_v27 = vcvt.s32.f32 %v1515_v45  ;;  %v2397_v31 = vcvt.s32.f32 %v1533_v46  ;;  %vm1091_vm1 = vweird.f32 %v9786_v8 }
 0x159   :  { %v4050_v26 = vmul.f32 %v9225_v62, %v3168_v50  ;;  %v4068_v19 = vmul.f32 %v9225_v62, %v3186_v51  ;;  %v2340_v51 = vunpack.c.2.s8 %v9784_v20  ;;  %vm1106_vm3 = vweird.f32 %v9800_v33 }
 0x15a   :  { %v5057_v2 = vpop.f32.mrf.mxu2  ;;  %v3261_v14 = vmul.f32 %v9823_v42, %v2379_v27  ;;  %v3279_v6 = vmul.f32 %v9823_v42, %v2397_v31  ;;  %v1568_v27 = vunpack.c.3.s8 %v9798_v60  ;;  %v1095_v31 = vand.u32 2147483647, %v9786_v8 }
 0x15b   :  { %v5186_v61 = vpop.f32.mrf.mxu3  ;;  %v9829_v4 = vpop.eup %8295 }
 0x15c   :  { %v9773_v16 = vadd.f32 %v5186_v61, %v5057_v2  ;;  %v5005_v25 = vpop.f32.mrf.mxu0  ;;  %v3187_v61 = vcvt.s32.f32 %v2323_v44  ;;  %v1087_v36 = vmul.f32 %v9829_v4, %v9786_v8  ;;  %v4518_v44 = vpack.c.bf16 %v4068_v19, %v4050_v26 }
 0x15d   :  { %v5134_v29 = vpop.f32.mrf.mxu1  ;;  %v1097_v26 = vand.u32 2147483648, %v9786_v8  ;;  %vm1092_vm2 = vweird.f32 %v9829_v4  ;;  %vm9921_vm7 = vcmp.eq.f32.partialorder %v1095_v31, 8.507059e+37 }
 0x15e   :  { %v9788_v30 = vadd.f32 %v5134_v29, %v5005_v25  ;;  %v9831_v25 = vpop.eup %8297  ;;  %v3260_v29 = vmul.f32 %v9821_v48, %v2378_v56  ;;  %v1088_v50 = vsub.f32 1.0, %v1087_v36  ;;  %v2341_v56 = vunpack.c.2.s8 %v9793_v57  ;;  %vm9902_vm5 = vmor %vm1091_vm1, %vm1092_vm2 }
 0x15f   :  { %5044 = vmatmul.bf16.gmra.mxu0 %v4302_v17  ;;  %5099 = vmatmul.bf16.gmra.mxu2 %v4500_v28  ;;  %v3278_v17 = vmul.f32 %v9821_v48, %v2396_v58  ;;  %v1102_v22 = vmul.f32 %v9831_v25, %v9800_v33  ;;  %v2359_v58 = vunpack.c.3.s8 %v9793_v57  ;;  %v3204_v36 = vcvt.s32.f32 %v2340_v51  ;;  %v4681_v51 = vld [vmem:[%s14845_s3 + $0x3f8] sm:$0xff] }
 0x160   :  { %5173 = vmatmul.bf16.gmra.mxu1 %v4303_v21  ;;  %5228 = vmatmul.bf16.gmra.mxu3 %v4501_v9  ;;  %v4051_v21 = vmul.f32 %v9227_v0, %v3169_v54  ;;  %v4069_v9 = vmul.f32 %v9227_v0, %v3187_v61  ;;  %v2358_v54 = vunpack.c.3.s8 %v9784_v20  ;;  %v1550_v61 = vunpack.c.2.s8 %v9798_v60  ;;  %v4696_v60 = vld [vmem:[%s14845_s3 + $0x470] sm:$0xff] }
 0x161   :  { %v4124_v45 = vpack.c.bf16 %v3278_v17, %v3260_v29  ;;  %v1551_v29 = vunpack.c.2.s8 %v9805_v35  ;;  %v1569_v17 = vunpack.c.3.s8 %v9805_v35  ;;  %v1110_v20 = vand.u32 2147483647, %v9800_v33  ;;  %v4664_v35 = vld [vmem:[%s14845_s3 + $0x370] sm:$0xff] }
 0x162   :  { %v5060_v24 = vpop.f32.mrf.mxu2  ;;  %vm1107_vm4 = vweird.f32 %v9831_v25  ;;  %v4086_v38 = vmul.f32 %v9225_v62, %v3204_v36 }
 0x163   :  { %v5189_v23 = vpop.f32.mrf.mxu3  ;;  %vm9913_vm6 = vmor %vm1106_vm3, %vm1107_vm4  ;;  %vm9925_vm8 = vcmp.eq.f32.partialorder %v1110_v20, 8.507059e+37 }
 0x164   :  { %v9825_v49 = vadd.f32 %v5189_v23, %v5060_v24  ;;  %v5007_v63 = vpop.f32.mrf.mxu0  ;;  %v4519_v23 = vpack.c.bf16 %v4069_v9, %v4051_v21  ;;  %v4697_v21 = vld [vmem:[%s14845_s3 + $0x478] sm:$0xff] }
 0x165   :  { %v5136_v2 = vpop.f32.mrf.mxu1  ;;  %v4913_v3 = vpack.c.bf16 %v4697_v21, %v4696_v60 }
 0x166   :  { %v9827_v59 = vadd.f32 %v5136_v2, %v5007_v63  ;;  %v4125_v63 = vpack.c.bf16 %v3279_v6, %v3261_v14  ;;  %v1103_v2 = vsub.f32 1.0, %v1102_v22  ;;  %v4665_v22 = vld [vmem:[%s14845_s3 + $0x378] sm:$0xff] }
 0x167   :  { %6018 = vmatpush.bf16.msra.mxu2 %v4913_v3 }
 0x168   :  { %v1104_v9 = vmul.f32 %v9831_v25, %v1103_v2  ;;  %v4680_v2 = vld [vmem:[%s14845_s3 + $0x3f0] sm:$0xff] }
 0x169   :  { %v4905_v10 = vpack.c.bf16 %v4681_v51, %v4680_v2 }
 0x16a   :  { %v5062_v28 = vpop.f32.mrf.mxu2  ;;  %v1105_v41 = vadd.f32 %v9831_v25, %v1104_v9 }
 0x16b   :  { %v5191_v37 = vpop.f32.mrf.mxu3  ;;  %5889 = vmatpush.bf16.msrb.mxu1 %v4905_v10 }
 0x16c   :  { %v9845_v11 = vadd.f32 %v5191_v37, %v5062_v28  ;;  %v5010_v40 = vpop.f32.mrf.mxu0  ;;  %v1089_v28 = vmul.f32 %v9829_v4, %v1088_v50  ;;  %v3222_v37 = vcvt.s32.f32 %v2358_v54  ;;  %v2432_v50 = vcvt.s32.f32 %v1568_v27 }
 0x16d   :  { %v5139_v24 = vpop.f32.mrf.mxu1  ;;  %v1109_v10 = vsel %vm9913_vm6, %v9831_v25, %v1105_v41  ;;  %v9952_v41 = vld [vmem:[%s14847_s4 + $0x20] sm:$0xff] }
 0x16e   :  { %14867 = vst [vmem:[#allocation11_spill] sm:$0xff] %v9845_v11  ;;  %v9847_v46 = vadd.f32 %v5139_v24, %v5010_v40  ;;  %v4712_v40 = vld [vmem:[%s14845_s3 + $0x4f0] sm:$0xff]  ;;  %v4713_v24 = vld [vmem:[%s14845_s3 + $0x4f8] sm:$0xff]  ;;  %v1090_v27 = vadd.f32 %v9829_v4, %v1089_v28  ;;  %v3314_v28 = vmul.f32 %v9821_v48, %v2432_v50 }
 0x16f   :  { %5104 = vmatmul.bf16.gmra.mxu2 %v4518_v44  ;;  %5252 = vmatmul.bf16.vlgmr.msra.gmra.mxu0 %v4124_v45  ;;  %v3205_v45 = vcvt.s32.f32 %v2341_v56  ;;  %v1112_v56 = vand.u32 2147483648, %v9800_v33  ;;  %v1098_v33 = vor.u32 1.1754944e-38, %v1097_v26  ;;  %v9940_v26 = vld [vmem:[%s14847_s4 + $0xa0] sm:$0xff] }
 0x170   :  { %5233 = vmatmul.bf16.gmra.mxu3 %v4519_v23  ;;  %5381 = vmatmul.bf16.vlgmr.msra.gmra.mxu1 %v4125_v63  ;;  %v3223_v23 = vcvt.s32.f32 %v2359_v58  ;;  %v2414_v63 = vcvt.s32.f32 %v1550_v61  ;;  %v4897_v58 = vpack.c.bf16 %v4665_v22, %v4664_v35  ;;  %v4921_v61 = vpack.c.bf16 %v4713_v24, %v4712_v40 }
 0x171   :  { %v4087_v21 = vmul.f32 %v9227_v0, %v3205_v45  ;;  %v1113_v22 = vor.u32 1.1754944e-38, %v1112_v56  ;;  %v1586_v2 = vunpack.c.0.s8 %v9940_v26  ;;  %v1604_v51 = vunpack.c.1.s8 %v9940_v26 }
 0x172   :  { %v5065_v19 = vpop.f32.mrf.mxu2  ;;  %v3296_v60 = vmul.f32 %v9821_v48, %v2414_v63  ;;  %5760 = vmatpush.bf16.msrb.mxu0 %v4897_v58  ;;  %6147 = vmatpush.bf16.msra.mxu3 %v4921_v61  ;;  %v4105_v35 = vmul.f32 %v9227_v0, %v3223_v23  ;;  %v1094_v0 = vsel %vm9902_vm5, %v9829_v4, %v1090_v27  ;;  %v9947_v4 = vld [vmem:[%s14847_s4 + $0xa8] sm:$0xff]  ;;  %v1534_v56 = vunpack.c.1.s8 %v9952_v41 }
 0x173   :  { %v5194_v57 = vpop.f32.mrf.mxu3  ;;  %v1099_v25 = vsel %vm9921_vm7, %v1098_v33, %v1094_v0  ;;  %v1114_v50 = vsel %vm9925_vm8, %v1113_v22, %v1109_v10  ;;  %v1605_v61 = vunpack.c.1.s8 %v9947_v4 }
 0x174   :  { %v9874_v14 = vadd.f32 %v5194_v57, %v5065_v19  ;;  %v5012_v6 = vpop.f32.mrf.mxu0  ;;  %v2415_v19 = vcvt.s32.f32 %v1551_v29  ;;  %v2433_v57 = vcvt.s32.f32 %v1569_v17  ;;  %v4104_v17 = vmul.f32 %v9225_v62, %v3222_v37 }
 0x175   :  { %v5141_v44 = vpop.f32.mrf.mxu1  ;;  %v4142_v45 = vpack.c.bf16 %v3314_v28, %v3296_v60  ;;  %v4537_v23 = vpack.c.bf16 %v4105_v35, %v4087_v21  ;;  %v9971_v60 = vperm.slane %v1099_v25, 0  ;;  %v9973_v28 = vperm.slane %v1114_v50, 0 }
 0x176   :  { %14868 = vst [vmem:[#allocation12_spill] sm:$0xff] %v9874_v14  ;;  %v9891_v54 = vadd.f32 %v5141_v44, %v5012_v6  ;;  %v3297_v62 = vmul.f32 %v9823_v42, %v2415_v19  ;;  %v3315_v9 = vmul.f32 %v9823_v42, %v2433_v57  ;;  %v4536_v44 = vpack.c.bf16 %v4104_v17, %v4086_v38  ;;  %v9957_v38 = vld [vmem:[%s14847_s4 + $0x28] sm:$0xff] }
 0x177   :  { %v1587_v19 = vunpack.c.0.s8 %v9947_v4  ;;  %v1516_v57 = vunpack.c.0.s8 %v9952_v41  ;;  %v1517_v27 = vunpack.c.0.s8 %v9957_v38  ;;  %v1535_v29 = vunpack.c.1.s8 %v9957_v38 }
 0x178   :  { %v4143_v63 = vpack.c.bf16 %v3315_v9, %v3297_v62  ;;  %v2450_v21 = vcvt.s32.f32 %v1586_v2  ;;  %v2468_v62 = vcvt.s32.f32 %v1604_v51  ;;  %v2469_v37 = vcvt.s32.f32 %v1605_v61 }
 0x179   :  { %v2451_v9 = vcvt.s32.f32 %v1587_v19  ;;  %v2380_v6 = vcvt.s32.f32 %v1516_v57  ;;  %v2381_v22 = vcvt.s32.f32 %v1517_v27 }
 0x17a   :  { %v5067_v8 = vpop.f32.mrf.mxu2  ;;  %v3332_v0 = vmul.f32 %v9821_v48, %v2450_v21  ;;  %v3350_v10 = vmul.f32 %v9821_v48, %v2468_v62  ;;  %v1623_v21 = vunpack.c.2.s8 %v9947_v4  ;;  %v1570_v62 = vunpack.c.3.s8 %v9952_v41 }
 0x17b   :  { %v5196_v36 = vpop.f32.mrf.mxu3  ;;  %v3263_v25 = vmul.f32 %v9973_v28, %v2381_v22 }
 0x17c   :  { %v9929_v40 = vadd.f32 %v5196_v36, %v5067_v8  ;;  %v5015_v24 = vpop.f32.mrf.mxu0  ;;  %v2398_v36 = vcvt.s32.f32 %v1534_v56  ;;  %v4160_v56 = vpack.c.bf16 %v3350_v10, %v3332_v0 }
 0x17d   :  { %v5144_v31 = vpop.f32.mrf.mxu1 }
 0x17e   :  { %14877 = vst [vmem:[#allocation13_spill] sm:$0xff] %v9929_v40  ;;  %v9942_v20 = vadd.f32 %v5144_v31, %v5015_v24  ;;  %v2399_v24 = vcvt.s32.f32 %v1535_v29  ;;  %v3262_v31 = vmul.f32 %v9971_v60, %v2380_v6  ;;  %v1641_v6 = vunpack.c.3.s8 %v9947_v4 }
 0x17f   :  { %5109 = vmatmul.bf16.gmra.mxu2 %v4536_v44  ;;  %5257 = vmatmul.bf16.gmra.mxu0 %v4142_v45  ;;  %v3280_v44 = vmul.f32 %v9971_v60, %v2398_v36  ;;  %v1553_v36 = vunpack.c.2.s8 %v9957_v38 }
 0x180   :  { %5238 = vmatmul.bf16.gmra.mxu3 %v4537_v23  ;;  %5386 = vmatmul.bf16.gmra.mxu1 %v4143_v63  ;;  %v3333_v23 = vmul.f32 %v9823_v42, %v2451_v9  ;;  %v3351_v63 = vmul.f32 %v9823_v42, %v2469_v37  ;;  %v3281_v50 = vmul.f32 %v9973_v28, %v2399_v24  ;;  %v1571_v37 = vunpack.c.3.s8 %v9957_v38 }
 0x182   :  { %v5070_v58 = vpop.f32.mrf.mxu2  ;;  %v4161_v27 = vpack.c.bf16 %v3351_v63, %v3333_v23  ;;  %v4127_v29 = vpack.c.bf16 %v3281_v50, %v3263_v25  ;;  %v2434_v23 = vcvt.s32.f32 %v1570_v62  ;;  %v2417_v25 = vcvt.s32.f32 %v1553_v36  ;;  %v10021_v36 = vld [vmem:[%s14847_s4 + $0x138] sm:$0xff] }
 0x183   :  { %v5199_v17 = vpop.f32.mrf.mxu3  ;;  %v2435_v50 = vcvt.s32.f32 %v1571_v37 }
 0x184   :  { %v9975_v3 = vadd.f32 %v5199_v17, %v5070_v58  ;;  %v5017_v8 = vpop.f32.mrf.mxu0  ;;  %v4126_v58 = vpack.c.bf16 %v3280_v44, %v3262_v31  ;;  %v1622_v17 = vunpack.c.2.s8 %v9940_v26  ;;  %v2487_v44 = vcvt.s32.f32 %v1623_v21 }
 0x185   :  { %v5146_v35 = vpop.f32.mrf.mxu1 }
 0x186   :  { %14878 = vst [vmem:[#allocation14_spill] sm:$0xff] %v9975_v3  ;;  %v9977_v33 = vadd.f32 %v5146_v35, %v5017_v8  ;;  %v1640_v8 = vunpack.c.3.s8 %v9940_v26  ;;  %v1552_v35 = vunpack.c.2.s8 %v9952_v41  ;;  %v2486_v10 = vcvt.s32.f32 %v1622_v17 }
 0x187   :  { %v2505_v41 = vcvt.s32.f32 %v1641_v6  ;;  %v10016_v6 = vld [vmem:[%s14847_s4 + $0x130] sm:$0xff] }
 0x188   :  { %v2504_v26 = vcvt.s32.f32 %v1640_v8  ;;  %v3368_v4 = vmul.f32 %v9821_v48, %v2486_v10  ;;  %v10028_v10 = vld [vmem:[%s14847_s4 + $0xb0] sm:$0xff] }
 0x18a   :  { %v5072_v45 = vpop.f32.mrf.mxu2 }
 0x18b   :  { %v5201_v2 = vpop.f32.mrf.mxu3 }
 0x18c   :  { %v9987_v51 = vadd.f32 %v5201_v2, %v5072_v45  ;;  %v5020_v19 = vpop.f32.mrf.mxu0  ;;  %v2416_v45 = vcvt.s32.f32 %v1552_v35  ;;  %v3386_v2 = vmul.f32 %v9821_v48, %v2504_v26  ;;  %v1658_v26 = vunpack.c.0.s8 %v10016_v6 }
 0x18d   :  { %v5149_v57 = vpop.f32.mrf.mxu1 }
 0x18e   :  { %14879 = vst [vmem:[#allocation15_spill] sm:$0xff] %v9987_v51  ;;  %v9989_v61 = vadd.f32 %v5149_v57, %v5020_v19  ;;  %v3298_v38 = vmul.f32 %v9971_v60, %v2416_v45  ;;  %v3316_v19 = vmul.f32 %v9971_v60, %v2434_v23  ;;  %v4178_v62 = vpack.c.bf16 %v3386_v2, %v3368_v4  ;;  %v4694_v23 = vld [vmem:[%s14845_s3 + $0x460] sm:$0xff] }
 0x18f   :  { %5262 = vmatmul.bf16.gmra.mxu0 %v4160_v56  ;;  %5510 = vmatmul.bf16.vlgmr.msrb.gmra.mxu2 %v4126_v58  ;;  %v3369_v56 = vmul.f32 %v9823_v42, %v2487_v44  ;;  %v3387_v58 = vmul.f32 %v9823_v42, %v2505_v41  ;;  %v1676_v44 = vunpack.c.1.s8 %v10016_v6  ;;  %v1659_v45 = vunpack.c.0.s8 %v10021_v36  ;;  %v4695_v41 = vld [vmem:[%s14845_s3 + $0x468] sm:$0xff] }
 0x190   :  { %5391 = vmatmul.bf16.gmra.mxu1 %v4161_v27  ;;  %5639 = vmatmul.bf16.vlgmr.msrb.gmra.mxu3 %v4127_v29  ;;  %v3299_v27 = vmul.f32 %v9973_v28, %v2417_v25  ;;  %v3317_v29 = vmul.f32 %v9973_v28, %v2435_v50  ;;  %v4662_v25 = vld [vmem:[%s14845_s3 + $0x360] sm:$0xff]  ;;  %v1677_v50 = vunpack.c.1.s8 %v10021_v36  ;;  %v1588_v4 = vunpack.c.0.s8 %v10028_v10 }
 0x191   :  { %v1606_v2 = vunpack.c.1.s8 %v10028_v10 }
 0x192   :  { %v5075_v9 = vpop.f32.mrf.mxu2 }
 0x193   :  { %v5204_v22 = vpop.f32.mrf.mxu3 }
 0x194   :  { %v9999_v24 = vadd.f32 %v5204_v22, %v5075_v9  ;;  %v5022_v0 = vpop.f32.mrf.mxu0  ;;  %v4144_v9 = vpack.c.bf16 %v3316_v19, %v3298_v38  ;;  %v4179_v22 = vpack.c.bf16 %v3387_v58, %v3369_v56  ;;  %v4912_v38 = vpack.c.bf16 %v4695_v41, %v4694_v23  ;;  %v4663_v19 = vld [vmem:[%s14845_s3 + $0x368] sm:$0xff]  ;;  %v4678_v23 = vld [vmem:[%s14845_s3 + $0x3e0] sm:$0xff] }
 0x195   :  { %v5151_v31 = vpop.f32.mrf.mxu1  ;;  %v4711_v56 = vld [vmem:[%s14845_s3 + $0x4e8] sm:$0xff] }
 0x196   :  { %14880 = vst [vmem:[#allocation16_spill] sm:$0xff] %v9999_v24  ;;  %v10001_v63 = vadd.f32 %v5151_v31, %v5022_v0  ;;  %v4145_v0 = vpack.c.bf16 %v3317_v29, %v3299_v27  ;;  %v10033_v31 = vld [vmem:[%s14847_s4 + $0xb8] sm:$0xff]  ;;  %6019 = vmatpush.bf16.msra.mxu2 %v4912_v38  ;;  %v4679_v41 = vld [vmem:[%s14845_s3 + $0x3e8] sm:$0xff] }
 0x197   :  { %v1589_v27 = vunpack.c.0.s8 %v10033_v31  ;;  %v1607_v29 = vunpack.c.1.s8 %v10033_v31  ;;  %v4904_v38 = vpack.c.bf16 %v4679_v41, %v4678_v23 }
 0x199   :  { %5890 = vmatpush.bf16.msrb.mxu1 %v4904_v38  ;;  %v1695_v38 = vunpack.c.2.s8 %v10021_v36 }
 0x19a   :  { %v5077_v57 = vpop.f32.mrf.mxu2 }
 0x19b   :  { %v5206_v17 = vpop.f32.mrf.mxu3 }
 0x19c   :  { %v10011_v8 = vadd.f32 %v5206_v17, %v5077_v57  ;;  %v5025_v21 = vpop.f32.mrf.mxu0  ;;  %v4710_v57 = vld [vmem:[%s14845_s3 + $0x4e0] sm:$0xff]  ;;  %v4896_v17 = vpack.c.bf16 %v4663_v19, %v4662_v25  ;;  %v2523_v25 = vcvt.s32.f32 %v1659_v45  ;;  %v2452_v19 = vcvt.s32.f32 %v1588_v4 }
 0x19d   :  { %v5154_v35 = vpop.f32.mrf.mxu1 }
 0x19e   :  { %14881 = vst [vmem:[#allocation17_spill] sm:$0xff] %v10011_v8  ;;  %v10023_v37 = vadd.f32 %v5154_v35, %v5025_v21  ;;  %v4920_v21 = vpack.c.bf16 %v4711_v56, %v4710_v57  ;;  %5761 = vmatpush.bf16.msrb.mxu0 %v4896_v17  ;;  %v2470_v57 = vcvt.s32.f32 %v1606_v2  ;;  %v3405_v45 = vmul.f32 %v9823_v42, %v2523_v25 }
 0x19f   :  { %5267 = vmatmul.bf16.gmra.mxu0 %v4178_v62  ;;  %5515 = vmatmul.bf16.gmra.mxu2 %v4144_v9  ;;  %v1694_v25 = vunpack.c.2.s8 %v10016_v6 }
 0x1a0   :  { %5396 = vmatmul.bf16.gmra.mxu1 %v4179_v22  ;;  %5644 = vmatmul.bf16.gmra.mxu3 %v4145_v0  ;;  %v2522_v22 = vcvt.s32.f32 %v1658_v26  ;;  %v2540_v0 = vcvt.s32.f32 %v1676_v44  ;;  %v2453_v26 = vcvt.s32.f32 %v1589_v27  ;;  %v2471_v44 = vcvt.s32.f32 %v1607_v29 }
 0x1a1   :  { %6148 = vmatpush.bf16.msra.mxu3 %v4920_v21  ;;  %v3352_v34 = vmul.f32 %v9971_v60, %v2470_v57  ;;  %v1712_v57 = vunpack.c.3.s8 %v10016_v6 }
 0x1a2   :  { %v5080_v58 = vpop.f32.mrf.mxu2  ;;  %v3404_v17 = vmul.f32 %v9821_v48, %v2522_v22  ;;  %v3422_v21 = vmul.f32 %v9821_v48, %v2540_v0 }
 0x1a3   :  { %v5209_v35 = vpop.f32.mrf.mxu3  ;;  %v2576_v6 = vcvt.s32.f32 %v1712_v57 }
 0x1a4   :  { %v10061_v62 = vadd.f32 %v5209_v35, %v5080_v58  ;;  %v5027_v9 = vpop.f32.mrf.mxu0  ;;  %v2541_v58 = vcvt.s32.f32 %v1677_v50  ;;  %v3334_v35 = vmul.f32 %v9971_v60, %v2452_v19  ;;  %v3353_v50 = vmul.f32 %v9973_v28, %v2471_v44 }
 0x1a5   :  { %v5156_v47 = vpop.f32.mrf.mxu1  ;;  %v4196_v22 = vpack.c.bf16 %v3422_v21, %v3404_v17  ;;  %v1625_v44 = vunpack.c.2.s8 %v10033_v31  ;;  %v1643_v17 = vunpack.c.3.s8 %v10033_v31 }
 0x1a6   :  { %14882 = vst [vmem:[#allocation18_spill] sm:$0xff] %v10061_v62  ;;  %v10069_v56 = vadd.f32 %v5156_v47, %v5027_v9  ;;  %v3423_v4 = vmul.f32 %v9823_v42, %v2541_v58  ;;  %v3335_v47 = vmul.f32 %v9973_v28, %v2453_v26  ;;  %v4162_v0 = vpack.c.bf16 %v3352_v34, %v3334_v35 }
 0x1a7   :  { %v1642_v58 = vunpack.c.3.s8 %v10028_v10  ;;  %v1713_v34 = vunpack.c.3.s8 %v10021_v36 }
 0x1a8   :  { %v4197_v41 = vpack.c.bf16 %v3423_v4, %v3405_v45  ;;  %v4163_v19 = vpack.c.bf16 %v3353_v50, %v3335_v47  ;;  %v2558_v4 = vcvt.s32.f32 %v1694_v25  ;;  %v2559_v50 = vcvt.s32.f32 %v1695_v38 }
 0x1aa   :  { %v5082_v12 = vpop.f32.mrf.mxu2  ;;  %v3440_v36 = vmul.f32 %v9821_v48, %v2558_v4  ;;  %v3441_v25 = vmul.f32 %v9823_v42, %v2559_v50  ;;  %v10108_v4 = vld [vmem:[%s14847_s4 + $0x1c0] sm:$0xff] }
 0x1ab   :  { %v5211_v2 = vpop.f32.mrf.mxu3 }
 0x1ac   :  { %v10079_v27 = vadd.f32 %v5211_v2, %v5082_v12  ;;  %v5030_v29 = vpop.f32.mrf.mxu0  ;;  %v1624_v12 = vunpack.c.2.s8 %v10028_v10  ;;  %v2577_v10 = vcvt.s32.f32 %v1713_v34 }
 0x1ad   :  { %v5159_v9 = vpop.f32.mrf.mxu1 }
 0x1ae   :  { %14883 = vst [vmem:[#allocation19_spill] sm:$0xff] %v10079_v27  ;;  %v10081_v23 = vadd.f32 %v5159_v9, %v5030_v29  ;;  %v2488_v2 = vcvt.s32.f32 %v1624_v12  ;;  %v2506_v29 = vcvt.s32.f32 %v1642_v58  ;;  %v3459_v57 = vmul.f32 %v9823_v42, %v2577_v10  ;;  %v10125_v10 = vld [vmem:[%s14847_s4 + $0x148] sm:$0xff] }
 0x1af   :  { %5272 = vmatmul.bf16.gmra.mxu0 %v4196_v22  ;;  %5520 = vmatmul.bf16.gmra.mxu2 %v4162_v0  ;;  %v2489_v22 = vcvt.s32.f32 %v1625_v44  ;;  %v2507_v0 = vcvt.s32.f32 %v1643_v17 }
 0x1b0   :  { %5401 = vmatmul.bf16.gmra.mxu1 %v4197_v41  ;;  %5649 = vmatmul.bf16.gmra.mxu3 %v4163_v19  ;;  %v3458_v41 = vmul.f32 %v9821_v48, %v2576_v6  ;;  %v3370_v31 = vmul.f32 %v9971_v60, %v2488_v2  ;;  %v3388_v19 = vmul.f32 %v9971_v60, %v2506_v29  ;;  %v10115_v2 = vld [vmem:[%s14847_s4 + $0x1c8] sm:$0xff]  ;;  %v10120_v29 = vld [vmem:[%s14847_s4 + $0x140] sm:$0xff] }
 0x1b1   :  { %v3371_v38 = vmul.f32 %v9973_v28, %v2489_v22  ;;  %v3389_v12 = vmul.f32 %v9973_v28, %v2507_v0  ;;  %v4215_v6 = vpack.c.bf16 %v3459_v57, %v3441_v25  ;;  %v1730_v22 = vunpack.c.0.s8 %v10108_v4 }
 0x1b2   :  { %v5085_v26 = vpop.f32.mrf.mxu2  ;;  %v1748_v0 = vunpack.c.1.s8 %v10108_v4  ;;  %v1661_v25 = vunpack.c.0.s8 %v10125_v10  ;;  %v1679_v57 = vunpack.c.1.s8 %v10125_v10 }
 0x1b3   :  { %v5214_v21 = vpop.f32.mrf.mxu3  ;;  %v4181_v50 = vpack.c.bf16 %v3389_v12, %v3371_v38 }
 0x1b4   :  { %v10091_v35 = vadd.f32 %v5214_v21, %v5085_v26  ;;  %v5032_v45 = vpop.f32.mrf.mxu0  ;;  %v4214_v21 = vpack.c.bf16 %v3458_v41, %v3440_v36  ;;  %v1731_v36 = vunpack.c.0.s8 %v10115_v2  ;;  %v1660_v41 = vunpack.c.0.s8 %v10120_v29 }
 0x1b5   :  { %v5161_v47 = vpop.f32.mrf.mxu1  ;;  %v2543_v27 = vcvt.s32.f32 %v1679_v57 }
 0x1b6   :  { %14884 = vst [vmem:[#allocation20_spill] sm:$0xff] %v10091_v35  ;;  %v10093_v9 = vadd.f32 %v5161_v47, %v5032_v45  ;;  %v4180_v45 = vpack.c.bf16 %v3388_v19, %v3370_v31  ;;  %v1678_v31 = vunpack.c.1.s8 %v10120_v29  ;;  %v2525_v35 = vcvt.s32.f32 %v1661_v25 }
 0x1ba   :  { %v5087_v26 = vpop.f32.mrf.mxu2 }
 0x1bb   :  { %v5216_v58 = vpop.f32.mrf.mxu3 }
 0x1bc   :  { %v10103_v34 = vadd.f32 %v5216_v58, %v5087_v26  ;;  %v5035_v44 = vpop.f32.mrf.mxu0  ;;  %v1749_v26 = vunpack.c.1.s8 %v10115_v2 }
 0x1bd   :  { %v5164_v17 = vpop.f32.mrf.mxu1 }
 0x1be   :  { %14885 = vst [vmem:[#allocation21_spill] sm:$0xff] %v10103_v34  ;;  %v10110_v47 = vadd.f32 %v5164_v17, %v5035_v44  ;;  %v2594_v44 = vcvt.s32.f32 %v1730_v22  ;;  %v2613_v34 = vcvt.s32.f32 %v1749_v26 }
 0x1bf   :  { %5277 = vmatmul.bf16.gmra.mxu0 %v4214_v21  ;;  %5525 = vmatmul.bf16.gmra.mxu2 %v4180_v45  ;;  %v2612_v21 = vcvt.s32.f32 %v1748_v0  ;;  %v2595_v45 = vcvt.s32.f32 %v1731_v36  ;;  %v3407_v36 = vmul.f32 %v9973_v28, %v2525_v35  ;;  %v1784_v35 = vunpack.c.3.s8 %v10108_v4 }
 0x1c0   :  { %5406 = vmatmul.bf16.gmra.mxu1 %v4215_v6  ;;  %5654 = vmatmul.bf16.gmra.mxu3 %v4181_v50  ;;  %v2524_v6 = vcvt.s32.f32 %v1660_v41  ;;  %v2542_v50 = vcvt.s32.f32 %v1678_v31  ;;  %v3476_v62 = vmul.f32 %v9821_v48, %v2594_v44  ;;  %v3495_v0 = vmul.f32 %v9823_v42, %v2613_v34 }
 0x1c1   :  { %v3494_v8 = vmul.f32 %v9821_v48, %v2612_v21  ;;  %v3477_v22 = vmul.f32 %v9823_v42, %v2595_v45  ;;  %v3425_v41 = vmul.f32 %v9973_v28, %v2543_v27  ;;  %v1766_v34 = vunpack.c.2.s8 %v10108_v4  ;;  %v4692_v45 = vld [vmem:[%s14845_s3 + $0x450] sm:$0xff] }
 0x1c2   :  { %v5090_v19 = vpop.f32.mrf.mxu2  ;;  %v3406_v24 = vmul.f32 %v9971_v60, %v2524_v6  ;;  %v1767_v27 = vunpack.c.2.s8 %v10115_v2  ;;  %v1714_v4 = vunpack.c.3.s8 %v10120_v29 }
 0x1c3   :  { %v5219_v38 = vpop.f32.mrf.mxu3  ;;  %v4233_v21 = vpack.c.bf16 %v3495_v0, %v3477_v22  ;;  %v4199_v6 = vpack.c.bf16 %v3425_v41, %v3407_v36  ;;  %v4708_v22 = vld [vmem:[%s14845_s3 + $0x4d0] sm:$0xff]  ;;  %v4709_v0 = vld [vmem:[%s14845_s3 + $0x4d8] sm:$0xff]  ;;  %v1715_v41 = vunpack.c.3.s8 %v10125_v10 }
 0x1c4   :  { %v10135_v12 = vadd.f32 %v5219_v38, %v5090_v19  ;;  %v5037_v58 = vpop.f32.mrf.mxu0  ;;  %v3424_v19 = vmul.f32 %v9971_v60, %v2542_v50  ;;  %v1696_v50 = vunpack.c.2.s8 %v10120_v29  ;;  %v4919_v29 = vpack.c.bf16 %v4709_v0, %v4708_v22 }
 0x1c5   :  { %v5166_v17 = vpop.f32.mrf.mxu1 }
 0x1c6   :  { %14886 = vst [vmem:[#allocation22_spill] sm:$0xff] %v10135_v12  ;;  %v10137_v52 = vadd.f32 %v5166_v17, %v5037_v58  ;;  %v4232_v58 = vpack.c.bf16 %v3494_v8, %v3476_v62  ;;  %v4198_v44 = vpack.c.bf16 %v3424_v19, %v3406_v24  ;;  %v4693_v24 = vld [vmem:[%s14845_s3 + $0x458] sm:$0xff]  ;;  %v4660_v8 = vld [vmem:[%s14845_s3 + $0x350] sm:$0xff]  ;;  %v1785_v62 = vunpack.c.3.s8 %v10115_v2  ;;  %6149 = vmatpush.bf16.msra.mxu3 %v4919_v29 }
 0x1c7   :  { %v4911_v19 = vpack.c.bf16 %v4693_v24, %v4692_v45  ;;  %v1697_v2 = vunpack.c.2.s8 %v10125_v10  ;;  %v4677_v45 = vld [vmem:[%s14845_s3 + $0x3d8] sm:$0xff]  ;;  %v2631_v24 = vcvt.s32.f32 %v1767_v27 }
 0x1c8   :  { %v2649_v0 = vcvt.s32.f32 %v1785_v62 }
 0x1c9   :  { %6020 = vmatpush.bf16.msra.mxu2 %v4911_v19  ;;  %v3513_v27 = vmul.f32 %v9823_v42, %v2631_v24 }
 0x1ca   :  { %v5092_v38 = vpop.f32.mrf.mxu2 }
 0x1cb   :  { %v5221_v31 = vpop.f32.mrf.mxu3 }
 0x1cc   :  { %v10147_v26 = vadd.f32 %v5221_v31, %v5092_v38  ;;  %v5040_v25 = vpop.f32.mrf.mxu0  ;;  %v4661_v38 = vld [vmem:[%s14845_s3 + $0x358] sm:$0xff] }
 0x1cd   :  { %v5169_v57 = vpop.f32.mrf.mxu1  ;;  %v4895_v31 = vpack.c.bf16 %v4661_v38, %v4660_v8  ;;  %v2560_v8 = vcvt.s32.f32 %v1696_v50  ;;  %v2578_v38 = vcvt.s32.f32 %v1714_v4  ;;  %v3531_v50 = vmul.f32 %v9823_v42, %v2649_v0 }
 0x1ce   :  { %14887 = vst [vmem:[#allocation23_spill] sm:$0xff] %v10147_v26  ;;  %v10149_v17 = vadd.f32 %v5169_v57, %v5040_v25 }
 0x1cf   :  { %5282 = vmatmul.bf16.gmra.mxu0 %v4232_v58  ;;  %5530 = vmatmul.bf16.gmra.mxu2 %v4198_v44  ;;  %v2630_v44 = vcvt.s32.f32 %v1766_v34  ;;  %v2561_v34 = vcvt.s32.f32 %v1697_v2  ;;  %v3442_v29 = vmul.f32 %v9971_v60, %v2560_v8  ;;  %v4251_v24 = vpack.c.bf16 %v3531_v50, %v3513_v27 }
 0x1d0   :  { %5411 = vmatmul.bf16.gmra.mxu1 %v4233_v21  ;;  %5659 = vmatmul.bf16.gmra.mxu3 %v4199_v6  ;;  %v2648_v21 = vcvt.s32.f32 %v1784_v35  ;;  %v4676_v6 = vld [vmem:[%s14845_s3 + $0x3d0] sm:$0xff]  ;;  %v2579_v35 = vcvt.s32.f32 %v1715_v41 }
 0x1d1   :  { %5762 = vmatpush.bf16.msrb.mxu0 %v4895_v31  ;;  %v4903_v19 = vpack.c.bf16 %v4677_v45, %v4676_v6  ;;  %v3443_v4 = vmul.f32 %v9973_v28, %v2561_v34  ;;  %v10200_v45 = vld [vmem:[%s14847_s4 + $0x250] sm:$0xff] }
 0x1d2   :  { %v5095_v36 = vpop.f32.mrf.mxu2  ;;  %v3530_v31 = vmul.f32 %v9821_v48, %v2648_v21  ;;  %v3461_v62 = vmul.f32 %v9973_v28, %v2579_v35  ;;  %v1802_v0 = vunpack.c.0.s8 %v10200_v45  ;;  %v1820_v34 = vunpack.c.1.s8 %v10200_v45 }
 0x1d3   :  { %v5224_v25 = vpop.f32.mrf.mxu3  ;;  %5891 = vmatpush.bf16.msrb.mxu1 %v4903_v19  ;;  %v10217_v19 = vld [vmem:[%s14847_s4 + $0x1d8] sm:$0xff] }
 0x1d4   :  { %v10177_v57 = vadd.f32 %v5224_v25, %v5095_v36  ;;  %v5042_v58 = vpop.f32.mrf.mxu0  ;;  %v3512_v36 = vmul.f32 %v9821_v48, %v2630_v44  ;;  %v3460_v25 = vmul.f32 %v9971_v60, %v2578_v38  ;;  %v4217_v8 = vpack.c.bf16 %v3461_v62, %v3443_v4  ;;  %v10207_v38 = vld [vmem:[%s14847_s4 + $0x258] sm:$0xff] }
 0x1d5   :  { %v5171_v10 = vpop.f32.mrf.mxu1  ;;  %v1803_v35 = vunpack.c.0.s8 %v10207_v38  ;;  %v1733_v27 = vunpack.c.0.s8 %v10217_v19  ;;  %v1751_v50 = vunpack.c.1.s8 %v10217_v19 }
 0x1d6   :  { %14888 = vst [vmem:[#allocation24_spill] sm:$0xff] %v10177_v57  ;;  %v10185_v22 = vadd.f32 %v5171_v10, %v5042_v58  ;;  %v4250_v6 = vpack.c.bf16 %v3530_v31, %v3512_v36  ;;  %v4216_v21 = vpack.c.bf16 %v3460_v25, %v3442_v29  ;;  %v1821_v25 = vunpack.c.1.s8 %v10207_v38 }
 0x1d7   :  { %v2597_v12 = vcvt.s32.f32 %v1733_v27  ;;  %v2615_v51 = vcvt.s32.f32 %v1751_v50 }
 0x1d8   :  { %v2685_v26 = vcvt.s32.f32 %v1821_v25 }
 0x1da   :  { %v5097_v57 = vpop.f32.mrf.mxu2 }
 0x1db   :  { %v5226_v2 = vpop.f32.mrf.mxu3 }
 0x1dc   :  { %v10195_v41 = vadd.f32 %v5226_v2, %v5097_v57  ;;  %v5045_v58 = vpop.f32.mrf.mxu0  ;;  %v10212_v57 = vld [vmem:[%s14847_s4 + $0x1d0] sm:$0xff] }
 0x1dd   :  { %v5174_v44 = vpop.f32.mrf.mxu1  ;;  %v1732_v36 = vunpack.c.0.s8 %v10212_v57  ;;  %v1750_v31 = vunpack.c.1.s8 %v10212_v57 }
 0x1de   :  { %14889 = vst [vmem:[#allocation25_spill] sm:$0xff] %v10195_v41  ;;  %v10202_v10 = vadd.f32 %v5174_v44, %v5045_v58  ;;  %v2666_v58 = vcvt.s32.f32 %v1802_v0 }
 0x1df   :  { %5287 = vmatmul.bf16.gmra.mxu0 %v4250_v6  ;;  %5535 = vmatmul.bf16.gmra.mxu2 %v4216_v21  ;;  %v2684_v6 = vcvt.s32.f32 %v1820_v34  ;;  %v2667_v21 = vcvt.s32.f32 %v1803_v35  ;;  %v3567_v34 = vmul.f32 %v9823_v42, %v2685_v26  ;;  %v3479_v35 = vmul.f32 %v9973_v28, %v2597_v12 }
 0x1e0   :  { %5416 = vmatmul.bf16.gmra.mxu1 %v4251_v24  ;;  %5664 = vmatmul.bf16.gmra.mxu3 %v4217_v8  ;;  %v2596_v24 = vcvt.s32.f32 %v1732_v36  ;;  %v2614_v8 = vcvt.s32.f32 %v1750_v31  ;;  %v3548_v3 = vmul.f32 %v9821_v48, %v2666_v58  ;;  %v3497_v36 = vmul.f32 %v9973_v28, %v2615_v51 }
 0x1e1   :  { %v3566_v40 = vmul.f32 %v9821_v48, %v2684_v6  ;;  %v3549_v0 = vmul.f32 %v9823_v42, %v2667_v21  ;;  %v1838_v12 = vunpack.c.2.s8 %v10200_v45  ;;  %v1856_v51 = vunpack.c.3.s8 %v10200_v45 }
 0x1e2   :  { %v5100_v29 = vpop.f32.mrf.mxu2  ;;  %v3478_v14 = vmul.f32 %v9971_v60, %v2596_v24  ;;  %v4235_v24 = vpack.c.bf16 %v3497_v36, %v3479_v35  ;;  %v1768_v26 = vunpack.c.2.s8 %v10212_v57  ;;  %v1786_v21 = vunpack.c.3.s8 %v10212_v57 }
 0x1e3   :  { %v5229_v4 = vpop.f32.mrf.mxu3  ;;  %v4268_v58 = vpack.c.bf16 %v3566_v40, %v3548_v3  ;;  %v4269_v6 = vpack.c.bf16 %v3567_v34, %v3549_v0  ;;  %v1839_v40 = vunpack.c.2.s8 %v10207_v38  ;;  %v1769_v3 = vunpack.c.2.s8 %v10217_v19 }
 0x1e4   :  { %v10227_v62 = vadd.f32 %v5229_v4, %v5100_v29  ;;  %v5047_v2 = vpop.f32.mrf.mxu0  ;;  %v3496_v29 = vmul.f32 %v9971_v60, %v2614_v8  ;;  %v2702_v35 = vcvt.s32.f32 %v1838_v12  ;;  %v2650_v57 = vcvt.s32.f32 %v1786_v21 }
 0x1e5   :  { %v5176_v44 = vpop.f32.mrf.mxu1 }
 0x1e6   :  { %14890 = vst [vmem:[#allocation26_spill] sm:$0xff] %v10227_v62  ;;  %v10229_v41 = vadd.f32 %v5176_v44, %v5047_v2  ;;  %v4234_v44 = vpack.c.bf16 %v3496_v29, %v3478_v14  ;;  %v1857_v14 = vunpack.c.3.s8 %v10207_v38  ;;  %v1787_v29 = vunpack.c.3.s8 %v10217_v19 }
 0x1e7   :  { %v3532_v12 = vmul.f32 %v9971_v60, %v2650_v57  ;;  %v10281_v57 = vld [vmem:[%s14847_s4 + $0x260] sm:$0xff] }
 0x1ea   :  { %v5102_v4 = vpop.f32.mrf.mxu2 }
 0x1eb   :  { %v5231_v31 = vpop.f32.mrf.mxu3 }
 0x1ec   :  { %v10239_v25 = vadd.f32 %v5231_v31, %v5102_v4  ;;  %v5253_v27 = vpop.f32.mrf.mxu0  ;;  %v2720_v31 = vcvt.s32.f32 %v1856_v51 }
 0x1ed   :  { %v5254_v50 = vadd.f32 %v5253_v27, %v9620_v55  ;;  %v5382_v2 = vpop.f32.mrf.mxu1  ;;  %v2632_v27 = vcvt.s32.f32 %v1768_v26 }
 0x1ee   :  { %14891 = vst [vmem:[#allocation27_spill] sm:$0xff] %v10239_v25  ;;  %v3602_v19 = vmul.f32 %v9821_v48, %v2720_v31 }
 0x1ef   :  { %v10242_v8 = vadd.f32 %v5382_v2, %v5254_v50  ;;  %5292 = vmatmul.bf16.gmra.mxu0 %v4268_v58  ;;  %5540 = vmatmul.bf16.gmra.mxu2 %v4234_v44  ;;  %v2703_v50 = vcvt.s32.f32 %v1839_v40  ;;  %v2721_v2 = vcvt.s32.f32 %v1857_v14  ;;  %v2633_v58 = vcvt.s32.f32 %v1769_v3 }
 0x1f0   :  { %5421 = vmatmul.bf16.gmra.mxu1 %v4269_v6  ;;  %5669 = vmatmul.bf16.gmra.mxu3 %v4235_v24  ;;  %v2651_v44 = vcvt.s32.f32 %v1787_v29  ;;  %v3584_v6 = vmul.f32 %v9821_v48, %v2702_v35  ;;  %v3514_v24 = vmul.f32 %v9971_v60, %v2632_v27 }
 0x1f1   :  { %v3603_v51 = vmul.f32 %v9823_v42, %v2721_v2  ;;  %v3515_v26 = vmul.f32 %v9973_v28, %v2633_v58 }
 0x1f2   :  { %v5105_v55 = vpop.f32.mrf.mxu2  ;;  %v3533_v21 = vmul.f32 %v9973_v28, %v2651_v44  ;;  %v4252_v35 = vpack.c.bf16 %v3532_v12, %v3514_v24  ;;  %v4658_v24 = vld [vmem:[%s14845_s3 + $0x340] sm:$0xff] }
 0x1f3   :  { %v5234_v4 = vpop.f32.mrf.mxu3 }
 0x1f4   :  { %v10252_v0 = vadd.f32 %v5234_v4, %v5105_v55  ;;  %v5255_v34 = vpop.f32.mrf.mxu0  ;;  %v4253_v27 = vpack.c.bf16 %v3533_v21, %v3515_v26  ;;  %v4659_v26 = vld [vmem:[%s14845_s3 + $0x348] sm:$0xff]  ;;  %v4706_v21 = vld [vmem:[%s14845_s3 + $0x4c0] sm:$0xff] }
 0x1f5   :  { %v5256_v45 = vadd.f32 %v5255_v34, %v9656_v15  ;;  %v5384_v36 = vpop.f32.mrf.mxu1  ;;  %v3585_v15 = vmul.f32 %v9823_v42, %v2703_v50  ;;  %v4286_v34 = vpack.c.bf16 %v3602_v19, %v3584_v6  ;;  %v10288_v50 = vld [vmem:[%s14847_s4 + $0x268] sm:$0xff]  ;;  %v4690_v6 = vld [vmem:[%s14845_s3 + $0x440] sm:$0xff] }
 0x1f6   :  { %14892 = vst [vmem:[#allocation28_spill] sm:$0xff] %v10252_v0  ;;  %v4691_v19 = vld [vmem:[%s14845_s3 + $0x448] sm:$0xff] }
 0x1f7   :  { %v10255_v38 = vadd.f32 %v5384_v36, %v5256_v45  ;;  %v10271_v45 = vld [vmem:[%s14847_s4 + $0x2e0] sm:$0xff]  ;;  %v10276_v36 = vld [vmem:[%s14847_s4 + $0x2e8] sm:$0xff]  ;;  %v4287_v31 = vpack.c.bf16 %v3603_v51, %v3585_v15  ;;  %v1822_v15 = vunpack.c.1.s8 %v10281_v57  ;;  %v4910_v51 = vpack.c.bf16 %v4691_v19, %v4690_v6 }
 0x1f8   :  { %v1874_v2 = vunpack.c.0.s8 %v10271_v45  ;;  %v1892_v58 = vunpack.c.1.s8 %v10271_v45  ;;  %v1875_v44 = vunpack.c.0.s8 %v10276_v36  ;;  %v1893_v12 = vunpack.c.1.s8 %v10276_v36 }
 0x1f9   :  { %6021 = vmatpush.bf16.msra.mxu2 %v4910_v51  ;;  %v2686_v11 = vcvt.s32.f32 %v1822_v15  ;;  %v4675_v51 = vld [vmem:[%s14845_s3 + $0x3c8] sm:$0xff] }
 0x1fa   :  { %v5107_v55 = vpop.f32.mrf.mxu2  ;;  %v2738_v19 = vcvt.s32.f32 %v1874_v2  ;;  %v2739_v62 = vcvt.s32.f32 %v1875_v44 }
 0x1fb   :  { %v5236_v40 = vpop.f32.mrf.mxu3  ;;  %v3568_v15 = vmul.f32 %v9971_v60, %v2686_v11 }
 0x1fc   :  { %v10265_v14 = vadd.f32 %v5236_v40, %v5107_v55  ;;  %v5258_v3 = vpop.f32.mrf.mxu0  ;;  %v1804_v55 = vunpack.c.0.s8 %v10281_v57  ;;  %v4707_v40 = vld [vmem:[%s14845_s3 + $0x4c8] sm:$0xff] }
 0x1fd   :  { %v5259_v29 = vadd.f32 %v5258_v3, %v9689_v7  ;;  %v5387_v4 = vpop.f32.mrf.mxu1 }
 0x1fe   :  { %14893 = vst [vmem:[#allocation29_spill] sm:$0xff] %v10265_v14  ;;  %v2756_v14 = vcvt.s32.f32 %v1892_v58  ;;  %v2668_v18 = vcvt.s32.f32 %v1804_v55 }
 0x1ff   :  { %v10283_v7 = vadd.f32 %v5387_v4, %v5259_v29  ;;  %5297 = vmatmul.bf16.gmra.mxu0 %v4286_v34  ;;  %5545 = vmatmul.bf16.gmra.mxu2 %v4252_v35  ;;  %v1805_v29 = vunpack.c.0.s8 %v10288_v50  ;;  %v1823_v4 = vunpack.c.1.s8 %v10288_v50  ;;  %v4894_v34 = vpack.c.bf16 %v4659_v26, %v4658_v24  ;;  %v4674_v24 = vld [vmem:[%s14845_s3 + $0x3c0] sm:$0xff] }
 0x200   :  { %5426 = vmatmul.bf16.gmra.mxu1 %v4287_v31  ;;  %5674 = vmatmul.bf16.gmra.mxu3 %v4253_v27  ;;  %v4918_v35 = vpack.c.bf16 %v4707_v40, %v4706_v21  ;;  %v2757_v26 = vcvt.s32.f32 %v1893_v12  ;;  %v4902_v58 = vpack.c.bf16 %v4675_v51, %v4674_v24  ;;  %v3638_v44 = vmul.f32 %v9821_v48, %v2756_v14 }
 0x201   :  { %5763 = vmatpush.bf16.msrb.mxu0 %v4894_v34  ;;  %v2669_v21 = vcvt.s32.f32 %v1805_v29  ;;  %v2687_v2 = vcvt.s32.f32 %v1823_v4  ;;  %v3550_v55 = vmul.f32 %v9971_v60, %v2668_v18  ;;  %v3621_v34 = vmul.f32 %v9823_v42, %v2739_v62 }
 0x202   :  { %v5110_v3 = vpop.f32.mrf.mxu2  ;;  %6150 = vmatpush.bf16.msra.mxu3 %v4918_v35  ;;  %5892 = vmatpush.bf16.msrb.mxu1 %v4902_v58  ;;  %v3639_v35 = vmul.f32 %v9823_v42, %v2757_v26  ;;  %v1910_v62 = vunpack.c.2.s8 %v10271_v45  ;;  %v1928_v51 = vunpack.c.3.s8 %v10271_v45  ;;  %v1840_v26 = vunpack.c.2.s8 %v10281_v57 }
 0x203   :  { %v5239_v31 = vpop.f32.mrf.mxu3  ;;  %v3551_v12 = vmul.f32 %v9973_v28, %v2669_v21  ;;  %v3569_v29 = vmul.f32 %v9973_v28, %v2687_v2  ;;  %v4270_v18 = vpack.c.bf16 %v3568_v15, %v3550_v55  ;;  %v1858_v21 = vunpack.c.3.s8 %v10281_v57 }
 0x204   :  { %v10316_v27 = vadd.f32 %v5239_v31, %v5110_v3  ;;  %v5260_v6 = vpop.f32.mrf.mxu0  ;;  %v1911_v2 = vunpack.c.2.s8 %v10276_v36  ;;  %v1929_v58 = vunpack.c.3.s8 %v10276_v36 }
 0x205   :  { %v5261_v0 = vadd.f32 %v5260_v6, %v9721_v32  ;;  %v5389_v25 = vpop.f32.mrf.mxu1  ;;  %v3620_v32 = vmul.f32 %v9821_v48, %v2738_v19  ;;  %v4305_v19 = vpack.c.bf16 %v3639_v35, %v3621_v34  ;;  %v4271_v11 = vpack.c.bf16 %v3569_v29, %v3551_v12 }
 0x206   :  { %v2774_v34 = vcvt.s32.f32 %v1910_v62  ;;  %v2792_v35 = vcvt.s32.f32 %v1928_v51  ;;  %v2704_v29 = vcvt.s32.f32 %v1840_v26 }
 0x207   :  { %v10325_v40 = vadd.f32 %v5389_v25, %v5261_v0  ;;  %v4304_v6 = vpack.c.bf16 %v3638_v44, %v3620_v32  ;;  %v1841_v32 = vunpack.c.2.s8 %v10288_v50  ;;  %v1859_v44 = vunpack.c.3.s8 %v10288_v50 }
 0x208   :  { %v3656_v50 = vmul.f32 %v9821_v48, %v2774_v34 }
 0x209   :  { %v2705_v36 = vcvt.s32.f32 %v1841_v32 }
 0x20a   :  { %v5112_v3 = vpop.f32.mrf.mxu2 }
 0x20b   :  { %v5241_v25 = vpop.f32.mrf.mxu3  ;;  %v3587_v51 = vmul.f32 %v9973_v28, %v2705_v36 }
 0x20c   :  { %v10335_v0 = vadd.f32 %v5241_v25, %v5112_v3  ;;  %v5263_v4 = vpop.f32.mrf.mxu0  ;;  %v2722_v25 = vcvt.s32.f32 %v1858_v21 }
 0x20d   :  { %v5264_v31 = vadd.f32 %v5263_v4, %v9788_v30  ;;  %v5392_v14 = vpop.f32.mrf.mxu1  ;;  %v2775_v4 = vcvt.s32.f32 %v1911_v2 }
 0x20f   :  { %v10338_v24 = vadd.f32 %v5392_v14, %v5264_v31  ;;  %5302 = vmatmul.bf16.gmra.mxu0 %v4304_v6  ;;  %5550 = vmatmul.bf16.gmra.mxu2 %v4270_v18  ;;  %v2793_v31 = vcvt.s32.f32 %v1929_v58  ;;  %v2723_v14 = vcvt.s32.f32 %v1859_v44  ;;  %v3586_v18 = vmul.f32 %v9971_v60, %v2704_v29 }
 0x210   :  { %5431 = vmatmul.bf16.gmra.mxu1 %v4305_v19  ;;  %5679 = vmatmul.bf16.gmra.mxu3 %v4271_v11  ;;  %v3604_v19 = vmul.f32 %v9971_v60, %v2722_v25 }
 0x211   :  { %v3675_v62 = vmul.f32 %v9823_v42, %v2793_v31  ;;  %v3605_v26 = vmul.f32 %v9973_v28, %v2723_v14 }
 0x212   :  { %v5511_v30 = vpop.f32.mrf.mxu2 }
 0x213   :  { %v5512_v55 = vadd.f32 %v5511_v30, %v10242_v8  ;;  %v5640_v15 = vpop.f32.mrf.mxu3  ;;  %v3674_v8 = vmul.f32 %v9821_v48, %v2792_v35  ;;  %v4289_v35 = vpack.c.bf16 %v3605_v26, %v3587_v51 }
 0x214   :  { %v5265_v3 = vpop.f32.mrf.mxu0 }
 0x215   :  { %v10349_v45 = vadd.f32 %v5640_v15, %v5512_v55  ;;  %v5266_v12 = vadd.f32 %v5265_v3, %v9827_v59  ;;  %v5394_v57 = vpop.f32.mrf.mxu1  ;;  %v3657_v59 = vmul.f32 %v9823_v42, %v2775_v4  ;;  %v4322_v55 = vpack.c.bf16 %v3674_v8, %v3656_v50  ;;  %v10369_v3 = vld [vmem:[%s14847_s4 + $0x370] sm:$0xff] }
 0x216   :  { %v4288_v15 = vpack.c.bf16 %v3604_v19, %v3586_v18  ;;  %v1946_v29 = vunpack.c.0.s8 %v10369_v3  ;;  %v1964_v25 = vunpack.c.1.s8 %v10369_v3 }
 0x217   :  { %v10352_v6 = vadd.f32 %v5394_v57, %v5266_v12  ;;  %v4323_v34 = vpack.c.bf16 %v3675_v62, %v3657_v59  ;;  %v10386_v57 = vld [vmem:[%s14847_s4 + $0x2f8] sm:$0xff] }
 0x218   :  { %v1877_v8 = vunpack.c.0.s8 %v10386_v57  ;;  %v1895_v18 = vunpack.c.1.s8 %v10386_v57  ;;  %v2810_v62 = vcvt.s32.f32 %v1946_v29  ;;  %v2828_v51 = vcvt.s32.f32 %v1964_v25 }
 0x21a   :  { %v5513_v11 = vpop.f32.mrf.mxu2 }
 0x21b   :  { %v5514_v21 = vadd.f32 %v5513_v11, %v10255_v38  ;;  %v5642_v30 = vpop.f32.mrf.mxu3  ;;  %v10374_v38 = vld [vmem:[%s14847_s4 + $0x2f0] sm:$0xff] }
 0x21c   :  { %v5268_v2 = vpop.f32.mrf.mxu0  ;;  %v1876_v4 = vunpack.c.0.s8 %v10374_v38  ;;  %v1894_v31 = vunpack.c.1.s8 %v10374_v38 }
 0x21d   :  { %v10363_v58 = vadd.f32 %v5642_v30, %v5514_v21  ;;  %v5269_v32 = vadd.f32 %v5268_v2, %v9847_v46  ;;  %v5397_v44 = vpop.f32.mrf.mxu1  ;;  %v10381_v46 = vld [vmem:[%s14847_s4 + $0x378] sm:$0xff] }
 0x21e   :  { %v1947_v14 = vunpack.c.0.s8 %v10381_v46  ;;  %v1965_v50 = vunpack.c.1.s8 %v10381_v46  ;;  %v2740_v2 = vcvt.s32.f32 %v1876_v4 }
 0x21f   :  { %14894 = vst [vmem:[#allocation30_spill] sm:$0xff] %v10363_v58  ;;  %v10376_v12 = vadd.f32 %v5397_v44, %v5269_v32  ;;  %5307 = vmatmul.bf16.gmra.mxu0 %v4322_v55  ;;  %5555 = vmatmul.bf16.gmra.mxu2 %v4288_v15  ;;  %v2758_v32 = vcvt.s32.f32 %v1894_v31  ;;  %v2741_v15 = vcvt.s32.f32 %v1877_v8  ;;  %v3692_v58 = vmul.f32 %v9821_v48, %v2810_v62 }
 0x220   :  { %5436 = vmatmul.bf16.gmra.mxu1 %v4323_v34  ;;  %5684 = vmatmul.bf16.gmra.mxu3 %v4289_v35  ;;  %v2811_v44 = vcvt.s32.f32 %v1947_v14  ;;  %v2829_v55 = vcvt.s32.f32 %v1965_v50  ;;  %v2759_v34 = vcvt.s32.f32 %v1895_v18  ;;  %v3622_v29 = vmul.f32 %v9971_v60, %v2740_v2 }
 0x221   :  { %v3640_v25 = vmul.f32 %v9971_v60, %v2758_v32  ;;  %v3623_v31 = vmul.f32 %v9973_v28, %v2741_v15  ;;  %v1982_v32 = vunpack.c.2.s8 %v10369_v3  ;;  %v2001_v15 = vunpack.c.3.s8 %v10381_v46 }
 0x222   :  { %v5516_v36 = vpop.f32.mrf.mxu2  ;;  %v3711_v4 = vmul.f32 %v9823_v42, %v2829_v55  ;;  %v3641_v14 = vmul.f32 %v9973_v28, %v2759_v34  ;;  %v4656_v55 = vld [vmem:[%s14845_s3 + $0x330] sm:$0xff]  ;;  %v1912_v34 = vunpack.c.2.s8 %v10374_v38 }
 0x223   :  { %v5517_v19 = vadd.f32 %v5516_v36, %v10283_v7  ;;  %v5645_v11 = vpop.f32.mrf.mxu3  ;;  %v3710_v7 = vmul.f32 %v9821_v48, %v2828_v51  ;;  %v4306_v51 = vpack.c.bf16 %v3640_v25, %v3622_v29  ;;  %v4657_v29 = vld [vmem:[%s14845_s3 + $0x338] sm:$0xff]  ;;  %v4704_v25 = vld [vmem:[%s14845_s3 + $0x4b0] sm:$0xff] }
 0x224   :  { %v5270_v59 = vpop.f32.mrf.mxu0 }
 0x225   :  { %v10397_v26 = vadd.f32 %v5645_v11, %v5517_v19  ;;  %v5271_v21 = vadd.f32 %v5270_v59, %v9891_v54  ;;  %v5399_v30 = vpop.f32.mrf.mxu1  ;;  %v3693_v54 = vmul.f32 %v9823_v42, %v2811_v44  ;;  %v4340_v62 = vpack.c.bf16 %v3710_v7, %v3692_v58  ;;  %v4689_v58 = vld [vmem:[%s14845_s3 + $0x438] sm:$0xff] }
 0x226   :  { %v1983_v44 = vunpack.c.2.s8 %v10381_v46  ;;  %v1913_v46 = vunpack.c.2.s8 %v10386_v57 }
 0x227   :  { %v10400_v35 = vadd.f32 %v5399_v30, %v5271_v21  ;;  %v4341_v21 = vpack.c.bf16 %v3711_v4, %v3693_v54  ;;  %v4307_v30 = vpack.c.bf16 %v3641_v14, %v3623_v31  ;;  %v1931_v4 = vunpack.c.3.s8 %v10386_v57  ;;  %v4672_v57 = vld [vmem:[%s14845_s3 + $0x3b0] sm:$0xff] }
 0x228   :  { %v4893_v31 = vpack.c.bf16 %v4657_v29, %v4656_v55 }
 0x22a   :  { %v5518_v36 = vpop.f32.mrf.mxu2  ;;  %5764 = vmatpush.bf16.msrb.mxu0 %v4893_v31 }
 0x22b   :  { %v5519_v50 = vadd.f32 %v5518_v36, %v10325_v40  ;;  %v5647_v8 = vpop.f32.mrf.mxu3  ;;  %v2000_v40 = vunpack.c.3.s8 %v10369_v3  ;;  %v1930_v3 = vunpack.c.3.s8 %v10374_v38  ;;  %v4705_v36 = vld [vmem:[%s14845_s3 + $0x4b8] sm:$0xff] }
 0x22c   :  { %v5273_v18 = vpop.f32.mrf.mxu0  ;;  %v4917_v38 = vpack.c.bf16 %v4705_v36, %v4704_v25 }
 0x22d   :  { %v10411_v19 = vadd.f32 %v5647_v8, %v5519_v50  ;;  %v5274_v11 = vadd.f32 %v5273_v18, %v9942_v20  ;;  %v5402_v59 = vpop.f32.mrf.mxu1  ;;  %v4688_v20 = vld [vmem:[%s14845_s3 + $0x430] sm:$0xff]  ;;  %v2846_v18 = vcvt.s32.f32 %v1982_v32  ;;  %v2865_v32 = vcvt.s32.f32 %v2001_v15 }
 0x22e   :  { %v4909_v7 = vpack.c.bf16 %v4689_v58, %v4688_v20  ;;  %6151 = vmatpush.bf16.msra.mxu3 %v4917_v38  ;;  %v2794_v20 = vcvt.s32.f32 %v1930_v3 }
 0x22f   :  { %v10414_v2 = vadd.f32 %v5402_v59, %v5274_v11  ;;  %5312 = vmatmul.bf16.gmra.mxu0 %v4340_v62  ;;  %5560 = vmatmul.bf16.gmra.mxu2 %v4306_v51  ;;  %v2864_v11 = vcvt.s32.f32 %v2000_v40  ;;  %v2847_v59 = vcvt.s32.f32 %v1983_v44  ;;  %v2777_v40 = vcvt.s32.f32 %v1913_v46 }
 0x230   :  { %5441 = vmatmul.bf16.gmra.mxu1 %v4341_v21  ;;  %5689 = vmatmul.bf16.gmra.mxu3 %v4307_v30  ;;  %v2776_v30 = vcvt.s32.f32 %v1912_v34  ;;  %v2795_v44 = vcvt.s32.f32 %v1931_v4  ;;  %v3747_v36 = vmul.f32 %v9823_v42, %v2865_v32 }
 0x231   :  { %6022 = vmatpush.bf16.msra.mxu2 %v4909_v7  ;;  %v3746_v34 = vmul.f32 %v9821_v48, %v2864_v11  ;;  %v3676_v7 = vmul.f32 %v9971_v60, %v2794_v20  ;;  %v3729_v25 = vmul.f32 %v9823_v42, %v2847_v59  ;;  %v3659_v15 = vmul.f32 %v9973_v28, %v2777_v40  ;;  %v10469_v11 = vld [vmem:[%s14847_s4 + $0x400] sm:$0xff] }
 0x232   :  { %v5521_v54 = vpop.f32.mrf.mxu2  ;;  %v3658_v3 = vmul.f32 %v9971_v60, %v2776_v30  ;;  %v10486_v30 = vld [vmem:[%s14847_s4 + $0x388] sm:$0xff]  ;;  %v2018_v20 = vunpack.c.0.s8 %v10469_v11 }
 0x233   :  { %v5522_v14 = vadd.f32 %v5521_v54, %v10338_v24  ;;  %v5650_v50 = vpop.f32.mrf.mxu3  ;;  %v4673_v24 = vld [vmem:[%s14845_s3 + $0x3b8] sm:$0xff]  ;;  %v3677_v54 = vmul.f32 %v9973_v28, %v2795_v44  ;;  %v4359_v59 = vpack.c.bf16 %v3747_v36, %v3729_v25 }
 0x234   :  { %v5275_v8 = vpop.f32.mrf.mxu0  ;;  %v4901_v58 = vpack.c.bf16 %v4673_v24, %v4672_v57  ;;  %v2036_v57 = vunpack.c.1.s8 %v10469_v11  ;;  %v2882_v25 = vcvt.s32.f32 %v2018_v20 }
 0x235   :  { %v10443_v62 = vadd.f32 %v5650_v50, %v5522_v14  ;;  %v5276_v51 = vadd.f32 %v5275_v8, %v9977_v33  ;;  %v5404_v21 = vpop.f32.mrf.mxu1  ;;  %v3728_v33 = vmul.f32 %v9821_v48, %v2846_v18  ;;  %v4324_v18 = vpack.c.bf16 %v3676_v7, %v3658_v3 }
 0x236   :  { %5893 = vmatpush.bf16.msrb.mxu1 %v4901_v58  ;;  %v2900_v36 = vcvt.s32.f32 %v2036_v57 }
 0x237   :  { %v10452_v55 = vadd.f32 %v5404_v21, %v5276_v51  ;;  %v4358_v8 = vpack.c.bf16 %v3746_v34, %v3728_v33  ;;  %v4325_v51 = vpack.c.bf16 %v3677_v54, %v3659_v15  ;;  %v1949_v33 = vunpack.c.0.s8 %v10486_v30 }
 0x238   :  { %v1967_v34 = vunpack.c.1.s8 %v10486_v30 }
 0x23a   :  { %v5523_v29 = vpop.f32.mrf.mxu2 }
 0x23b   :  { %v5524_v46 = vadd.f32 %v5523_v29, %v10352_v6  ;;  %v5652_v4 = vpop.f32.mrf.mxu3  ;;  %v10474_v6 = vld [vmem:[%s14847_s4 + $0x380] sm:$0xff] }
 0x23c   :  { %v5278_v31 = vpop.f32.mrf.mxu0  ;;  %v1948_v24 = vunpack.c.0.s8 %v10474_v6  ;;  %v1966_v32 = vunpack.c.1.s8 %v10474_v6 }
 0x23d   :  { %v10463_v38 = vadd.f32 %v5652_v4, %v5524_v46  ;;  %v5279_v14 = vadd.f32 %v5278_v31, %v9989_v61  ;;  %v5407_v50 = vpop.f32.mrf.mxu1  ;;  %v10481_v61 = vld [vmem:[%s14847_s4 + $0x408] sm:$0xff] }
 0x23e   :  { %v2019_v44 = vunpack.c.0.s8 %v10481_v61  ;;  %v2037_v58 = vunpack.c.1.s8 %v10481_v61  ;;  %v2812_v4 = vcvt.s32.f32 %v1948_v24  ;;  %v2830_v31 = vcvt.s32.f32 %v1966_v32 }
 0x23f   :  { %v10476_v21 = vadd.f32 %v5407_v50, %v5279_v14  ;;  %5317 = vmatmul.bf16.gmra.mxu0 %v4358_v8  ;;  %5565 = vmatmul.bf16.gmra.mxu2 %v4324_v18  ;;  %v2813_v8 = vcvt.s32.f32 %v1949_v33  ;;  %v2831_v18 = vcvt.s32.f32 %v1967_v34 }
 0x240   :  { %5446 = vmatmul.bf16.gmra.mxu1 %v4359_v59  ;;  %5694 = vmatmul.bf16.gmra.mxu3 %v4325_v51  ;;  %v2883_v14 = vcvt.s32.f32 %v2019_v44  ;;  %v2901_v50 = vcvt.s32.f32 %v2037_v58  ;;  %v3764_v51 = vmul.f32 %v9821_v48, %v2882_v25  ;;  %v3694_v20 = vmul.f32 %v9971_v60, %v2812_v4 }
 0x241   :  { %v3712_v57 = vmul.f32 %v9971_v60, %v2830_v31  ;;  %v3695_v32 = vmul.f32 %v9973_v28, %v2813_v8  ;;  %v3713_v44 = vmul.f32 %v9973_v28, %v2831_v18  ;;  %v2054_v31 = vunpack.c.2.s8 %v10469_v11 }
 0x242   :  { %v5526_v40 = vpop.f32.mrf.mxu2  ;;  %v3783_v24 = vmul.f32 %v9823_v42, %v2901_v50  ;;  %v2002_v50 = vunpack.c.3.s8 %v10474_v6  ;;  %v2055_v8 = vunpack.c.2.s8 %v10481_v61  ;;  %v2073_v18 = vunpack.c.3.s8 %v10481_v61 }
 0x243   :  { %v5527_v3 = vadd.f32 %v5526_v40, %v10376_v12  ;;  %v5655_v7 = vpop.f32.mrf.mxu3  ;;  %v3782_v12 = vmul.f32 %v9821_v48, %v2900_v36  ;;  %v4342_v36 = vpack.c.bf16 %v3712_v57, %v3694_v20 }
 0x244   :  { %v5280_v29 = vpop.f32.mrf.mxu0 }
 0x245   :  { %v10497_v15 = vadd.f32 %v5655_v7, %v5527_v3  ;;  %v5281_v54 = vadd.f32 %v5280_v29, %v10001_v63  ;;  %v5409_v46 = vpop.f32.mrf.mxu1  ;;  %v3765_v63 = vmul.f32 %v9823_v42, %v2883_v14  ;;  %v4376_v25 = vpack.c.bf16 %v3782_v12, %v3764_v51 }
 0x246   :  { %v1984_v14 = vunpack.c.2.s8 %v10474_v6  ;;  %v1985_v51 = vunpack.c.2.s8 %v10486_v30  ;;  %v2003_v12 = vunpack.c.3.s8 %v10486_v30 }
 0x247   :  { %v10500_v59 = vadd.f32 %v5409_v46, %v5281_v54  ;;  %v4377_v54 = vpack.c.bf16 %v3783_v24, %v3765_v63  ;;  %v4343_v46 = vpack.c.bf16 %v3713_v44, %v3695_v32  ;;  %v2918_v63 = vcvt.s32.f32 %v2054_v31 }
 0x248   :  { %v2848_v44 = vcvt.s32.f32 %v1984_v14  ;;  %v2849_v61 = vcvt.s32.f32 %v1985_v51 }
 0x249   :  { %v3800_v30 = vmul.f32 %v9821_v48, %v2918_v63 }
 0x24a   :  { %v5528_v40 = vpop.f32.mrf.mxu2  ;;  %v3731_v31 = vmul.f32 %v9973_v28, %v2849_v61  ;;  %v4654_v61 = vld [vmem:[%s14845_s3 + $0x320] sm:$0xff] }
 0x24b   :  { %v5529_v58 = vadd.f32 %v5528_v40, %v10400_v35  ;;  %v5657_v33 = vpop.f32.mrf.mxu3  ;;  %v2072_v35 = vunpack.c.3.s8 %v10469_v11 }
 0x24c   :  { %v5283_v34 = vpop.f32.mrf.mxu0 }
 0x24d   :  { %v10511_v3 = vadd.f32 %v5657_v33, %v5529_v58  ;;  %v5284_v7 = vadd.f32 %v5283_v34, %v10023_v37  ;;  %v5412_v29 = vpop.f32.mrf.mxu1  ;;  %v2936_v24 = vcvt.s32.f32 %v2072_v35  ;;  %v2866_v58 = vcvt.s32.f32 %v2002_v50 }
 0x24e   :  { %v2919_v33 = vcvt.s32.f32 %v2055_v8  ;;  %v2937_v34 = vcvt.s32.f32 %v2073_v18 }
 0x24f   :  { %v10514_v4 = vadd.f32 %v5412_v29, %v5284_v7  ;;  %5322 = vmatmul.bf16.gmra.mxu0 %v4376_v25  ;;  %5570 = vmatmul.bf16.gmra.mxu2 %v4342_v36  ;;  %v2867_v7 = vcvt.s32.f32 %v2003_v12  ;;  %v3730_v25 = vmul.f32 %v9971_v60, %v2848_v44  ;;  %v3748_v36 = vmul.f32 %v9971_v60, %v2866_v58 }
 0x250   :  { %5451 = vmatmul.bf16.gmra.mxu1 %v4377_v54  ;;  %5699 = vmatmul.bf16.gmra.mxu3 %v4343_v46  ;;  %v3819_v46 = vmul.f32 %v9823_v42, %v2937_v34  ;;  %v4687_v34 = vld [vmem:[%s14845_s3 + $0x428] sm:$0xff] }
 0x251   :  { %v3749_v35 = vmul.f32 %v9973_v28, %v2867_v7 }
 0x252   :  { %v5531_v37 = vpop.f32.mrf.mxu2 }
 0x253   :  { %v5532_v20 = vadd.f32 %v5531_v37, %v10414_v2  ;;  %v5660_v57 = vpop.f32.mrf.mxu3  ;;  %v3818_v2 = vmul.f32 %v9821_v48, %v2936_v24  ;;  %v4361_v63 = vpack.c.bf16 %v3749_v35, %v3731_v31  ;;  %v10555_v24 = vld [vmem:[%s14847_s4 + $0x410] sm:$0xff] }
 0x254   :  { %v5285_v40 = vpop.f32.mrf.mxu0 }
 0x255   :  { %v10525_v11 = vadd.f32 %v5660_v57, %v5532_v20  ;;  %v5286_v32 = vadd.f32 %v5285_v40, %v10069_v56  ;;  %v5414_v6 = vpop.f32.mrf.mxu1  ;;  %v3801_v56 = vmul.f32 %v9823_v42, %v2919_v33  ;;  %v4394_v12 = vpack.c.bf16 %v3818_v2, %v3800_v30  ;;  %v10545_v57 = vld [vmem:[%s14847_s4 + $0x490] sm:$0xff]  ;;  %v10550_v40 = vld [vmem:[%s14847_s4 + $0x498] sm:$0xff]  ;;  %v4686_v33 = vld [vmem:[%s14845_s3 + $0x420] sm:$0xff] }
 0x256   :  { %v4360_v20 = vpack.c.bf16 %v3748_v36, %v3730_v25  ;;  %v2108_v44 = vunpack.c.1.s8 %v10545_v57  ;;  %v2091_v58 = vunpack.c.0.s8 %v10550_v40  ;;  %v2109_v7 = vunpack.c.1.s8 %v10550_v40  ;;  %v4655_v36 = vld [vmem:[%s14845_s3 + $0x328] sm:$0xff] }
 0x257   :  { %14895 = vst [vmem:[#allocation31_spill] sm:$0xff] %v10525_v11  ;;  %v10528_v29 = vadd.f32 %v5414_v6, %v5286_v32  ;;  %v10562_v32 = vld [vmem:[%s14847_s4 + $0x418] sm:$0xff]  ;;  %v2090_v6 = vunpack.c.0.s8 %v10545_v57  ;;  %v2020_v30 = vunpack.c.0.s8 %v10555_v24  ;;  %v2038_v2 = vunpack.c.1.s8 %v10555_v24 }
 0x258   :  { %v4908_v25 = vpack.c.bf16 %v4687_v34, %v4686_v33  ;;  %v2021_v31 = vunpack.c.0.s8 %v10562_v32  ;;  %v2039_v35 = vunpack.c.1.s8 %v10562_v32 }
 0x259   :  { %v2902_v11 = vcvt.s32.f32 %v2038_v2 }
 0x25a   :  { %v5533_v54 = vpop.f32.mrf.mxu2  ;;  %6023 = vmatpush.bf16.msra.mxu2 %v4908_v25 }
 0x25b   :  { %v5534_v14 = vadd.f32 %v5533_v54, %v10452_v55  ;;  %v5662_v50 = vpop.f32.mrf.mxu3  ;;  %v4395_v55 = vpack.c.bf16 %v3819_v46, %v3801_v56  ;;  %v4702_v54 = vld [vmem:[%s14845_s3 + $0x4a0] sm:$0xff]  ;;  %v4703_v56 = vld [vmem:[%s14845_s3 + $0x4a8] sm:$0xff] }
 0x25c   :  { %v5288_v37 = vpop.f32.mrf.mxu0 }
 0x25d   :  { %v10539_v8 = vadd.f32 %v5662_v50, %v5534_v14  ;;  %v5289_v18 = vadd.f32 %v5288_v37, %v10081_v23  ;;  %v5417_v51 = vpop.f32.mrf.mxu1  ;;  %v4892_v14 = vpack.c.bf16 %v4655_v36, %v4654_v61  ;;  %v4916_v50 = vpack.c.bf16 %v4703_v56, %v4702_v54  ;;  %v4670_v61 = vld [vmem:[%s14845_s3 + $0x3a0] sm:$0xff] }
 0x25e   :  { %v3784_v54 = vmul.f32 %v9971_v60, %v2902_v11 }
 0x25f   :  { %14896 = vst [vmem:[#allocation32_spill] sm:$0xff] %v10539_v8  ;;  %v10557_v23 = vadd.f32 %v5417_v51, %v5289_v18  ;;  %5327 = vmatmul.bf16.gmra.mxu0 %v4394_v12  ;;  %5575 = vmatmul.bf16.gmra.mxu2 %v4360_v20  ;;  %v2954_v12 = vcvt.s32.f32 %v2090_v6  ;;  %v2972_v20 = vcvt.s32.f32 %v2108_v44  ;;  %v2884_v8 = vcvt.s32.f32 %v2020_v30 }
 0x260   :  { %5456 = vmatmul.bf16.gmra.mxu1 %v4395_v55  ;;  %5704 = vmatmul.bf16.gmra.mxu3 %v4361_v63  ;;  %v2955_v55 = vcvt.s32.f32 %v2091_v58  ;;  %v2973_v6 = vcvt.s32.f32 %v2109_v7  ;;  %v2885_v44 = vcvt.s32.f32 %v2021_v31  ;;  %v2903_v58 = vcvt.s32.f32 %v2039_v35 }
 0x261   :  { %5765 = vmatpush.bf16.msrb.mxu0 %v4892_v14  ;;  %6152 = vmatpush.bf16.msra.mxu3 %v4916_v50  ;;  %v3854_v30 = vmul.f32 %v9821_v48, %v2972_v20  ;;  %v3766_v2 = vmul.f32 %v9971_v60, %v2884_v8 }
 0x262   :  { %v5536_v46 = vpop.f32.mrf.mxu2  ;;  %v3855_v14 = vmul.f32 %v9823_v42, %v2973_v6  ;;  %v3767_v7 = vmul.f32 %v9973_v28, %v2885_v44  ;;  %v3785_v31 = vmul.f32 %v9973_v28, %v2903_v58  ;;  %v2127_v6 = vunpack.c.2.s8 %v10550_v40 }
 0x263   :  { %v5537_v37 = vadd.f32 %v5536_v46, %v10476_v21  ;;  %v5665_v18 = vpop.f32.mrf.mxu3  ;;  %v4671_v21 = vld [vmem:[%s14845_s3 + $0x3a8] sm:$0xff]  ;;  %v3837_v46 = vmul.f32 %v9823_v42, %v2955_v55  ;;  %v4378_v11 = vpack.c.bf16 %v3784_v54, %v3766_v2  ;;  %v2145_v44 = vunpack.c.3.s8 %v10550_v40 }
 0x264   :  { %v5290_v51 = vpop.f32.mrf.mxu0  ;;  %v4900_v25 = vpack.c.bf16 %v4671_v21, %v4670_v61  ;;  %v2056_v61 = vunpack.c.2.s8 %v10555_v24  ;;  %v2074_v21 = vunpack.c.3.s8 %v10555_v24  ;;  %v2057_v58 = vunpack.c.2.s8 %v10562_v32 }
 0x265   :  { %v10591_v63 = vadd.f32 %v5665_v18, %v5537_v37  ;;  %v5291_v33 = vadd.f32 %v5290_v51, %v10093_v9  ;;  %v5419_v34 = vpop.f32.mrf.mxu1  ;;  %v3836_v9 = vmul.f32 %v9821_v48, %v2954_v12  ;;  %v4413_v20 = vpack.c.bf16 %v3855_v14, %v3837_v46 }
 0x266   :  { %5894 = vmatpush.bf16.msrb.mxu1 %v4900_v25  ;;  %v2075_v25 = vunpack.c.3.s8 %v10562_v32  ;;  %v2920_v14 = vcvt.s32.f32 %v2056_v61  ;;  %v2921_v40 = vcvt.s32.f32 %v2057_v58 }
 0x267   :  { %v10600_v36 = vadd.f32 %v5419_v34, %v5291_v33  ;;  %v4412_v12 = vpack.c.bf16 %v3854_v30, %v3836_v9  ;;  %v4379_v33 = vpack.c.bf16 %v3785_v31, %v3767_v7  ;;  %v2126_v34 = vunpack.c.2.s8 %v10545_v57 }
 0x268   :  { %v2938_v7 = vcvt.s32.f32 %v2074_v21  ;;  %v2991_v31 = vcvt.s32.f32 %v2127_v6 }
 0x269   :  { %v2990_v54 = vcvt.s32.f32 %v2126_v34 }
 0x26a   :  { %v5538_v56 = vpop.f32.mrf.mxu2 }
 0x26b   :  { %v5539_v35 = vadd.f32 %v5538_v56, %v10500_v59  ;;  %v5667_v50 = vpop.f32.mrf.mxu3  ;;  %v2144_v59 = vunpack.c.3.s8 %v10545_v57  ;;  %v3872_v32 = vmul.f32 %v9821_v48, %v2990_v54  ;;  %v10662_v54 = vld [vmem:[%s14847_s4 + $0x4a8] sm:$0xff] }
 0x26c   :  { %v5293_v37 = vpop.f32.mrf.mxu0 }
 0x26d   :  { %v10611_v18 = vadd.f32 %v5667_v50, %v5539_v35  ;;  %v5294_v51 = vadd.f32 %v5293_v37, %v10110_v47  ;;  %v5422_v8 = vpop.f32.mrf.mxu1  ;;  %v3008_v56 = vcvt.s32.f32 %v2144_v59  ;;  %v3009_v35 = vcvt.s32.f32 %v2145_v44 }
 0x26e   :  { %v2939_v50 = vcvt.s32.f32 %v2075_v25  ;;  %v10645_v25 = vld [vmem:[%s14847_s4 + $0x520] sm:$0xff] }
 0x26f   :  { %v10614_v55 = vadd.f32 %v5422_v8, %v5294_v51  ;;  %5332 = vmatmul.bf16.gmra.mxu0 %v4412_v12  ;;  %5580 = vmatmul.bf16.gmra.mxu2 %v4378_v11  ;;  %v3802_v51 = vmul.f32 %v9971_v60, %v2920_v14  ;;  %v3820_v8 = vmul.f32 %v9971_v60, %v2938_v7 }
 0x270   :  { %5461 = vmatmul.bf16.gmra.mxu1 %v4413_v20  ;;  %5709 = vmatmul.bf16.gmra.mxu3 %v4379_v33  ;;  %v3891_v11 = vmul.f32 %v9823_v42, %v3009_v35  ;;  %v3803_v20 = vmul.f32 %v9973_v28, %v2921_v40  ;;  %v3821_v33 = vmul.f32 %v9973_v28, %v2939_v50  ;;  %v2093_v40 = vunpack.c.0.s8 %v10662_v54 }
 0x271   :  { %v4396_v58 = vpack.c.bf16 %v3820_v8, %v3802_v51  ;;  %v2111_v50 = vunpack.c.1.s8 %v10662_v54 }
 0x272   :  { %v5541_v47 = vpop.f32.mrf.mxu2 }
 0x273   :  { %v5542_v9 = vadd.f32 %v5541_v47, %v10514_v4  ;;  %v5670_v30 = vpop.f32.mrf.mxu3  ;;  %v3890_v4 = vmul.f32 %v9821_v48, %v3008_v56  ;;  %v2162_v56 = vunpack.c.0.s8 %v10645_v25 }
 0x274   :  { %v5295_v2 = vpop.f32.mrf.mxu0 }
 0x275   :  { %v10625_v57 = vadd.f32 %v5670_v30, %v5542_v9  ;;  %v5296_v46 = vadd.f32 %v5295_v2, %v10137_v52  ;;  %v5424_v24 = vpop.f32.mrf.mxu1  ;;  %v3873_v52 = vmul.f32 %v9823_v42, %v2991_v31  ;;  %v4430_v44 = vpack.c.bf16 %v3890_v4, %v3872_v32 }
 0x276   :  { %v4397_v30 = vpack.c.bf16 %v3821_v33, %v3803_v20  ;;  %v3026_v8 = vcvt.s32.f32 %v2162_v56 }
 0x277   :  { %v10628_v37 = vadd.f32 %v5424_v24, %v5296_v46  ;;  %v4431_v9 = vpack.c.bf16 %v3891_v11, %v3873_v52  ;;  %v2180_v46 = vunpack.c.1.s8 %v10645_v25 }
 0x27a   :  { %v5543_v12 = vpop.f32.mrf.mxu2 }
 0x27b   :  { %v5544_v34 = vadd.f32 %v5543_v12, %v10528_v29  ;;  %v5672_v59 = vpop.f32.mrf.mxu3  ;;  %v10650_v29 = vld [vmem:[%s14847_s4 + $0x4a0] sm:$0xff]  ;;  %v3044_v12 = vcvt.s32.f32 %v2180_v46 }
 0x27c   :  { %v5298_v61 = vpop.f32.mrf.mxu0  ;;  %v2092_v24 = vunpack.c.0.s8 %v10650_v29  ;;  %v2110_v14 = vunpack.c.1.s8 %v10650_v29 }
 0x27d   :  { %v10639_v21 = vadd.f32 %v5672_v59, %v5544_v34  ;;  %v5299_v47 = vadd.f32 %v5298_v61, %v10149_v17  ;;  %v5427_v6 = vpop.f32.mrf.mxu1  ;;  %v10657_v17 = vld [vmem:[%s14847_s4 + $0x528] sm:$0xff] }
 0x27e   :  { %v2163_v31 = vunpack.c.0.s8 %v10657_v17  ;;  %v2181_v35 = vunpack.c.1.s8 %v10657_v17  ;;  %v2956_v33 = vcvt.s32.f32 %v2092_v24  ;;  %v2974_v34 = vcvt.s32.f32 %v2110_v14 }
 0x27f   :  { %v10652_v2 = vadd.f32 %v5427_v6, %v5299_v47  ;;  %5337 = vmatmul.bf16.gmra.mxu0 %v4430_v44  ;;  %5585 = vmatmul.bf16.gmra.mxu2 %v4396_v58  ;;  %v2957_v47 = vcvt.s32.f32 %v2093_v40  ;;  %v2975_v6 = vcvt.s32.f32 %v2111_v50  ;;  %v3908_v58 = vmul.f32 %v9821_v48, %v3026_v8 }
 0x280   :  { %5466 = vmatmul.bf16.gmra.mxu1 %v4431_v9  ;;  %5714 = vmatmul.bf16.gmra.mxu3 %v4397_v30  ;;  %v3027_v59 = vcvt.s32.f32 %v2163_v31  ;;  %v3045_v61 = vcvt.s32.f32 %v2181_v35  ;;  %v3838_v9 = vmul.f32 %v9971_v60, %v2956_v33  ;;  %v3856_v30 = vmul.f32 %v9971_v60, %v2974_v34  ;;  %v4685_v34 = vld [vmem:[%s14845_s3 + $0x418] sm:$0xff] }
 0x281   :  { %v3839_v24 = vmul.f32 %v9973_v28, %v2957_v47  ;;  %v3857_v14 = vmul.f32 %v9973_v28, %v2975_v6  ;;  %v2199_v33 = vunpack.c.2.s8 %v10657_v17  ;;  %v2128_v47 = vunpack.c.2.s8 %v10650_v29 }
 0x282   :  { %v5546_v7 = vpop.f32.mrf.mxu2  ;;  %v3927_v46 = vmul.f32 %v9823_v42, %v3045_v61  ;;  %v2217_v61 = vunpack.c.3.s8 %v10657_v17  ;;  %v2129_v17 = vunpack.c.2.s8 %v10662_v54 }
 0x283   :  { %v5547_v32 = vadd.f32 %v5546_v7, %v10557_v23  ;;  %v5675_v4 = vpop.f32.mrf.mxu3  ;;  %v3926_v23 = vmul.f32 %v9821_v48, %v3044_v12  ;;  %v4415_v12 = vpack.c.bf16 %v3857_v14, %v3839_v24 }
 0x284   :  { %v5300_v51 = vpop.f32.mrf.mxu0 }
 0x285   :  { %v10673_v52 = vadd.f32 %v5675_v4, %v5547_v32  ;;  %v5301_v11 = vadd.f32 %v5300_v51, %v10185_v22  ;;  %v5429_v20 = vpop.f32.mrf.mxu1  ;;  %v3909_v22 = vmul.f32 %v9823_v42, %v3027_v59  ;;  %v4448_v4 = vpack.c.bf16 %v3926_v23, %v3908_v58  ;;  %v4652_v59 = vld [vmem:[%s14845_s3 + $0x310] sm:$0xff]  ;;  %v4653_v58 = vld [vmem:[%s14845_s3 + $0x318] sm:$0xff] }
 0x286   :  { %v4414_v51 = vpack.c.bf16 %v3856_v30, %v3838_v9  ;;  %v4700_v23 = vld [vmem:[%s14845_s3 + $0x490] sm:$0xff]  ;;  %v4701_v9 = vld [vmem:[%s14845_s3 + $0x498] sm:$0xff] }
 0x287   :  { %v10676_v44 = vadd.f32 %v5429_v20, %v5301_v11  ;;  %v4449_v8 = vpack.c.bf16 %v3927_v46, %v3909_v22  ;;  %v2198_v20 = vunpack.c.2.s8 %v10645_v25  ;;  %v4891_v22 = vpack.c.bf16 %v4653_v58, %v4652_v59 }
 0x289   :  { %5766 = vmatpush.bf16.msrb.mxu0 %v4891_v22 }
 0x28a   :  { %v5548_v56 = vpop.f32.mrf.mxu2 }
 0x28b   :  { %v5549_v7 = vadd.f32 %v5548_v56, %v10600_v36  ;;  %v5677_v31 = vpop.f32.mrf.mxu3  ;;  %v2216_v36 = vunpack.c.3.s8 %v10645_v25  ;;  %v2146_v25 = vunpack.c.3.s8 %v10650_v29  ;;  %v2147_v56 = vunpack.c.3.s8 %v10662_v54  ;;  %v4668_v54 = vld [vmem:[%s14845_s3 + $0x390] sm:$0xff] }
 0x28c   :  { %v5303_v35 = vpop.f32.mrf.mxu0  ;;  %v4915_v29 = vpack.c.bf16 %v4701_v9, %v4700_v23 }
 0x28d   :  { %v10687_v40 = vadd.f32 %v5677_v31, %v5549_v7  ;;  %v5304_v50 = vadd.f32 %v5303_v35, %v10202_v10  ;;  %v5432_v32 = vpop.f32.mrf.mxu1  ;;  %v4684_v10 = vld [vmem:[%s14845_s3 + $0x410] sm:$0xff]  ;;  %v3062_v7 = vcvt.s32.f32 %v2198_v20  ;;  %v3080_v31 = vcvt.s32.f32 %v2216_v36 }
 0x28e   :  { %v4907_v6 = vpack.c.bf16 %v4685_v34, %v4684_v10  ;;  %v3063_v35 = vcvt.s32.f32 %v2199_v33  ;;  %6153 = vmatpush.bf16.msra.mxu3 %v4915_v29  ;;  %v2993_v20 = vcvt.s32.f32 %v2129_v17  ;;  %v3011_v36 = vcvt.s32.f32 %v2147_v56 }
 0x28f   :  { %v10690_v11 = vadd.f32 %v5432_v32, %v5304_v50  ;;  %5342 = vmatmul.bf16.gmra.mxu0 %v4448_v4  ;;  %5590 = vmatmul.bf16.gmra.mxu2 %v4414_v51  ;;  %v2992_v51 = vcvt.s32.f32 %v2128_v47  ;;  %v3962_v34 = vmul.f32 %v9821_v48, %v3080_v31 }
 0x290   :  { %5471 = vmatmul.bf16.gmra.mxu1 %v4449_v8  ;;  %5719 = vmatmul.bf16.gmra.mxu3 %v4415_v12  ;;  %v3010_v8 = vcvt.s32.f32 %v2146_v25  ;;  %v3081_v12 = vcvt.s32.f32 %v2217_v61  ;;  %v3875_v61 = vmul.f32 %v9973_v28, %v2993_v20  ;;  %v3893_v23 = vmul.f32 %v9973_v28, %v3011_v36 }
 0x291   :  { %6024 = vmatpush.bf16.msra.mxu2 %v4907_v6  ;;  %v3874_v59 = vmul.f32 %v9971_v60, %v2992_v51  ;;  %v3945_v6 = vmul.f32 %v9823_v42, %v3063_v35 }
 0x292   :  { %v5551_v30 = vpop.f32.mrf.mxu2  ;;  %v3892_v47 = vmul.f32 %v9971_v60, %v3010_v8  ;;  %v3963_v58 = vmul.f32 %v9823_v42, %v3081_v12  ;;  %v4433_v31 = vpack.c.bf16 %v3893_v23, %v3875_v61 }
 0x293   :  { %v5552_v46 = vadd.f32 %v5551_v30, %v10614_v55  ;;  %v5680_v24 = vpop.f32.mrf.mxu3  ;;  %v4669_v55 = vld [vmem:[%s14845_s3 + $0x398] sm:$0xff] }
 0x294   :  { %v5305_v14 = vpop.f32.mrf.mxu0  ;;  %v4899_v33 = vpack.c.bf16 %v4669_v55, %v4668_v54 }
 0x295   :  { %v10719_v50 = vadd.f32 %v5680_v24, %v5552_v46  ;;  %v5306_v32 = vadd.f32 %v5305_v14, %v10229_v41  ;;  %v5434_v4 = vpop.f32.mrf.mxu1  ;;  %v3944_v41 = vmul.f32 %v9821_v48, %v3062_v7  ;;  %v4432_v24 = vpack.c.bf16 %v3892_v47, %v3874_v59  ;;  %v10745_v14 = vld [vmem:[%s14847_s4 + $0x5b0] sm:$0xff] }
 0x296   :  { %5895 = vmatpush.bf16.msrb.mxu1 %v4899_v33  ;;  %v4467_v7 = vpack.c.bf16 %v3963_v58, %v3945_v6  ;;  %v2252_v51 = vunpack.c.1.s8 %v10745_v14 }
 0x297   :  { %v10728_v10 = vadd.f32 %v5434_v4, %v5306_v32  ;;  %v4466_v46 = vpack.c.bf16 %v3962_v34, %v3944_v41  ;;  %v10762_v32 = vld [vmem:[%s14847_s4 + $0x538] sm:$0xff]  ;;  %v2234_v4 = vunpack.c.0.s8 %v10745_v14  ;;  %v8350_v41 = vld [vmem:[%s14846_s2] sm:$0xff] }
 0x298   :  { %v2165_v36 = vunpack.c.0.s8 %v10762_v32  ;;  %v2183_v33 = vunpack.c.1.s8 %v10762_v32  ;;  %v686_v34 = vperm.slane %v8350_v41, 6  ;;  %v3116_v61 = vcvt.s32.f32 %v2252_v51 }
 0x299   :  { %v3098_v58 = vcvt.s32.f32 %v2234_v4 }
 0x29a   :  { %v5553_v25 = vpop.f32.mrf.mxu2  ;;  %v3998_v51 = vmul.f32 %v9821_v48, %v3116_v61 }
 0x29b   :  { %v5554_v9 = vadd.f32 %v5553_v25, %v10628_v37  ;;  %v5682_v30 = vpop.f32.mrf.mxu3  ;;  %v10750_v37 = vld [vmem:[%s14847_s4 + $0x530] sm:$0xff]  ;;  %v687_v25 = vperm.slane %v8350_v41, 7  ;;  %v3980_v4 = vmul.f32 %v9821_v48, %v3098_v58 }
 0x29c   :  { %v5308_v17 = vpop.f32.mrf.mxu0  ;;  %v2164_v8 = vunpack.c.0.s8 %v10750_v37  ;;  %v2182_v54 = vunpack.c.1.s8 %v10750_v37 }
 0x29d   :  { %v10739_v56 = vadd.f32 %v5682_v30, %v5554_v9  ;;  %v5309_v22 = vadd.f32 %v5308_v17, %v9654_v39  ;;  %v5437_v29 = vpop.f32.mrf.mxu1  ;;  %v10757_v39 = vld [vmem:[%s14847_s4 + $0x5b8] sm:$0xff] }
 0x29e   :  { %v2235_v12 = vunpack.c.0.s8 %v10757_v39  ;;  %v2253_v20 = vunpack.c.1.s8 %v10757_v39  ;;  %v3028_v17 = vcvt.s32.f32 %v2164_v8 }
 0x29f   :  { %14897 = vst [vmem:[#allocation33_spill] sm:$0xff] %v10739_v56  ;;  %v10752_v35 = vadd.f32 %v5437_v29, %v5309_v22  ;;  %5347 = vmatmul.bf16.gmra.mxu0 %v4466_v46  ;;  %5595 = vmatmul.bf16.gmra.mxu2 %v4432_v24  ;;  %v3046_v22 = vcvt.s32.f32 %v2182_v54  ;;  %v3029_v24 = vcvt.s32.f32 %v2165_v36 }
 0x2a0   :  { %5476 = vmatmul.bf16.gmra.mxu1 %v4467_v7  ;;  %5724 = vmatmul.bf16.gmra.mxu3 %v4433_v31  ;;  %v3099_v29 = vcvt.s32.f32 %v2235_v12  ;;  %v3117_v46 = vcvt.s32.f32 %v2253_v20  ;;  %v3047_v7 = vcvt.s32.f32 %v2183_v33  ;;  %v808_v31 = vadd.f32 %v9343_v43, %v686_v34 }
 0x2a1   :  { %v3911_v20 = vmul.f32 %v9973_v28, %v3029_v24 }
 0x2a2   :  { %v5556_v55 = vpop.f32.mrf.mxu2  ;;  %v3981_v54 = vmul.f32 %v9823_v42, %v3099_v29  ;;  %v3999_v12 = vmul.f32 %v9823_v42, %v3117_v46  ;;  %v3929_v43 = vmul.f32 %v9973_v28, %v3047_v7  ;;  %v960_v36 = vsub.f32 0.0, %v808_v31 }
 0x2a3   :  { %v5557_v59 = vadd.f32 %v5556_v55, %v10652_v2  ;;  %v5685_v47 = vpop.f32.mrf.mxu3  ;;  %v821_v2 = vadd.f32 %v9353_v53, %v687_v25  ;;  %v3910_v55 = vmul.f32 %v9971_v60, %v3028_v17  ;;  %v2288_v29 = vunpack.c.3.s8 %v10745_v14 }
 0x2a4   :  { %v5310_v6 = vpop.f32.mrf.mxu0  ;;  %v4485_v61 = vpack.c.bf16 %v3999_v12, %v3981_v54  ;;  %v2200_v46 = vunpack.c.2.s8 %v10750_v37  ;;  %v2271_v7 = vunpack.c.2.s8 %v10757_v39  ;;  %v2289_v31 = vunpack.c.3.s8 %v10757_v39 }
 0x2a5   :  { %v10776_v23 = vadd.f32 %v5685_v47, %v5557_v59  ;;  %v5311_v9 = vadd.f32 %v5310_v6, %v9687_v5  ;;  %v5439_v30 = vpop.f32.mrf.mxu1  ;;  %v3928_v5 = vmul.f32 %v9971_v60, %v3046_v22  ;;  %v961_v41 = vsub.f32 0.0, %v821_v2 }
 0x2a6   :  { %v4484_v6 = vpack.c.bf16 %v3998_v51, %v3980_v4  ;;  %v2201_v2 = vunpack.c.2.s8 %v10762_v32  ;;  %v2219_v4 = vunpack.c.3.s8 %v10762_v32  ;;  %v3135_v39 = vcvt.s32.f32 %v2271_v7 }
 0x2a7   :  { %v10780_v56 = vadd.f32 %v5439_v30, %v5311_v9  ;;  %v4450_v58 = vpack.c.bf16 %v3928_v5, %v3910_v55  ;;  %v4451_v9 = vpack.c.bf16 %v3929_v43, %v3911_v20  ;;  %v984_v30 = vmul.f32 1.442695, %v960_v36 }
 0x2a8   :  { %v986_v22 = vmul.f32 1.442695, %v961_v41  ;;  %v3064_v20 = vcvt.s32.f32 %v2200_v46  ;;  %v3153_v36 = vcvt.s32.f32 %v2289_v31 }
 0x2a9   :  { %8299 = vpow2.f32 %v984_v30 }
 0x2aa   :  { %v5558_v8 = vpop.f32.mrf.mxu2  ;;  %8301 = vpow2.f32 %v986_v22 }
 0x2ab   :  { %v5559_v53 = vadd.f32 %v5558_v8, %v10676_v44  ;;  %v5687_v33 = vpop.f32.mrf.mxu3  ;;  %v2270_v44 = vunpack.c.2.s8 %v10745_v14  ;;  %v3152_v8 = vcvt.s32.f32 %v2288_v29 }
 0x2ac   :  { %v5313_v34 = vpop.f32.mrf.mxu0 }
 0x2ad   :  { %v10792_v59 = vadd.f32 %v5687_v33, %v5559_v53  ;;  %v5314_v47 = vadd.f32 %v5313_v34, %v9719_v13  ;;  %v5442_v25 = vpop.f32.mrf.mxu1  ;;  %v2218_v13 = vunpack.c.3.s8 %v10750_v37  ;;  %v3134_v14 = vcvt.s32.f32 %v2270_v44 }
 0x2ae   :  { %v3065_v53 = vcvt.s32.f32 %v2201_v2  ;;  %v3083_v33 = vcvt.s32.f32 %v2219_v4  ;;  %v4034_v34 = vmul.f32 %v9821_v48, %v3152_v8  ;;  %v10828_v4 = vld [vmem:[%s14847_s4 + $0x640] sm:$0xff] }
 0x2af   :  { %v10795_v17 = vadd.f32 %v5442_v25, %v5314_v47  ;;  %5352 = vmatmul.bf16.gmra.mxu0 %v4484_v6  ;;  %5600 = vmatmul.bf16.gmra.mxu2 %v4450_v58  ;;  %v3082_v43 = vcvt.s32.f32 %v2218_v13  ;;  %v8300_v41 = vpop.eup %8299  ;;  %v3946_v47 = vmul.f32 %v9971_v60, %v3064_v20  ;;  %v4017_v58 = vmul.f32 %v9823_v42, %v3135_v39 }
 0x2b0   :  { %5481 = vmatmul.bf16.gmra.mxu1 %v4485_v61  ;;  %5729 = vmatmul.bf16.gmra.mxu3 %v4451_v9  ;;  %v8302_v6 = vpop.eup %8301  ;;  %v4035_v61 = vmul.f32 %v9823_v42, %v3153_v36  ;;  %v3947_v9 = vmul.f32 %v9973_v28, %v3065_v53  ;;  %v3965_v30 = vmul.f32 %v9973_v28, %v3083_v33  ;;  %v10820_v29 = vadd.f32 1.0, %v8300_v41  ;;  %v4682_v36 = vld [vmem:[%s14845_s3 + $0x400] sm:$0xff]  ;;  %v4683_v53 = vld [vmem:[%s14845_s3 + $0x408] sm:$0xff] }
 0x2b1   :  { %v3964_v25 = vmul.f32 %v9971_v60, %v3082_v43  ;;  %v2306_v20 = vunpack.c.0.s8 %v10828_v4  ;;  %v2324_v43 = vunpack.c.1.s8 %v10828_v4  ;;  %v4650_v33 = vld [vmem:[%s14845_s3 + $0x300] sm:$0xff] }
 0x2b2   :  { %v5561_v24 = vpop.f32.mrf.mxu2  ;;  %8303 = vrcp.f32 %v10820_v29  ;;  %vm1121_vm9 = vweird.f32 %v10820_v29 }
 0x2b3   :  { %v5562_v51 = vadd.f32 %v5561_v24, %v10690_v11  ;;  %v5690_v55 = vpop.f32.mrf.mxu3  ;;  %v4016_v11 = vmul.f32 %v9821_v48, %v3134_v14  ;;  %v4468_v2 = vpack.c.bf16 %v3964_v25, %v3946_v47  ;;  %v8351_v14 = vld [vmem:[%s14846_s2 + $0x8] sm:$0xff]  ;;  %v4906_v47 = vpack.c.bf16 %v4683_v53, %v4682_v36 }
 0x2b4   :  { %v5315_v5 = vpop.f32.mrf.mxu0  ;;  %v688_v8 = vperm.slane %v8351_v14, 0  ;;  %v4651_v25 = vld [vmem:[%s14845_s3 + $0x308] sm:$0xff] }
 0x2b5   :  { %v10806_v54 = vadd.f32 %v5690_v55, %v5562_v51  ;;  %v5316_v37 = vadd.f32 %v5315_v5, %v9773_v16  ;;  %v5444_v12 = vpop.f32.mrf.mxu1  ;;  %v4502_v31 = vpack.c.bf16 %v4034_v34, %v4016_v11  ;;  %v4503_v51 = vpack.c.bf16 %v4035_v61, %v4017_v58  ;;  %v10838_v5 = vld [vmem:[%s14847_s4 + $0x5c0] sm:$0xff]  ;;  %6025 = vmatpush.bf16.msra.mxu2 %v4906_v47  ;;  %v14899_v53 = vld [vmem:[#allocation11_spill] sm:$0xff] }
 0x2b6   :  { %v4469_v55 = vpack.c.bf16 %v3965_v30, %v3947_v9  ;;  %v2236_v11 = vunpack.c.0.s8 %v10838_v5  ;;  %v2254_v34 = vunpack.c.1.s8 %v10838_v5  ;;  %v4890_v30 = vpack.c.bf16 %v4651_v25, %v4650_v33  ;;  %v14900_v47 = vld [vmem:[#allocation2_spill] sm:$0xff] }
 0x2b7   :  { %v10809_v32 = vadd.f32 %v5444_v12, %v5316_v37  ;;  %v10850_v12 = vld [vmem:[%s14847_s4 + $0x5c8] sm:$0xff] }
 0x2b8   :  { %v2237_v61 = vunpack.c.0.s8 %v10850_v12  ;;  %v2255_v9 = vunpack.c.1.s8 %v10850_v12  ;;  %5767 = vmatpush.bf16.msrb.mxu0 %v4890_v30 }
 0x2ba   :  { %v5563_v16 = vpop.f32.mrf.mxu2 }
 0x2bb   :  { %v5564_v22 = vadd.f32 %v5563_v16, %v10728_v10  ;;  %v5692_v44 = vpop.f32.mrf.mxu3  ;;  %v10833_v10 = vld [vmem:[%s14847_s4 + $0x648] sm:$0xff] }
 0x2bc   :  { %v5318_v46 = vpop.f32.mrf.mxu0  ;;  %v2307_v39 = vunpack.c.0.s8 %v10833_v10  ;;  %v2325_v41 = vunpack.c.1.s8 %v10833_v10  ;;  %v4699_v16 = vld [vmem:[%s14845_s3 + $0x488] sm:$0xff] }
 0x2bd   :  { %v10822_v13 = vadd.f32 %v5692_v44, %v5564_v22  ;;  %v5319_v24 = vadd.f32 %v5318_v46, %v9825_v49  ;;  %v5447_v7 = vpop.f32.mrf.mxu1  ;;  %v10840_v49 = vadd.f32 1.0, %v8302_v6  ;;  %v4698_v6 = vld [vmem:[%s14845_s3 + $0x480] sm:$0xff]  ;;  %v689_v44 = vperm.slane %v8351_v14, 1  ;;  %v10891_v14 = vpop.eup %8303 }
 0x2be   :  { %v4914_v22 = vpack.c.bf16 %v4699_v16, %v4698_v6  ;;  %v3100_v6 = vcvt.s32.f32 %v2236_v11  ;;  %v3118_v16 = vcvt.s32.f32 %v2254_v34  ;;  %vm1122_vm10 = vweird.f32 %v10891_v14 }
 0x2bf   :  { %v10845_v37 = vadd.f32 %v5447_v7, %v5319_v24  ;;  %5357 = vmatmul.bf16.gmra.mxu0 %v4502_v31  ;;  %5605 = vmatmul.bf16.gmra.mxu2 %v4468_v2  ;;  %8305 = vrcp.f32 %v10840_v49  ;;  %v834_v7 = vadd.f32 %v9355_v1, %v688_v8  ;;  %v3170_v2 = vcvt.s32.f32 %v2306_v20  ;;  %v4667_v1 = vld [vmem:[%s14845_s3 + $0x388] sm:$0xff]  ;;  %vm10948_vm13 = vmor %vm1121_vm9, %vm1122_vm10 }
 0x2c0   :  { %5486 = vmatmul.bf16.gmra.mxu1 %v4503_v51  ;;  %5734 = vmatmul.bf16.gmra.mxu3 %v4469_v55  ;;  %v3188_v51 = vcvt.s32.f32 %v2324_v43  ;;  %v3171_v55 = vcvt.s32.f32 %v2307_v39  ;;  %v3189_v8 = vcvt.s32.f32 %v2325_v41  ;;  %v3101_v20 = vcvt.s32.f32 %v2237_v61 }
 0x2c1   :  { %6154 = vmatpush.bf16.msra.mxu3 %v4914_v22  ;;  %v3119_v43 = vcvt.s32.f32 %v2255_v9  ;;  %v962_v11 = vsub.f32 0.0, %v834_v7  ;;  %v4052_v22 = vmul.f32 %v9821_v48, %v3170_v2  ;;  %v1117_v2 = vmul.f32 %v10891_v14, %v10820_v29 }
 0x2c2   :  { %v5566_v58 = vpop.f32.mrf.mxu2  ;;  %v4053_v61 = vmul.f32 %v9823_v42, %v3171_v55  ;;  %v4071_v9 = vmul.f32 %v9823_v42, %v3189_v8  ;;  %v14901_v55 = vld [vmem:[#allocation12_spill] sm:$0xff]  ;;  %vm1136_vm11 = vweird.f32 %v10840_v49 }
 0x2c3   :  { %v5567_v46 = vadd.f32 %v5566_v58, %v10752_v35  ;;  %v5695_v24 = vpop.f32.mrf.mxu3  ;;  %v4666_v35 = vld [vmem:[%s14845_s3 + $0x380] sm:$0xff]  ;;  %v847_v58 = vadd.f32 %v14900_v47, %v689_v44  ;;  %v3983_v44 = vmul.f32 %v9973_v28, %v3101_v20  ;;  %v4001_v7 = vmul.f32 %v9973_v28, %v3119_v43 }
 0x2c4   :  { %v5320_v31 = vpop.f32.mrf.mxu0  ;;  %v4898_v39 = vpack.c.bf16 %v4667_v1, %v4666_v35  ;;  %v4521_v43 = vpack.c.bf16 %v4071_v9, %v4053_v61  ;;  %v2361_v61 = vunpack.c.3.s8 %v10833_v10  ;;  %v2273_v9 = vunpack.c.2.s8 %v10850_v12 }
 0x2c5   :  { %v10882_v36 = vadd.f32 %v5695_v24, %v5567_v46  ;;  %v5321_v33 = vadd.f32 %v5320_v31, %v14899_v53  ;;  %v5449_v25 = vpop.f32.mrf.mxu1  ;;  %v10896_v34 = vpop.eup %8305  ;;  %v4070_v46 = vmul.f32 %v9821_v48, %v3188_v51  ;;  %v3982_v24 = vmul.f32 %v9971_v60, %v3100_v6 }
 0x2c6   :  { %5896 = vmatpush.bf16.msrb.mxu1 %v4898_v39  ;;  %v4000_v31 = vmul.f32 %v9971_v60, %v3118_v16  ;;  %v963_v53 = vsub.f32 0.0, %v847_v58  ;;  %v1132_v51 = vmul.f32 %v10896_v34, %v10840_v49  ;;  %v988_v6 = vmul.f32 1.442695, %v962_v11 }
 0x2c7   :  { %14898 = vst [vmem:[#allocation34_spill] sm:$0xff] %v10882_v36  ;;  %v10894_v30 = vadd.f32 %v5449_v25, %v5321_v33  ;;  %v4520_v20 = vpack.c.bf16 %v4070_v46, %v4052_v22  ;;  %v4487_v47 = vpack.c.bf16 %v4001_v7, %v3983_v44  ;;  %v2342_v11 = vunpack.c.2.s8 %v10828_v4 }
 0x2c8   :  { %v4486_v39 = vpack.c.bf16 %v4000_v31, %v3982_v24  ;;  %v990_v58 = vmul.f32 1.442695, %v963_v53  ;;  %v1133_v36 = vsub.f32 1.0, %v1132_v51  ;;  %8307 = vpow2.f32 %v988_v6 }
 0x2c9   :  { %v2272_v22 = vunpack.c.2.s8 %v10838_v5  ;;  %v2290_v46 = vunpack.c.3.s8 %v10838_v5  ;;  %v2343_v31 = vunpack.c.2.s8 %v10833_v10  ;;  %v2291_v44 = vunpack.c.3.s8 %v10850_v12 }
 0x2ca   :  { %v5568_v41 = vpop.f32.mrf.mxu2  ;;  %v1125_v7 = vand.u32 2147483647, %v10820_v29  ;;  %8309 = vpow2.f32 %v990_v58  ;;  %v1134_v5 = vmul.f32 %v10896_v34, %v1133_v36  ;;  %v3206_v6 = vcvt.s32.f32 %v2342_v11 }
 0x2cb   :  { %v5569_v33 = vadd.f32 %v5568_v41, %v10780_v56  ;;  %v5697_v25 = vpop.f32.mrf.mxu3  ;;  %v1118_v41 = vsub.f32 1.0, %v1117_v2  ;;  %v3155_v58 = vcvt.s32.f32 %v2291_v44  ;;  %v1140_v36 = vand.u32 2147483647, %v10840_v49 }
 0x2cc   :  { %v5323_v16 = vpop.f32.mrf.mxu0  ;;  %vm1137_vm12 = vweird.f32 %v10896_v34  ;;  %vm10956_vm14 = vcmp.eq.f32.partialorder %v1125_v7, 8.507059e+37 }
 0x2cd   :  { %v10911_v35 = vadd.f32 %v5697_v25, %v5569_v33  ;;  %v5324_v1 = vadd.f32 %v5323_v16, %v14901_v55  ;;  %v5452_v8 = vpop.f32.mrf.mxu1  ;;  %v2360_v33 = vunpack.c.3.s8 %v10828_v4  ;;  %v1127_v4 = vand.u32 2147483648, %v10820_v29  ;;  %v14902_v55 = vld [vmem:[#allocation13_spill] sm:$0xff]  ;;  %vm10962_vm15 = vmor %vm1136_vm11, %vm1137_vm12 }
 0x2ce   :  { %v1119_v2 = vmul.f32 %v10891_v14, %v1118_v41  ;;  %vm10967_vm0 = vcmp.eq.f32.partialorder %v1140_v36, 8.507059e+37 }
 0x2cf   :  { %v10914_v56 = vadd.f32 %v5452_v8, %v5324_v1  ;;  %5362 = vmatmul.bf16.gmra.mxu0 %v4520_v20  ;;  %5610 = vmatmul.bf16.gmra.mxu2 %v4486_v39  ;;  %v3224_v16 = vcvt.s32.f32 %v2360_v33  ;;  %v3136_v8 = vcvt.s32.f32 %v2272_v22  ;;  %v3154_v20 = vcvt.s32.f32 %v2290_v46 }
 0x2d0   :  { %5491 = vmatmul.bf16.gmra.mxu1 %v4521_v43  ;;  %5739 = vmatmul.bf16.gmra.mxu3 %v4487_v47  ;;  %v3207_v39 = vcvt.s32.f32 %v2343_v31  ;;  %v3225_v43 = vcvt.s32.f32 %v2361_v61  ;;  %v3137_v47 = vcvt.s32.f32 %v2273_v9  ;;  %v1120_v11 = vadd.f32 %v10891_v14, %v1119_v2 }
 0x2d1   :  { %v1135_v33 = vadd.f32 %v10896_v34, %v1134_v5  ;;  %v1142_v22 = vand.u32 2147483648, %v10840_v49  ;;  %v4106_v31 = vmul.f32 %v9821_v48, %v3224_v16  ;;  %v4018_v61 = vmul.f32 %v9971_v60, %v3136_v8 }
 0x2d2   :  { %v5571_v24 = vpop.f32.mrf.mxu2  ;;  %v4036_v9 = vmul.f32 %v9971_v60, %v3154_v20  ;;  %v4107_v2 = vmul.f32 %v9823_v42, %v3225_v43  ;;  %v4019_v5 = vmul.f32 %v9973_v28, %v3137_v47  ;;  %v14912_v20 = vld [vmem:[#allocation14_spill] sm:$0xff] }
 0x2d3   :  { %v5572_v53 = vadd.f32 %v5571_v24, %v10795_v17  ;;  %v5700_v25 = vpop.f32.mrf.mxu3  ;;  %v8308_v17 = vpop.eup %8307  ;;  %v4088_v24 = vmul.f32 %v9821_v48, %v3206_v6 }
 0x2d4   :  { %v5325_v51 = vpop.f32.mrf.mxu0  ;;  %v8310_v46 = vpop.eup %8309  ;;  %v4504_v47 = vpack.c.bf16 %v4036_v9, %v4018_v61 }
 0x2d5   :  { %v10930_v10 = vadd.f32 %v5700_v25, %v5572_v53  ;;  %v5326_v1 = vadd.f32 %v5325_v51, %v14902_v55  ;;  %v5454_v12 = vpop.f32.mrf.mxu1  ;;  %v4089_v25 = vmul.f32 %v9823_v42, %v3207_v39  ;;  %v4037_v51 = vmul.f32 %v9973_v28, %v3155_v58 }
 0x2d6   :  { %v1128_v55 = vor.u32 1.1754944e-38, %v1127_v4  ;;  %v4538_v43 = vpack.c.bf16 %v4106_v31, %v4088_v24  ;;  %v1124_v4 = vsel %vm10948_vm13, %v10891_v14, %v1120_v11  ;;  %v1139_v58 = vsel %vm10962_vm15, %v10896_v34, %v1135_v33  ;;  %v10999_v14 = vld [vmem:[%s14847_s4 + $0x658] sm:$0xff] }
 0x2d7   :  { %v10936_v41 = vadd.f32 %v5454_v12, %v5326_v1  ;;  %v1143_v1 = vor.u32 1.1754944e-38, %v1142_v22  ;;  %v10971_v12 = vadd.f32 1.0, %v8308_v17  ;;  %v4539_v17 = vpack.c.bf16 %v4107_v2, %v4089_v25  ;;  %v10990_v22 = vld [vmem:[%s14847_s4 + $0x30] sm:$0xff]  ;;  %v11004_v34 = vld [vmem:[%s14847_s4 + $0x38] sm:$0xff] }
 0x2d8   :  { %v4505_v36 = vpack.c.bf16 %v4037_v51, %v4019_v5  ;;  %v10992_v24 = vadd.f32 1.0, %v8310_v46  ;;  %v1129_v46 = vsel %vm10956_vm14, %v1128_v55, %v1124_v4  ;;  %v1518_v9 = vunpack.c.0.s8 %v10990_v22 }
 0x2d9   :  { %8311 = vrcp.f32 %v10971_v12  ;;  %v1144_v61 = vsel %vm10967_vm0, %v1143_v1, %v1139_v58  ;;  %v1536_v44 = vunpack.c.1.s8 %v10990_v22  ;;  %v2309_v25 = vunpack.c.0.s8 %v10999_v14 }
 0x2da   :  { %v5573_v53 = vpop.f32.mrf.mxu2  ;;  %v2327_v2 = vunpack.c.1.s8 %v10999_v14  ;;  %v1519_v5 = vunpack.c.0.s8 %v11004_v34  ;;  %v1537_v51 = vunpack.c.1.s8 %v11004_v34  ;;  %8313 = vrcp.f32 %v10992_v24 }
 0x2db   :  { %v5574_v6 = vadd.f32 %v5573_v53, %v10809_v32  ;;  %v5702_v16 = vpop.f32.mrf.mxu3  ;;  %v10979_v32 = vld [vmem:[%s14847_s4 + $0x650] sm:$0xff]  ;;  %v3173_v58 = vcvt.s32.f32 %v2309_v25  ;;  %vm1151_vm1 = vweird.f32 %v10971_v12  ;;  %vm1166_vm3 = vweird.f32 %v10992_v24 }
 0x2dc   :  { %v5328_v7 = vpop.f32.mrf.mxu0  ;;  %v2308_v11 = vunpack.c.0.s8 %v10979_v32  ;;  %v2326_v33 = vunpack.c.1.s8 %v10979_v32 }
 0x2dd   :  { %v10973_v8 = vadd.f32 %v5702_v16, %v5574_v6  ;;  %v5329_v49 = vadd.f32 %v5328_v7, %v14912_v20  ;;  %v5457_v39 = vpop.f32.mrf.mxu1  ;;  %v11021_v6 = vperm.slane %v1129_v46, 0  ;;  %v11023_v16 = vperm.slane %v1144_v61, 0  ;;  %v14914_v20 = vld [vmem:[#allocation15_spill] sm:$0xff] }
 0x2de   :  { %v3172_v42 = vcvt.s32.f32 %v2308_v11  ;;  %v3190_v1 = vcvt.s32.f32 %v2326_v33 }
 0x2df   :  { %14911 = vst [vmem:[#allocation11_spill] sm:$0xff] %v10973_v8  ;;  %v10994_v31 = vadd.f32 %v5457_v39, %v5329_v49  ;;  %5367 = vmatmul.bf16.gmra.mxu0 %v4538_v43  ;;  %5615 = vmatmul.bf16.gmra.mxu2 %v4504_v47  ;;  %v2382_v43 = vcvt.s32.f32 %v1518_v9  ;;  %v2400_v47 = vcvt.s32.f32 %v1536_v44  ;;  %v11028_v4 = vpop.eup %8311  ;;  %v4055_v44 = vmul.f32 %v9973_v28, %v3173_v58 }
 0x2e0   :  { %5496 = vmatmul.bf16.gmra.mxu1 %v4539_v17  ;;  %5744 = vmatmul.bf16.gmra.mxu3 %v4505_v36  ;;  %v3191_v17 = vcvt.s32.f32 %v2327_v2  ;;  %v2401_v36 = vcvt.s32.f32 %v1537_v51  ;;  %v11032_v61 = vpop.eup %8313  ;;  %v4054_v11 = vmul.f32 %v9971_v60, %v3172_v42  ;;  %v4072_v33 = vmul.f32 %v9971_v60, %v3190_v1 }
 0x2e1   :  { %v1147_v51 = vmul.f32 %v11028_v4, %v10971_v12  ;;  %v1162_v42 = vmul.f32 %v11032_v61, %v10992_v24  ;;  %vm1152_vm2 = vweird.f32 %v11028_v4  ;;  %vm1167_vm4 = vweird.f32 %v11032_v61 }
 0x2e2   :  { %v5576_v53 = vpop.f32.mrf.mxu2  ;;  %v4073_v25 = vmul.f32 %v9973_v28, %v3191_v17  ;;  %vm11108_vm5 = vmor %vm1151_vm1, %vm1152_vm2 }
 0x2e3   :  { %v5577_v48 = vadd.f32 %v5576_v53, %v10845_v37  ;;  %v5705_v29 = vpop.f32.mrf.mxu3  ;;  %v2383_v37 = vcvt.s32.f32 %v1519_v5  ;;  %v3264_v53 = vmul.f32 %v11021_v6, %v2382_v43  ;;  %v3283_v5 = vmul.f32 %v11023_v16, %v2401_v36  ;;  %vm11118_vm6 = vmor %vm1166_vm3, %vm1167_vm4 }
 0x2e4   :  { %v5330_v55 = vpop.f32.mrf.mxu0  ;;  %v4523_v17 = vpack.c.bf16 %v4073_v25, %v4055_v44  ;;  %v1148_v36 = vsub.f32 1.0, %v1147_v51  ;;  %v1554_v44 = vunpack.c.2.s8 %v10990_v22  ;;  %v4777_v51 = vld [vmem:[%s14845_s3 + $0x6f8] sm:$0xff] }
 0x2e5   :  { %v11025_v7 = vadd.f32 %v5705_v29, %v5577_v48  ;;  %v5331_v49 = vadd.f32 %v5330_v55, %v14914_v20  ;;  %v5459_v39 = vpop.f32.mrf.mxu1  ;;  %v3282_v48 = vmul.f32 %v11021_v6, %v2400_v47  ;;  %v3265_v2 = vmul.f32 %v11023_v16, %v2383_v37 }
 0x2e6   :  { %v4522_v47 = vpack.c.bf16 %v4072_v33, %v4054_v11  ;;  %v4760_v11 = vld [vmem:[%s14845_s3 + $0x670] sm:$0xff]  ;;  %v4761_v33 = vld [vmem:[%s14845_s3 + $0x678] sm:$0xff] }
 0x2e7   :  { %14913 = vst [vmem:[#allocation2_spill] sm:$0xff] %v11025_v7  ;;  %v11030_v46 = vadd.f32 %v5459_v39, %v5331_v49  ;;  %v14916_v49 = vld [vmem:[#allocation16_spill] sm:$0xff]  ;;  %v4128_v58 = vpack.c.bf16 %v3282_v48, %v3264_v53  ;;  %v4129_v37 = vpack.c.bf16 %v3283_v5, %v3265_v2  ;;  %v2363_v48 = vunpack.c.3.s8 %v10999_v14  ;;  %v4729_v2 = vld [vmem:[%s14845_s3 + $0x578] sm:$0xff] }
 0x2e8   :  { %v4728_v53 = vld [vmem:[%s14845_s3 + $0x570] sm:$0xff]  ;;  %v4945_v25 = vpack.c.bf16 %v4761_v33, %v4760_v11 }
 0x2e9   :  { %v4776_v5 = vld [vmem:[%s14845_s3 + $0x6f0] sm:$0xff] }
 0x2ea   :  { %v5578_v9 = vpop.f32.mrf.mxu2  ;;  %6534 = vmatpush.bf16.msrb.mxu2 %v4945_v25 }
 0x2eb   :  { %v5579_v29 = vadd.f32 %v5578_v9, %v10894_v30  ;;  %v5707_v55 = vpop.f32.mrf.mxu3  ;;  %v1163_v30 = vsub.f32 1.0, %v1162_v42  ;;  %v2344_v9 = vunpack.c.2.s8 %v10979_v32 }
 0x2ec   :  { %v5333_v1 = vpop.f32.mrf.mxu0 }
 0x2ed   :  { %v11047_v20 = vadd.f32 %v5707_v55, %v5579_v29  ;;  %v5334_v39 = vadd.f32 %v5333_v1, %v14916_v49  ;;  %v5462_v43 = vpop.f32.mrf.mxu1  ;;  %v2362_v29 = vunpack.c.3.s8 %v10979_v32  ;;  %v2345_v55 = vunpack.c.2.s8 %v10999_v14 }
 0x2ee   :  { %v1572_v32 = vunpack.c.3.s8 %v10990_v22  ;;  %v1555_v14 = vunpack.c.2.s8 %v11004_v34  ;;  %v1573_v1 = vunpack.c.3.s8 %v11004_v34  ;;  %v4929_v49 = vpack.c.bf16 %v4729_v2, %v4728_v53  ;;  %v14917_v53 = vld [vmem:[#allocation17_spill] sm:$0xff] }
 0x2ef   :  { %14915 = vst [vmem:[#allocation12_spill] sm:$0xff] %v11047_v20  ;;  %v11051_v7 = vadd.f32 %v5462_v43, %v5334_v39  ;;  %5620 = vmatmul.bf16.gmra.mxu2 %v4522_v47  ;;  %5768 = vmatmul.bf16.vlgmr.msrb.gmra.mxu0 %v4128_v58  ;;  %v4953_v22 = vpack.c.bf16 %v4777_v51, %v4776_v5  ;;  %v1155_v43 = vand.u32 2147483647, %v10971_v12  ;;  %v1157_v47 = vand.u32 2147483648, %v10971_v12 }
 0x2f0   :  { %5749 = vmatmul.bf16.gmra.mxu3 %v4523_v17  ;;  %5897 = vmatmul.bf16.vlgmr.msrb.gmra.mxu1 %v4129_v37  ;;  %v1149_v39 = vmul.f32 %v11028_v4, %v1148_v36  ;;  %v1164_v37 = vmul.f32 %v11032_v61, %v1163_v30  ;;  %v3208_v33 = vcvt.s32.f32 %v2344_v9  ;;  %v3226_v20 = vcvt.s32.f32 %v2362_v29  ;;  %v4745_v30 = vld [vmem:[%s14845_s3 + $0x5f8] sm:$0xff] }
 0x2f1   :  { %v3209_v8 = vcvt.s32.f32 %v2345_v55  ;;  %6276 = vmatpush.bf16.msra.mxu0 %v4929_v49  ;;  %6663 = vmatpush.bf16.msrb.mxu3 %v4953_v22  ;;  %v2418_v5 = vcvt.s32.f32 %v1554_v44  ;;  %v2436_v51 = vcvt.s32.f32 %v1572_v32  ;;  %v3227_v9 = vcvt.s32.f32 %v2363_v48 }
 0x2f2   :  { %v5581_v42 = vpop.f32.mrf.mxu2  ;;  %v2419_v29 = vcvt.s32.f32 %v1555_v14  ;;  %v2437_v55 = vcvt.s32.f32 %v1573_v1  ;;  %v1150_v32 = vadd.f32 %v11028_v4, %v1149_v39  ;;  %v1165_v49 = vadd.f32 %v11032_v61, %v1164_v37 }
 0x2f3   :  { %v5582_v58 = vadd.f32 %v5581_v42, %v10914_v56  ;;  %v5710_v17 = vpop.f32.mrf.mxu3  ;;  %v4744_v56 = vld [vmem:[%s14845_s3 + $0x5f0] sm:$0xff]  ;;  %v1170_v42 = vand.u32 2147483647, %v10992_v24  ;;  %v1172_v22 = vand.u32 2147483648, %v10992_v24  ;;  %v4090_v48 = vmul.f32 %v9971_v60, %v3208_v33  ;;  %v14927_v24 = vld [vmem:[#allocation18_spill] sm:$0xff] }
 0x2f4   :  { %v5335_v11 = vpop.f32.mrf.mxu0  ;;  %v4937_v25 = vpack.c.bf16 %v4745_v30, %v4744_v56  ;;  %v4108_v14 = vmul.f32 %v9971_v60, %v3226_v20  ;;  %v3300_v1 = vmul.f32 %v11021_v6, %v2418_v5  ;;  %v4091_v37 = vmul.f32 %v9973_v28, %v3209_v8 }
 0x2f5   :  { %v11084_v34 = vadd.f32 %v5710_v17, %v5582_v58  ;;  %v5336_v36 = vadd.f32 %v5335_v11, %v14917_v53  ;;  %v5464_v2 = vpop.f32.mrf.mxu1  ;;  %v3318_v58 = vmul.f32 %v11021_v6, %v2436_v51  ;;  %v4109_v11 = vmul.f32 %v9973_v28, %v3227_v9 }
 0x2f6   :  { %6405 = vmatpush.bf16.msra.mxu1 %v4937_v25  ;;  %v3301_v53 = vmul.f32 %v11023_v16, %v2419_v29  ;;  %v3319_v33 = vmul.f32 %v11023_v16, %v2437_v55  ;;  %vm11123_vm7 = vcmp.eq.f32.partialorder %v1155_v43, 8.507059e+37  ;;  %v1158_v8 = vor.u32 1.1754944e-38, %v1157_v47 }
 0x2f7   :  { %v11096_v44 = vadd.f32 %v5464_v2, %v5336_v36  ;;  %vm11127_vm8 = vcmp.eq.f32.partialorder %v1170_v42, 8.507059e+37  ;;  %v1173_v2 = vor.u32 1.1754944e-38, %v1172_v22  ;;  %v4540_v9 = vpack.c.bf16 %v4108_v14, %v4090_v48  ;;  %v11148_v42 = vld [vmem:[%s14847_s4 + $0x40] sm:$0xff]  ;;  %v11155_v48 = vld [vmem:[%s14847_s4 + $0xc8] sm:$0xff] }
 0x2f8   :  { %v4146_v29 = vpack.c.bf16 %v3318_v58, %v3300_v1  ;;  %v1154_v43 = vsel %vm11108_vm5, %v11028_v4, %v1150_v32  ;;  %v1169_v47 = vsel %vm11118_vm6, %v11032_v61, %v1165_v49  ;;  %v4541_v55 = vpack.c.bf16 %v4109_v11, %v4091_v37  ;;  %v11160_v4 = vld [vmem:[%s14847_s4 + $0x48] sm:$0xff] }
 0x2f9   :  { %v4147_v25 = vpack.c.bf16 %v3319_v33, %v3301_v53  ;;  %v1159_v49 = vsel %vm11123_vm7, %v1158_v8, %v1154_v43  ;;  %v1174_v14 = vsel %vm11127_vm8, %v1173_v2, %v1169_v47  ;;  %v1520_v1 = vunpack.c.0.s8 %v11148_v42 }
 0x2fa   :  { %v5583_v39 = vpop.f32.mrf.mxu2  ;;  %v1538_v58 = vunpack.c.1.s8 %v11148_v42  ;;  %v1609_v37 = vunpack.c.1.s8 %v11155_v48  ;;  %v1521_v11 = vunpack.c.0.s8 %v11160_v4  ;;  %v1539_v53 = vunpack.c.1.s8 %v11160_v4 }
 0x2fb   :  { %v5584_v12 = vadd.f32 %v5583_v39, %v10936_v41  ;;  %v5712_v20 = vpop.f32.mrf.mxu3  ;;  %v11137_v41 = vld [vmem:[%s14847_s4 + $0xc0] sm:$0xff]  ;;  %v1591_v39 = vunpack.c.0.s8 %v11155_v48 }
 0x2fc   :  { %v5338_v5 = vpop.f32.mrf.mxu0  ;;  %v1590_v61 = vunpack.c.0.s8 %v11137_v41  ;;  %v1608_v32 = vunpack.c.1.s8 %v11137_v41  ;;  %v2473_v43 = vcvt.s32.f32 %v1609_v37  ;;  %v2385_v47 = vcvt.s32.f32 %v1521_v11 }
 0x2fd   :  { %v11131_v51 = vadd.f32 %v5712_v20, %v5584_v12  ;;  %v5339_v56 = vadd.f32 %v5338_v5, %v14927_v24  ;;  %v5467_v30 = vpop.f32.mrf.mxu1  ;;  %v11175_v12 = vperm.slane %v1159_v49, 0  ;;  %v11177_v20 = vperm.slane %v1174_v14, 0  ;;  %v14929_v5 = vld [vmem:[#allocation19_spill] sm:$0xff] }
 0x2fe   :  { %v2454_v8 = vcvt.s32.f32 %v1590_v61  ;;  %v2472_v28 = vcvt.s32.f32 %v1608_v32 }
 0x2ff   :  { %14926 = vst [vmem:[#allocation13_spill] sm:$0xff] %v11131_v51  ;;  %v11150_v22 = vadd.f32 %v5467_v30, %v5339_v56  ;;  %5625 = vmatmul.bf16.gmra.mxu2 %v4540_v9  ;;  %5773 = vmatmul.bf16.gmra.mxu0 %v4146_v29  ;;  %v2384_v30 = vcvt.s32.f32 %v1520_v1  ;;  %v2402_v9 = vcvt.s32.f32 %v1538_v58  ;;  %v2455_v29 = vcvt.s32.f32 %v1591_v39 }
 0x300   :  { %5754 = vmatmul.bf16.gmra.mxu3 %v4541_v55  ;;  %5902 = vmatmul.bf16.gmra.mxu1 %v4147_v25  ;;  %v2403_v55 = vcvt.s32.f32 %v1539_v53  ;;  %v3336_v25 = vmul.f32 %v11021_v6, %v2454_v8  ;;  %v3354_v49 = vmul.f32 %v11021_v6, %v2472_v28  ;;  %v3355_v1 = vmul.f32 %v11023_v16, %v2473_v43 }
 0x301   :  { %v3266_v61 = vmul.f32 %v11175_v12, %v2384_v30  ;;  %v3284_v32 = vmul.f32 %v11175_v12, %v2402_v9  ;;  %v3267_v58 = vmul.f32 %v11177_v20, %v2385_v47  ;;  %v1626_v9 = vunpack.c.2.s8 %v11137_v41 }
 0x302   :  { %v5586_v17 = vpop.f32.mrf.mxu2  ;;  %v3285_v39 = vmul.f32 %v11177_v20, %v2403_v55  ;;  %v4164_v28 = vpack.c.bf16 %v3354_v49, %v3336_v25  ;;  %v1574_v43 = vunpack.c.3.s8 %v11148_v42  ;;  %v1627_v55 = vunpack.c.2.s8 %v11155_v48 }
 0x303   :  { %v5587_v33 = vadd.f32 %v5586_v17, %v10994_v31  ;;  %v5715_v60 = vpop.f32.mrf.mxu3  ;;  %v3337_v17 = vmul.f32 %v11023_v16, %v2455_v29  ;;  %v1556_v29 = vunpack.c.2.s8 %v11148_v42  ;;  %v1645_v25 = vunpack.c.3.s8 %v11155_v48 }
 0x304   :  { %v5340_v36 = vpop.f32.mrf.mxu0  ;;  %v1557_v49 = vunpack.c.2.s8 %v11160_v4 }
 0x305   :  { %v11179_v2 = vadd.f32 %v5715_v60, %v5587_v33  ;;  %v5341_v24 = vadd.f32 %v5340_v36, %v14929_v5  ;;  %v5469_v56 = vpop.f32.mrf.mxu1  ;;  %v14931_v60 = vld [vmem:[#allocation20_spill] sm:$0xff]  ;;  %v4130_v5 = vpack.c.bf16 %v3284_v32, %v3266_v61  ;;  %v1575_v61 = vunpack.c.3.s8 %v11160_v4 }
 0x306   :  { %v2421_v48 = vcvt.s32.f32 %v1557_v49 }
 0x307   :  { %14928 = vst [vmem:[#allocation14_spill] sm:$0xff] %v11179_v2  ;;  %v11182_v31 = vadd.f32 %v5469_v56, %v5341_v24  ;;  %v4165_v24 = vpack.c.bf16 %v3355_v1, %v3337_v17  ;;  %v4131_v56 = vpack.c.bf16 %v3285_v39, %v3267_v58  ;;  %v2490_v1 = vcvt.s32.f32 %v1626_v9  ;;  %v14933_v39 = vld [vmem:[#allocation21_spill] sm:$0xff] }
 0x309   :  { %v3372_v4 = vmul.f32 %v11021_v6, %v2490_v1 }
 0x30a   :  { %v5588_v14 = vpop.f32.mrf.mxu2 }
 0x30b   :  { %v5589_v37 = vadd.f32 %v5588_v14, %v11030_v46  ;;  %v5717_v11 = vpop.f32.mrf.mxu3  ;;  %v1644_v46 = vunpack.c.3.s8 %v11137_v41 }
 0x30c   :  { %v5343_v53 = vpop.f32.mrf.mxu0 }
 0x30d   :  { %v11193_v33 = vadd.f32 %v5717_v11, %v5589_v37  ;;  %v5344_v36 = vadd.f32 %v5343_v53, %v14931_v60  ;;  %v5472_v8 = vpop.f32.mrf.mxu1  ;;  %v2508_v58 = vcvt.s32.f32 %v1644_v46  ;;  %v2420_v11 = vcvt.s32.f32 %v1556_v29 }
 0x30e   :  { %v2438_v53 = vcvt.s32.f32 %v1574_v43  ;;  %v2491_v60 = vcvt.s32.f32 %v1627_v55  ;;  %v3303_v29 = vmul.f32 %v11177_v20, %v2421_v48 }
 0x30f   :  { %14930 = vst [vmem:[#allocation15_spill] sm:$0xff] %v11193_v33  ;;  %v11196_v30 = vadd.f32 %v5472_v8, %v5344_v36  ;;  %5778 = vmatmul.bf16.gmra.mxu0 %v4164_v28  ;;  %6026 = vmatmul.bf16.vlgmr.msra.gmra.mxu2 %v4130_v5  ;;  %v2509_v36 = vcvt.s32.f32 %v1645_v25  ;;  %v2439_v8 = vcvt.s32.f32 %v1575_v61  ;;  %v3302_v5 = vmul.f32 %v11175_v12, %v2420_v11  ;;  %v14935_v61 = vld [vmem:[#allocation22_spill] sm:$0xff] }
 0x310   :  { %5907 = vmatmul.bf16.gmra.mxu1 %v4165_v24  ;;  %6155 = vmatmul.bf16.vlgmr.msra.gmra.mxu3 %v4131_v56  ;;  %v3320_v24 = vmul.f32 %v11175_v12, %v2438_v53  ;;  %v3373_v9 = vmul.f32 %v11023_v16, %v2491_v60  ;;  %v11244_v53 = vld [vmem:[%s14847_s4 + $0xd8] sm:$0xff] }
 0x311   :  { %v3391_v46 = vmul.f32 %v11023_v16, %v2509_v36  ;;  %v3321_v43 = vmul.f32 %v11177_v20, %v2439_v8  ;;  %v4758_v8 = vld [vmem:[%s14845_s3 + $0x660] sm:$0xff] }
 0x312   :  { %v5591_v47 = vpop.f32.mrf.mxu2  ;;  %v4148_v1 = vpack.c.bf16 %v3320_v24, %v3302_v5 }
 0x313   :  { %v5592_v32 = vadd.f32 %v5591_v47, %v11051_v7  ;;  %v5720_v14 = vpop.f32.mrf.mxu3  ;;  %v3390_v7 = vmul.f32 %v11021_v6, %v2508_v58  ;;  %v11227_v58 = vld [vmem:[%s14847_s4 + $0x150] sm:$0xff] }
 0x314   :  { %v5345_v17 = vpop.f32.mrf.mxu0  ;;  %v1662_v60 = vunpack.c.0.s8 %v11227_v58  ;;  %v1680_v36 = vunpack.c.1.s8 %v11227_v58 }
 0x315   :  { %v11207_v41 = vadd.f32 %v5720_v14, %v5592_v32  ;;  %v5346_v37 = vadd.f32 %v5345_v17, %v14933_v39  ;;  %v5474_v42 = vpop.f32.mrf.mxu1  ;;  %v4182_v17 = vpack.c.bf16 %v3390_v7, %v3372_v4  ;;  %v11232_v39 = vld [vmem:[%s14847_s4 + $0x158] sm:$0xff]  ;;  %v4759_v4 = vld [vmem:[%s14845_s3 + $0x668] sm:$0xff]  ;;  %v4726_v7 = vld [vmem:[%s14845_s3 + $0x560] sm:$0xff] }
 0x316   :  { %v1663_v48 = vunpack.c.0.s8 %v11232_v39  ;;  %v1681_v5 = vunpack.c.1.s8 %v11232_v39 }
 0x317   :  { %14932 = vst [vmem:[#allocation16_spill] sm:$0xff] %v11207_v41  ;;  %v11210_v28 = vadd.f32 %v5474_v42, %v5346_v37  ;;  %v4149_v37 = vpack.c.bf16 %v3321_v43, %v3303_v29  ;;  %v11237_v42 = vld [vmem:[%s14847_s4 + $0xd0] sm:$0xff]  ;;  %v4774_v29 = vld [vmem:[%s14845_s3 + $0x6e0] sm:$0xff]  ;;  %v4775_v43 = vld [vmem:[%s14845_s3 + $0x6e8] sm:$0xff] }
 0x318   :  { %v1592_v24 = vunpack.c.0.s8 %v11237_v42 }
 0x31a   :  { %v5593_v56 = vpop.f32.mrf.mxu2  ;;  %v2456_v2 = vcvt.s32.f32 %v1592_v24 }
 0x31b   :  { %v5594_v47 = vadd.f32 %v5593_v56, %v11096_v44  ;;  %v5722_v55 = vpop.f32.mrf.mxu3  ;;  %v4183_v44 = vpack.c.bf16 %v3391_v46, %v3373_v9  ;;  %v1610_v56 = vunpack.c.1.s8 %v11237_v42  ;;  %v4944_v9 = vpack.c.bf16 %v4759_v4, %v4758_v8  ;;  %v4727_v46 = vld [vmem:[%s14845_s3 + $0x568] sm:$0xff] }
 0x31c   :  { %v5348_v25 = vpop.f32.mrf.mxu0  ;;  %v2527_v8 = vcvt.s32.f32 %v1663_v48 }
 0x31d   :  { %v11221_v49 = vadd.f32 %v5722_v55, %v5594_v47  ;;  %v5349_v32 = vadd.f32 %v5348_v25, %v14935_v61  ;;  %v5477_v14 = vpop.f32.mrf.mxu1  ;;  %v1593_v55 = vunpack.c.0.s8 %v11244_v53  ;;  %v1611_v25 = vunpack.c.1.s8 %v11244_v53  ;;  %6535 = vmatpush.bf16.msrb.mxu2 %v4944_v9 }
 0x31e   :  { %v4928_v61 = vpack.c.bf16 %v4727_v46, %v4726_v7  ;;  %v2474_v51 = vcvt.s32.f32 %v1610_v56  ;;  %v4742_v7 = vld [vmem:[%s14845_s3 + $0x5e0] sm:$0xff]  ;;  %v3338_v56 = vmul.f32 %v11175_v12, %v2456_v2 }
 0x31f   :  { %14934 = vst [vmem:[#allocation17_spill] sm:$0xff] %v11221_v49  ;;  %v11239_v11 = vadd.f32 %v5477_v14, %v5349_v32  ;;  %5783 = vmatmul.bf16.gmra.mxu0 %v4182_v17  ;;  %6031 = vmatmul.bf16.gmra.mxu2 %v4148_v1  ;;  %v4952_v32 = vpack.c.bf16 %v4775_v43, %v4774_v29  ;;  %v14936_v49 = vld [vmem:[#allocation23_spill] sm:$0xff]  ;;  %v2475_v48 = vcvt.s32.f32 %v1611_v25 }
 0x320   :  { %5912 = vmatmul.bf16.gmra.mxu1 %v4183_v44  ;;  %6160 = vmatmul.bf16.gmra.mxu3 %v4149_v37  ;;  %v2526_v44 = vcvt.s32.f32 %v1662_v60  ;;  %v2544_v37 = vcvt.s32.f32 %v1680_v36  ;;  %v2545_v60 = vcvt.s32.f32 %v1681_v5  ;;  %v2457_v36 = vcvt.s32.f32 %v1593_v55 }
 0x321   :  { %6277 = vmatpush.bf16.msra.mxu0 %v4928_v61  ;;  %6664 = vmatpush.bf16.msrb.mxu3 %v4952_v32  ;;  %v3356_v29 = vmul.f32 %v11175_v12, %v2474_v51  ;;  %v3357_v55 = vmul.f32 %v11177_v20, %v2475_v48  ;;  %v1699_v48 = vunpack.c.2.s8 %v11232_v39 }
 0x322   :  { %v5596_v47 = vpop.f32.mrf.mxu2  ;;  %v3426_v24 = vmul.f32 %v11021_v6, %v2544_v37  ;;  %v3427_v61 = vmul.f32 %v11023_v16, %v2545_v60  ;;  %v3339_v5 = vmul.f32 %v11177_v20, %v2457_v36  ;;  %v1646_v60 = vunpack.c.3.s8 %v11237_v42 }
 0x323   :  { %v5597_v14 = vadd.f32 %v5596_v47, %v11150_v22  ;;  %v5725_v17 = vpop.f32.mrf.mxu3  ;;  %v4743_v22 = vld [vmem:[%s14845_s3 + $0x5e8] sm:$0xff]  ;;  %v3409_v47 = vmul.f32 %v11023_v16, %v2527_v8  ;;  %v4166_v51 = vpack.c.bf16 %v3356_v29, %v3338_v56 }
 0x324   :  { %v5350_v1 = vpop.f32.mrf.mxu0  ;;  %v4936_v9 = vpack.c.bf16 %v4743_v22, %v4742_v7  ;;  %v4167_v37 = vpack.c.bf16 %v3357_v55, %v3339_v5  ;;  %v1698_v7 = vunpack.c.2.s8 %v11227_v58  ;;  %v1628_v22 = vunpack.c.2.s8 %v11237_v42  ;;  %v14939_v5 = vld [vmem:[#allocation25_spill] sm:$0xff] }
 0x325   :  { %v11273_v4 = vadd.f32 %v5725_v17, %v5597_v14  ;;  %v5351_v41 = vadd.f32 %v5350_v1, %v14936_v49  ;;  %v5479_v33 = vpop.f32.mrf.mxu1  ;;  %v3408_v49 = vmul.f32 %v11021_v6, %v2526_v44  ;;  %v14937_v14 = vld [vmem:[#allocation24_spill] sm:$0xff]  ;;  %v4201_v44 = vpack.c.bf16 %v3427_v61, %v3409_v47 }
 0x326   :  { %6406 = vmatpush.bf16.msra.mxu1 %v4936_v9  ;;  %v1717_v9 = vunpack.c.3.s8 %v11232_v39  ;;  %v2562_v47 = vcvt.s32.f32 %v1698_v7 }
 0x327   :  { %v11282_v46 = vadd.f32 %v5479_v33, %v5351_v41  ;;  %v4200_v1 = vpack.c.bf16 %v3426_v24, %v3408_v49  ;;  %v1629_v49 = vunpack.c.2.s8 %v11244_v53  ;;  %v1647_v24 = vunpack.c.3.s8 %v11244_v53 }
 0x328   :  { %v3444_v53 = vmul.f32 %v11021_v6, %v2562_v47  ;;  %v11327_v47 = vld [vmem:[%s14847_s4 + $0x1e0] sm:$0xff] }
 0x329   :  { %v2493_v39 = vcvt.s32.f32 %v1629_v49  ;;  %v14941_v49 = vld [vmem:[#allocation26_spill] sm:$0xff] }
 0x32a   :  { %v5598_v43 = vpop.f32.mrf.mxu2 }
 0x32b   :  { %v5599_v33 = vadd.f32 %v5598_v43, %v11182_v31  ;;  %v5727_v41 = vpop.f32.mrf.mxu3  ;;  %v1716_v31 = vunpack.c.3.s8 %v11227_v58 }
 0x32c   :  { %v5353_v25 = vpop.f32.mrf.mxu0 }
 0x32d   :  { %v11293_v32 = vadd.f32 %v5727_v41, %v5599_v33  ;;  %v5354_v17 = vadd.f32 %v5353_v25, %v14937_v14  ;;  %v5482_v2 = vpop.f32.mrf.mxu1  ;;  %v2580_v61 = vcvt.s32.f32 %v1716_v31  ;;  %v2492_v33 = vcvt.s32.f32 %v1628_v22 }
 0x32e   :  { %v2510_v41 = vcvt.s32.f32 %v1646_v60  ;;  %v2563_v25 = vcvt.s32.f32 %v1699_v48  ;;  %v2581_v14 = vcvt.s32.f32 %v1717_v9  ;;  %v3375_v31 = vmul.f32 %v11177_v20, %v2493_v39 }
 0x32f   :  { %v11296_v8 = vadd.f32 %v5482_v2, %v5354_v17  ;;  %5788 = vmatmul.bf16.gmra.mxu0 %v4200_v1  ;;  %6036 = vmatmul.bf16.gmra.mxu2 %v4166_v51  ;;  %v2511_v17 = vcvt.s32.f32 %v1647_v24  ;;  %v3374_v1 = vmul.f32 %v11175_v12, %v2492_v33  ;;  %v11344_v33 = vld [vmem:[%s14847_s4 + $0x168] sm:$0xff] }
 0x330   :  { %5917 = vmatmul.bf16.gmra.mxu1 %v4201_v44  ;;  %6165 = vmatmul.bf16.gmra.mxu3 %v4167_v37  ;;  %v3392_v51 = vmul.f32 %v11175_v12, %v2510_v41  ;;  %v3445_v37 = vmul.f32 %v11023_v16, %v2563_v25  ;;  %v3463_v7 = vmul.f32 %v11023_v16, %v2581_v14  ;;  %v1734_v41 = vunpack.c.0.s8 %v11327_v47 }
 0x331   :  { %v3393_v22 = vmul.f32 %v11177_v20, %v2511_v17  ;;  %v1752_v25 = vunpack.c.1.s8 %v11327_v47 }
 0x332   :  { %v5601_v36 = vpop.f32.mrf.mxu2 }
 0x333   :  { %v5602_v56 = vadd.f32 %v5601_v36, %v11196_v30  ;;  %v5730_v29 = vpop.f32.mrf.mxu3  ;;  %v3462_v30 = vmul.f32 %v11021_v6, %v2580_v61  ;;  %v4219_v61 = vpack.c.bf16 %v3463_v7, %v3445_v37 }
 0x334   :  { %v5355_v43 = vpop.f32.mrf.mxu0 }
 0x335   :  { %v11307_v58 = vadd.f32 %v5730_v29, %v5602_v56  ;;  %v5356_v55 = vadd.f32 %v5355_v43, %v14939_v5  ;;  %v5484_v42 = vpop.f32.mrf.mxu1  ;;  %v4218_v29 = vpack.c.bf16 %v3462_v30, %v3444_v53  ;;  %v4184_v43 = vpack.c.bf16 %v3392_v51, %v3374_v1 }
 0x336   :  { %v4185_v5 = vpack.c.bf16 %v3393_v22, %v3375_v31  ;;  %v1665_v1 = vunpack.c.0.s8 %v11344_v33  ;;  %v1683_v51 = vunpack.c.1.s8 %v11344_v33  ;;  %v2598_v31 = vcvt.s32.f32 %v1734_v41 }
 0x337   :  { %14938 = vst [vmem:[#allocation18_spill] sm:$0xff] %v11307_v58  ;;  %v11310_v2 = vadd.f32 %v5484_v42, %v5356_v55  ;;  %v11339_v42 = vld [vmem:[%s14847_s4 + $0x1e8] sm:$0xff]  ;;  %v2616_v22 = vcvt.s32.f32 %v1752_v25 }
 0x338   :  { %v1735_v53 = vunpack.c.0.s8 %v11339_v42  ;;  %v1753_v30 = vunpack.c.1.s8 %v11339_v42  ;;  %v3480_v58 = vmul.f32 %v11021_v6, %v2598_v31 }
 0x33a   :  { %v5603_v44 = vpop.f32.mrf.mxu2 }
 0x33b   :  { %v5604_v60 = vadd.f32 %v5603_v44, %v11210_v28  ;;  %v5732_v36 = vpop.f32.mrf.mxu3  ;;  %v11332_v28 = vld [vmem:[%s14847_s4 + $0x160] sm:$0xff] }
 0x33c   :  { %v5358_v48 = vpop.f32.mrf.mxu0  ;;  %v1664_v14 = vunpack.c.0.s8 %v11332_v28  ;;  %v1682_v39 = vunpack.c.1.s8 %v11332_v28 }
 0x33d   :  { %v11321_v9 = vadd.f32 %v5732_v36, %v5604_v60  ;;  %v5359_v24 = vadd.f32 %v5358_v48, %v14941_v49  ;;  %v5487_v56 = vpop.f32.mrf.mxu1  ;;  %v14942_v36 = vld [vmem:[#allocation27_spill] sm:$0xff] }
 0x33f   :  { %14940 = vst [vmem:[#allocation19_spill] sm:$0xff] %v11321_v9  ;;  %v11334_v55 = vadd.f32 %v5487_v56, %v5359_v24  ;;  %5793 = vmatmul.bf16.gmra.mxu0 %v4218_v29  ;;  %6041 = vmatmul.bf16.gmra.mxu2 %v4184_v43  ;;  %v2528_v24 = vcvt.s32.f32 %v1664_v14  ;;  %v2546_v56 = vcvt.s32.f32 %v1682_v39  ;;  %v2599_v29 = vcvt.s32.f32 %v1735_v53 }
 0x340   :  { %5922 = vmatmul.bf16.gmra.mxu1 %v4219_v61  ;;  %6170 = vmatmul.bf16.gmra.mxu3 %v4185_v5  ;;  %v2617_v43 = vcvt.s32.f32 %v1753_v30  ;;  %v2529_v61 = vcvt.s32.f32 %v1665_v1  ;;  %v2547_v5 = vcvt.s32.f32 %v1683_v51 }
 0x341   :  { %v3410_v41 = vmul.f32 %v11175_v12, %v2528_v24  ;;  %v3428_v25 = vmul.f32 %v11175_v12, %v2546_v56 }
 0x342   :  { %v5606_v17 = vpop.f32.mrf.mxu2  ;;  %v3499_v14 = vmul.f32 %v11023_v16, %v2617_v43  ;;  %v3411_v39 = vmul.f32 %v11177_v20, %v2529_v61  ;;  %v3429_v53 = vmul.f32 %v11177_v20, %v2547_v5  ;;  %v1771_v43 = vunpack.c.2.s8 %v11339_v42  ;;  %v4756_v61 = vld [vmem:[%s14845_s3 + $0x650] sm:$0xff] }
 0x343   :  { %v5607_v44 = vadd.f32 %v5606_v17, %v11239_v11  ;;  %v5735_v37 = vpop.f32.mrf.mxu3  ;;  %v3498_v11 = vmul.f32 %v11021_v6, %v2616_v22  ;;  %v4724_v5 = vld [vmem:[%s14845_s3 + $0x550] sm:$0xff] }
 0x344   :  { %v5360_v7 = vpop.f32.mrf.mxu0  ;;  %v4203_v24 = vpack.c.bf16 %v3429_v53, %v3411_v39  ;;  %v1719_v53 = vunpack.c.3.s8 %v11344_v33 }
 0x345   :  { %v11355_v60 = vadd.f32 %v5735_v37, %v5607_v44  ;;  %v5361_v48 = vadd.f32 %v5360_v7, %v14942_v36  ;;  %v5489_v49 = vpop.f32.mrf.mxu1  ;;  %v3481_v44 = vmul.f32 %v11023_v16, %v2599_v29  ;;  %v14944_v7 = vld [vmem:[#allocation28_spill] sm:$0xff]  ;;  %v4236_v36 = vpack.c.bf16 %v3498_v11, %v3480_v58  ;;  %v4757_v58 = vld [vmem:[%s14845_s3 + $0x658] sm:$0xff] }
 0x346   :  { %v1770_v29 = vunpack.c.2.s8 %v11327_v47  ;;  %v1789_v11 = vunpack.c.3.s8 %v11339_v42  ;;  %v1701_v42 = vunpack.c.2.s8 %v11344_v33  ;;  %v4740_v33 = vld [vmem:[%s14845_s3 + $0x5d0] sm:$0xff] }
 0x347   :  { %v11358_v9 = vadd.f32 %v5489_v49, %v5361_v48  ;;  %v4202_v48 = vpack.c.bf16 %v3428_v25, %v3410_v41  ;;  %v4237_v49 = vpack.c.bf16 %v3499_v14, %v3481_v44  ;;  %v1700_v41 = vunpack.c.2.s8 %v11332_v28  ;;  %v4772_v44 = vld [vmem:[%s14845_s3 + $0x6d0] sm:$0xff]  ;;  %v4773_v14 = vld [vmem:[%s14845_s3 + $0x6d8] sm:$0xff] }
 0x348   :  { %v4943_v25 = vpack.c.bf16 %v4757_v58, %v4756_v61 }
 0x349   :  { %v2564_v58 = vcvt.s32.f32 %v1700_v41 }
 0x34a   :  { %v5608_v17 = vpop.f32.mrf.mxu2  ;;  %6536 = vmatpush.bf16.msrb.mxu2 %v4943_v25 }
 0x34b   :  { %v5609_v30 = vadd.f32 %v5608_v17, %v11282_v46  ;;  %v5737_v1 = vpop.f32.mrf.mxu3  ;;  %v1788_v46 = vunpack.c.3.s8 %v11327_v47  ;;  %v1718_v47 = vunpack.c.3.s8 %v11332_v28  ;;  %v4725_v17 = vld [vmem:[%s14845_s3 + $0x558] sm:$0xff]  ;;  %v4951_v28 = vpack.c.bf16 %v4773_v14, %v4772_v44 }
 0x34c   :  { %v5363_v51 = vpop.f32.mrf.mxu0 }
 0x34d   :  { %v11369_v37 = vadd.f32 %v5737_v1, %v5609_v30  ;;  %v5364_v31 = vadd.f32 %v5363_v51, %v14944_v7  ;;  %v5492_v22 = vpop.f32.mrf.mxu1  ;;  %v4927_v30 = vpack.c.bf16 %v4725_v17, %v4724_v5  ;;  %6665 = vmatpush.bf16.msrb.mxu3 %v4951_v28 }
 0x34f   :  { %14943 = vst [vmem:[#allocation20_spill] sm:$0xff] %v11369_v37  ;;  %v11372_v56 = vadd.f32 %v5492_v22, %v5364_v31  ;;  %5798 = vmatmul.bf16.gmra.mxu0 %v4236_v36  ;;  %6046 = vmatmul.bf16.gmra.mxu2 %v4202_v48  ;;  %v2634_v31 = vcvt.s32.f32 %v1770_v29  ;;  %v2652_v22 = vcvt.s32.f32 %v1788_v46  ;;  %v2635_v36 = vcvt.s32.f32 %v1771_v43 }
 0x350   :  { %5927 = vmatmul.bf16.gmra.mxu1 %v4237_v49  ;;  %6175 = vmatmul.bf16.gmra.mxu3 %v4203_v24  ;;  %v14945_v49 = vld [vmem:[#allocation29_spill] sm:$0xff]  ;;  %v2582_v37 = vcvt.s32.f32 %v1718_v47  ;;  %v2653_v29 = vcvt.s32.f32 %v1789_v11  ;;  %v2565_v46 = vcvt.s32.f32 %v1701_v42  ;;  %v2583_v43 = vcvt.s32.f32 %v1719_v53 }
 0x351   :  { %6278 = vmatpush.bf16.msra.mxu0 %v4927_v30  ;;  %v3516_v17 = vmul.f32 %v11021_v6, %v2634_v31  ;;  %v3534_v41 = vmul.f32 %v11021_v6, %v2652_v22  ;;  %v3446_v47 = vmul.f32 %v11175_v12, %v2564_v58  ;;  %v11444_v58 = vld [vmem:[%s14847_s4 + $0x1f8] sm:$0xff] }
 0x352   :  { %v5611_v39 = vpop.f32.mrf.mxu2  ;;  %v3464_v44 = vmul.f32 %v11175_v12, %v2582_v37  ;;  %v3535_v30 = vmul.f32 %v11023_v16, %v2653_v29  ;;  %v3447_v11 = vmul.f32 %v11177_v20, %v2565_v46  ;;  %v3465_v42 = vmul.f32 %v11177_v20, %v2583_v43 }
 0x353   :  { %v5612_v1 = vadd.f32 %v5611_v39, %v11296_v8  ;;  %v5740_v51 = vpop.f32.mrf.mxu3  ;;  %v4741_v8 = vld [vmem:[%s14845_s3 + $0x5d8] sm:$0xff]  ;;  %v3517_v39 = vmul.f32 %v11023_v16, %v2635_v36  ;;  %v4254_v22 = vpack.c.bf16 %v3534_v41, %v3516_v17  ;;  %v11427_v36 = vld [vmem:[%s14847_s4 + $0x270] sm:$0xff]  ;;  %v1737_v41 = vunpack.c.0.s8 %v11444_v58 }
 0x354   :  { %v5365_v7 = vpop.f32.mrf.mxu0  ;;  %v4935_v5 = vpack.c.bf16 %v4741_v8, %v4740_v33  ;;  %v4220_v37 = vpack.c.bf16 %v3464_v44, %v3446_v47  ;;  %v1806_v33 = vunpack.c.0.s8 %v11427_v36  ;;  %v1824_v8 = vunpack.c.1.s8 %v11427_v36 }
 0x355   :  { %v11401_v48 = vadd.f32 %v5740_v51, %v5612_v1  ;;  %v5366_v24 = vadd.f32 %v5365_v7, %v14945_v49  ;;  %v5494_v61 = vpop.f32.mrf.mxu1  ;;  %v4255_v49 = vpack.c.bf16 %v3535_v30, %v3517_v39  ;;  %v1755_v47 = vunpack.c.1.s8 %v11444_v58 }
 0x356   :  { %6407 = vmatpush.bf16.msra.mxu1 %v4935_v5  ;;  %v2670_v30 = vcvt.s32.f32 %v1806_v33 }
 0x357   :  { %v11410_v25 = vadd.f32 %v5494_v61, %v5366_v24  ;;  %v4221_v24 = vpack.c.bf16 %v3465_v42, %v3447_v11  ;;  %v2688_v11 = vcvt.s32.f32 %v1824_v8 }
 0x35a   :  { %v5613_v14 = vpop.f32.mrf.mxu2 }
 0x35b   :  { %v5614_v53 = vadd.f32 %v5613_v14, %v11310_v2  ;;  %v5742_v28 = vpop.f32.mrf.mxu3  ;;  %v11432_v2 = vld [vmem:[%s14847_s4 + $0x1f0] sm:$0xff] }
 0x35c   :  { %v5368_v1 = vpop.f32.mrf.mxu0  ;;  %v1736_v29 = vunpack.c.0.s8 %v11432_v2  ;;  %v1754_v46 = vunpack.c.1.s8 %v11432_v2 }
 0x35d   :  { %v11421_v51 = vadd.f32 %v5742_v28, %v5614_v53  ;;  %v5369_v7 = vadd.f32 %v5368_v1, %v10316_v27  ;;  %v5497_v31 = vpop.f32.mrf.mxu1  ;;  %v11439_v27 = vld [vmem:[%s14847_s4 + $0x278] sm:$0xff] }
 0x35e   :  { %v1807_v5 = vunpack.c.0.s8 %v11439_v27  ;;  %v1825_v17 = vunpack.c.1.s8 %v11439_v27  ;;  %v2600_v1 = vcvt.s32.f32 %v1736_v29 }
 0x35f   :  { %14946 = vst [vmem:[#allocation21_spill] sm:$0xff] %v11421_v51  ;;  %v11434_v61 = vadd.f32 %v5497_v31, %v5369_v7  ;;  %5803 = vmatmul.bf16.gmra.mxu0 %v4254_v22  ;;  %6051 = vmatmul.bf16.gmra.mxu2 %v4220_v37  ;;  %v2618_v7 = vcvt.s32.f32 %v1754_v46  ;;  %v2601_v37 = vcvt.s32.f32 %v1737_v41  ;;  %v3552_v51 = vmul.f32 %v11021_v6, %v2670_v30 }
 0x360   :  { %5932 = vmatmul.bf16.gmra.mxu1 %v4255_v49  ;;  %6180 = vmatmul.bf16.gmra.mxu3 %v4221_v24  ;;  %v2671_v31 = vcvt.s32.f32 %v1807_v5  ;;  %v2689_v22 = vcvt.s32.f32 %v1825_v17  ;;  %v2619_v49 = vcvt.s32.f32 %v1755_v47  ;;  %v3482_v33 = vmul.f32 %v11175_v12, %v2600_v1 }
 0x361   :  { %v3500_v8 = vmul.f32 %v11175_v12, %v2618_v7  ;;  %v3483_v46 = vmul.f32 %v11177_v20, %v2601_v37  ;;  %v1842_v7 = vunpack.c.2.s8 %v11427_v36  ;;  %v1861_v37 = vunpack.c.3.s8 %v11439_v27 }
 0x362   :  { %v5616_v43 = vpop.f32.mrf.mxu2  ;;  %v3571_v29 = vmul.f32 %v11023_v16, %v2689_v22  ;;  %v3501_v5 = vmul.f32 %v11177_v20, %v2619_v49  ;;  %v1790_v22 = vunpack.c.3.s8 %v11432_v2  ;;  %v1773_v49 = vunpack.c.2.s8 %v11444_v58 }
 0x363   :  { %v5617_v44 = vadd.f32 %v5616_v43, %v11334_v55  ;;  %v5745_v14 = vpop.f32.mrf.mxu3  ;;  %v3570_v55 = vmul.f32 %v11021_v6, %v2688_v11  ;;  %v4238_v11 = vpack.c.bf16 %v3500_v8, %v3482_v33 }
 0x364   :  { %v5370_v39 = vpop.f32.mrf.mxu0 }
 0x365   :  { %v11455_v42 = vadd.f32 %v5745_v14, %v5617_v44  ;;  %v5371_v53 = vadd.f32 %v5370_v39, %v10335_v0  ;;  %v5499_v28 = vpop.f32.mrf.mxu1  ;;  %v3553_v0 = vmul.f32 %v11023_v16, %v2671_v31  ;;  %v4272_v30 = vpack.c.bf16 %v3570_v55, %v3552_v51 }
 0x366   :  { %v1772_v31 = vunpack.c.2.s8 %v11432_v2  ;;  %v1843_v51 = vunpack.c.2.s8 %v11439_v27  ;;  %v1791_v55 = vunpack.c.3.s8 %v11444_v58  ;;  %v2637_v27 = vcvt.s32.f32 %v1773_v49 }
 0x367   :  { %v11458_v24 = vadd.f32 %v5499_v28, %v5371_v53  ;;  %v4273_v53 = vpack.c.bf16 %v3571_v29, %v3553_v0  ;;  %v4239_v28 = vpack.c.bf16 %v3501_v5, %v3483_v46  ;;  %v2706_v0 = vcvt.s32.f32 %v1842_v7  ;;  %v14949_v46 = vld [vmem:[#allocation30_spill] sm:$0xff] }
 0x369   :  { %v3588_v58 = vmul.f32 %v11021_v6, %v2706_v0  ;;  %v11503_v0 = vld [vmem:[%s14847_s4 + $0x300] sm:$0xff] }
 0x36a   :  { %v5618_v43 = vpop.f32.mrf.mxu2 }
 0x36b   :  { %v5619_v17 = vadd.f32 %v5618_v43, %v11358_v9  ;;  %v5747_v41 = vpop.f32.mrf.mxu3  ;;  %v1860_v9 = vunpack.c.3.s8 %v11427_v36 }
 0x36c   :  { %v5769_v47 = vpop.f32.mrf.mxu0 }
 0x36d   :  { %v11469_v44 = vadd.f32 %v5747_v41, %v5619_v17  ;;  %v5770_v14 = vadd.f32 %v5769_v47, %v10349_v45  ;;  %v5898_v39 = vpop.f32.mrf.mxu1  ;;  %v2724_v29 = vcvt.s32.f32 %v1860_v9  ;;  %v2636_v17 = vcvt.s32.f32 %v1772_v31 }
 0x36e   :  { %v2654_v41 = vcvt.s32.f32 %v1790_v22  ;;  %v2707_v47 = vcvt.s32.f32 %v1843_v51  ;;  %v3519_v31 = vmul.f32 %v11177_v20, %v2637_v27  ;;  %v4755_v27 = vld [vmem:[%s14845_s3 + $0x648] sm:$0xff] }
 0x36f   :  { %14947 = vst [vmem:[#allocation22_spill] sm:$0xff] %v11469_v44  ;;  %v11472_v1 = vadd.f32 %v5898_v39, %v5770_v14  ;;  %5808 = vmatmul.bf16.gmra.mxu0 %v4272_v30  ;;  %6056 = vmatmul.bf16.gmra.mxu2 %v4238_v11  ;;  %v2725_v14 = vcvt.s32.f32 %v1861_v37  ;;  %v2655_v39 = vcvt.s32.f32 %v1791_v55  ;;  %v3518_v11 = vmul.f32 %v11175_v12, %v2636_v17 }
 0x370   :  { %5937 = vmatmul.bf16.gmra.mxu1 %v4273_v53  ;;  %6185 = vmatmul.bf16.gmra.mxu3 %v4239_v28  ;;  %v3536_v53 = vmul.f32 %v11175_v12, %v2654_v41  ;;  %v3589_v7 = vmul.f32 %v11023_v16, %v2707_v47  ;;  %v1878_v17 = vunpack.c.0.s8 %v11503_v0  ;;  %v1896_v41 = vunpack.c.1.s8 %v11503_v0 }
 0x371   :  { %v3607_v9 = vmul.f32 %v11023_v16, %v2725_v14  ;;  %v3537_v22 = vmul.f32 %v11177_v20, %v2655_v39  ;;  %v4754_v14 = vld [vmem:[%s14845_s3 + $0x640] sm:$0xff] }
 0x372   :  { %v5621_v45 = vpop.f32.mrf.mxu2  ;;  %v4722_v39 = vld [vmem:[%s14845_s3 + $0x540] sm:$0xff] }
 0x373   :  { %v5622_v33 = vadd.f32 %v5621_v45, %v11372_v56  ;;  %v5750_v8 = vpop.f32.mrf.mxu3  ;;  %v3606_v56 = vmul.f32 %v11021_v6, %v2724_v29  ;;  %v11508_v29 = vld [vmem:[%s14847_s4 + $0x308] sm:$0xff] }
 0x374   :  { %v5771_v43 = vpop.f32.mrf.mxu0  ;;  %v1879_v47 = vunpack.c.0.s8 %v11508_v29 }
 0x375   :  { %v11483_v36 = vadd.f32 %v5750_v8, %v5622_v33  ;;  %v5772_v5 = vadd.f32 %v5771_v43, %v14949_v46  ;;  %v5900_v2 = vpop.f32.mrf.mxu1  ;;  %v4290_v8 = vpack.c.bf16 %v3606_v56, %v3588_v58  ;;  %v4256_v43 = vpack.c.bf16 %v3536_v53, %v3518_v11 }
 0x376   :  { %v4257_v46 = vpack.c.bf16 %v3537_v22, %v3519_v31  ;;  %v1897_v58 = vunpack.c.1.s8 %v11508_v29  ;;  %v4942_v53 = vpack.c.bf16 %v4755_v27, %v4754_v14 }
 0x377   :  { %14948 = vst [vmem:[#allocation23_spill] sm:$0xff] %v11483_v36  ;;  %v11486_v30 = vadd.f32 %v5900_v2, %v5772_v5  ;;  %v11513_v5 = vld [vmem:[%s14847_s4 + $0x280] sm:$0xff]  ;;  %v11520_v2 = vld [vmem:[%s14847_s4 + $0x288] sm:$0xff] }
 0x378   :  { %v1808_v56 = vunpack.c.0.s8 %v11513_v5  ;;  %v1826_v11 = vunpack.c.1.s8 %v11513_v5  ;;  %v1809_v22 = vunpack.c.0.s8 %v11520_v2  ;;  %6537 = vmatpush.bf16.msrb.mxu2 %v4942_v53 }
 0x37a   :  { %v5623_v28 = vpop.f32.mrf.mxu2  ;;  %v2672_v36 = vcvt.s32.f32 %v1808_v56  ;;  %v2690_v44 = vcvt.s32.f32 %v1826_v11 }
 0x37b   :  { %v5624_v45 = vadd.f32 %v5623_v28, %v11410_v25  ;;  %v5752_v51 = vpop.f32.mrf.mxu3  ;;  %v4291_v25 = vpack.c.bf16 %v3607_v9, %v3589_v7  ;;  %v4723_v28 = vld [vmem:[%s14845_s3 + $0x548] sm:$0xff]  ;;  %v4770_v7 = vld [vmem:[%s14845_s3 + $0x6c0] sm:$0xff] }
 0x37c   :  { %v5774_v37 = vpop.f32.mrf.mxu0  ;;  %v4771_v9 = vld [vmem:[%s14845_s3 + $0x6c8] sm:$0xff]  ;;  %v3554_v11 = vmul.f32 %v11175_v12, %v2672_v36 }
 0x37d   :  { %v11497_v49 = vadd.f32 %v5752_v51, %v5624_v45  ;;  %v5775_v55 = vadd.f32 %v5774_v37, %v10397_v26  ;;  %v5903_v33 = vpop.f32.mrf.mxu1  ;;  %v1827_v45 = vunpack.c.1.s8 %v11520_v2  ;;  %v4926_v51 = vpack.c.bf16 %v4723_v28, %v4722_v39  ;;  %v4738_v39 = vld [vmem:[%s14845_s3 + $0x5c0] sm:$0xff] }
 0x37e   :  { %v4950_v37 = vpack.c.bf16 %v4771_v9, %v4770_v7  ;;  %v3572_v7 = vmul.f32 %v11175_v12, %v2690_v44 }
 0x37f   :  { %14950 = vst [vmem:[#allocation24_spill] sm:$0xff] %v11497_v49  ;;  %v11515_v26 = vadd.f32 %v5903_v33, %v5775_v55  ;;  %5813 = vmatmul.bf16.gmra.mxu0 %v4290_v8  ;;  %6061 = vmatmul.bf16.gmra.mxu2 %v4256_v43  ;;  %v2742_v43 = vcvt.s32.f32 %v1878_v17  ;;  %v2761_v17 = vcvt.s32.f32 %v1897_v58 }
 0x380   :  { %5942 = vmatmul.bf16.gmra.mxu1 %v4291_v25  ;;  %6190 = vmatmul.bf16.gmra.mxu3 %v4257_v46  ;;  %v2760_v25 = vcvt.s32.f32 %v1896_v41  ;;  %v2743_v46 = vcvt.s32.f32 %v1879_v47  ;;  %v2673_v41 = vcvt.s32.f32 %v1809_v22  ;;  %v2691_v47 = vcvt.s32.f32 %v1827_v45 }
 0x381   :  { %6279 = vmatpush.bf16.msra.mxu0 %v4926_v51  ;;  %6666 = vmatpush.bf16.msrb.mxu3 %v4950_v37  ;;  %v3643_v51 = vmul.f32 %v11023_v16, %v2761_v17  ;;  %v4274_v44 = vpack.c.bf16 %v3572_v7, %v3554_v11  ;;  %v1915_v17 = vunpack.c.2.s8 %v11508_v29 }
 0x382   :  { %v5626_v31 = vpop.f32.mrf.mxu2  ;;  %v3642_v56 = vmul.f32 %v11021_v6, %v2760_v25  ;;  %v3555_v58 = vmul.f32 %v11177_v20, %v2673_v41  ;;  %v3573_v22 = vmul.f32 %v11177_v20, %v2691_v47  ;;  %v1933_v41 = vunpack.c.3.s8 %v11508_v29 }
 0x383   :  { %v5627_v55 = vadd.f32 %v5626_v31, %v11434_v61  ;;  %v5755_v33 = vpop.f32.mrf.mxu3  ;;  %v4739_v61 = vld [vmem:[%s14845_s3 + $0x5c8] sm:$0xff]  ;;  %v3625_v31 = vmul.f32 %v11023_v16, %v2743_v46  ;;  %v1845_v47 = vunpack.c.2.s8 %v11520_v2 }
 0x384   :  { %v5776_v8 = vpop.f32.mrf.mxu0  ;;  %v4934_v53 = vpack.c.bf16 %v4739_v61, %v4738_v39  ;;  %v4275_v25 = vpack.c.bf16 %v3573_v22, %v3555_v58  ;;  %v1844_v39 = vunpack.c.2.s8 %v11513_v5  ;;  %v1862_v61 = vunpack.c.3.s8 %v11513_v5 }
 0x385   :  { %v11549_v14 = vadd.f32 %v5755_v33, %v5627_v55  ;;  %v5777_v27 = vadd.f32 %v5776_v8, %v10411_v19  ;;  %v5905_v49 = vpop.f32.mrf.mxu1  ;;  %v3624_v19 = vmul.f32 %v11021_v6, %v2742_v43  ;;  %v4309_v43 = vpack.c.bf16 %v3643_v51, %v3625_v31 }
 0x386   :  { %6408 = vmatpush.bf16.msra.mxu1 %v4934_v53  ;;  %v1863_v53 = vunpack.c.3.s8 %v11520_v2  ;;  %v2708_v51 = vcvt.s32.f32 %v1844_v39  ;;  %v2726_v58 = vcvt.s32.f32 %v1862_v61  ;;  %v2779_v22 = vcvt.s32.f32 %v1915_v17 }
 0x387   :  { %v11558_v28 = vadd.f32 %v5905_v49, %v5777_v27  ;;  %v4308_v8 = vpack.c.bf16 %v3642_v56, %v3624_v19  ;;  %v1914_v27 = vunpack.c.2.s8 %v11503_v0  ;;  %v2709_v29 = vcvt.s32.f32 %v1845_v47 }
 0x389   :  { %v2778_v7 = vcvt.s32.f32 %v1914_v27 }
 0x38a   :  { %v5628_v9 = vpop.f32.mrf.mxu2 }
 0x38b   :  { %v5629_v49 = vadd.f32 %v5628_v9, %v11458_v24  ;;  %v5757_v45 = vpop.f32.mrf.mxu3  ;;  %v1932_v24 = vunpack.c.3.s8 %v11503_v0  ;;  %v3660_v2 = vmul.f32 %v11021_v6, %v2778_v7  ;;  %v11620_v7 = vld [vmem:[%s14847_s4 + $0x318] sm:$0xff] }
 0x38c   :  { %v5779_v37 = vpop.f32.mrf.mxu0 }
 0x38d   :  { %v11569_v55 = vadd.f32 %v5757_v45, %v5629_v49  ;;  %v5780_v33 = vadd.f32 %v5779_v37, %v10443_v62  ;;  %v5908_v36 = vpop.f32.mrf.mxu1  ;;  %v2796_v9 = vcvt.s32.f32 %v1932_v24  ;;  %v2797_v49 = vcvt.s32.f32 %v1933_v41 }
 0x38e   :  { %v2727_v45 = vcvt.s32.f32 %v1863_v53  ;;  %v11603_v53 = vld [vmem:[%s14847_s4 + $0x390] sm:$0xff] }
 0x38f   :  { %v11572_v46 = vadd.f32 %v5908_v36, %v5780_v33  ;;  %5818 = vmatmul.bf16.gmra.mxu0 %v4308_v8  ;;  %6066 = vmatmul.bf16.gmra.mxu2 %v4274_v44  ;;  %v3590_v33 = vmul.f32 %v11175_v12, %v2708_v51  ;;  %v3608_v36 = vmul.f32 %v11175_v12, %v2726_v58 }
 0x390   :  { %5947 = vmatmul.bf16.gmra.mxu1 %v4309_v43  ;;  %6195 = vmatmul.bf16.gmra.mxu3 %v4275_v25  ;;  %v3679_v44 = vmul.f32 %v11023_v16, %v2797_v49  ;;  %v3591_v43 = vmul.f32 %v11177_v20, %v2709_v29  ;;  %v3609_v25 = vmul.f32 %v11177_v20, %v2727_v45  ;;  %v1881_v29 = vunpack.c.0.s8 %v11620_v7 }
 0x391   :  { %v4292_v47 = vpack.c.bf16 %v3608_v36, %v3590_v33  ;;  %v1899_v45 = vunpack.c.1.s8 %v11620_v7 }
 0x392   :  { %v6027_v62 = vpop.f32.mrf.mxu2 }
 0x393   :  { %v6028_v19 = vadd.f32 %v6027_v62, %v11472_v1  ;;  %v6156_v56 = vpop.f32.mrf.mxu3  ;;  %v3678_v1 = vmul.f32 %v11021_v6, %v2796_v9  ;;  %v1950_v9 = vunpack.c.0.s8 %v11603_v53 }
 0x394   :  { %v5781_v11 = vpop.f32.mrf.mxu0 }
 0x395   :  { %v11583_v0 = vadd.f32 %v6156_v56, %v6028_v19  ;;  %v5782_v31 = vadd.f32 %v5781_v11, %v10463_v38  ;;  %v5910_v5 = vpop.f32.mrf.mxu1  ;;  %v3661_v38 = vmul.f32 %v11023_v16, %v2779_v22  ;;  %v4326_v41 = vpack.c.bf16 %v3678_v1, %v3660_v2 }
 0x396   :  { %v4293_v56 = vpack.c.bf16 %v3609_v25, %v3591_v43  ;;  %v2814_v36 = vcvt.s32.f32 %v1950_v9 }
 0x397   :  { %v11586_v37 = vadd.f32 %v5910_v5, %v5782_v31  ;;  %v4327_v19 = vpack.c.bf16 %v3679_v44, %v3661_v38  ;;  %v1968_v31 = vunpack.c.1.s8 %v11603_v53 }
 0x39a   :  { %v6029_v8 = vpop.f32.mrf.mxu2 }
 0x39b   :  { %v6030_v27 = vadd.f32 %v6029_v8, %v11486_v30  ;;  %v6158_v24 = vpop.f32.mrf.mxu3  ;;  %v11608_v30 = vld [vmem:[%s14847_s4 + $0x310] sm:$0xff]  ;;  %v2832_v8 = vcvt.s32.f32 %v1968_v31 }
 0x39c   :  { %v5784_v39 = vpop.f32.mrf.mxu0  ;;  %v1880_v5 = vunpack.c.0.s8 %v11608_v30  ;;  %v1898_v51 = vunpack.c.1.s8 %v11608_v30 }
 0x39d   :  { %v11597_v61 = vadd.f32 %v6158_v24, %v6030_v27  ;;  %v5785_v62 = vadd.f32 %v5784_v39, %v10497_v15  ;;  %v5913_v17 = vpop.f32.mrf.mxu1  ;;  %v11615_v15 = vld [vmem:[%s14847_s4 + $0x398] sm:$0xff] }
 0x39e   :  { %v1951_v22 = vunpack.c.0.s8 %v11615_v15  ;;  %v1969_v49 = vunpack.c.1.s8 %v11615_v15  ;;  %v2744_v25 = vcvt.s32.f32 %v1880_v5  ;;  %v2762_v27 = vcvt.s32.f32 %v1898_v51 }
 0x39f   :  { %v11610_v11 = vadd.f32 %v5913_v17, %v5785_v62  ;;  %5823 = vmatmul.bf16.gmra.mxu0 %v4326_v41  ;;  %6071 = vmatmul.bf16.gmra.mxu2 %v4292_v47  ;;  %v2745_v62 = vcvt.s32.f32 %v1881_v29  ;;  %v2763_v17 = vcvt.s32.f32 %v1899_v45  ;;  %v3696_v47 = vmul.f32 %v11021_v6, %v2814_v36  ;;  %v14951_v45 = vld [vmem:[#allocation31_spill] sm:$0xff] }
 0x3a0   :  { %5952 = vmatmul.bf16.gmra.mxu1 %v4327_v19  ;;  %6200 = vmatmul.bf16.gmra.mxu3 %v4293_v56  ;;  %v2815_v24 = vcvt.s32.f32 %v1951_v22  ;;  %v2833_v39 = vcvt.s32.f32 %v1969_v49  ;;  %v3626_v19 = vmul.f32 %v11175_v12, %v2744_v25  ;;  %v3644_v56 = vmul.f32 %v11175_v12, %v2762_v27 }
 0x3a1   :  { %v3627_v5 = vmul.f32 %v11177_v20, %v2745_v62  ;;  %v3645_v51 = vmul.f32 %v11177_v20, %v2763_v17  ;;  %v1986_v25 = vunpack.c.2.s8 %v11603_v53  ;;  %v1987_v27 = vunpack.c.2.s8 %v11615_v15  ;;  %v4720_v62 = vld [vmem:[%s14845_s3 + $0x530] sm:$0xff] }
 0x3a2   :  { %v6032_v58 = vpop.f32.mrf.mxu2  ;;  %v3715_v31 = vmul.f32 %v11023_v16, %v2833_v39  ;;  %v4310_v36 = vpack.c.bf16 %v3644_v56, %v3626_v19  ;;  %v4753_v39 = vld [vmem:[%s14845_s3 + $0x638] sm:$0xff]  ;;  %v2005_v17 = vunpack.c.3.s8 %v11615_v15  ;;  %v4768_v56 = vld [vmem:[%s14845_s3 + $0x6b0] sm:$0xff]  ;;  %v1917_v15 = vunpack.c.2.s8 %v11620_v7 }
 0x3a3   :  { %v6033_v2 = vadd.f32 %v6032_v58, %v11515_v26  ;;  %v6161_v1 = vpop.f32.mrf.mxu3  ;;  %v3714_v26 = vmul.f32 %v11021_v6, %v2832_v8  ;;  %v4721_v19 = vld [vmem:[%s14845_s3 + $0x538] sm:$0xff] }
 0x3a4   :  { %v5786_v33 = vpop.f32.mrf.mxu0 }
 0x3a5   :  { %v11631_v38 = vadd.f32 %v6161_v1, %v6033_v2  ;;  %v5787_v44 = vadd.f32 %v5786_v33, %v10511_v3  ;;  %v5915_v43 = vpop.f32.mrf.mxu1  ;;  %v3697_v3 = vmul.f32 %v11023_v16, %v2815_v24  ;;  %v4344_v33 = vpack.c.bf16 %v3714_v26, %v3696_v47  ;;  %v4752_v24 = vld [vmem:[%s14845_s3 + $0x630] sm:$0xff] }
 0x3a6   :  { %v1916_v47 = vunpack.c.2.s8 %v11608_v30  ;;  %v4941_v26 = vpack.c.bf16 %v4753_v39, %v4752_v24 }
 0x3a7   :  { %v11634_v41 = vadd.f32 %v5915_v43, %v5787_v44  ;;  %v4345_v8 = vpack.c.bf16 %v3715_v31, %v3697_v3  ;;  %v4311_v44 = vpack.c.bf16 %v3645_v51, %v3627_v5  ;;  %v1935_v31 = vunpack.c.3.s8 %v11620_v7  ;;  %v4736_v7 = vld [vmem:[%s14845_s3 + $0x5b0] sm:$0xff] }
 0x3a8   :  { %v4925_v5 = vpack.c.bf16 %v4721_v19, %v4720_v62  ;;  %6538 = vmatpush.bf16.msrb.mxu2 %v4941_v26 }
 0x3aa   :  { %v6034_v9 = vpop.f32.mrf.mxu2  ;;  %6280 = vmatpush.bf16.msra.mxu0 %v4925_v5 }
 0x3ab   :  { %v6035_v58 = vadd.f32 %v6034_v9, %v11558_v28  ;;  %v6163_v22 = vpop.f32.mrf.mxu3  ;;  %v2004_v28 = vunpack.c.3.s8 %v11603_v53  ;;  %v1934_v53 = vunpack.c.3.s8 %v11608_v30  ;;  %v4769_v9 = vld [vmem:[%s14845_s3 + $0x6b8] sm:$0xff] }
 0x3ac   :  { %v5789_v49 = vpop.f32.mrf.mxu0  ;;  %v4949_v30 = vpack.c.bf16 %v4769_v9, %v4768_v56 }
 0x3ad   :  { %v11645_v29 = vadd.f32 %v6163_v22, %v6035_v58  ;;  %v5790_v2 = vadd.f32 %v5789_v49, %v14951_v45  ;;  %v5918_v1 = vpop.f32.mrf.mxu1  ;;  %v2850_v49 = vcvt.s32.f32 %v1986_v25  ;;  %v2868_v45 = vcvt.s32.f32 %v2004_v28 }
 0x3ae   :  { %6667 = vmatpush.bf16.msrb.mxu3 %v4949_v30  ;;  %v2798_v24 = vcvt.s32.f32 %v1934_v53  ;;  %v2869_v25 = vcvt.s32.f32 %v2005_v17  ;;  %v2781_v28 = vcvt.s32.f32 %v1917_v15 }
 0x3af   :  { %v11648_v43 = vadd.f32 %v5918_v1, %v5790_v2  ;;  %5828 = vmatmul.bf16.gmra.mxu0 %v4344_v33  ;;  %6076 = vmatmul.bf16.gmra.mxu2 %v4310_v36  ;;  %v2851_v2 = vcvt.s32.f32 %v1987_v27  ;;  %v14952_v33 = vld [vmem:[#allocation32_spill] sm:$0xff]  ;;  %v2799_v27 = vcvt.s32.f32 %v1935_v31  ;;  %v3732_v26 = vmul.f32 %v11021_v6, %v2850_v49 }
 0x3b0   :  { %5957 = vmatmul.bf16.gmra.mxu1 %v4345_v8  ;;  %6205 = vmatmul.bf16.gmra.mxu3 %v4311_v44  ;;  %v2780_v44 = vcvt.s32.f32 %v1916_v47  ;;  %v3750_v47 = vmul.f32 %v11021_v6, %v2868_v45  ;;  %v3680_v19 = vmul.f32 %v11175_v12, %v2798_v24  ;;  %v3663_v17 = vmul.f32 %v11177_v20, %v2781_v28 }
 0x3b1   :  { %v3733_v9 = vmul.f32 %v11023_v16, %v2851_v2  ;;  %v3681_v15 = vmul.f32 %v11177_v20, %v2799_v27  ;;  %v11703_v2 = vld [vmem:[%s14847_s4 + $0x420] sm:$0xff] }
 0x3b2   :  { %v6037_v3 = vpop.f32.mrf.mxu2  ;;  %v3662_v53 = vmul.f32 %v11175_v12, %v2780_v44  ;;  %v4362_v49 = vpack.c.bf16 %v3750_v47, %v3732_v26  ;;  %v11720_v44 = vld [vmem:[%s14847_s4 + $0x3a8] sm:$0xff]  ;;  %v2022_v24 = vunpack.c.0.s8 %v11703_v2 }
 0x3b3   :  { %v6038_v51 = vadd.f32 %v6037_v3, %v11572_v46  ;;  %v6166_v58 = vpop.f32.mrf.mxu3  ;;  %v4737_v46 = vld [vmem:[%s14845_s3 + $0x5b8] sm:$0xff]  ;;  %v3751_v3 = vmul.f32 %v11023_v16, %v2869_v25  ;;  %v1953_v26 = vunpack.c.0.s8 %v11720_v44  ;;  %v1971_v47 = vunpack.c.1.s8 %v11720_v44 }
 0x3b4   :  { %v5791_v22 = vpop.f32.mrf.mxu0  ;;  %v4933_v39 = vpack.c.bf16 %v4737_v46, %v4736_v7  ;;  %v4328_v45 = vpack.c.bf16 %v3680_v19, %v3662_v53  ;;  %v2040_v7 = vunpack.c.1.s8 %v11703_v2 }
 0x3b5   :  { %v11677_v1 = vadd.f32 %v6166_v58, %v6038_v51  ;;  %v5792_v36 = vadd.f32 %v5791_v22, %v14952_v33  ;;  %v5920_v8 = vpop.f32.mrf.mxu1  ;;  %v4363_v33 = vpack.c.bf16 %v3751_v3, %v3733_v9  ;;  %v2886_v9 = vcvt.s32.f32 %v2022_v24 }
 0x3b6   :  { %6409 = vmatpush.bf16.msra.mxu1 %v4933_v39  ;;  %v2904_v3 = vcvt.s32.f32 %v2040_v7 }
 0x3b7   :  { %v11686_v62 = vadd.f32 %v5920_v8, %v5792_v36  ;;  %v4329_v36 = vpack.c.bf16 %v3681_v15, %v3663_v17 }
 0x3ba   :  { %v6039_v56 = vpop.f32.mrf.mxu2 }
 0x3bb   :  { %v6040_v31 = vadd.f32 %v6039_v56, %v11586_v37  ;;  %v6168_v5 = vpop.f32.mrf.mxu3  ;;  %v11708_v37 = vld [vmem:[%s14847_s4 + $0x3a0] sm:$0xff] }
 0x3bc   :  { %v5794_v30 = vpop.f32.mrf.mxu0  ;;  %v1952_v46 = vunpack.c.0.s8 %v11708_v37  ;;  %v1970_v25 = vunpack.c.1.s8 %v11708_v37 }
 0x3bd   :  { %v11697_v51 = vadd.f32 %v6168_v5, %v6040_v31  ;;  %v5795_v58 = vadd.f32 %v5794_v30, %v10591_v63  ;;  %v5923_v22 = vpop.f32.mrf.mxu1  ;;  %v11715_v63 = vld [vmem:[%s14847_s4 + $0x428] sm:$0xff] }
 0x3be   :  { %v2023_v27 = vunpack.c.0.s8 %v11715_v63  ;;  %v2041_v39 = vunpack.c.1.s8 %v11715_v63  ;;  %v2816_v5 = vcvt.s32.f32 %v1952_v46  ;;  %v2834_v30 = vcvt.s32.f32 %v1970_v25 }
 0x3bf   :  { %v11710_v8 = vadd.f32 %v5923_v22, %v5795_v58  ;;  %5833 = vmatmul.bf16.gmra.mxu0 %v4362_v49  ;;  %6081 = vmatmul.bf16.gmra.mxu2 %v4328_v45  ;;  %v2817_v49 = vcvt.s32.f32 %v1953_v26  ;;  %v2835_v45 = vcvt.s32.f32 %v1971_v47 }
 0x3c0   :  { %5962 = vmatmul.bf16.gmra.mxu1 %v4363_v33  ;;  %6210 = vmatmul.bf16.gmra.mxu3 %v4329_v36  ;;  %v2887_v58 = vcvt.s32.f32 %v2023_v27  ;;  %v2905_v22 = vcvt.s32.f32 %v2041_v39  ;;  %v3768_v36 = vmul.f32 %v11021_v6, %v2886_v9  ;;  %v3698_v24 = vmul.f32 %v11175_v12, %v2816_v5 }
 0x3c1   :  { %v3716_v7 = vmul.f32 %v11175_v12, %v2834_v30  ;;  %v3699_v25 = vmul.f32 %v11177_v20, %v2817_v49  ;;  %v3717_v27 = vmul.f32 %v11177_v20, %v2835_v45  ;;  %v2058_v30 = vunpack.c.2.s8 %v11703_v2 }
 0x3c2   :  { %v6042_v28 = vpop.f32.mrf.mxu2  ;;  %v3787_v46 = vmul.f32 %v11023_v16, %v2905_v22  ;;  %v2006_v22 = vunpack.c.3.s8 %v11708_v37  ;;  %v2059_v49 = vunpack.c.2.s8 %v11715_v63  ;;  %v2077_v45 = vunpack.c.3.s8 %v11715_v63 }
 0x3c3   :  { %v6043_v53 = vadd.f32 %v6042_v28, %v11610_v11  ;;  %v6171_v19 = vpop.f32.mrf.mxu3  ;;  %v3786_v11 = vmul.f32 %v11021_v6, %v2904_v3  ;;  %v4346_v3 = vpack.c.bf16 %v3716_v7, %v3698_v24 }
 0x3c4   :  { %v5796_v56 = vpop.f32.mrf.mxu0 }
 0x3c5   :  { %v11731_v17 = vadd.f32 %v6171_v19, %v6043_v53  ;;  %v5797_v15 = vadd.f32 %v5796_v56, %v10611_v18  ;;  %v5925_v31 = vpop.f32.mrf.mxu1  ;;  %v3769_v18 = vmul.f32 %v11023_v16, %v2887_v58  ;;  %v4380_v9 = vpack.c.bf16 %v3786_v11, %v3768_v36 }
 0x3c6   :  { %v1988_v58 = vunpack.c.2.s8 %v11708_v37  ;;  %v1989_v36 = vunpack.c.2.s8 %v11720_v44  ;;  %v2007_v11 = vunpack.c.3.s8 %v11720_v44 }
 0x3c7   :  { %v11734_v33 = vadd.f32 %v5925_v31, %v5797_v15  ;;  %v4381_v15 = vpack.c.bf16 %v3787_v46, %v3769_v18  ;;  %v4347_v31 = vpack.c.bf16 %v3717_v27, %v3699_v25  ;;  %v2922_v18 = vcvt.s32.f32 %v2058_v30 }
 0x3c8   :  { %v2852_v27 = vcvt.s32.f32 %v1988_v58  ;;  %v2853_v63 = vcvt.s32.f32 %v1989_v36 }
 0x3c9   :  { %v3804_v44 = vmul.f32 %v11021_v6, %v2922_v18 }
 0x3ca   :  { %v6044_v28 = vpop.f32.mrf.mxu2  ;;  %v3735_v30 = vmul.f32 %v11177_v20, %v2853_v63  ;;  %v4718_v63 = vld [vmem:[%s14845_s3 + $0x520] sm:$0xff] }
 0x3cb   :  { %v6045_v39 = vadd.f32 %v6044_v28, %v11634_v41  ;;  %v6173_v26 = vpop.f32.mrf.mxu3  ;;  %v2076_v41 = vunpack.c.3.s8 %v11703_v2 }
 0x3cc   :  { %v5799_v47 = vpop.f32.mrf.mxu0 }
 0x3cd   :  { %v11745_v53 = vadd.f32 %v6173_v26, %v6045_v39  ;;  %v5800_v19 = vadd.f32 %v5799_v47, %v10625_v57  ;;  %v5928_v56 = vpop.f32.mrf.mxu1  ;;  %v2940_v46 = vcvt.s32.f32 %v2076_v41  ;;  %v2870_v39 = vcvt.s32.f32 %v2006_v22 }
 0x3ce   :  { %v2923_v26 = vcvt.s32.f32 %v2059_v49  ;;  %v2941_v47 = vcvt.s32.f32 %v2077_v45 }
 0x3cf   :  { %v11748_v5 = vadd.f32 %v5928_v56, %v5800_v19  ;;  %5838 = vmatmul.bf16.gmra.mxu0 %v4380_v9  ;;  %6086 = vmatmul.bf16.gmra.mxu2 %v4346_v3  ;;  %v2871_v19 = vcvt.s32.f32 %v2007_v11  ;;  %v3734_v9 = vmul.f32 %v11175_v12, %v2852_v27  ;;  %v3752_v3 = vmul.f32 %v11175_v12, %v2870_v39 }
 0x3d0   :  { %5967 = vmatmul.bf16.gmra.mxu1 %v4381_v15  ;;  %6215 = vmatmul.bf16.gmra.mxu3 %v4347_v31  ;;  %v3823_v31 = vmul.f32 %v11023_v16, %v2941_v47  ;;  %v4751_v47 = vld [vmem:[%s14845_s3 + $0x628] sm:$0xff] }
 0x3d1   :  { %v3753_v41 = vmul.f32 %v11177_v20, %v2871_v19 }
 0x3d2   :  { %v6047_v57 = vpop.f32.mrf.mxu2 }
 0x3d3   :  { %v6048_v24 = vadd.f32 %v6047_v57, %v11648_v43  ;;  %v6176_v7 = vpop.f32.mrf.mxu3  ;;  %v3822_v43 = vmul.f32 %v11021_v6, %v2940_v46  ;;  %v4365_v18 = vpack.c.bf16 %v3753_v41, %v3735_v30  ;;  %v11789_v46 = vld [vmem:[%s14847_s4 + $0x430] sm:$0xff] }
 0x3d4   :  { %v5801_v28 = vpop.f32.mrf.mxu0 }
 0x3d5   :  { %v11759_v2 = vadd.f32 %v6176_v7, %v6048_v24  ;;  %v5802_v25 = vadd.f32 %v5801_v28, %v10639_v21  ;;  %v5930_v37 = vpop.f32.mrf.mxu1  ;;  %v3805_v21 = vmul.f32 %v11023_v16, %v2923_v26  ;;  %v4398_v11 = vpack.c.bf16 %v3822_v43, %v3804_v44  ;;  %v11779_v7 = vld [vmem:[%s14847_s4 + $0x4b0] sm:$0xff]  ;;  %v11784_v28 = vld [vmem:[%s14847_s4 + $0x4b8] sm:$0xff]  ;;  %v4750_v26 = vld [vmem:[%s14845_s3 + $0x620] sm:$0xff] }
 0x3d6   :  { %v4364_v24 = vpack.c.bf16 %v3752_v3, %v3734_v9  ;;  %v2112_v27 = vunpack.c.1.s8 %v11779_v7  ;;  %v2095_v39 = vunpack.c.0.s8 %v11784_v28  ;;  %v2113_v19 = vunpack.c.1.s8 %v11784_v28  ;;  %v4719_v3 = vld [vmem:[%s14845_s3 + $0x528] sm:$0xff] }
 0x3d7   :  { %14953 = vst [vmem:[#allocation25_spill] sm:$0xff] %v11759_v2  ;;  %v11762_v56 = vadd.f32 %v5930_v37, %v5802_v25  ;;  %v11796_v25 = vld [vmem:[%s14847_s4 + $0x438] sm:$0xff]  ;;  %v2094_v37 = vunpack.c.0.s8 %v11779_v7  ;;  %v2024_v44 = vunpack.c.0.s8 %v11789_v46  ;;  %v2042_v43 = vunpack.c.1.s8 %v11789_v46 }
 0x3d8   :  { %v4940_v9 = vpack.c.bf16 %v4751_v47, %v4750_v26  ;;  %v2025_v30 = vunpack.c.0.s8 %v11796_v25  ;;  %v2043_v41 = vunpack.c.1.s8 %v11796_v25 }
 0x3d9   :  { %v2906_v2 = vcvt.s32.f32 %v2042_v43 }
 0x3da   :  { %v6049_v15 = vpop.f32.mrf.mxu2  ;;  %6539 = vmatpush.bf16.msrb.mxu2 %v4940_v9 }
 0x3db   :  { %v6050_v58 = vadd.f32 %v6049_v15, %v11686_v62  ;;  %v6178_v22 = vpop.f32.mrf.mxu3  ;;  %v4399_v62 = vpack.c.bf16 %v3823_v31, %v3805_v21  ;;  %v4766_v15 = vld [vmem:[%s14845_s3 + $0x6a0] sm:$0xff]  ;;  %v4767_v21 = vld [vmem:[%s14845_s3 + $0x6a8] sm:$0xff] }
 0x3dc   :  { %v5804_v57 = vpop.f32.mrf.mxu0 }
 0x3dd   :  { %v11773_v49 = vadd.f32 %v6178_v22, %v6050_v58  ;;  %v5805_v45 = vadd.f32 %v5804_v57, %v10673_v52  ;;  %v5933_v36 = vpop.f32.mrf.mxu1  ;;  %v4924_v58 = vpack.c.bf16 %v4719_v3, %v4718_v63  ;;  %v4948_v22 = vpack.c.bf16 %v4767_v21, %v4766_v15  ;;  %v4734_v63 = vld [vmem:[%s14845_s3 + $0x5a0] sm:$0xff] }
 0x3de   :  { %v3788_v15 = vmul.f32 %v11175_v12, %v2906_v2 }
 0x3df   :  { %14954 = vst [vmem:[#allocation26_spill] sm:$0xff] %v11773_v49  ;;  %v11791_v52 = vadd.f32 %v5933_v36, %v5805_v45  ;;  %5843 = vmatmul.bf16.gmra.mxu0 %v4398_v11  ;;  %6091 = vmatmul.bf16.gmra.mxu2 %v4364_v24  ;;  %v2958_v11 = vcvt.s32.f32 %v2094_v37  ;;  %v2976_v24 = vcvt.s32.f32 %v2112_v27  ;;  %v2888_v49 = vcvt.s32.f32 %v2024_v44 }
 0x3e0   :  { %5972 = vmatmul.bf16.gmra.mxu1 %v4399_v62  ;;  %6220 = vmatmul.bf16.gmra.mxu3 %v4365_v18  ;;  %v2959_v62 = vcvt.s32.f32 %v2095_v39  ;;  %v2977_v37 = vcvt.s32.f32 %v2113_v19  ;;  %v2889_v27 = vcvt.s32.f32 %v2025_v30  ;;  %v2907_v39 = vcvt.s32.f32 %v2043_v41 }
 0x3e1   :  { %6281 = vmatpush.bf16.msra.mxu0 %v4924_v58  ;;  %6668 = vmatpush.bf16.msrb.mxu3 %v4948_v22  ;;  %v3858_v44 = vmul.f32 %v11021_v6, %v2976_v24  ;;  %v3770_v43 = vmul.f32 %v11175_v12, %v2888_v49 }
 0x3e2   :  { %v6052_v31 = vpop.f32.mrf.mxu2  ;;  %v3859_v58 = vmul.f32 %v11023_v16, %v2977_v37  ;;  %v3771_v19 = vmul.f32 %v11177_v20, %v2889_v27  ;;  %v3789_v30 = vmul.f32 %v11177_v20, %v2907_v39  ;;  %v2131_v37 = vunpack.c.2.s8 %v11784_v28 }
 0x3e3   :  { %v6053_v57 = vadd.f32 %v6052_v31, %v11710_v8  ;;  %v6181_v45 = vpop.f32.mrf.mxu3  ;;  %v4735_v8 = vld [vmem:[%s14845_s3 + $0x5a8] sm:$0xff]  ;;  %v3841_v31 = vmul.f32 %v11023_v16, %v2959_v62  ;;  %v4382_v2 = vpack.c.bf16 %v3788_v15, %v3770_v43  ;;  %v2149_v27 = vunpack.c.3.s8 %v11784_v28 }
 0x3e4   :  { %v5806_v36 = vpop.f32.mrf.mxu0  ;;  %v4932_v9 = vpack.c.bf16 %v4735_v8, %v4734_v63  ;;  %v2060_v63 = vunpack.c.2.s8 %v11789_v46  ;;  %v2078_v8 = vunpack.c.3.s8 %v11789_v46  ;;  %v2061_v39 = vunpack.c.2.s8 %v11796_v25 }
 0x3e5   :  { %v11825_v18 = vadd.f32 %v6181_v45, %v6053_v57  ;;  %v5807_v26 = vadd.f32 %v5806_v36, %v10687_v40  ;;  %v5935_v47 = vpop.f32.mrf.mxu1  ;;  %v3840_v40 = vmul.f32 %v11021_v6, %v2958_v11  ;;  %v4417_v24 = vpack.c.bf16 %v3859_v58, %v3841_v31  ;;  %v14955_v31 = vld [vmem:[#allocation33_spill] sm:$0xff] }
 0x3e6   :  { %6410 = vmatpush.bf16.msra.mxu1 %v4932_v9  ;;  %v2079_v9 = vunpack.c.3.s8 %v11796_v25  ;;  %v2925_v28 = vcvt.s32.f32 %v2061_v39 }
 0x3e7   :  { %v11834_v3 = vadd.f32 %v5935_v47, %v5807_v26  ;;  %v4416_v11 = vpack.c.bf16 %v3858_v44, %v3840_v40  ;;  %v4383_v26 = vpack.c.bf16 %v3789_v30, %v3771_v19  ;;  %v2130_v47 = vunpack.c.2.s8 %v11779_v7 }
 0x3e8   :  { %v2924_v19 = vcvt.s32.f32 %v2060_v63  ;;  %v2942_v30 = vcvt.s32.f32 %v2078_v8 }
 0x3e9   :  { %v2994_v15 = vcvt.s32.f32 %v2130_v47  ;;  %v3807_v47 = vmul.f32 %v11177_v20, %v2925_v28 }
 0x3ea   :  { %v6054_v21 = vpop.f32.mrf.mxu2 }
 0x3eb   :  { %v6055_v41 = vadd.f32 %v6054_v21, %v11734_v33  ;;  %v6183_v22 = vpop.f32.mrf.mxu3  ;;  %v2148_v33 = vunpack.c.3.s8 %v11779_v7  ;;  %v3876_v25 = vmul.f32 %v11021_v6, %v2994_v15 }
 0x3ec   :  { %v5809_v57 = vpop.f32.mrf.mxu0 }
 0x3ed   :  { %v11845_v45 = vadd.f32 %v6183_v22, %v6055_v41  ;;  %v5810_v36 = vadd.f32 %v5809_v57, %v10719_v50  ;;  %v5938_v49 = vpop.f32.mrf.mxu1  ;;  %v3012_v21 = vcvt.s32.f32 %v2148_v33  ;;  %v2995_v41 = vcvt.s32.f32 %v2131_v37 }
 0x3ee   :  { %v3013_v22 = vcvt.s32.f32 %v2149_v27  ;;  %v2943_v57 = vcvt.s32.f32 %v2079_v9 }
 0x3ef   :  { %v11848_v62 = vadd.f32 %v5938_v49, %v5810_v36  ;;  %5848 = vmatmul.bf16.gmra.mxu0 %v4416_v11  ;;  %6096 = vmatmul.bf16.gmra.mxu2 %v4382_v2  ;;  %v3806_v49 = vmul.f32 %v11175_v12, %v2924_v19  ;;  %v3824_v11 = vmul.f32 %v11175_v12, %v2942_v30 }
 0x3f0   :  { %5977 = vmatmul.bf16.gmra.mxu1 %v4417_v24  ;;  %6225 = vmatmul.bf16.gmra.mxu3 %v4383_v26  ;;  %v3877_v24 = vmul.f32 %v11023_v16, %v2995_v41  ;;  %v3895_v26 = vmul.f32 %v11023_v16, %v3013_v22  ;;  %v3825_v33 = vmul.f32 %v11177_v20, %v2943_v57 }
 0x3f2   :  { %v6057_v50 = vpop.f32.mrf.mxu2  ;;  %v4401_v15 = vpack.c.bf16 %v3825_v33, %v3807_v47 }
 0x3f3   :  { %v6058_v40 = vadd.f32 %v6057_v50, %v11748_v5  ;;  %v6186_v44 = vpop.f32.mrf.mxu3  ;;  %v3894_v5 = vmul.f32 %v11021_v6, %v3012_v21 }
 0x3f4   :  { %v5811_v43 = vpop.f32.mrf.mxu0 }
 0x3f5   :  { %v11859_v7 = vadd.f32 %v6186_v44, %v6058_v40  ;;  %v5812_v58 = vadd.f32 %v5811_v43, %v14955_v31  ;;  %v5940_v46 = vpop.f32.mrf.mxu1  ;;  %v4434_v9 = vpack.c.bf16 %v3894_v5, %v3876_v25  ;;  %v4400_v40 = vpack.c.bf16 %v3824_v11, %v3806_v49  ;;  %v11879_v44 = vld [vmem:[%s14847_s4 + $0x540] sm:$0xff]  ;;  %v11896_v31 = vld [vmem:[%s14847_s4 + $0x4c8] sm:$0xff] }
 0x3f6   :  { %v4435_v43 = vpack.c.bf16 %v3895_v26, %v3877_v24  ;;  %v2097_v57 = vunpack.c.0.s8 %v11896_v31  ;;  %v2115_v25 = vunpack.c.1.s8 %v11896_v31 }
 0x3f7   :  { %v11862_v36 = vadd.f32 %v5940_v46, %v5812_v58  ;;  %v2166_v58 = vunpack.c.0.s8 %v11879_v44  ;;  %v2184_v46 = vunpack.c.1.s8 %v11879_v44 }
 0x3f9   :  { %v3048_v24 = vcvt.s32.f32 %v2184_v46 }
 0x3fa   :  { %v6059_v2 = vpop.f32.mrf.mxu2 }
 0x3fb   :  { %v6060_v63 = vadd.f32 %v6059_v2, %v11762_v56  ;;  %v6188_v8 = vpop.f32.mrf.mxu3  ;;  %v11884_v56 = vld [vmem:[%s14847_s4 + $0x4c0] sm:$0xff]  ;;  %v3030_v2 = vcvt.s32.f32 %v2166_v58 }
 0x3fc   :  { %v5814_v50 = vpop.f32.mrf.mxu0  ;;  %v2096_v19 = vunpack.c.0.s8 %v11884_v56  ;;  %v2114_v30 = vunpack.c.1.s8 %v11884_v56 }
 0x3fd   :  { %v11873_v37 = vadd.f32 %v6188_v8, %v6060_v63  ;;  %v5815_v27 = vadd.f32 %v5814_v50, %v10776_v23  ;;  %v5943_v39 = vpop.f32.mrf.mxu1  ;;  %v11891_v23 = vld [vmem:[%s14847_s4 + $0x548] sm:$0xff] }
 0x3fe   :  { %v2167_v22 = vunpack.c.0.s8 %v11891_v23  ;;  %v2185_v28 = vunpack.c.1.s8 %v11891_v23  ;;  %v2960_v63 = vcvt.s32.f32 %v2096_v19  ;;  %v2978_v8 = vcvt.s32.f32 %v2114_v30 }
 0x3ff   :  { %v11886_v21 = vadd.f32 %v5943_v39, %v5815_v27  ;;  %5853 = vmatmul.bf16.gmra.mxu0 %v4434_v9  ;;  %6101 = vmatmul.bf16.gmra.mxu2 %v4400_v40  ;;  %v2961_v39 = vcvt.s32.f32 %v2097_v57  ;;  %v2979_v9 = vcvt.s32.f32 %v2115_v25 }
 0x400   :  { %5982 = vmatmul.bf16.gmra.mxu1 %v4435_v43  ;;  %6230 = vmatmul.bf16.gmra.mxu3 %v4401_v15  ;;  %v3031_v50 = vcvt.s32.f32 %v2167_v22  ;;  %v3049_v27 = vcvt.s32.f32 %v2185_v28  ;;  %v3912_v43 = vmul.f32 %v11021_v6, %v3030_v2  ;;  %v3842_v15 = vmul.f32 %v11175_v12, %v2960_v63 }
 0x401   :  { %v3860_v58 = vmul.f32 %v11175_v12, %v2978_v8  ;;  %v3843_v30 = vmul.f32 %v11177_v20, %v2961_v39  ;;  %v2202_v63 = vunpack.c.2.s8 %v11879_v44  ;;  %v2203_v8 = vunpack.c.2.s8 %v11891_v23 }
 0x402   :  { %v6062_v41 = vpop.f32.mrf.mxu2  ;;  %v3931_v19 = vmul.f32 %v11023_v16, %v3049_v27  ;;  %v4716_v27 = vld [vmem:[%s14845_s3 + $0x510] sm:$0xff]  ;;  %v2221_v39 = vunpack.c.3.s8 %v11891_v23  ;;  %v2133_v23 = vunpack.c.2.s8 %v11896_v31 }
 0x403   :  { %v6063_v5 = vadd.f32 %v6062_v41, %v11791_v52  ;;  %v6191_v49 = vpop.f32.mrf.mxu3  ;;  %v3930_v52 = vmul.f32 %v11021_v6, %v3048_v24  ;;  %v3861_v41 = vmul.f32 %v11177_v20, %v2979_v9  ;;  %v4418_v2 = vpack.c.bf16 %v3860_v58, %v3842_v15  ;;  %v4764_v15 = vld [vmem:[%s14845_s3 + $0x690] sm:$0xff]  ;;  %v4765_v58 = vld [vmem:[%s14845_s3 + $0x698] sm:$0xff] }
 0x404   :  { %v5816_v11 = vpop.f32.mrf.mxu0  ;;  %v2132_v9 = vunpack.c.2.s8 %v11884_v56 }
 0x405   :  { %v11907_v26 = vadd.f32 %v6191_v49, %v6063_v5  ;;  %v5817_v47 = vadd.f32 %v5816_v11, %v10792_v59  ;;  %v5945_v33 = vpop.f32.mrf.mxu1  ;;  %v3913_v59 = vmul.f32 %v11023_v16, %v3031_v50  ;;  %v4452_v11 = vpack.c.bf16 %v3930_v52, %v3912_v43  ;;  %v4749_v50 = vld [vmem:[%s14845_s3 + $0x618] sm:$0xff] }
 0x406   :  { %v4717_v52 = vld [vmem:[%s14845_s3 + $0x518] sm:$0xff] }
 0x407   :  { %v11910_v40 = vadd.f32 %v5945_v33, %v5817_v47  ;;  %v4453_v24 = vpack.c.bf16 %v3931_v19, %v3913_v59  ;;  %v4419_v47 = vpack.c.bf16 %v3861_v41, %v3843_v30  ;;  %v2151_v59 = vunpack.c.3.s8 %v11896_v31  ;;  %v4732_v31 = vld [vmem:[%s14845_s3 + $0x590] sm:$0xff] }
 0x408   :  { %v4923_v19 = vpack.c.bf16 %v4717_v52, %v4716_v27 }
 0x40a   :  { %v6064_v46 = vpop.f32.mrf.mxu2  ;;  %6282 = vmatpush.bf16.msra.mxu0 %v4923_v19 }
 0x40b   :  { %v6065_v22 = vadd.f32 %v6064_v46, %v11834_v3  ;;  %v6193_v28 = vpop.f32.mrf.mxu3  ;;  %v2220_v3 = vunpack.c.3.s8 %v11879_v44  ;;  %v2150_v44 = vunpack.c.3.s8 %v11884_v56  ;;  %v4947_v56 = vpack.c.bf16 %v4765_v58, %v4764_v15 }
 0x40c   :  { %v5819_v57 = vpop.f32.mrf.mxu0 }
 0x40d   :  { %v11921_v25 = vadd.f32 %v6193_v28, %v6065_v22  ;;  %v5820_v5 = vadd.f32 %v5819_v57, %v10806_v54  ;;  %v5948_v49 = vpop.f32.mrf.mxu1  ;;  %v4748_v54 = vld [vmem:[%s14845_s3 + $0x610] sm:$0xff]  ;;  %v3066_v28 = vcvt.s32.f32 %v2202_v63  ;;  %v3084_v57 = vcvt.s32.f32 %v2220_v3  ;;  %6669 = vmatpush.bf16.msrb.mxu3 %v4947_v56  ;;  %v14959_v56 = vld [vmem:[#allocation34_spill] sm:$0xff] }
 0x40e   :  { %v4939_v43 = vpack.c.bf16 %v4749_v50, %v4748_v54  ;;  %v3085_v63 = vcvt.s32.f32 %v2221_v39  ;;  %v2997_v3 = vcvt.s32.f32 %v2133_v23 }
 0x40f   :  { %14956 = vst [vmem:[#allocation27_spill] sm:$0xff] %v11921_v25  ;;  %v11924_v33 = vadd.f32 %v5948_v49, %v5820_v5  ;;  %5858 = vmatmul.bf16.gmra.mxu0 %v4452_v11  ;;  %6106 = vmatmul.bf16.gmra.mxu2 %v4418_v2  ;;  %v3067_v5 = vcvt.s32.f32 %v2203_v8  ;;  %v3015_v8 = vcvt.s32.f32 %v2151_v59  ;;  %v3966_v27 = vmul.f32 %v11021_v6, %v3084_v57  ;;  %v11979_v57 = vld [vmem:[%s14847_s4 + $0x5d0] sm:$0xff] }
 0x410   :  { %5987 = vmatmul.bf16.gmra.mxu1 %v4453_v24  ;;  %6235 = vmatmul.bf16.gmra.mxu3 %v4419_v47  ;;  %v2996_v24 = vcvt.s32.f32 %v2132_v9  ;;  %v3014_v47 = vcvt.s32.f32 %v2150_v44  ;;  %v3967_v15 = vmul.f32 %v11023_v16, %v3085_v63  ;;  %v3879_v39 = vmul.f32 %v11177_v20, %v2997_v3 }
 0x411   :  { %6540 = vmatpush.bf16.msrb.mxu2 %v4939_v43  ;;  %v3949_v52 = vmul.f32 %v11023_v16, %v3067_v5  ;;  %v3897_v58 = vmul.f32 %v11177_v20, %v3015_v8 }
 0x412   :  { %v6067_v46 = vpop.f32.mrf.mxu2  ;;  %v3878_v9 = vmul.f32 %v11175_v12, %v2996_v24  ;;  %v3896_v44 = vmul.f32 %v11175_v12, %v3014_v47  ;;  %v11991_v24 = vld [vmem:[%s14847_s4 + $0x5d8] sm:$0xff] }
 0x413   :  { %v6068_v30 = vadd.f32 %v6067_v46, %v11848_v62  ;;  %v6196_v41 = vpop.f32.mrf.mxu3  ;;  %v4733_v62 = vld [vmem:[%s14845_s3 + $0x598] sm:$0xff]  ;;  %v4471_v5 = vpack.c.bf16 %v3967_v15, %v3949_v52 }
 0x414   :  { %v5821_v22 = vpop.f32.mrf.mxu0  ;;  %v4931_v54 = vpack.c.bf16 %v4733_v62, %v4732_v31  ;;  %v11996_v47 = vld [vmem:[%s14847_s4 + $0x558] sm:$0xff]  ;;  %v2238_v31 = vunpack.c.0.s8 %v11979_v57  ;;  %v2256_v62 = vunpack.c.1.s8 %v11979_v57 }
 0x415   :  { %v11953_v49 = vadd.f32 %v6196_v41, %v6068_v30  ;;  %v5822_v11 = vadd.f32 %v5821_v22, %v10822_v13  ;;  %v5950_v2 = vpop.f32.mrf.mxu1  ;;  %v3948_v13 = vmul.f32 %v11021_v6, %v3066_v28  ;;  %v4436_v28 = vpack.c.bf16 %v3896_v44, %v3878_v9 }
 0x416   :  { %6411 = vmatpush.bf16.msra.mxu1 %v4931_v54  ;;  %v2239_v54 = vunpack.c.0.s8 %v11991_v24  ;;  %v2187_v9 = vunpack.c.1.s8 %v11996_v47  ;;  %v3102_v15 = vcvt.s32.f32 %v2238_v31 }
 0x417   :  { %14957 = vst [vmem:[#allocation28_spill] sm:$0xff] %v11953_v49  ;;  %v11962_v50 = vadd.f32 %v5950_v2, %v5822_v11  ;;  %v4470_v22 = vpack.c.bf16 %v3966_v27, %v3948_v13  ;;  %v4437_v11 = vpack.c.bf16 %v3897_v58, %v3879_v39  ;;  %v2257_v13 = vunpack.c.1.s8 %v11991_v24 }
 0x418   :  { %v2169_v27 = vunpack.c.0.s8 %v11996_v47  ;;  %v3120_v39 = vcvt.s32.f32 %v2256_v62 }
 0x41a   :  { %v6069_v43 = vpop.f32.mrf.mxu2 }
 0x41b   :  { %v6070_v46 = vadd.f32 %v6069_v43, %v11862_v36  ;;  %v6198_v23 = vpop.f32.mrf.mxu3  ;;  %v11984_v36 = vld [vmem:[%s14847_s4 + $0x550] sm:$0xff] }
 0x41c   :  { %v5824_v59 = vpop.f32.mrf.mxu0  ;;  %v2168_v63 = vunpack.c.0.s8 %v11984_v36  ;;  %v2186_v3 = vunpack.c.1.s8 %v11984_v36 }
 0x41d   :  { %v11973_v19 = vadd.f32 %v6198_v23, %v6070_v46  ;;  %v5825_v30 = vadd.f32 %v5824_v59, %v14959_v56  ;;  %v5953_v41 = vpop.f32.mrf.mxu1 }
 0x41e   :  { %v3032_v59 = vcvt.s32.f32 %v2168_v63  ;;  %v3050_v56 = vcvt.s32.f32 %v2186_v3 }
 0x41f   :  { %14958 = vst [vmem:[#allocation29_spill] sm:$0xff] %v11973_v19  ;;  %v11986_v2 = vadd.f32 %v5953_v41, %v5825_v30  ;;  %5863 = vmatmul.bf16.gmra.mxu0 %v4470_v22  ;;  %6111 = vmatmul.bf16.gmra.mxu2 %v4436_v28  ;;  %v3103_v30 = vcvt.s32.f32 %v2239_v54  ;;  %v3121_v41 = vcvt.s32.f32 %v2257_v13  ;;  %v3033_v22 = vcvt.s32.f32 %v2169_v27  ;;  %v14961_v13 = vld [vmem:[#allocation3_spill] sm:$0xff] }
 0x420   :  { %5992 = vmatmul.bf16.gmra.mxu1 %v4471_v5  ;;  %6240 = vmatmul.bf16.gmra.mxu3 %v4437_v11  ;;  %v3051_v28 = vcvt.s32.f32 %v2187_v9  ;;  %v3984_v11 = vmul.f32 %v11021_v6, %v3102_v15  ;;  %v3914_v31 = vmul.f32 %v11175_v12, %v3032_v59  ;;  %v3932_v62 = vmul.f32 %v11175_v12, %v3050_v56 }
 0x421   :  { %v4003_v63 = vmul.f32 %v11023_v16, %v3121_v41  ;;  %v3915_v3 = vmul.f32 %v11177_v20, %v3033_v22  ;;  %v964_v27 = vsub.f32 0.0, %v14961_v13  ;;  %v2204_v13 = vunpack.c.2.s8 %v11984_v36 }
 0x422   :  { %v6072_v8 = vpop.f32.mrf.mxu2  ;;  %v3933_v54 = vmul.f32 %v11177_v20, %v3051_v28  ;;  %v4454_v56 = vpack.c.bf16 %v3932_v62, %v3914_v31  ;;  %v2293_v31 = vunpack.c.3.s8 %v11991_v24  ;;  %v2205_v62 = vunpack.c.2.s8 %v11996_v47 }
 0x423   :  { %v6073_v44 = vadd.f32 %v6072_v8, %v11886_v21  ;;  %v6201_v43 = vpop.f32.mrf.mxu3  ;;  %v4002_v21 = vmul.f32 %v11021_v6, %v3120_v39  ;;  %v992_v22 = vmul.f32 1.442695, %v964_v27 }
 0x424   :  { %v5826_v52 = vpop.f32.mrf.mxu0  ;;  %v4455_v41 = vpack.c.bf16 %v3933_v54, %v3915_v3 }
 0x425   :  { %v12007_v58 = vadd.f32 %v6201_v43, %v6073_v44  ;;  %v5827_v46 = vadd.f32 %v5826_v52, %v10911_v35  ;;  %v5955_v23 = vpop.f32.mrf.mxu1  ;;  %v3985_v35 = vmul.f32 %v11023_v16, %v3103_v30  ;;  %v14962_v43 = vld [vmem:[#allocation4_spill] sm:$0xff]  ;;  %v4488_v59 = vpack.c.bf16 %v4002_v21, %v3984_v11 }
 0x426   :  { %v965_v52 = vsub.f32 0.0, %v14962_v43  ;;  %v2275_v21 = vunpack.c.2.s8 %v11991_v24  ;;  %8315 = vpow2.f32 %v992_v22 }
 0x427   :  { %14960 = vst [vmem:[#allocation30_spill] sm:$0xff] %v12007_v58  ;;  %v12010_v5 = vadd.f32 %v5955_v23, %v5827_v46  ;;  %v4489_v30 = vpack.c.bf16 %v4003_v63, %v3985_v35  ;;  %v2223_v35 = vunpack.c.3.s8 %v11996_v47 }
 0x428   :  { %v994_v28 = vmul.f32 1.442695, %v965_v52  ;;  %v3068_v52 = vcvt.s32.f32 %v2204_v13  ;;  %v3139_v24 = vcvt.s32.f32 %v2275_v21 }
 0x42a   :  { %v6074_v8 = vpop.f32.mrf.mxu2  ;;  %8317 = vpow2.f32 %v994_v28 }
 0x42b   :  { %v6075_v9 = vadd.f32 %v6074_v8, %v11910_v40  ;;  %v6203_v44 = vpop.f32.mrf.mxu3  ;;  %v2274_v40 = vunpack.c.2.s8 %v11979_v57  ;;  %v2292_v8 = vunpack.c.3.s8 %v11979_v57 }
 0x42c   :  { %v5829_v15 = vpop.f32.mrf.mxu0 }
 0x42d   :  { %v12023_v39 = vadd.f32 %v6203_v44, %v6075_v9  ;;  %v5830_v46 = vadd.f32 %v5829_v15, %v10930_v10  ;;  %v5958_v23 = vpop.f32.mrf.mxu1  ;;  %v2222_v10 = vunpack.c.3.s8 %v11984_v36  ;;  %v3138_v57 = vcvt.s32.f32 %v2274_v40  ;;  %v14965_v36 = vld [vmem:[#allocation11_spill] sm:$0xff] }
 0x42e   :  { %v3156_v27 = vcvt.s32.f32 %v2292_v8  ;;  %v4021_v8 = vmul.f32 %v11023_v16, %v3139_v24 }
 0x42f   :  { %14963 = vst [vmem:[#allocation31_spill] sm:$0xff] %v12023_v39  ;;  %v12026_v58 = vadd.f32 %v5958_v23, %v5830_v46  ;;  %5868 = vmatmul.bf16.gmra.mxu0 %v4488_v59  ;;  %6116 = vmatmul.bf16.gmra.mxu2 %v4454_v56  ;;  %v3086_v15 = vcvt.s32.f32 %v2222_v10  ;;  %v3157_v46 = vcvt.s32.f32 %v2293_v31  ;;  %v3069_v23 = vcvt.s32.f32 %v2205_v62  ;;  %v8316_v56 = vpop.eup %8315 }
 0x430   :  { %5997 = vmatmul.bf16.gmra.mxu1 %v4489_v30  ;;  %6245 = vmatmul.bf16.gmra.mxu3 %v4455_v41  ;;  %v3087_v59 = vcvt.s32.f32 %v2223_v35  ;;  %v4038_v30 = vmul.f32 %v11021_v6, %v3156_v27  ;;  %v3950_v41 = vmul.f32 %v11175_v12, %v3068_v52  ;;  %v8318_v28 = vpop.eup %8317  ;;  %v12051_v62 = vadd.f32 1.0, %v8316_v56 }
 0x431   :  { %v3968_v22 = vmul.f32 %v11175_v12, %v3086_v15  ;;  %v4039_v13 = vmul.f32 %v11023_v16, %v3157_v46  ;;  %v3951_v10 = vmul.f32 %v11177_v20, %v3069_v23  ;;  %v12069_v15 = vld [vmem:[%s14847_s4 + $0x5e0] sm:$0xff]  ;;  %v12071_v24 = vadd.f32 1.0, %v8318_v28  ;;  %v12078_v23 = vld [vmem:[%s14847_s4 + $0x5e8] sm:$0xff] }
 0x432   :  { %v6077_v11 = vpop.f32.mrf.mxu2  ;;  %8319 = vrcp.f32 %v12051_v62  ;;  %vm1181_vm9 = vweird.f32 %v12051_v62 }
 0x433   :  { %v6078_v63 = vadd.f32 %v6077_v11, %v11924_v33  ;;  %v6206_v3 = vpop.f32.mrf.mxu3  ;;  %v4020_v33 = vmul.f32 %v11021_v6, %v3138_v57  ;;  %v3969_v11 = vmul.f32 %v11177_v20, %v3087_v59  ;;  %8321 = vrcp.f32 %v12071_v24 }
 0x434   :  { %v5831_v54 = vpop.f32.mrf.mxu0  ;;  %vm1196_vm11 = vweird.f32 %v12071_v24 }
 0x435   :  { %v12037_v9 = vadd.f32 %v6206_v3, %v6078_v63  ;;  %v5832_v44 = vadd.f32 %v5831_v54, %v14965_v36  ;;  %v5960_v43 = vpop.f32.mrf.mxu1  ;;  %v14967_v3 = vld [vmem:[#allocation2_spill] sm:$0xff]  ;;  %v4506_v27 = vpack.c.bf16 %v4038_v30, %v4020_v33  ;;  %v4472_v36 = vpack.c.bf16 %v3968_v22, %v3950_v41  ;;  %v4747_v41 = vld [vmem:[%s14845_s3 + $0x608] sm:$0xff] }
 0x436   :  { %v4473_v52 = vpack.c.bf16 %v3969_v11, %v3951_v10  ;;  %v4746_v30 = vld [vmem:[%s14845_s3 + $0x600] sm:$0xff]  ;;  %v4715_v10 = vld [vmem:[%s14845_s3 + $0x508] sm:$0xff] }
 0x437   :  { %14964 = vst [vmem:[#allocation32_spill] sm:$0xff] %v12037_v9  ;;  %v12040_v47 = vadd.f32 %v5960_v43, %v5832_v44  ;;  %v12059_v44 = vld [vmem:[%s14847_s4 + $0x660] sm:$0xff]  ;;  %v4507_v43 = vpack.c.bf16 %v4039_v13, %v4021_v8  ;;  %v2258_v8 = vunpack.c.1.s8 %v12069_v15  ;;  %v4938_v13 = vpack.c.bf16 %v4747_v41, %v4746_v30  ;;  %v14969_v9 = vld [vmem:[#allocation12_spill] sm:$0xff] }
 0x438   :  { %v2310_v59 = vunpack.c.0.s8 %v12059_v44  ;;  %v2328_v56 = vunpack.c.1.s8 %v12059_v44  ;;  %v4714_v22 = vld [vmem:[%s14845_s3 + $0x500] sm:$0xff] }
 0x439   :  { %v4762_v11 = vld [vmem:[%s14845_s3 + $0x680] sm:$0xff]  ;;  %6541 = vmatpush.bf16.msrb.mxu2 %v4938_v13 }
 0x43a   :  { %v6079_v40 = vpop.f32.mrf.mxu2  ;;  %v3192_v30 = vcvt.s32.f32 %v2328_v56 }
 0x43b   :  { %v6080_v21 = vadd.f32 %v6079_v40, %v11962_v50  ;;  %v6208_v31 = vpop.f32.mrf.mxu3  ;;  %v12064_v50 = vld [vmem:[%s14847_s4 + $0x668] sm:$0xff]  ;;  %v2240_v40 = vunpack.c.0.s8 %v12069_v15 }
 0x43c   :  { %v5834_v35 = vpop.f32.mrf.mxu0  ;;  %v2311_v33 = vunpack.c.0.s8 %v12064_v50  ;;  %v2329_v28 = vunpack.c.1.s8 %v12064_v50 }
 0x43d   :  { %v12053_v63 = vadd.f32 %v6208_v31, %v6080_v21  ;;  %v5835_v54 = vadd.f32 %v5834_v35, %v14967_v3  ;;  %v5963_v57 = vpop.f32.mrf.mxu1  ;;  %v4763_v21 = vld [vmem:[%s14845_s3 + $0x688] sm:$0xff]  ;;  %v2241_v35 = vunpack.c.0.s8 %v12078_v23  ;;  %v2259_v3 = vunpack.c.1.s8 %v12078_v23 }
 0x43e   :  { %v3175_v41 = vcvt.s32.f32 %v2311_v33  ;;  %v3104_v49 = vcvt.s32.f32 %v2240_v40  ;;  %v3193_v56 = vcvt.s32.f32 %v2329_v28 }
 0x43f   :  { %14966 = vst [vmem:[#allocation33_spill] sm:$0xff] %v12053_v63  ;;  %v12073_v46 = vadd.f32 %v5963_v57, %v5835_v54  ;;  %5873 = vmatmul.bf16.gmra.mxu0 %v4506_v27  ;;  %6121 = vmatmul.bf16.gmra.mxu2 %v4472_v36  ;;  %v4922_v54 = vpack.c.bf16 %v4715_v10, %v4714_v22  ;;  %v3122_v22 = vcvt.s32.f32 %v2258_v8  ;;  %v4730_v10 = vld [vmem:[%s14845_s3 + $0x580] sm:$0xff]  ;;  %v3105_v33 = vcvt.s32.f32 %v2241_v35 }
 0x440   :  { %6002 = vmatmul.bf16.gmra.mxu1 %v4507_v43  ;;  %6250 = vmatmul.bf16.gmra.mxu3 %v4473_v52  ;;  %v4946_v57 = vpack.c.bf16 %v4763_v21, %v4762_v11  ;;  %v3174_v52 = vcvt.s32.f32 %v2310_v59  ;;  %v12118_v59 = vpop.eup %8319  ;;  %v3123_v13 = vcvt.s32.f32 %v2259_v3  ;;  %v4057_v28 = vmul.f32 %v11023_v16, %v3175_v41  ;;  %v14971_v3 = vld [vmem:[#allocation6_spill] sm:$0xff] }
 0x441   :  { %6283 = vmatpush.bf16.msra.mxu0 %v4922_v54  ;;  %v12123_v40 = vpop.eup %8321  ;;  %v4074_v54 = vmul.f32 %v11021_v6, %v3192_v30  ;;  %v4075_v35 = vmul.f32 %v11023_v16, %v3193_v56  ;;  %v1177_v30 = vmul.f32 %v12118_v59, %v12051_v62  ;;  %vm1182_vm10 = vweird.f32 %v12118_v59 }
 0x442   :  { %v6082_v31 = vpop.f32.mrf.mxu2  ;;  %6670 = vmatpush.bf16.msrb.mxu3 %v4946_v57  ;;  %v4056_v8 = vmul.f32 %v11021_v6, %v3174_v52  ;;  %v3986_v57 = vmul.f32 %v11175_v12, %v3104_v49  ;;  %v1192_v49 = vmul.f32 %v12123_v40, %v12071_v24  ;;  %vm1197_vm12 = vweird.f32 %v12123_v40  ;;  %vm12176_vm13 = vmor %vm1181_vm9, %vm1182_vm10 }
 0x443   :  { %v6083_v27 = vadd.f32 %v6082_v31, %v11986_v2  ;;  %v6211_v36 = vpop.f32.mrf.mxu3  ;;  %v4731_v2 = vld [vmem:[%s14845_s3 + $0x588] sm:$0xff]  ;;  %vm12190_vm15 = vmor %vm1196_vm11, %vm1197_vm12 }
 0x444   :  { %v5836_v43 = vpop.f32.mrf.mxu0  ;;  %v4930_v11 = vpack.c.bf16 %v4731_v2, %v4730_v10  ;;  %v1193_v25 = vsub.f32 1.0, %v1192_v49 }
 0x445   :  { %v12109_v63 = vadd.f32 %v6211_v36, %v6083_v27  ;;  %v5837_v39 = vadd.f32 %v5836_v43, %v14969_v9  ;;  %v5965_v19 = vpop.f32.mrf.mxu1  ;;  %v14970_v9 = vld [vmem:[#allocation5_spill] sm:$0xff]  ;;  %v4004_v27 = vmul.f32 %v11175_v12, %v3122_v22  ;;  %v967_v43 = vsub.f32 0.0, %v14971_v3 }
 0x446   :  { %v966_v31 = vsub.f32 0.0, %v14970_v9  ;;  %6412 = vmatpush.bf16.msra.mxu1 %v4930_v11  ;;  %v4524_v11 = vpack.c.bf16 %v4074_v54, %v4056_v8  ;;  %v4525_v9 = vpack.c.bf16 %v4075_v35, %v4057_v28  ;;  %v2294_v8 = vunpack.c.3.s8 %v12069_v15 }
 0x447   :  { %14968 = vst [vmem:[#allocation34_spill] sm:$0xff] %v12109_v63  ;;  %v12120_v21 = vadd.f32 %v5965_v19, %v5837_v39  ;;  %v3987_v19 = vmul.f32 %v11177_v20, %v3105_v33  ;;  %v4005_v39 = vmul.f32 %v11177_v20, %v3123_v13  ;;  %v4490_v13 = vpack.c.bf16 %v4004_v27, %v3986_v57 }
 0x448   :  { %v996_v22 = vmul.f32 1.442695, %v966_v31  ;;  %v998_v63 = vmul.f32 1.442695, %v967_v43  ;;  %v2346_v31 = vunpack.c.2.s8 %v12059_v44  ;;  %v2347_v57 = vunpack.c.2.s8 %v12064_v50 }
 0x449   :  { %v4491_v3 = vpack.c.bf16 %v4005_v39, %v3987_v19  ;;  %v2365_v27 = vunpack.c.3.s8 %v12064_v50  ;;  %v2277_v28 = vunpack.c.2.s8 %v12078_v23  ;;  %v2295_v35 = vunpack.c.3.s8 %v12078_v23 }
 0x44a   :  { %v6084_v36 = vpop.f32.mrf.mxu2  ;;  %8323 = vpow2.f32 %v996_v22  ;;  %v1185_v19 = vand.u32 2147483647, %v12051_v62  ;;  %v3210_v49 = vcvt.s32.f32 %v2346_v31 }
 0x44b   :  { %v6085_v10 = vadd.f32 %v6084_v36, %v12010_v5  ;;  %v6213_v52 = vpop.f32.mrf.mxu3  ;;  %v1178_v36 = vsub.f32 1.0, %v1177_v30  ;;  %8325 = vpow2.f32 %v998_v63  ;;  %v3141_v63 = vcvt.s32.f32 %v2277_v28 }
 0x44c   :  { %v5839_v2 = vpop.f32.mrf.mxu0  ;;  %vm12184_vm14 = vcmp.eq.f32.partialorder %v1185_v19, 8.507059e+37 }
 0x44d   :  { %v12139_v41 = vadd.f32 %v6213_v52, %v6085_v10  ;;  %v5840_v56 = vadd.f32 %v5839_v2, %v11084_v34  ;;  %v5968_v33 = vpop.f32.mrf.mxu1  ;;  %v2364_v10 = vunpack.c.3.s8 %v12059_v44  ;;  %v2276_v34 = vunpack.c.2.s8 %v12069_v15  ;;  %v14972_v2 = vld [vmem:[#allocation13_spill] sm:$0xff] }
 0x44e   :  { %v1187_v44 = vand.u32 2147483648, %v12051_v62  ;;  %v1179_v52 = vmul.f32 %v12118_v59, %v1178_v36  ;;  %v1194_v15 = vmul.f32 %v12123_v40, %v1193_v25  ;;  %v1200_v25 = vand.u32 2147483647, %v12071_v24 }
 0x44f   :  { %v12142_v5 = vadd.f32 %v5968_v33, %v5840_v56  ;;  %5878 = vmatmul.bf16.gmra.mxu0 %v4524_v11  ;;  %6126 = vmatmul.bf16.gmra.mxu2 %v4490_v13  ;;  %v3228_v22 = vcvt.s32.f32 %v2364_v10  ;;  %v3140_v33 = vcvt.s32.f32 %v2276_v34  ;;  %v3158_v11 = vcvt.s32.f32 %v2294_v8 }
 0x450   :  { %6007 = vmatmul.bf16.gmra.mxu1 %v4525_v9  ;;  %6255 = vmatmul.bf16.gmra.mxu3 %v4491_v3  ;;  %v3211_v13 = vcvt.s32.f32 %v2347_v57  ;;  %v3229_v9 = vcvt.s32.f32 %v2365_v27  ;;  %v3159_v3 = vcvt.s32.f32 %v2295_v35  ;;  %v1180_v31 = vadd.f32 %v12118_v59, %v1179_v52 }
 0x451   :  { %v1195_v10 = vadd.f32 %v12123_v40, %v1194_v15  ;;  %v1202_v34 = vand.u32 2147483648, %v12071_v24  ;;  %v4110_v57 = vmul.f32 %v11021_v6, %v3228_v22  ;;  %v4022_v27 = vmul.f32 %v11175_v12, %v3140_v33 }
 0x452   :  { %v6087_v54 = vpop.f32.mrf.mxu2  ;;  %v4040_v28 = vmul.f32 %v11175_v12, %v3158_v11  ;;  %v4111_v52 = vmul.f32 %v11023_v16, %v3229_v9  ;;  %v4023_v15 = vmul.f32 %v11177_v20, %v3141_v63  ;;  %vm12195_vm0 = vcmp.eq.f32.partialorder %v1200_v25, 8.507059e+37  ;;  %v14982_v11 = vld [vmem:[#allocation14_spill] sm:$0xff] }
 0x453   :  { %v6088_v39 = vadd.f32 %v6087_v54, %v12026_v58  ;;  %v6216_v43 = vpop.f32.mrf.mxu3  ;;  %v8324_v58 = vpop.eup %8323  ;;  %v4092_v54 = vmul.f32 %v11021_v6, %v3210_v49 }
 0x454   :  { %v5841_v30 = vpop.f32.mrf.mxu0  ;;  %v8326_v8 = vpop.eup %8325  ;;  %v4508_v63 = vpack.c.bf16 %v4040_v28, %v4022_v27 }
 0x455   :  { %v12158_v50 = vadd.f32 %v6216_v43, %v6088_v39  ;;  %v5842_v56 = vadd.f32 %v5841_v30, %v14972_v2  ;;  %v5970_v23 = vpop.f32.mrf.mxu1  ;;  %v4093_v43 = vmul.f32 %v11023_v16, %v3211_v13  ;;  %v4041_v30 = vmul.f32 %v11177_v20, %v3159_v3 }
 0x456   :  { %v1188_v2 = vor.u32 1.1754944e-38, %v1187_v44  ;;  %v4542_v9 = vpack.c.bf16 %v4110_v57, %v4092_v54  ;;  %v1184_v44 = vsel %vm12176_vm13, %v12118_v59, %v1180_v31  ;;  %v1199_v3 = vsel %vm12190_vm15, %v12123_v40, %v1195_v10  ;;  %v12227_v59 = vld [vmem:[%s14847_s4 + $0x678] sm:$0xff] }
 0x457   :  { %v12164_v36 = vadd.f32 %v5970_v23, %v5842_v56  ;;  %v1203_v56 = vor.u32 1.1754944e-38, %v1202_v34  ;;  %v12199_v23 = vadd.f32 1.0, %v8324_v58  ;;  %v4543_v58 = vpack.c.bf16 %v4111_v52, %v4093_v43  ;;  %v12218_v34 = vld [vmem:[%s14847_s4 + $0x50] sm:$0xff]  ;;  %v12232_v40 = vld [vmem:[%s14847_s4 + $0x58] sm:$0xff] }
 0x458   :  { %v4509_v25 = vpack.c.bf16 %v4041_v30, %v4023_v15  ;;  %v12220_v54 = vadd.f32 1.0, %v8326_v8  ;;  %v1189_v8 = vsel %vm12184_vm14, %v1188_v2, %v1184_v44  ;;  %v1522_v28 = vunpack.c.0.s8 %v12218_v34 }
 0x459   :  { %8327 = vrcp.f32 %v12199_v23  ;;  %v1204_v27 = vsel %vm12195_vm0, %v1203_v56, %v1199_v3  ;;  %v1540_v35 = vunpack.c.1.s8 %v12218_v34  ;;  %v2313_v43 = vunpack.c.0.s8 %v12227_v59 }
 0x45a   :  { %v6089_v39 = vpop.f32.mrf.mxu2  ;;  %v2331_v52 = vunpack.c.1.s8 %v12227_v59  ;;  %v1523_v15 = vunpack.c.0.s8 %v12232_v40  ;;  %v1541_v30 = vunpack.c.1.s8 %v12232_v40  ;;  %8329 = vrcp.f32 %v12220_v54 }
 0x45b   :  { %v6090_v49 = vadd.f32 %v6089_v39, %v12040_v47  ;;  %v6218_v22 = vpop.f32.mrf.mxu3  ;;  %v12207_v47 = vld [vmem:[%s14847_s4 + $0x670] sm:$0xff]  ;;  %v3177_v3 = vcvt.s32.f32 %v2313_v43  ;;  %vm1211_vm1 = vweird.f32 %v12199_v23  ;;  %vm1226_vm3 = vweird.f32 %v12220_v54 }
 0x45c   :  { %v5844_v19 = vpop.f32.mrf.mxu0  ;;  %v2312_v31 = vunpack.c.0.s8 %v12207_v47  ;;  %v2330_v10 = vunpack.c.1.s8 %v12207_v47 }
 0x45d   :  { %v12201_v33 = vadd.f32 %v6218_v22, %v6090_v49  ;;  %v5845_v24 = vadd.f32 %v5844_v19, %v14982_v11  ;;  %v5973_v13 = vpop.f32.mrf.mxu1  ;;  %v12249_v49 = vperm.slane %v1189_v8, 0  ;;  %v12251_v22 = vperm.slane %v1204_v27, 0  ;;  %v14984_v11 = vld [vmem:[#allocation15_spill] sm:$0xff] }
 0x45e   :  { %v3176_v16 = vcvt.s32.f32 %v2312_v31  ;;  %v3194_v56 = vcvt.s32.f32 %v2330_v10 }
 0x45f   :  { %14981 = vst [vmem:[#allocation3_spill] sm:$0xff] %v12201_v33  ;;  %v12222_v57 = vadd.f32 %v5973_v13, %v5845_v24  ;;  %5883 = vmatmul.bf16.gmra.mxu0 %v4542_v9  ;;  %6131 = vmatmul.bf16.gmra.mxu2 %v4508_v63  ;;  %v2386_v9 = vcvt.s32.f32 %v1522_v28  ;;  %v2404_v63 = vcvt.s32.f32 %v1540_v35  ;;  %v12256_v44 = vpop.eup %8327  ;;  %v4059_v35 = vmul.f32 %v11177_v20, %v3177_v3 }
 0x460   :  { %6012 = vmatmul.bf16.gmra.mxu1 %v4543_v58  ;;  %6260 = vmatmul.bf16.gmra.mxu3 %v4509_v25  ;;  %v3195_v58 = vcvt.s32.f32 %v2331_v52  ;;  %v2405_v25 = vcvt.s32.f32 %v1541_v30  ;;  %v12260_v27 = vpop.eup %8329  ;;  %v4058_v31 = vmul.f32 %v11175_v12, %v3176_v16  ;;  %v4076_v10 = vmul.f32 %v11175_v12, %v3194_v56 }
 0x461   :  { %v1207_v30 = vmul.f32 %v12256_v44, %v12199_v23  ;;  %v1222_v16 = vmul.f32 %v12260_v27, %v12220_v54  ;;  %vm1212_vm2 = vweird.f32 %v12256_v44  ;;  %vm1227_vm4 = vweird.f32 %v12260_v27 }
 0x462   :  { %v6092_v39 = vpop.f32.mrf.mxu2  ;;  %v4077_v43 = vmul.f32 %v11177_v20, %v3195_v58  ;;  %vm12336_vm5 = vmor %vm1211_vm1, %vm1212_vm2 }
 0x463   :  { %v6093_v6 = vadd.f32 %v6092_v39, %v12073_v46  ;;  %v6221_v62 = vpop.f32.mrf.mxu3  ;;  %v2387_v46 = vcvt.s32.f32 %v1523_v15  ;;  %v3268_v39 = vmul.f32 %v12249_v49, %v2386_v9  ;;  %v3287_v15 = vmul.f32 %v12251_v22, %v2405_v25  ;;  %vm12346_vm6 = vmor %vm1226_vm3, %vm1227_vm4 }
 0x464   :  { %v5846_v2 = vpop.f32.mrf.mxu0  ;;  %v4527_v58 = vpack.c.bf16 %v4077_v43, %v4059_v35  ;;  %v1208_v25 = vsub.f32 1.0, %v1207_v30  ;;  %v1558_v35 = vunpack.c.2.s8 %v12218_v34  ;;  %v4841_v30 = vld [vmem:[%s14845_s3 + $0x8f8] sm:$0xff] }
 0x465   :  { %v12253_v19 = vadd.f32 %v6221_v62, %v6093_v6  ;;  %v5847_v24 = vadd.f32 %v5846_v2, %v14984_v11  ;;  %v5975_v13 = vpop.f32.mrf.mxu1  ;;  %v3286_v6 = vmul.f32 %v12249_v49, %v2404_v63  ;;  %v3269_v52 = vmul.f32 %v12251_v22, %v2387_v46 }
 0x466   :  { %v4526_v63 = vpack.c.bf16 %v4076_v10, %v4058_v31  ;;  %v4824_v31 = vld [vmem:[%s14845_s3 + $0x870] sm:$0xff]  ;;  %v4825_v10 = vld [vmem:[%s14845_s3 + $0x878] sm:$0xff] }
 0x467   :  { %14983 = vst [vmem:[#allocation4_spill] sm:$0xff] %v12253_v19  ;;  %v12258_v8 = vadd.f32 %v5975_v13, %v5847_v24  ;;  %v14986_v24 = vld [vmem:[#allocation16_spill] sm:$0xff]  ;;  %v4132_v3 = vpack.c.bf16 %v3286_v6, %v3268_v39  ;;  %v4133_v46 = vpack.c.bf16 %v3287_v15, %v3269_v52  ;;  %v2367_v6 = vunpack.c.3.s8 %v12227_v59  ;;  %v4793_v52 = vld [vmem:[%s14845_s3 + $0x778] sm:$0xff] }
 0x468   :  { %v4792_v39 = vld [vmem:[%s14845_s3 + $0x770] sm:$0xff]  ;;  %v4977_v43 = vpack.c.bf16 %v4825_v10, %v4824_v31 }
 0x469   :  { %v4840_v15 = vld [vmem:[%s14845_s3 + $0x8f0] sm:$0xff] }
 0x46a   :  { %v6094_v28 = vpop.f32.mrf.mxu2  ;;  %7050 = vmatpush.bf16.msra.mxu2 %v4977_v43 }
 0x46b   :  { %v6095_v62 = vadd.f32 %v6094_v28, %v12120_v21  ;;  %v6223_v2 = vpop.f32.mrf.mxu3  ;;  %v1223_v21 = vsub.f32 1.0, %v1222_v16  ;;  %v2348_v28 = vunpack.c.2.s8 %v12207_v47 }
 0x46c   :  { %v5849_v56 = vpop.f32.mrf.mxu0 }
 0x46d   :  { %v12275_v11 = vadd.f32 %v6223_v2, %v6095_v62  ;;  %v5850_v13 = vadd.f32 %v5849_v56, %v14986_v24  ;;  %v5978_v9 = vpop.f32.mrf.mxu1  ;;  %v2366_v62 = vunpack.c.3.s8 %v12207_v47  ;;  %v2349_v2 = vunpack.c.2.s8 %v12227_v59 }
 0x46e   :  { %v1576_v47 = vunpack.c.3.s8 %v12218_v34  ;;  %v1559_v59 = vunpack.c.2.s8 %v12232_v40  ;;  %v1577_v56 = vunpack.c.3.s8 %v12232_v40  ;;  %v4961_v24 = vpack.c.bf16 %v4793_v52, %v4792_v39  ;;  %v14987_v39 = vld [vmem:[#allocation17_spill] sm:$0xff] }
 0x46f   :  { %14985 = vst [vmem:[#allocation11_spill] sm:$0xff] %v12275_v11  ;;  %v12279_v19 = vadd.f32 %v5978_v9, %v5850_v13  ;;  %6136 = vmatmul.bf16.gmra.mxu2 %v4526_v63  ;;  %6284 = vmatmul.bf16.vlgmr.msra.gmra.mxu0 %v4132_v3  ;;  %v4985_v34 = vpack.c.bf16 %v4841_v30, %v4840_v15  ;;  %v1215_v9 = vand.u32 2147483647, %v12199_v23  ;;  %v1217_v63 = vand.u32 2147483648, %v12199_v23 }
 0x470   :  { %6265 = vmatmul.bf16.gmra.mxu3 %v4527_v58  ;;  %6413 = vmatmul.bf16.vlgmr.msra.gmra.mxu1 %v4133_v46  ;;  %v1209_v13 = vmul.f32 %v12256_v44, %v1208_v25  ;;  %v1224_v46 = vmul.f32 %v12260_v27, %v1223_v21  ;;  %v3212_v10 = vcvt.s32.f32 %v2348_v28  ;;  %v3230_v11 = vcvt.s32.f32 %v2366_v62  ;;  %v4809_v21 = vld [vmem:[%s14845_s3 + $0x7f8] sm:$0xff] }
 0x471   :  { %v3213_v33 = vcvt.s32.f32 %v2349_v2  ;;  %6792 = vmatpush.bf16.msrb.mxu0 %v4961_v24  ;;  %7179 = vmatpush.bf16.msra.mxu3 %v4985_v34  ;;  %v2422_v15 = vcvt.s32.f32 %v1558_v35  ;;  %v2440_v30 = vcvt.s32.f32 %v1576_v47  ;;  %v3231_v28 = vcvt.s32.f32 %v2367_v6 }
 0x472   :  { %v6097_v16 = vpop.f32.mrf.mxu2  ;;  %v2423_v62 = vcvt.s32.f32 %v1559_v59  ;;  %v2441_v2 = vcvt.s32.f32 %v1577_v56  ;;  %v1210_v47 = vadd.f32 %v12256_v44, %v1209_v13  ;;  %v1225_v24 = vadd.f32 %v12260_v27, %v1224_v46 }
 0x473   :  { %v6098_v3 = vadd.f32 %v6097_v16, %v12142_v5  ;;  %v6226_v58 = vpop.f32.mrf.mxu3  ;;  %v4808_v5 = vld [vmem:[%s14845_s3 + $0x7f0] sm:$0xff]  ;;  %v1230_v16 = vand.u32 2147483647, %v12220_v54  ;;  %v1232_v34 = vand.u32 2147483648, %v12220_v54  ;;  %v4094_v6 = vmul.f32 %v11175_v12, %v3212_v10 }
 0x474   :  { %v5851_v31 = vpop.f32.mrf.mxu0  ;;  %v4969_v43 = vpack.c.bf16 %v4809_v21, %v4808_v5  ;;  %v4112_v59 = vmul.f32 %v11175_v12, %v3230_v11  ;;  %v3304_v56 = vmul.f32 %v12249_v49, %v2422_v15  ;;  %v4095_v46 = vmul.f32 %v11177_v20, %v3213_v33 }
 0x475   :  { %v12312_v40 = vadd.f32 %v6226_v58, %v6098_v3  ;;  %v5852_v25 = vadd.f32 %v5851_v31, %v14987_v39  ;;  %v5980_v52 = vpop.f32.mrf.mxu1  ;;  %v3322_v3 = vmul.f32 %v12249_v49, %v2440_v30  ;;  %v4113_v31 = vmul.f32 %v11177_v20, %v3231_v28 }
 0x476   :  { %6921 = vmatpush.bf16.msrb.mxu1 %v4969_v43  ;;  %v3305_v39 = vmul.f32 %v12251_v22, %v2423_v62  ;;  %v3323_v10 = vmul.f32 %v12251_v22, %v2441_v2  ;;  %vm12351_vm7 = vcmp.eq.f32.partialorder %v1215_v9, 8.507059e+37  ;;  %v1218_v33 = vor.u32 1.1754944e-38, %v1217_v63 }
 0x477   :  { %v12324_v35 = vadd.f32 %v5980_v52, %v5852_v25  ;;  %vm12355_vm8 = vcmp.eq.f32.partialorder %v1230_v16, 8.507059e+37  ;;  %v1233_v52 = vor.u32 1.1754944e-38, %v1232_v34  ;;  %v4544_v21 = vpack.c.bf16 %v4112_v59, %v4094_v6  ;;  %v12383_v16 = vld [vmem:[%s14847_s4 + $0xe8] sm:$0xff] }
 0x478   :  { %v4150_v28 = vpack.c.bf16 %v3322_v3, %v3304_v56  ;;  %v1214_v9 = vsel %vm12336_vm5, %v12256_v44, %v1210_v47  ;;  %v1229_v63 = vsel %vm12346_vm6, %v12260_v27, %v1225_v24  ;;  %v4545_v62 = vpack.c.bf16 %v4113_v31, %v4095_v46  ;;  %v12388_v44 = vld [vmem:[%s14847_s4 + $0x68] sm:$0xff] }
 0x479   :  { %v4151_v2 = vpack.c.bf16 %v3323_v10, %v3305_v39  ;;  %v1219_v24 = vsel %vm12351_vm7, %v1218_v33, %v1214_v9  ;;  %v1234_v34 = vsel %vm12355_vm8, %v1233_v52, %v1229_v63  ;;  %v1595_v3 = vunpack.c.0.s8 %v12383_v16 }
 0x47a   :  { %v6099_v13 = vpop.f32.mrf.mxu2  ;;  %v1613_v58 = vunpack.c.1.s8 %v12383_v16  ;;  %v1543_v46 = vunpack.c.1.s8 %v12388_v44  ;;  %v12403_v10 = vperm.slane %v1219_v24, 0  ;;  %v12405_v12 = vperm.slane %v1234_v34, 0 }
 0x47b   :  { %v6100_v23 = vadd.f32 %v6099_v13, %v12164_v36  ;;  %v6228_v11 = vpop.f32.mrf.mxu3  ;;  %v12365_v36 = vld [vmem:[%s14847_s4 + $0xe0] sm:$0xff]  ;;  %v1525_v13 = vunpack.c.0.s8 %v12388_v44 }
 0x47c   :  { %v5854_v15 = vpop.f32.mrf.mxu0  ;;  %v1594_v27 = vunpack.c.0.s8 %v12365_v36  ;;  %v1612_v47 = vunpack.c.1.s8 %v12365_v36  ;;  %v2407_v9 = vcvt.s32.f32 %v1543_v46 }
 0x47d   :  { %v12359_v30 = vadd.f32 %v6228_v11, %v6100_v23  ;;  %v5855_v54 = vadd.f32 %v5854_v15, %v11273_v4  ;;  %v5983_v5 = vpop.f32.mrf.mxu1  ;;  %v12376_v4 = vld [vmem:[%s14847_s4 + $0x60] sm:$0xff] }
 0x47e   :  { %v1524_v6 = vunpack.c.0.s8 %v12376_v4  ;;  %v1542_v59 = vunpack.c.1.s8 %v12376_v4  ;;  %v2458_v11 = vcvt.s32.f32 %v1594_v27  ;;  %v2476_v25 = vcvt.s32.f32 %v1612_v47 }
 0x47f   :  { %v12378_v43 = vadd.f32 %v5983_v5, %v5855_v54  ;;  %6141 = vmatmul.bf16.gmra.mxu2 %v4544_v21  ;;  %6289 = vmatmul.bf16.gmra.mxu0 %v4150_v28  ;;  %v2459_v5 = vcvt.s32.f32 %v1595_v3  ;;  %v2477_v21 = vcvt.s32.f32 %v1613_v58  ;;  %v2389_v28 = vcvt.s32.f32 %v1525_v13  ;;  %v14996_v13 = vld [vmem:[#allocation18_spill] sm:$0xff] }
 0x480   :  { %6270 = vmatmul.bf16.gmra.mxu3 %v4545_v62  ;;  %6418 = vmatmul.bf16.gmra.mxu1 %v4151_v2  ;;  %v2388_v15 = vcvt.s32.f32 %v1524_v6  ;;  %v2406_v54 = vcvt.s32.f32 %v1542_v59  ;;  %v3340_v63 = vmul.f32 %v12249_v49, %v2458_v11  ;;  %v3358_v62 = vmul.f32 %v12249_v49, %v2476_v25 }
 0x481   :  { %v3359_v24 = vmul.f32 %v12251_v22, %v2477_v21  ;;  %v3271_v34 = vmul.f32 %v12405_v12, %v2389_v28  ;;  %v3289_v6 = vmul.f32 %v12405_v12, %v2407_v9  ;;  %v1631_v21 = vunpack.c.2.s8 %v12383_v16 }
 0x482   :  { %v6102_v56 = vpop.f32.mrf.mxu2  ;;  %v3270_v2 = vmul.f32 %v12403_v10, %v2388_v15  ;;  %v3288_v27 = vmul.f32 %v12403_v10, %v2406_v54  ;;  %v1560_v15 = vunpack.c.2.s8 %v12376_v4  ;;  %v1578_v54 = vunpack.c.3.s8 %v12376_v4 }
 0x483   :  { %v6103_v31 = vadd.f32 %v6102_v56, %v12222_v57  ;;  %v6231_v39 = vpop.f32.mrf.mxu3  ;;  %v4135_v25 = vpack.c.bf16 %v3289_v6, %v3271_v34  ;;  %v1649_v28 = vunpack.c.3.s8 %v12383_v16  ;;  %v1561_v9 = vunpack.c.2.s8 %v12388_v44 }
 0x484   :  { %v5856_v23 = vpop.f32.mrf.mxu0  ;;  %v2424_v6 = vcvt.s32.f32 %v1560_v15 }
 0x485   :  { %v12407_v33 = vadd.f32 %v6231_v39, %v6103_v31  ;;  %v5857_v20 = vadd.f32 %v5856_v23, %v11293_v32  ;;  %v5985_v52 = vpop.f32.mrf.mxu1  ;;  %v3341_v32 = vmul.f32 %v12251_v22, %v2459_v5  ;;  %v4168_v39 = vpack.c.bf16 %v3358_v62, %v3340_v63 }
 0x486   :  { %v4134_v23 = vpack.c.bf16 %v3288_v27, %v3270_v2  ;;  %v1579_v63 = vunpack.c.3.s8 %v12388_v44  ;;  %v2425_v16 = vcvt.s32.f32 %v1561_v9 }
 0x487   :  { %v12410_v57 = vadd.f32 %v5985_v52, %v5857_v20  ;;  %v4169_v11 = vpack.c.bf16 %v3359_v24, %v3341_v32  ;;  %v1630_v52 = vunpack.c.2.s8 %v12365_v36  ;;  %v14998_v24 = vld [vmem:[#allocation19_spill] sm:$0xff] }
 0x48a   :  { %v6104_v47 = vpop.f32.mrf.mxu2 }
 0x48b   :  { %v6105_v59 = vadd.f32 %v6104_v47, %v12258_v8  ;;  %v6233_v56 = vpop.f32.mrf.mxu3  ;;  %v1648_v8 = vunpack.c.3.s8 %v12365_v36  ;;  %v2494_v47 = vcvt.s32.f32 %v1630_v52  ;;  %v3307_v52 = vmul.f32 %v12405_v12, %v2425_v16 }
 0x48c   :  { %v5859_v3 = vpop.f32.mrf.mxu0 }
 0x48d   :  { %v12421_v58 = vadd.f32 %v6233_v56, %v6105_v59  ;;  %v5860_v46 = vadd.f32 %v5859_v3, %v14996_v13  ;;  %v5988_v31 = vpop.f32.mrf.mxu1  ;;  %v2512_v32 = vcvt.s32.f32 %v1648_v8  ;;  %v2442_v59 = vcvt.s32.f32 %v1578_v54 }
 0x48e   :  { %v2495_v56 = vcvt.s32.f32 %v1631_v21  ;;  %v2513_v3 = vcvt.s32.f32 %v1649_v28  ;;  %v2443_v13 = vcvt.s32.f32 %v1579_v63  ;;  %v3376_v44 = vmul.f32 %v12249_v49, %v2494_v47 }
 0x48f   :  { %v12424_v20 = vadd.f32 %v5988_v31, %v5860_v46  ;;  %6294 = vmatmul.bf16.gmra.mxu0 %v4168_v39  ;;  %6542 = vmatmul.bf16.vlgmr.msrb.gmra.mxu2 %v4134_v23  ;;  %v3306_v31 = vmul.f32 %v12403_v10, %v2424_v6  ;;  %v3324_v39 = vmul.f32 %v12403_v10, %v2442_v59  ;;  %v4822_v59 = vld [vmem:[%s14845_s3 + $0x860] sm:$0xff] }
 0x490   :  { %6423 = vmatmul.bf16.gmra.mxu1 %v4169_v11  ;;  %6671 = vmatmul.bf16.vlgmr.msrb.gmra.mxu3 %v4135_v25  ;;  %v3377_v11 = vmul.f32 %v12251_v22, %v2495_v56  ;;  %v3395_v25 = vmul.f32 %v12251_v22, %v2513_v3  ;;  %v3325_v8 = vmul.f32 %v12405_v12, %v2443_v13  ;;  %v4823_v56 = vld [vmem:[%s14845_s3 + $0x868] sm:$0xff]  ;;  %v4790_v3 = vld [vmem:[%s14845_s3 + $0x760] sm:$0xff] }
 0x492   :  { %v6107_v5 = vpop.f32.mrf.mxu2  ;;  %v4153_v47 = vpack.c.bf16 %v3325_v8, %v3307_v52 }
 0x493   :  { %v6108_v62 = vadd.f32 %v6107_v5, %v12279_v19  ;;  %v6236_v2 = vpop.f32.mrf.mxu3  ;;  %v3394_v19 = vmul.f32 %v12249_v49, %v2512_v32  ;;  %v12465_v32 = vld [vmem:[%s14847_s4 + $0xf0] sm:$0xff] }
 0x494   :  { %v5861_v27 = vpop.f32.mrf.mxu0  ;;  %v1596_v13 = vunpack.c.0.s8 %v12465_v32 }
 0x495   :  { %v12435_v36 = vadd.f32 %v6236_v2, %v6108_v62  ;;  %v5862_v34 = vadd.f32 %v5861_v27, %v14998_v24  ;;  %v5990_v4 = vpop.f32.mrf.mxu1  ;;  %v4186_v63 = vpack.c.bf16 %v3394_v19, %v3376_v44  ;;  %v4152_v62 = vpack.c.bf16 %v3324_v39, %v3306_v31  ;;  %v12455_v2 = vld [vmem:[%s14847_s4 + $0x170] sm:$0xff]  ;;  %v12460_v27 = vld [vmem:[%s14847_s4 + $0x178] sm:$0xff]  ;;  %v4791_v31 = vld [vmem:[%s14845_s3 + $0x768] sm:$0xff] }
 0x496   :  { %v12472_v24 = vld [vmem:[%s14847_s4 + $0xf8] sm:$0xff]  ;;  %v1667_v6 = vunpack.c.0.s8 %v12460_v27  ;;  %v1685_v16 = vunpack.c.1.s8 %v12460_v27  ;;  %v1614_v44 = vunpack.c.1.s8 %v12465_v32  ;;  %v4976_v19 = vpack.c.bf16 %v4823_v56, %v4822_v59  ;;  %v4838_v39 = vld [vmem:[%s14845_s3 + $0x8e0] sm:$0xff] }
 0x497   :  { %14997 = vst [vmem:[#allocation2_spill] sm:$0xff] %v12435_v36  ;;  %v12438_v46 = vadd.f32 %v5990_v4, %v5862_v34  ;;  %v1666_v34 = vunpack.c.0.s8 %v12455_v2  ;;  %v1684_v4 = vunpack.c.1.s8 %v12455_v2  ;;  %v1615_v52 = vunpack.c.1.s8 %v12472_v24 }
 0x498   :  { %v4960_v8 = vpack.c.bf16 %v4791_v31, %v4790_v3  ;;  %7051 = vmatpush.bf16.msra.mxu2 %v4976_v19  ;;  %v2478_v36 = vcvt.s32.f32 %v1614_v44  ;;  %v4806_v3 = vld [vmem:[%s14845_s3 + $0x7e0] sm:$0xff] }
 0x49a   :  { %v6109_v23 = vpop.f32.mrf.mxu2  ;;  %6793 = vmatpush.bf16.msrb.mxu0 %v4960_v8 }
 0x49b   :  { %v6110_v15 = vadd.f32 %v6109_v23, %v12324_v35  ;;  %v6238_v54 = vpop.f32.mrf.mxu3  ;;  %v4187_v35 = vpack.c.bf16 %v3395_v25, %v3377_v11  ;;  %v4839_v23 = vld [vmem:[%s14845_s3 + $0x8e8] sm:$0xff]  ;;  %v1597_v25 = vunpack.c.0.s8 %v12472_v24 }
 0x49c   :  { %v5864_v5 = vpop.f32.mrf.mxu0 }
 0x49d   :  { %v12449_v21 = vadd.f32 %v6238_v54, %v6110_v15  ;;  %v5865_v28 = vadd.f32 %v5864_v5, %v11355_v60  ;;  %v5993_v9 = vpop.f32.mrf.mxu1  ;;  %v4984_v15 = vpack.c.bf16 %v4839_v23, %v4838_v39  ;;  %v3360_v23 = vmul.f32 %v12403_v10, %v2478_v36 }
 0x49f   :  { %14999 = vst [vmem:[#allocation12_spill] sm:$0xff] %v12449_v21  ;;  %v12467_v60 = vadd.f32 %v5993_v9, %v5865_v28  ;;  %6299 = vmatmul.bf16.gmra.mxu0 %v4186_v63  ;;  %6547 = vmatmul.bf16.gmra.mxu2 %v4152_v62  ;;  %v2530_v9 = vcvt.s32.f32 %v1666_v34  ;;  %v2548_v63 = vcvt.s32.f32 %v1684_v4  ;;  %v2531_v62 = vcvt.s32.f32 %v1667_v6 }
 0x4a0   :  { %6428 = vmatmul.bf16.gmra.mxu1 %v4187_v35  ;;  %6676 = vmatmul.bf16.gmra.mxu3 %v4153_v47  ;;  %v15000_v47 = vld [vmem:[#allocation20_spill] sm:$0xff]  ;;  %v2460_v21 = vcvt.s32.f32 %v1596_v13  ;;  %v2549_v34 = vcvt.s32.f32 %v1685_v16  ;;  %v2461_v4 = vcvt.s32.f32 %v1597_v25  ;;  %v2479_v6 = vcvt.s32.f32 %v1615_v52 }
 0x4a1   :  { %7180 = vmatpush.bf16.msra.mxu3 %v4984_v15  ;;  %v3412_v39 = vmul.f32 %v12249_v49, %v2530_v9  ;;  %v3430_v13 = vmul.f32 %v12249_v49, %v2548_v63  ;;  %v3413_v8 = vmul.f32 %v12251_v22, %v2531_v62 }
 0x4a2   :  { %v6112_v11 = vpop.f32.mrf.mxu2  ;;  %v3342_v44 = vmul.f32 %v12403_v10, %v2460_v21  ;;  %v3431_v15 = vmul.f32 %v12251_v22, %v2549_v34  ;;  %v3343_v16 = vmul.f32 %v12405_v12, %v2461_v4  ;;  %v3361_v25 = vmul.f32 %v12405_v12, %v2479_v6 }
 0x4a3   :  { %v6113_v54 = vadd.f32 %v6112_v11, %v12378_v43  ;;  %v6241_v5 = vpop.f32.mrf.mxu3  ;;  %v4807_v43 = vld [vmem:[%s14845_s3 + $0x7e8] sm:$0xff]  ;;  %v4204_v63 = vpack.c.bf16 %v3430_v13, %v3412_v39  ;;  %v1703_v34 = vunpack.c.2.s8 %v12460_v27  ;;  %v1721_v4 = vunpack.c.3.s8 %v12460_v27 }
 0x4a4   :  { %v5866_v28 = vpop.f32.mrf.mxu0  ;;  %v4968_v19 = vpack.c.bf16 %v4807_v43, %v4806_v3  ;;  %v4170_v36 = vpack.c.bf16 %v3360_v23, %v3342_v44  ;;  %v1632_v3 = vunpack.c.2.s8 %v12465_v32  ;;  %v1650_v43 = vunpack.c.3.s8 %v12465_v32 }
 0x4a5   :  { %v12501_v35 = vadd.f32 %v6241_v5, %v6113_v54  ;;  %v5867_v59 = vadd.f32 %v5866_v28, %v15000_v47  ;;  %v5995_v56 = vpop.f32.mrf.mxu1  ;;  %v4205_v47 = vpack.c.bf16 %v3431_v15, %v3413_v8  ;;  %v1633_v6 = vunpack.c.2.s8 %v12472_v24  ;;  %v15001_v8 = vld [vmem:[#allocation21_spill] sm:$0xff] }
 0x4a6   :  { %6922 = vmatpush.bf16.msrb.mxu1 %v4968_v19  ;;  %v1651_v19 = vunpack.c.3.s8 %v12472_v24 }
 0x4a7   :  { %v12510_v31 = vadd.f32 %v5995_v56, %v5867_v59  ;;  %v4171_v59 = vpack.c.bf16 %v3361_v25, %v3343_v16  ;;  %v1702_v56 = vunpack.c.2.s8 %v12455_v2  ;;  %v2496_v16 = vcvt.s32.f32 %v1632_v3 }
 0x4a8   :  { %v2514_v25 = vcvt.s32.f32 %v1650_v43  ;;  %v2497_v27 = vcvt.s32.f32 %v1633_v6 }
 0x4a9   :  { %v2566_v23 = vcvt.s32.f32 %v1702_v56 }
 0x4aa   :  { %v6114_v11 = vpop.f32.mrf.mxu2  ;;  %v3379_v56 = vmul.f32 %v12405_v12, %v2497_v27 }
 0x4ab   :  { %v6115_v52 = vadd.f32 %v6114_v11, %v12410_v57  ;;  %v6243_v54 = vpop.f32.mrf.mxu3  ;;  %v1720_v57 = vunpack.c.3.s8 %v12455_v2  ;;  %v3448_v24 = vmul.f32 %v12249_v49, %v2566_v23 }
 0x4ac   :  { %v5869_v5 = vpop.f32.mrf.mxu0 }
 0x4ad   :  { %v12521_v28 = vadd.f32 %v6243_v54, %v6115_v52  ;;  %v5870_v9 = vadd.f32 %v5869_v5, %v11401_v48  ;;  %v5998_v21 = vpop.f32.mrf.mxu1  ;;  %v2584_v11 = vcvt.s32.f32 %v1720_v57  ;;  %v2567_v52 = vcvt.s32.f32 %v1703_v34 }
 0x4ae   :  { %v2585_v54 = vcvt.s32.f32 %v1721_v4  ;;  %v2515_v5 = vcvt.s32.f32 %v1651_v19 }
 0x4af   :  { %v12524_v62 = vadd.f32 %v5998_v21, %v5870_v9  ;;  %6304 = vmatmul.bf16.gmra.mxu0 %v4204_v63  ;;  %6552 = vmatmul.bf16.gmra.mxu2 %v4170_v36  ;;  %v3378_v21 = vmul.f32 %v12403_v10, %v2496_v16  ;;  %v3396_v63 = vmul.f32 %v12403_v10, %v2514_v25 }
 0x4b0   :  { %6433 = vmatmul.bf16.gmra.mxu1 %v4205_v47  ;;  %6681 = vmatmul.bf16.gmra.mxu3 %v4171_v59  ;;  %v3449_v47 = vmul.f32 %v12251_v22, %v2567_v52  ;;  %v3467_v59 = vmul.f32 %v12251_v22, %v2585_v54  ;;  %v3397_v57 = vmul.f32 %v12405_v12, %v2515_v5 }
 0x4b2   :  { %v6117_v48 = vpop.f32.mrf.mxu2  ;;  %v4189_v23 = vpack.c.bf16 %v3397_v57, %v3379_v56  ;;  %v15002_v56 = vld [vmem:[#allocation22_spill] sm:$0xff] }
 0x4b3   :  { %v6118_v39 = vadd.f32 %v6117_v48, %v12424_v20  ;;  %v6246_v13 = vpop.f32.mrf.mxu3  ;;  %v3466_v20 = vmul.f32 %v12249_v49, %v2584_v11 }
 0x4b4   :  { %v5871_v44 = vpop.f32.mrf.mxu0 }
 0x4b5   :  { %v12535_v2 = vadd.f32 %v6246_v13, %v6118_v39  ;;  %v5872_v15 = vadd.f32 %v5871_v44, %v15001_v8  ;;  %v6000_v32 = vpop.f32.mrf.mxu1  ;;  %v4222_v19 = vpack.c.bf16 %v3466_v20, %v3448_v24  ;;  %v4188_v39 = vpack.c.bf16 %v3396_v63, %v3378_v21  ;;  %v12555_v13 = vld [vmem:[%s14847_s4 + $0x200] sm:$0xff]  ;;  %v12572_v8 = vld [vmem:[%s14847_s4 + $0x188] sm:$0xff] }
 0x4b6   :  { %v4223_v44 = vpack.c.bf16 %v3467_v59, %v3449_v47  ;;  %v1669_v5 = vunpack.c.0.s8 %v12572_v8  ;;  %v1687_v24 = vunpack.c.1.s8 %v12572_v8 }
 0x4b7   :  { %v12538_v9 = vadd.f32 %v6000_v32, %v5872_v15  ;;  %v1738_v15 = vunpack.c.0.s8 %v12555_v13  ;;  %v1756_v32 = vunpack.c.1.s8 %v12555_v13 }
 0x4b9   :  { %v2620_v47 = vcvt.s32.f32 %v1756_v32 }
 0x4ba   :  { %v6119_v36 = vpop.f32.mrf.mxu2 }
 0x4bb   :  { %v6120_v3 = vadd.f32 %v6119_v36, %v12438_v46  ;;  %v6248_v43 = vpop.f32.mrf.mxu3  ;;  %v12560_v46 = vld [vmem:[%s14847_s4 + $0x180] sm:$0xff]  ;;  %v2602_v36 = vcvt.s32.f32 %v1738_v15 }
 0x4bc   :  { %v5874_v48 = vpop.f32.mrf.mxu0  ;;  %v1668_v16 = vunpack.c.0.s8 %v12560_v46  ;;  %v1686_v25 = vunpack.c.1.s8 %v12560_v46 }
 0x4bd   :  { %v12549_v34 = vadd.f32 %v6248_v43, %v6120_v3  ;;  %v5875_v4 = vadd.f32 %v5874_v48, %v11455_v42  ;;  %v6003_v6 = vpop.f32.mrf.mxu1  ;;  %v12567_v42 = vld [vmem:[%s14847_s4 + $0x208] sm:$0xff] }
 0x4be   :  { %v1739_v54 = vunpack.c.0.s8 %v12567_v42  ;;  %v1757_v27 = vunpack.c.1.s8 %v12567_v42  ;;  %v2532_v43 = vcvt.s32.f32 %v1668_v16  ;;  %v2550_v48 = vcvt.s32.f32 %v1686_v25 }
 0x4bf   :  { %v12562_v11 = vadd.f32 %v6003_v6, %v5875_v4  ;;  %6309 = vmatmul.bf16.gmra.mxu0 %v4222_v19  ;;  %6557 = vmatmul.bf16.gmra.mxu2 %v4188_v39  ;;  %v2533_v19 = vcvt.s32.f32 %v1669_v5  ;;  %v2551_v39 = vcvt.s32.f32 %v1687_v24 }
 0x4c0   :  { %6438 = vmatmul.bf16.gmra.mxu1 %v4223_v44  ;;  %6686 = vmatmul.bf16.gmra.mxu3 %v4189_v23  ;;  %v2603_v4 = vcvt.s32.f32 %v1739_v54  ;;  %v2621_v6 = vcvt.s32.f32 %v1757_v27  ;;  %v3484_v23 = vmul.f32 %v12249_v49, %v2602_v36  ;;  %v3414_v15 = vmul.f32 %v12403_v10, %v2532_v43 }
 0x4c1   :  { %v3432_v32 = vmul.f32 %v12403_v10, %v2550_v48  ;;  %v3415_v25 = vmul.f32 %v12405_v12, %v2533_v19  ;;  %v3433_v54 = vmul.f32 %v12405_v12, %v2551_v39  ;;  %v4820_v19 = vld [vmem:[%s14845_s3 + $0x850] sm:$0xff]  ;;  %v4821_v39 = vld [vmem:[%s14845_s3 + $0x858] sm:$0xff] }
 0x4c2   :  { %v6122_v52 = vpop.f32.mrf.mxu2  ;;  %v3503_v16 = vmul.f32 %v12251_v22, %v2621_v6  ;;  %v1775_v6 = vunpack.c.2.s8 %v12567_v42 }
 0x4c3   :  { %v6123_v20 = vadd.f32 %v6122_v52, %v12467_v60  ;;  %v6251_v21 = vpop.f32.mrf.mxu3  ;;  %v3502_v60 = vmul.f32 %v12249_v49, %v2620_v47  ;;  %v4207_v43 = vpack.c.bf16 %v3433_v54, %v3415_v25  ;;  %v1723_v54 = vunpack.c.3.s8 %v12572_v8 }
 0x4c4   :  { %v5876_v63 = vpop.f32.mrf.mxu0 }
 0x4c5   :  { %v12583_v59 = vadd.f32 %v6251_v21, %v6123_v20  ;;  %v5877_v57 = vadd.f32 %v5876_v63, %v15002_v56  ;;  %v6005_v3 = vpop.f32.mrf.mxu1  ;;  %v3485_v20 = vmul.f32 %v12251_v22, %v2603_v4  ;;  %v15004_v63 = vld [vmem:[#allocation23_spill] sm:$0xff]  ;;  %v4240_v56 = vpack.c.bf16 %v3502_v60, %v3484_v23  ;;  %v4788_v23 = vld [vmem:[%s14845_s3 + $0x750] sm:$0xff] }
 0x4c6   :  { %v1774_v4 = vunpack.c.2.s8 %v12555_v13  ;;  %v1793_v60 = vunpack.c.3.s8 %v12567_v42  ;;  %v1705_v42 = vunpack.c.2.s8 %v12572_v8  ;;  %v4804_v8 = vld [vmem:[%s14845_s3 + $0x7d0] sm:$0xff] }
 0x4c7   :  { %v12586_v44 = vadd.f32 %v6005_v3, %v5877_v57  ;;  %v4206_v57 = vpack.c.bf16 %v3432_v32, %v3414_v15  ;;  %v4241_v3 = vpack.c.bf16 %v3503_v16, %v3485_v20  ;;  %v1704_v15 = vunpack.c.2.s8 %v12560_v46  ;;  %v4836_v20 = vld [vmem:[%s14845_s3 + $0x8d0] sm:$0xff]  ;;  %v4837_v16 = vld [vmem:[%s14845_s3 + $0x8d8] sm:$0xff] }
 0x4c8   :  { %v4975_v32 = vpack.c.bf16 %v4821_v39, %v4820_v19 }
 0x4c9   :  { %v2568_v39 = vcvt.s32.f32 %v1704_v15 }
 0x4ca   :  { %v6124_v52 = vpop.f32.mrf.mxu2  ;;  %7052 = vmatpush.bf16.msra.mxu2 %v4975_v32 }
 0x4cb   :  { %v6125_v27 = vadd.f32 %v6124_v52, %v12510_v31  ;;  %v6253_v5 = vpop.f32.mrf.mxu3  ;;  %v1792_v31 = vunpack.c.3.s8 %v12555_v13  ;;  %v1722_v13 = vunpack.c.3.s8 %v12560_v46  ;;  %v4789_v52 = vld [vmem:[%s14845_s3 + $0x758] sm:$0xff]  ;;  %v4983_v46 = vpack.c.bf16 %v4837_v16, %v4836_v20 }
 0x4cc   :  { %v5879_v24 = vpop.f32.mrf.mxu0 }
 0x4cd   :  { %v12597_v21 = vadd.f32 %v6253_v5, %v6125_v27  ;;  %v5880_v36 = vadd.f32 %v5879_v24, %v15004_v63  ;;  %v6008_v47 = vpop.f32.mrf.mxu1  ;;  %v4959_v27 = vpack.c.bf16 %v4789_v52, %v4788_v23  ;;  %7181 = vmatpush.bf16.msra.mxu3 %v4983_v46 }
 0x4cf   :  { %15003 = vst [vmem:[#allocation5_spill] sm:$0xff] %v12597_v21  ;;  %v12600_v48 = vadd.f32 %v6008_v47, %v5880_v36  ;;  %6314 = vmatmul.bf16.gmra.mxu0 %v4240_v56  ;;  %6562 = vmatmul.bf16.gmra.mxu2 %v4206_v57  ;;  %v2638_v36 = vcvt.s32.f32 %v1774_v4  ;;  %v2656_v47 = vcvt.s32.f32 %v1792_v31  ;;  %v2639_v56 = vcvt.s32.f32 %v1775_v6 }
 0x4d0   :  { %6443 = vmatmul.bf16.gmra.mxu1 %v4241_v3  ;;  %6691 = vmatmul.bf16.gmra.mxu3 %v4207_v43  ;;  %v15005_v3 = vld [vmem:[#allocation24_spill] sm:$0xff]  ;;  %v2586_v21 = vcvt.s32.f32 %v1722_v13  ;;  %v2657_v4 = vcvt.s32.f32 %v1793_v60  ;;  %v2569_v31 = vcvt.s32.f32 %v1705_v42  ;;  %v2587_v6 = vcvt.s32.f32 %v1723_v54 }
 0x4d1   :  { %6794 = vmatpush.bf16.msrb.mxu0 %v4959_v27  ;;  %v3520_v52 = vmul.f32 %v12249_v49, %v2638_v36  ;;  %v3538_v15 = vmul.f32 %v12249_v49, %v2656_v47  ;;  %v3450_v13 = vmul.f32 %v12403_v10, %v2568_v39  ;;  %v12672_v39 = vld [vmem:[%s14847_s4 + $0x218] sm:$0xff] }
 0x4d2   :  { %v6127_v25 = vpop.f32.mrf.mxu2  ;;  %v3468_v20 = vmul.f32 %v12403_v10, %v2586_v21  ;;  %v3539_v27 = vmul.f32 %v12251_v22, %v2657_v4  ;;  %v3451_v60 = vmul.f32 %v12405_v12, %v2569_v31  ;;  %v3469_v42 = vmul.f32 %v12405_v12, %v2587_v6 }
 0x4d3   :  { %v6128_v5 = vadd.f32 %v6127_v25, %v12524_v62  ;;  %v6256_v24 = vpop.f32.mrf.mxu3  ;;  %v4805_v62 = vld [vmem:[%s14845_s3 + $0x7d8] sm:$0xff]  ;;  %v3521_v25 = vmul.f32 %v12251_v22, %v2639_v56  ;;  %v4258_v47 = vpack.c.bf16 %v3538_v15, %v3520_v52  ;;  %v12655_v56 = vld [vmem:[%s14847_s4 + $0x290] sm:$0xff]  ;;  %v1741_v15 = vunpack.c.0.s8 %v12672_v39 }
 0x4d4   :  { %v5881_v63 = vpop.f32.mrf.mxu0  ;;  %v4967_v23 = vpack.c.bf16 %v4805_v62, %v4804_v8  ;;  %v4224_v21 = vpack.c.bf16 %v3468_v20, %v3450_v13  ;;  %v1810_v8 = vunpack.c.0.s8 %v12655_v56  ;;  %v1828_v62 = vunpack.c.1.s8 %v12655_v56 }
 0x4d5   :  { %v12629_v57 = vadd.f32 %v6256_v24, %v6128_v5  ;;  %v5882_v43 = vadd.f32 %v5881_v63, %v15005_v3  ;;  %v6010_v19 = vpop.f32.mrf.mxu1  ;;  %v4259_v3 = vpack.c.bf16 %v3539_v27, %v3521_v25  ;;  %v1759_v13 = vunpack.c.1.s8 %v12672_v39 }
 0x4d6   :  { %6923 = vmatpush.bf16.msrb.mxu1 %v4967_v23  ;;  %v2674_v27 = vcvt.s32.f32 %v1810_v8 }
 0x4d7   :  { %v12638_v32 = vadd.f32 %v6010_v19, %v5882_v43  ;;  %v4225_v43 = vpack.c.bf16 %v3469_v42, %v3451_v60  ;;  %v2692_v60 = vcvt.s32.f32 %v1828_v62 }
 0x4da   :  { %v6129_v16 = vpop.f32.mrf.mxu2 }
 0x4db   :  { %v6130_v54 = vadd.f32 %v6129_v16, %v12538_v9  ;;  %v6258_v46 = vpop.f32.mrf.mxu3  ;;  %v12660_v9 = vld [vmem:[%s14847_s4 + $0x210] sm:$0xff] }
 0x4dc   :  { %v5884_v5 = vpop.f32.mrf.mxu0  ;;  %v1740_v4 = vunpack.c.0.s8 %v12660_v9  ;;  %v1758_v31 = vunpack.c.1.s8 %v12660_v9 }
 0x4dd   :  { %v12649_v24 = vadd.f32 %v6258_v46, %v6130_v54  ;;  %v5885_v63 = vadd.f32 %v5884_v5, %v11549_v14  ;;  %v6013_v36 = vpop.f32.mrf.mxu1  ;;  %v12667_v14 = vld [vmem:[%s14847_s4 + $0x298] sm:$0xff] }
 0x4de   :  { %v1811_v23 = vunpack.c.0.s8 %v12667_v14  ;;  %v1829_v52 = vunpack.c.1.s8 %v12667_v14  ;;  %v2604_v5 = vcvt.s32.f32 %v1740_v4 }
 0x4df   :  { %15006 = vst [vmem:[#allocation6_spill] sm:$0xff] %v12649_v24  ;;  %v12662_v19 = vadd.f32 %v6013_v36, %v5885_v63  ;;  %6319 = vmatmul.bf16.gmra.mxu0 %v4258_v47  ;;  %6567 = vmatmul.bf16.gmra.mxu2 %v4224_v21  ;;  %v2622_v63 = vcvt.s32.f32 %v1758_v31  ;;  %v2605_v21 = vcvt.s32.f32 %v1741_v15  ;;  %v3556_v24 = vmul.f32 %v12249_v49, %v2674_v27 }
 0x4e0   :  { %6448 = vmatmul.bf16.gmra.mxu1 %v4259_v3  ;;  %6696 = vmatmul.bf16.gmra.mxu3 %v4225_v43  ;;  %v2675_v36 = vcvt.s32.f32 %v1811_v23  ;;  %v2693_v47 = vcvt.s32.f32 %v1829_v52  ;;  %v2623_v3 = vcvt.s32.f32 %v1759_v13  ;;  %v3486_v8 = vmul.f32 %v12403_v10, %v2604_v5 }
 0x4e1   :  { %v3504_v62 = vmul.f32 %v12403_v10, %v2622_v63  ;;  %v3487_v31 = vmul.f32 %v12405_v12, %v2605_v21  ;;  %v1846_v63 = vunpack.c.2.s8 %v12655_v56  ;;  %v1865_v21 = vunpack.c.3.s8 %v12667_v14 }
 0x4e2   :  { %v6132_v6 = vpop.f32.mrf.mxu2  ;;  %v3575_v4 = vmul.f32 %v12251_v22, %v2693_v47  ;;  %v3505_v23 = vmul.f32 %v12405_v12, %v2623_v3  ;;  %v1794_v47 = vunpack.c.3.s8 %v12660_v9  ;;  %v1777_v3 = vunpack.c.2.s8 %v12672_v39 }
 0x4e3   :  { %v6133_v20 = vadd.f32 %v6132_v6, %v12562_v11  ;;  %v6261_v16 = vpop.f32.mrf.mxu3  ;;  %v3574_v11 = vmul.f32 %v12249_v49, %v2692_v60  ;;  %v4242_v60 = vpack.c.bf16 %v3504_v62, %v3486_v8 }
 0x4e4   :  { %v5886_v25 = vpop.f32.mrf.mxu0 }
 0x4e5   :  { %v12683_v42 = vadd.f32 %v6261_v16, %v6133_v20  ;;  %v5887_v54 = vadd.f32 %v5886_v25, %v11569_v55  ;;  %v6015_v46 = vpop.f32.mrf.mxu1  ;;  %v3557_v55 = vmul.f32 %v12251_v22, %v2675_v36  ;;  %v4276_v27 = vpack.c.bf16 %v3574_v11, %v3556_v24 }
 0x4e6   :  { %v1776_v36 = vunpack.c.2.s8 %v12660_v9  ;;  %v1847_v24 = vunpack.c.2.s8 %v12667_v14  ;;  %v1795_v11 = vunpack.c.3.s8 %v12672_v39  ;;  %v2641_v14 = vcvt.s32.f32 %v1777_v3 }
 0x4e7   :  { %v12686_v43 = vadd.f32 %v6015_v46, %v5887_v54  ;;  %v4277_v54 = vpack.c.bf16 %v3575_v4, %v3557_v55  ;;  %v4243_v46 = vpack.c.bf16 %v3505_v23, %v3487_v31  ;;  %v2710_v55 = vcvt.s32.f32 %v1846_v63 }
 0x4e8   :  { %v2640_v23 = vcvt.s32.f32 %v1776_v36  ;;  %v3523_v63 = vmul.f32 %v12405_v12, %v2641_v14  ;;  %v4786_v14 = vld [vmem:[%s14845_s3 + $0x740] sm:$0xff] }
 0x4e9   :  { %v3592_v39 = vmul.f32 %v12249_v49, %v2710_v55 }
 0x4ea   :  { %v6134_v6 = vpop.f32.mrf.mxu2 }
 0x4eb   :  { %v6135_v52 = vadd.f32 %v6134_v6, %v12586_v44  ;;  %v6263_v15 = vpop.f32.mrf.mxu3  ;;  %v1864_v44 = vunpack.c.3.s8 %v12655_v56 }
 0x4ec   :  { %v6285_v13 = vpop.f32.mrf.mxu0 }
 0x4ed   :  { %v12697_v20 = vadd.f32 %v6263_v15, %v6135_v52  ;;  %v6286_v16 = vadd.f32 %v6285_v13, %v11583_v0  ;;  %v6414_v25 = vpop.f32.mrf.mxu1  ;;  %v2728_v4 = vcvt.s32.f32 %v1864_v44  ;;  %v2658_v52 = vcvt.s32.f32 %v1794_v47 }
 0x4ee   :  { %v2711_v15 = vcvt.s32.f32 %v1847_v24  ;;  %v2729_v13 = vcvt.s32.f32 %v1865_v21 }
 0x4ef   :  { %v12700_v5 = vadd.f32 %v6414_v25, %v6286_v16  ;;  %6324 = vmatmul.bf16.gmra.mxu0 %v4276_v27  ;;  %6572 = vmatmul.bf16.gmra.mxu2 %v4242_v60  ;;  %v2659_v16 = vcvt.s32.f32 %v1795_v11  ;;  %v3522_v27 = vmul.f32 %v12403_v10, %v2640_v23  ;;  %v3540_v60 = vmul.f32 %v12403_v10, %v2658_v52 }
 0x4f0   :  { %6453 = vmatmul.bf16.gmra.mxu1 %v4277_v54  ;;  %6701 = vmatmul.bf16.gmra.mxu3 %v4243_v46  ;;  %v3611_v46 = vmul.f32 %v12251_v22, %v2729_v13  ;;  %v4819_v13 = vld [vmem:[%s14845_s3 + $0x848] sm:$0xff] }
 0x4f1   :  { %v3541_v44 = vmul.f32 %v12405_v12, %v2659_v16 }
 0x4f2   :  { %v6137_v0 = vpop.f32.mrf.mxu2 }
 0x4f3   :  { %v6138_v8 = vadd.f32 %v6137_v0, %v12600_v48  ;;  %v6266_v62 = vpop.f32.mrf.mxu3  ;;  %v3610_v48 = vmul.f32 %v12249_v49, %v2728_v4  ;;  %v4261_v55 = vpack.c.bf16 %v3541_v44, %v3523_v63  ;;  %v12741_v4 = vld [vmem:[%s14847_s4 + $0x2a0] sm:$0xff] }
 0x4f4   :  { %v6287_v6 = vpop.f32.mrf.mxu0 }
 0x4f5   :  { %v12711_v56 = vadd.f32 %v6266_v62, %v6138_v8  ;;  %v6288_v31 = vadd.f32 %v6287_v6, %v11597_v61  ;;  %v6416_v9 = vpop.f32.mrf.mxu1  ;;  %v3593_v61 = vmul.f32 %v12251_v22, %v2711_v15  ;;  %v4294_v11 = vpack.c.bf16 %v3610_v48, %v3592_v39  ;;  %v12731_v62 = vld [vmem:[%s14847_s4 + $0x320] sm:$0xff]  ;;  %v12736_v6 = vld [vmem:[%s14847_s4 + $0x328] sm:$0xff] }
 0x4f6   :  { %v4260_v8 = vpack.c.bf16 %v3540_v60, %v3522_v27  ;;  %v1900_v23 = vunpack.c.1.s8 %v12731_v62  ;;  %v1883_v52 = vunpack.c.0.s8 %v12736_v6  ;;  %v4818_v15 = vld [vmem:[%s14845_s3 + $0x840] sm:$0xff]  ;;  %v1901_v16 = vunpack.c.1.s8 %v12736_v6  ;;  %v4787_v60 = vld [vmem:[%s14845_s3 + $0x748] sm:$0xff] }
 0x4f7   :  { %15007 = vst [vmem:[#allocation13_spill] sm:$0xff] %v12711_v56  ;;  %v12714_v25 = vadd.f32 %v6416_v9, %v6288_v31  ;;  %v12748_v31 = vld [vmem:[%s14847_s4 + $0x2a8] sm:$0xff]  ;;  %v1882_v9 = vunpack.c.0.s8 %v12731_v62  ;;  %v1812_v39 = vunpack.c.0.s8 %v12741_v4  ;;  %v1830_v48 = vunpack.c.1.s8 %v12741_v4 }
 0x4f8   :  { %v4974_v27 = vpack.c.bf16 %v4819_v13, %v4818_v15  ;;  %v1813_v63 = vunpack.c.0.s8 %v12748_v31  ;;  %v1831_v44 = vunpack.c.1.s8 %v12748_v31 }
 0x4f9   :  { %v2694_v56 = vcvt.s32.f32 %v1830_v48 }
 0x4fa   :  { %v6139_v54 = vpop.f32.mrf.mxu2  ;;  %7053 = vmatpush.bf16.msra.mxu2 %v4974_v27 }
 0x4fb   :  { %v6140_v36 = vadd.f32 %v6139_v54, %v12638_v32  ;;  %v6268_v47 = vpop.f32.mrf.mxu3  ;;  %v4295_v32 = vpack.c.bf16 %v3611_v46, %v3593_v61  ;;  %v4834_v54 = vld [vmem:[%s14845_s3 + $0x8c0] sm:$0xff]  ;;  %v4835_v61 = vld [vmem:[%s14845_s3 + $0x8c8] sm:$0xff] }
 0x4fc   :  { %v6290_v0 = vpop.f32.mrf.mxu0 }
 0x4fd   :  { %v12725_v24 = vadd.f32 %v6268_v47, %v6140_v36  ;;  %v6291_v21 = vadd.f32 %v6290_v0, %v11631_v38  ;;  %v6419_v3 = vpop.f32.mrf.mxu1  ;;  %v4958_v36 = vpack.c.bf16 %v4787_v60, %v4786_v14  ;;  %v4982_v47 = vpack.c.bf16 %v4835_v61, %v4834_v54  ;;  %v4802_v14 = vld [vmem:[%s14845_s3 + $0x7c0] sm:$0xff] }
 0x4fe   :  { %v3576_v54 = vmul.f32 %v12403_v10, %v2694_v56 }
 0x4ff   :  { %15008 = vst [vmem:[#allocation14_spill] sm:$0xff] %v12725_v24  ;;  %v12743_v38 = vadd.f32 %v6419_v3, %v6291_v21  ;;  %6329 = vmatmul.bf16.gmra.mxu0 %v4294_v11  ;;  %6577 = vmatmul.bf16.gmra.mxu2 %v4260_v8  ;;  %v2746_v11 = vcvt.s32.f32 %v1882_v9  ;;  %v2764_v8 = vcvt.s32.f32 %v1900_v23  ;;  %v2676_v24 = vcvt.s32.f32 %v1812_v39 }
 0x500   :  { %6458 = vmatmul.bf16.gmra.mxu1 %v4295_v32  ;;  %6706 = vmatmul.bf16.gmra.mxu3 %v4261_v55  ;;  %v2747_v32 = vcvt.s32.f32 %v1883_v52  ;;  %v2765_v9 = vcvt.s32.f32 %v1901_v16  ;;  %v2677_v23 = vcvt.s32.f32 %v1813_v63  ;;  %v2695_v52 = vcvt.s32.f32 %v1831_v44 }
 0x501   :  { %6795 = vmatpush.bf16.msrb.mxu0 %v4958_v36  ;;  %7182 = vmatpush.bf16.msra.mxu3 %v4982_v47  ;;  %v3646_v39 = vmul.f32 %v12249_v49, %v2764_v8  ;;  %v3558_v48 = vmul.f32 %v12403_v10, %v2676_v24 }
 0x502   :  { %v6142_v46 = vpop.f32.mrf.mxu2  ;;  %v3647_v36 = vmul.f32 %v12251_v22, %v2765_v9  ;;  %v3559_v16 = vmul.f32 %v12405_v12, %v2677_v23  ;;  %v3577_v63 = vmul.f32 %v12405_v12, %v2695_v52  ;;  %v1919_v9 = vunpack.c.2.s8 %v12736_v6 }
 0x503   :  { %v6143_v0 = vadd.f32 %v6142_v46, %v12662_v19  ;;  %v6271_v21 = vpop.f32.mrf.mxu3  ;;  %v4803_v19 = vld [vmem:[%s14845_s3 + $0x7c8] sm:$0xff]  ;;  %v3629_v46 = vmul.f32 %v12251_v22, %v2747_v32  ;;  %v4278_v56 = vpack.c.bf16 %v3576_v54, %v3558_v48  ;;  %v1937_v23 = vunpack.c.3.s8 %v12736_v6 }
 0x504   :  { %v6292_v3 = vpop.f32.mrf.mxu0  ;;  %v4966_v27 = vpack.c.bf16 %v4803_v19, %v4802_v14  ;;  %v1848_v14 = vunpack.c.2.s8 %v12741_v4  ;;  %v1866_v19 = vunpack.c.3.s8 %v12741_v4  ;;  %v1849_v52 = vunpack.c.2.s8 %v12748_v31 }
 0x505   :  { %v12777_v55 = vadd.f32 %v6271_v21, %v6143_v0  ;;  %v6293_v15 = vadd.f32 %v6292_v3, %v11645_v29  ;;  %v6421_v13 = vpop.f32.mrf.mxu1  ;;  %v3628_v29 = vmul.f32 %v12249_v49, %v2746_v11  ;;  %v4313_v8 = vpack.c.bf16 %v3647_v36, %v3629_v46 }
 0x506   :  { %6924 = vmatpush.bf16.msrb.mxu1 %v4966_v27  ;;  %v1867_v27 = vunpack.c.3.s8 %v12748_v31  ;;  %v2712_v36 = vcvt.s32.f32 %v1848_v14  ;;  %v2713_v6 = vcvt.s32.f32 %v1849_v52 }
 0x507   :  { %v12786_v60 = vadd.f32 %v6421_v13, %v6293_v15  ;;  %v4312_v11 = vpack.c.bf16 %v3646_v39, %v3628_v29  ;;  %v4279_v15 = vpack.c.bf16 %v3577_v63, %v3559_v16  ;;  %v1918_v13 = vunpack.c.2.s8 %v12731_v62 }
 0x508   :  { %v2730_v16 = vcvt.s32.f32 %v1866_v19  ;;  %v2783_v63 = vcvt.s32.f32 %v1919_v9 }
 0x509   :  { %v2782_v54 = vcvt.s32.f32 %v1918_v13 }
 0x50a   :  { %v6144_v61 = vpop.f32.mrf.mxu2 }
 0x50b   :  { %v6145_v44 = vadd.f32 %v6144_v61, %v12686_v43  ;;  %v6273_v47 = vpop.f32.mrf.mxu3  ;;  %v1936_v43 = vunpack.c.3.s8 %v12731_v62  ;;  %v3664_v31 = vmul.f32 %v12249_v49, %v2782_v54  ;;  %v12848_v54 = vld [vmem:[%s14847_s4 + $0x338] sm:$0xff] }
 0x50c   :  { %v6295_v0 = vpop.f32.mrf.mxu0 }
 0x50d   :  { %v12797_v21 = vadd.f32 %v6273_v47, %v6145_v44  ;;  %v6296_v3 = vadd.f32 %v6295_v0, %v11677_v1  ;;  %v6424_v24 = vpop.f32.mrf.mxu1  ;;  %v2800_v61 = vcvt.s32.f32 %v1936_v43  ;;  %v2801_v44 = vcvt.s32.f32 %v1937_v23 }
 0x50e   :  { %v2731_v47 = vcvt.s32.f32 %v1867_v27  ;;  %v12831_v27 = vld [vmem:[%s14847_s4 + $0x3b0] sm:$0xff] }
 0x50f   :  { %v12800_v32 = vadd.f32 %v6424_v24, %v6296_v3  ;;  %6334 = vmatmul.bf16.gmra.mxu0 %v4312_v11  ;;  %6582 = vmatmul.bf16.gmra.mxu2 %v4278_v56  ;;  %v3594_v3 = vmul.f32 %v12403_v10, %v2712_v36  ;;  %v3612_v24 = vmul.f32 %v12403_v10, %v2730_v16 }
 0x510   :  { %6463 = vmatmul.bf16.gmra.mxu1 %v4313_v8  ;;  %6711 = vmatmul.bf16.gmra.mxu3 %v4279_v15  ;;  %v3683_v56 = vmul.f32 %v12251_v22, %v2801_v44  ;;  %v3595_v8 = vmul.f32 %v12405_v12, %v2713_v6  ;;  %v3613_v15 = vmul.f32 %v12405_v12, %v2731_v47  ;;  %v1885_v6 = vunpack.c.0.s8 %v12848_v54 }
 0x511   :  { %v4296_v52 = vpack.c.bf16 %v3612_v24, %v3594_v3  ;;  %v1903_v47 = vunpack.c.1.s8 %v12848_v54 }
 0x512   :  { %v6543_v1 = vpop.f32.mrf.mxu2 }
 0x513   :  { %v6544_v29 = vadd.f32 %v6543_v1, %v12700_v5  ;;  %v6672_v39 = vpop.f32.mrf.mxu3  ;;  %v3682_v5 = vmul.f32 %v12249_v49, %v2800_v61  ;;  %v1954_v61 = vunpack.c.0.s8 %v12831_v27 }
 0x514   :  { %v6297_v48 = vpop.f32.mrf.mxu0 }
 0x515   :  { %v12811_v62 = vadd.f32 %v6672_v39, %v6544_v29  ;;  %v6298_v46 = vadd.f32 %v6297_v48, %v11697_v51  ;;  %v6426_v4 = vpop.f32.mrf.mxu1  ;;  %v3665_v51 = vmul.f32 %v12251_v22, %v2783_v63  ;;  %v4330_v23 = vpack.c.bf16 %v3682_v5, %v3664_v31 }
 0x516   :  { %v4297_v39 = vpack.c.bf16 %v3613_v15, %v3595_v8  ;;  %v2818_v24 = vcvt.s32.f32 %v1954_v61 }
 0x517   :  { %v12814_v0 = vadd.f32 %v6426_v4, %v6298_v46  ;;  %v4331_v29 = vpack.c.bf16 %v3683_v56, %v3665_v51  ;;  %v1972_v46 = vunpack.c.1.s8 %v12831_v27 }
 0x51a   :  { %v6545_v11 = vpop.f32.mrf.mxu2 }
 0x51b   :  { %v6546_v13 = vadd.f32 %v6545_v11, %v12714_v25  ;;  %v6674_v43 = vpop.f32.mrf.mxu3  ;;  %v12836_v25 = vld [vmem:[%s14847_s4 + $0x330] sm:$0xff]  ;;  %v2836_v11 = vcvt.s32.f32 %v1972_v46 }
 0x51c   :  { %v6300_v14 = vpop.f32.mrf.mxu0  ;;  %v1884_v4 = vunpack.c.0.s8 %v12836_v25  ;;  %v1902_v36 = vunpack.c.1.s8 %v12836_v25 }
 0x51d   :  { %v12825_v19 = vadd.f32 %v6674_v43, %v6546_v13  ;;  %v6301_v1 = vadd.f32 %v6300_v14, %v11731_v17  ;;  %v6429_v9 = vpop.f32.mrf.mxu1  ;;  %v12843_v17 = vld [vmem:[%s14847_s4 + $0x3b8] sm:$0xff] }
 0x51e   :  { %v1955_v63 = vunpack.c.0.s8 %v12843_v17  ;;  %v1973_v44 = vunpack.c.1.s8 %v12843_v17  ;;  %v2748_v15 = vcvt.s32.f32 %v1884_v4  ;;  %v2766_v13 = vcvt.s32.f32 %v1902_v36 }
 0x51f   :  { %v12838_v48 = vadd.f32 %v6429_v9, %v6301_v1  ;;  %6339 = vmatmul.bf16.gmra.mxu0 %v4330_v23  ;;  %6587 = vmatmul.bf16.gmra.mxu2 %v4296_v52  ;;  %v2749_v1 = vcvt.s32.f32 %v1885_v6  ;;  %v2767_v9 = vcvt.s32.f32 %v1903_v47  ;;  %v3700_v52 = vmul.f32 %v12249_v49, %v2818_v24  ;;  %v15009_v47 = vld [vmem:[#allocation25_spill] sm:$0xff] }
 0x520   :  { %6468 = vmatmul.bf16.gmra.mxu1 %v4331_v29  ;;  %6716 = vmatmul.bf16.gmra.mxu3 %v4297_v39  ;;  %v2819_v43 = vcvt.s32.f32 %v1955_v63  ;;  %v2837_v14 = vcvt.s32.f32 %v1973_v44  ;;  %v3630_v29 = vmul.f32 %v12403_v10, %v2748_v15  ;;  %v3648_v39 = vmul.f32 %v12403_v10, %v2766_v13 }
 0x521   :  { %v3631_v4 = vmul.f32 %v12405_v12, %v2749_v1  ;;  %v3649_v36 = vmul.f32 %v12405_v12, %v2767_v9  ;;  %v1990_v15 = vunpack.c.2.s8 %v12831_v27  ;;  %v1991_v13 = vunpack.c.2.s8 %v12843_v17  ;;  %v4784_v1 = vld [vmem:[%s14845_s3 + $0x730] sm:$0xff] }
 0x522   :  { %v6548_v16 = vpop.f32.mrf.mxu2  ;;  %v3719_v46 = vmul.f32 %v12251_v22, %v2837_v14  ;;  %v4314_v24 = vpack.c.bf16 %v3648_v39, %v3630_v29  ;;  %v4817_v14 = vld [vmem:[%s14845_s3 + $0x838] sm:$0xff]  ;;  %v2009_v9 = vunpack.c.3.s8 %v12843_v17  ;;  %v4832_v39 = vld [vmem:[%s14845_s3 + $0x8b0] sm:$0xff]  ;;  %v1921_v17 = vunpack.c.2.s8 %v12848_v54 }
 0x523   :  { %v6549_v31 = vadd.f32 %v6548_v16, %v12743_v38  ;;  %v6677_v5 = vpop.f32.mrf.mxu3  ;;  %v3718_v38 = vmul.f32 %v12249_v49, %v2836_v11  ;;  %v4785_v29 = vld [vmem:[%s14845_s3 + $0x738] sm:$0xff] }
 0x524   :  { %v6302_v3 = vpop.f32.mrf.mxu0 }
 0x525   :  { %v12859_v51 = vadd.f32 %v6677_v5, %v6549_v31  ;;  %v6303_v56 = vadd.f32 %v6302_v3, %v11745_v53  ;;  %v6431_v8 = vpop.f32.mrf.mxu1  ;;  %v3701_v53 = vmul.f32 %v12251_v22, %v2819_v43  ;;  %v4348_v3 = vpack.c.bf16 %v3718_v38, %v3700_v52  ;;  %v4816_v43 = vld [vmem:[%s14845_s3 + $0x830] sm:$0xff] }
 0x526   :  { %v1920_v52 = vunpack.c.2.s8 %v12836_v25  ;;  %v4973_v38 = vpack.c.bf16 %v4817_v14, %v4816_v43 }
 0x527   :  { %v12862_v23 = vadd.f32 %v6431_v8, %v6303_v56  ;;  %v4349_v11 = vpack.c.bf16 %v3719_v46, %v3701_v53  ;;  %v4315_v56 = vpack.c.bf16 %v3649_v36, %v3631_v4  ;;  %v1939_v46 = vunpack.c.3.s8 %v12848_v54  ;;  %v4800_v54 = vld [vmem:[%s14845_s3 + $0x7b0] sm:$0xff] }
 0x528   :  { %v4957_v4 = vpack.c.bf16 %v4785_v29, %v4784_v1  ;;  %7054 = vmatpush.bf16.msra.mxu2 %v4973_v38 }
 0x52a   :  { %v6550_v61 = vpop.f32.mrf.mxu2  ;;  %6796 = vmatpush.bf16.msrb.mxu0 %v4957_v4 }
 0x52b   :  { %v6551_v16 = vadd.f32 %v6550_v61, %v12786_v60  ;;  %v6679_v63 = vpop.f32.mrf.mxu3  ;;  %v2008_v60 = vunpack.c.3.s8 %v12831_v27  ;;  %v1938_v27 = vunpack.c.3.s8 %v12836_v25  ;;  %v4833_v61 = vld [vmem:[%s14845_s3 + $0x8b8] sm:$0xff] }
 0x52c   :  { %v6305_v44 = vpop.f32.mrf.mxu0  ;;  %v4981_v25 = vpack.c.bf16 %v4833_v61, %v4832_v39 }
 0x52d   :  { %v12873_v6 = vadd.f32 %v6679_v63, %v6551_v16  ;;  %v6306_v31 = vadd.f32 %v6305_v44, %v15009_v47  ;;  %v6434_v5 = vpop.f32.mrf.mxu1  ;;  %v2854_v44 = vcvt.s32.f32 %v1990_v15  ;;  %v2872_v47 = vcvt.s32.f32 %v2008_v60 }
 0x52e   :  { %7183 = vmatpush.bf16.msra.mxu3 %v4981_v25  ;;  %v2802_v43 = vcvt.s32.f32 %v1938_v27  ;;  %v2873_v15 = vcvt.s32.f32 %v2009_v9  ;;  %v2785_v60 = vcvt.s32.f32 %v1921_v17 }
 0x52f   :  { %v12876_v8 = vadd.f32 %v6434_v5, %v6306_v31  ;;  %6344 = vmatmul.bf16.gmra.mxu0 %v4348_v3  ;;  %6592 = vmatmul.bf16.gmra.mxu2 %v4314_v24  ;;  %v2855_v31 = vcvt.s32.f32 %v1991_v13  ;;  %v15010_v3 = vld [vmem:[#allocation26_spill] sm:$0xff]  ;;  %v2803_v13 = vcvt.s32.f32 %v1939_v46  ;;  %v3736_v38 = vmul.f32 %v12249_v49, %v2854_v44 }
 0x530   :  { %6473 = vmatmul.bf16.gmra.mxu1 %v4349_v11  ;;  %6721 = vmatmul.bf16.gmra.mxu3 %v4315_v56  ;;  %v2784_v56 = vcvt.s32.f32 %v1920_v52  ;;  %v3754_v52 = vmul.f32 %v12249_v49, %v2872_v47  ;;  %v3684_v29 = vmul.f32 %v12403_v10, %v2802_v43  ;;  %v3667_v9 = vmul.f32 %v12405_v12, %v2785_v60 }
 0x531   :  { %v3737_v61 = vmul.f32 %v12251_v22, %v2855_v31  ;;  %v3685_v17 = vmul.f32 %v12405_v12, %v2803_v13  ;;  %v12931_v31 = vld [vmem:[%s14847_s4 + $0x440] sm:$0xff] }
 0x532   :  { %v6553_v53 = vpop.f32.mrf.mxu2  ;;  %v3666_v27 = vmul.f32 %v12403_v10, %v2784_v56  ;;  %v4366_v44 = vpack.c.bf16 %v3754_v52, %v3736_v38  ;;  %v12948_v56 = vld [vmem:[%s14847_s4 + $0x3c8] sm:$0xff]  ;;  %v2026_v43 = vunpack.c.0.s8 %v12931_v31 }
 0x533   :  { %v6554_v36 = vadd.f32 %v6553_v53, %v12800_v32  ;;  %v6682_v16 = vpop.f32.mrf.mxu3  ;;  %v4801_v32 = vld [vmem:[%s14845_s3 + $0x7b8] sm:$0xff]  ;;  %v3755_v53 = vmul.f32 %v12251_v22, %v2873_v15  ;;  %v1957_v38 = vunpack.c.0.s8 %v12948_v56  ;;  %v1975_v52 = vunpack.c.1.s8 %v12948_v56 }
 0x534   :  { %v6307_v63 = vpop.f32.mrf.mxu0  ;;  %v4965_v14 = vpack.c.bf16 %v4801_v32, %v4800_v54  ;;  %v4332_v47 = vpack.c.bf16 %v3684_v29, %v3666_v27  ;;  %v2044_v54 = vunpack.c.1.s8 %v12931_v31 }
 0x535   :  { %v12905_v5 = vadd.f32 %v6682_v16, %v6554_v36  ;;  %v6308_v24 = vadd.f32 %v6307_v63, %v15010_v3  ;;  %v6436_v11 = vpop.f32.mrf.mxu1  ;;  %v4367_v3 = vpack.c.bf16 %v3755_v53, %v3737_v61  ;;  %v2890_v61 = vcvt.s32.f32 %v2026_v43 }
 0x536   :  { %6925 = vmatpush.bf16.msrb.mxu1 %v4965_v14  ;;  %v2908_v53 = vcvt.s32.f32 %v2044_v54 }
 0x537   :  { %v12914_v1 = vadd.f32 %v6436_v11, %v6308_v24  ;;  %v4333_v24 = vpack.c.bf16 %v3685_v17, %v3667_v9 }
 0x53a   :  { %v6555_v39 = vpop.f32.mrf.mxu2 }
 0x53b   :  { %v6556_v46 = vadd.f32 %v6555_v39, %v12814_v0  ;;  %v6684_v4 = vpop.f32.mrf.mxu3  ;;  %v12936_v0 = vld [vmem:[%s14847_s4 + $0x3c0] sm:$0xff] }
 0x53c   :  { %v6310_v25 = vpop.f32.mrf.mxu0  ;;  %v1956_v32 = vunpack.c.0.s8 %v12936_v0  ;;  %v1974_v15 = vunpack.c.1.s8 %v12936_v0 }
 0x53d   :  { %v12925_v36 = vadd.f32 %v6684_v4, %v6556_v46  ;;  %v6311_v16 = vadd.f32 %v6310_v25, %v11825_v18  ;;  %v6439_v63 = vpop.f32.mrf.mxu1  ;;  %v12943_v18 = vld [vmem:[%s14847_s4 + $0x448] sm:$0xff] }
 0x53e   :  { %v2027_v13 = vunpack.c.0.s8 %v12943_v18  ;;  %v2045_v14 = vunpack.c.1.s8 %v12943_v18  ;;  %v2820_v4 = vcvt.s32.f32 %v1956_v32  ;;  %v2838_v25 = vcvt.s32.f32 %v1974_v15 }
 0x53f   :  { %v12938_v11 = vadd.f32 %v6439_v63, %v6311_v16  ;;  %6349 = vmatmul.bf16.gmra.mxu0 %v4366_v44  ;;  %6597 = vmatmul.bf16.gmra.mxu2 %v4332_v47  ;;  %v2821_v44 = vcvt.s32.f32 %v1957_v38  ;;  %v2839_v47 = vcvt.s32.f32 %v1975_v52 }
 0x540   :  { %6478 = vmatmul.bf16.gmra.mxu1 %v4367_v3  ;;  %6726 = vmatmul.bf16.gmra.mxu3 %v4333_v24  ;;  %v2891_v16 = vcvt.s32.f32 %v2027_v13  ;;  %v2909_v63 = vcvt.s32.f32 %v2045_v14  ;;  %v3772_v24 = vmul.f32 %v12249_v49, %v2890_v61  ;;  %v3702_v43 = vmul.f32 %v12403_v10, %v2820_v4 }
 0x541   :  { %v3720_v54 = vmul.f32 %v12403_v10, %v2838_v25  ;;  %v3703_v15 = vmul.f32 %v12405_v12, %v2821_v44  ;;  %v3721_v13 = vmul.f32 %v12405_v12, %v2839_v47  ;;  %v2062_v25 = vunpack.c.2.s8 %v12931_v31 }
 0x542   :  { %v6558_v60 = vpop.f32.mrf.mxu2  ;;  %v3791_v32 = vmul.f32 %v12251_v22, %v2909_v63  ;;  %v2010_v63 = vunpack.c.3.s8 %v12936_v0  ;;  %v2063_v44 = vunpack.c.2.s8 %v12943_v18  ;;  %v2081_v47 = vunpack.c.3.s8 %v12943_v18 }
 0x543   :  { %v6559_v27 = vadd.f32 %v6558_v60, %v12838_v48  ;;  %v6687_v29 = vpop.f32.mrf.mxu3  ;;  %v3790_v48 = vmul.f32 %v12249_v49, %v2908_v53  ;;  %v4350_v53 = vpack.c.bf16 %v3720_v54, %v3702_v43 }
 0x544   :  { %v6312_v39 = vpop.f32.mrf.mxu0 }
 0x545   :  { %v12959_v9 = vadd.f32 %v6687_v29, %v6559_v27  ;;  %v6313_v17 = vadd.f32 %v6312_v39, %v11845_v45  ;;  %v6441_v46 = vpop.f32.mrf.mxu1  ;;  %v3773_v45 = vmul.f32 %v12251_v22, %v2891_v16  ;;  %v4384_v61 = vpack.c.bf16 %v3790_v48, %v3772_v24 }
 0x546   :  { %v1992_v16 = vunpack.c.2.s8 %v12936_v0  ;;  %v1993_v24 = vunpack.c.2.s8 %v12948_v56  ;;  %v2011_v48 = vunpack.c.3.s8 %v12948_v56 }
 0x547   :  { %15011 = vst [vmem:[#allocation15_spill] sm:$0xff] %v12959_v9  ;;  %v12962_v3 = vadd.f32 %v6441_v46, %v6313_v17  ;;  %v4385_v17 = vpack.c.bf16 %v3791_v32, %v3773_v45  ;;  %v4351_v46 = vpack.c.bf16 %v3721_v13, %v3703_v15  ;;  %v2926_v45 = vcvt.s32.f32 %v2062_v25 }
 0x548   :  { %v2856_v13 = vcvt.s32.f32 %v1992_v16  ;;  %v2857_v18 = vcvt.s32.f32 %v1993_v24 }
 0x549   :  { %v3808_v56 = vmul.f32 %v12249_v49, %v2926_v45 }
 0x54a   :  { %v6560_v60 = vpop.f32.mrf.mxu2  ;;  %v3739_v25 = vmul.f32 %v12405_v12, %v2857_v18  ;;  %v4782_v18 = vld [vmem:[%s14845_s3 + $0x720] sm:$0xff] }
 0x54b   :  { %v6561_v14 = vadd.f32 %v6560_v60, %v12862_v23  ;;  %v6689_v38 = vpop.f32.mrf.mxu3  ;;  %v2080_v23 = vunpack.c.3.s8 %v12931_v31 }
 0x54c   :  { %v6315_v52 = vpop.f32.mrf.mxu0 }
 0x54d   :  { %v12973_v27 = vadd.f32 %v6689_v38, %v6561_v14  ;;  %v6316_v29 = vadd.f32 %v6315_v52, %v11859_v7  ;;  %v6444_v39 = vpop.f32.mrf.mxu1  ;;  %v2944_v32 = vcvt.s32.f32 %v2080_v23  ;;  %v2874_v14 = vcvt.s32.f32 %v2010_v63 }
 0x54e   :  { %v2927_v38 = vcvt.s32.f32 %v2063_v44  ;;  %v2945_v52 = vcvt.s32.f32 %v2081_v47 }
 0x54f   :  { %15012 = vst [vmem:[#allocation16_spill] sm:$0xff] %v12973_v27  ;;  %v12976_v4 = vadd.f32 %v6444_v39, %v6316_v29  ;;  %6354 = vmatmul.bf16.gmra.mxu0 %v4384_v61  ;;  %6602 = vmatmul.bf16.gmra.mxu2 %v4350_v53  ;;  %v2875_v29 = vcvt.s32.f32 %v2011_v48  ;;  %v3738_v61 = vmul.f32 %v12403_v10, %v2856_v13 }
 0x550   :  { %6483 = vmatmul.bf16.gmra.mxu1 %v4385_v17  ;;  %6731 = vmatmul.bf16.gmra.mxu3 %v4351_v46  ;;  %v3756_v53 = vmul.f32 %v12403_v10, %v2874_v14  ;;  %v3827_v46 = vmul.f32 %v12251_v22, %v2945_v52  ;;  %v4815_v52 = vld [vmem:[%s14845_s3 + $0x828] sm:$0xff] }
 0x551   :  { %v3757_v23 = vmul.f32 %v12405_v12, %v2875_v29 }
 0x552   :  { %v6563_v7 = vpop.f32.mrf.mxu2 }
 0x553   :  { %v6564_v43 = vadd.f32 %v6563_v7, %v12876_v8  ;;  %v6692_v54 = vpop.f32.mrf.mxu3  ;;  %v3826_v8 = vmul.f32 %v12249_v49, %v2944_v32  ;;  %v4369_v45 = vpack.c.bf16 %v3757_v23, %v3739_v25  ;;  %v13017_v32 = vld [vmem:[%s14847_s4 + $0x450] sm:$0xff] }
 0x554   :  { %v6317_v60 = vpop.f32.mrf.mxu0 }
 0x555   :  { %v12987_v31 = vadd.f32 %v6692_v54, %v6564_v43  ;;  %v6318_v15 = vadd.f32 %v6317_v60, %v11873_v37  ;;  %v6446_v0 = vpop.f32.mrf.mxu1  ;;  %v3809_v37 = vmul.f32 %v12251_v22, %v2927_v38  ;;  %v4402_v48 = vpack.c.bf16 %v3826_v8, %v3808_v56  ;;  %v13007_v54 = vld [vmem:[%s14847_s4 + $0x4d0] sm:$0xff]  ;;  %v13012_v60 = vld [vmem:[%s14847_s4 + $0x4d8] sm:$0xff]  ;;  %v4814_v38 = vld [vmem:[%s14845_s3 + $0x820] sm:$0xff] }
 0x556   :  { %v4368_v43 = vpack.c.bf16 %v3756_v53, %v3738_v61  ;;  %v2116_v13 = vunpack.c.1.s8 %v13007_v54  ;;  %v2099_v14 = vunpack.c.0.s8 %v13012_v60  ;;  %v2117_v29 = vunpack.c.1.s8 %v13012_v60  ;;  %v4783_v53 = vld [vmem:[%s14845_s3 + $0x728] sm:$0xff] }
 0x557   :  { %15013 = vst [vmem:[#allocation17_spill] sm:$0xff] %v12987_v31  ;;  %v12990_v39 = vadd.f32 %v6446_v0, %v6318_v15  ;;  %v13024_v15 = vld [vmem:[%s14847_s4 + $0x458] sm:$0xff]  ;;  %v2098_v0 = vunpack.c.0.s8 %v13007_v54  ;;  %v2028_v56 = vunpack.c.0.s8 %v13017_v32  ;;  %v2046_v8 = vunpack.c.1.s8 %v13017_v32 }
 0x558   :  { %v4972_v61 = vpack.c.bf16 %v4815_v52, %v4814_v38  ;;  %v2029_v25 = vunpack.c.0.s8 %v13024_v15  ;;  %v2047_v23 = vunpack.c.1.s8 %v13024_v15  ;;  %v15016_v38 = vld [vmem:[#allocation27_spill] sm:$0xff] }
 0x559   :  { %v2892_v31 = vcvt.s32.f32 %v2028_v56  ;;  %v2910_v27 = vcvt.s32.f32 %v2046_v8 }
 0x55a   :  { %v6565_v17 = vpop.f32.mrf.mxu2  ;;  %7055 = vmatpush.bf16.msra.mxu2 %v4972_v61 }
 0x55b   :  { %v6566_v16 = vadd.f32 %v6565_v17, %v12914_v1  ;;  %v6694_v63 = vpop.f32.mrf.mxu3  ;;  %v4403_v1 = vpack.c.bf16 %v3827_v46, %v3809_v37  ;;  %v4830_v17 = vld [vmem:[%s14845_s3 + $0x8a0] sm:$0xff]  ;;  %v4831_v37 = vld [vmem:[%s14845_s3 + $0x8a8] sm:$0xff]  ;;  %v3774_v8 = vmul.f32 %v12403_v10, %v2892_v31 }
 0x55c   :  { %v6320_v7 = vpop.f32.mrf.mxu0 }
 0x55d   :  { %v13001_v44 = vadd.f32 %v6694_v63, %v6566_v16  ;;  %v6321_v47 = vadd.f32 %v6320_v7, %v11907_v26  ;;  %v6449_v24 = vpop.f32.mrf.mxu1  ;;  %v4956_v16 = vpack.c.bf16 %v4783_v53, %v4782_v18  ;;  %v4980_v63 = vpack.c.bf16 %v4831_v37, %v4830_v17  ;;  %v4798_v18 = vld [vmem:[%s14845_s3 + $0x7a0] sm:$0xff] }
 0x55e   :  { %v3792_v37 = vmul.f32 %v12403_v10, %v2910_v27 }
 0x55f   :  { %15014 = vst [vmem:[#allocation18_spill] sm:$0xff] %v13001_v44  ;;  %v13019_v26 = vadd.f32 %v6449_v24, %v6321_v47  ;;  %6359 = vmatmul.bf16.gmra.mxu0 %v4402_v48  ;;  %6607 = vmatmul.bf16.gmra.mxu2 %v4368_v43  ;;  %v2962_v48 = vcvt.s32.f32 %v2098_v0  ;;  %v2980_v43 = vcvt.s32.f32 %v2116_v13  ;;  %v2981_v0 = vcvt.s32.f32 %v2117_v29 }
 0x560   :  { %6488 = vmatmul.bf16.gmra.mxu1 %v4403_v1  ;;  %6736 = vmatmul.bf16.gmra.mxu3 %v4369_v45  ;;  %v2963_v1 = vcvt.s32.f32 %v2099_v14  ;;  %v2893_v13 = vcvt.s32.f32 %v2029_v25  ;;  %v2911_v14 = vcvt.s32.f32 %v2047_v23  ;;  %v4386_v27 = vpack.c.bf16 %v3792_v37, %v3774_v8 }
 0x561   :  { %6797 = vmatpush.bf16.msrb.mxu0 %v4956_v16  ;;  %7184 = vmatpush.bf16.msra.mxu3 %v4980_v63  ;;  %v3844_v17 = vmul.f32 %v12249_v49, %v2962_v48  ;;  %v3862_v56 = vmul.f32 %v12249_v49, %v2980_v43  ;;  %v3863_v63 = vmul.f32 %v12251_v22, %v2981_v0  ;;  %v2082_v0 = vunpack.c.3.s8 %v13017_v32 }
 0x562   :  { %v6568_v46 = vpop.f32.mrf.mxu2  ;;  %v3845_v16 = vmul.f32 %v12251_v22, %v2963_v1  ;;  %v3775_v29 = vmul.f32 %v12405_v12, %v2893_v13  ;;  %v3793_v25 = vmul.f32 %v12405_v12, %v2911_v14  ;;  %v2135_v14 = vunpack.c.2.s8 %v13012_v60 }
 0x563   :  { %v6569_v7 = vadd.f32 %v6568_v46, %v12938_v11  ;;  %v6697_v47 = vpop.f32.mrf.mxu3  ;;  %v4799_v11 = vld [vmem:[%s14845_s3 + $0x7a8] sm:$0xff]  ;;  %v4420_v43 = vpack.c.bf16 %v3862_v56, %v3844_v17  ;;  %v2065_v17 = vunpack.c.2.s8 %v13024_v15  ;;  %v2083_v56 = vunpack.c.3.s8 %v13024_v15 }
 0x564   :  { %v6322_v24 = vpop.f32.mrf.mxu0  ;;  %v4964_v61 = vpack.c.bf16 %v4799_v11, %v4798_v18  ;;  %v2134_v18 = vunpack.c.2.s8 %v13007_v54  ;;  %v2064_v11 = vunpack.c.2.s8 %v13017_v32 }
 0x565   :  { %v13053_v45 = vadd.f32 %v6697_v47, %v6569_v7  ;;  %v6323_v52 = vadd.f32 %v6322_v24, %v15016_v38  ;;  %v6451_v44 = vpop.f32.mrf.mxu1  ;;  %v15018_v24 = vld [vmem:[#allocation28_spill] sm:$0xff]  ;;  %v4421_v38 = vpack.c.bf16 %v3863_v63, %v3845_v16 }
 0x566   :  { %6926 = vmatpush.bf16.msrb.mxu1 %v4964_v61  ;;  %v2153_v61 = vunpack.c.3.s8 %v13012_v60  ;;  %v2998_v16 = vcvt.s32.f32 %v2134_v18  ;;  %v2929_v60 = vcvt.s32.f32 %v2065_v17  ;;  %v15022_v17 = vld [vmem:[#allocation30_spill] sm:$0xff] }
 0x567   :  { %15015 = vst [vmem:[#allocation19_spill] sm:$0xff] %v13053_v45  ;;  %v13062_v53 = vadd.f32 %v6451_v44, %v6323_v52  ;;  %v4387_v52 = vpack.c.bf16 %v3793_v25, %v3775_v29  ;;  %v15020_v29 = vld [vmem:[#allocation29_spill] sm:$0xff] }
 0x568   :  { %v3880_v15 = vmul.f32 %v12249_v49, %v2998_v16  ;;  %v13107_v16 = vld [vmem:[%s14847_s4 + $0x560] sm:$0xff] }
 0x56a   :  { %v6570_v46 = vpop.f32.mrf.mxu2 }
 0x56b   :  { %v6571_v44 = vadd.f32 %v6570_v46, %v12962_v3  ;;  %v6699_v23 = vpop.f32.mrf.mxu3  ;;  %v2152_v3 = vunpack.c.3.s8 %v13007_v54 }
 0x56c   :  { %v6325_v7 = vpop.f32.mrf.mxu0 }
 0x56d   :  { %v13073_v47 = vadd.f32 %v6699_v23, %v6571_v44  ;;  %v6326_v48 = vadd.f32 %v6325_v7, %v15018_v24  ;;  %v6454_v31 = vpop.f32.mrf.mxu1  ;;  %v3016_v63 = vcvt.s32.f32 %v2152_v3  ;;  %v2928_v44 = vcvt.s32.f32 %v2064_v11 }
 0x56e   :  { %v2946_v23 = vcvt.s32.f32 %v2082_v0  ;;  %v2999_v7 = vcvt.s32.f32 %v2135_v14  ;;  %v3017_v24 = vcvt.s32.f32 %v2153_v61  ;;  %v3811_v3 = vmul.f32 %v12405_v12, %v2929_v60 }
 0x56f   :  { %15017 = vst [vmem:[#allocation20_spill] sm:$0xff] %v13073_v47  ;;  %v13076_v1 = vadd.f32 %v6454_v31, %v6326_v48  ;;  %6364 = vmatmul.bf16.gmra.mxu0 %v4420_v43  ;;  %6612 = vmatmul.bf16.gmra.mxu2 %v4386_v27  ;;  %v2947_v48 = vcvt.s32.f32 %v2083_v56  ;;  %v3810_v43 = vmul.f32 %v12403_v10, %v2928_v44  ;;  %v13124_v44 = vld [vmem:[%s14847_s4 + $0x4e8] sm:$0xff] }
 0x570   :  { %6493 = vmatmul.bf16.gmra.mxu1 %v4421_v38  ;;  %6741 = vmatmul.bf16.gmra.mxu3 %v4387_v52  ;;  %v3828_v27 = vmul.f32 %v12403_v10, %v2946_v23  ;;  %v3881_v52 = vmul.f32 %v12251_v22, %v2999_v7  ;;  %v3899_v18 = vmul.f32 %v12251_v22, %v3017_v24  ;;  %v2170_v23 = vunpack.c.0.s8 %v13107_v16 }
 0x571   :  { %v3829_v11 = vmul.f32 %v12405_v12, %v2947_v48  ;;  %v2188_v7 = vunpack.c.1.s8 %v13107_v16 }
 0x572   :  { %v6573_v13 = vpop.f32.mrf.mxu2 }
 0x573   :  { %v6574_v8 = vadd.f32 %v6573_v13, %v12976_v4  ;;  %v6702_v37 = vpop.f32.mrf.mxu3  ;;  %v3898_v4 = vmul.f32 %v12249_v49, %v3016_v63  ;;  %v4439_v63 = vpack.c.bf16 %v3899_v18, %v3881_v52 }
 0x574   :  { %v6327_v46 = vpop.f32.mrf.mxu0 }
 0x575   :  { %v13087_v54 = vadd.f32 %v6702_v37, %v6574_v8  ;;  %v6328_v25 = vadd.f32 %v6327_v46, %v15020_v29  ;;  %v6456_v32 = vpop.f32.mrf.mxu1  ;;  %v4438_v37 = vpack.c.bf16 %v3898_v4, %v3880_v15  ;;  %v4404_v46 = vpack.c.bf16 %v3828_v27, %v3810_v43 }
 0x576   :  { %v4405_v29 = vpack.c.bf16 %v3829_v11, %v3811_v3  ;;  %v2101_v43 = vunpack.c.0.s8 %v13124_v44  ;;  %v2119_v27 = vunpack.c.1.s8 %v13124_v44  ;;  %v3034_v3 = vcvt.s32.f32 %v2170_v23 }
 0x577   :  { %15019 = vst [vmem:[#allocation21_spill] sm:$0xff] %v13087_v54  ;;  %v13090_v31 = vadd.f32 %v6456_v32, %v6328_v25  ;;  %v13119_v32 = vld [vmem:[%s14847_s4 + $0x568] sm:$0xff]  ;;  %v3052_v11 = vcvt.s32.f32 %v2188_v7 }
 0x578   :  { %v2171_v15 = vunpack.c.0.s8 %v13119_v32  ;;  %v2189_v4 = vunpack.c.1.s8 %v13119_v32  ;;  %v3916_v54 = vmul.f32 %v12249_v49, %v3034_v3 }
 0x57a   :  { %v6575_v38 = vpop.f32.mrf.mxu2 }
 0x57b   :  { %v6576_v0 = vadd.f32 %v6575_v38, %v12990_v39  ;;  %v6704_v13 = vpop.f32.mrf.mxu3  ;;  %v13112_v39 = vld [vmem:[%s14847_s4 + $0x4e0] sm:$0xff] }
 0x57c   :  { %v6330_v14 = vpop.f32.mrf.mxu0  ;;  %v2100_v24 = vunpack.c.0.s8 %v13112_v39  ;;  %v2118_v60 = vunpack.c.1.s8 %v13112_v39 }
 0x57d   :  { %v13101_v61 = vadd.f32 %v6704_v13, %v6576_v0  ;;  %v6331_v56 = vadd.f32 %v6330_v14, %v15022_v17  ;;  %v6459_v8 = vpop.f32.mrf.mxu1  ;;  %v15024_v13 = vld [vmem:[#allocation31_spill] sm:$0xff] }
 0x57f   :  { %15021 = vst [vmem:[#allocation22_spill] sm:$0xff] %v13101_v61  ;;  %v13114_v25 = vadd.f32 %v6459_v8, %v6331_v56  ;;  %6369 = vmatmul.bf16.gmra.mxu0 %v4438_v37  ;;  %6617 = vmatmul.bf16.gmra.mxu2 %v4404_v46  ;;  %v2964_v56 = vcvt.s32.f32 %v2100_v24  ;;  %v2982_v8 = vcvt.s32.f32 %v2118_v60  ;;  %v3035_v37 = vcvt.s32.f32 %v2171_v15 }
 0x580   :  { %6498 = vmatmul.bf16.gmra.mxu1 %v4439_v63  ;;  %6746 = vmatmul.bf16.gmra.mxu3 %v4405_v29  ;;  %v3053_v46 = vcvt.s32.f32 %v2189_v4  ;;  %v2965_v63 = vcvt.s32.f32 %v2101_v43  ;;  %v2983_v29 = vcvt.s32.f32 %v2119_v27 }
 0x581   :  { %v3846_v23 = vmul.f32 %v12403_v10, %v2964_v56  ;;  %v3864_v7 = vmul.f32 %v12403_v10, %v2982_v8 }
 0x582   :  { %v6578_v48 = vpop.f32.mrf.mxu2  ;;  %v3935_v24 = vmul.f32 %v12251_v22, %v3053_v46  ;;  %v3847_v60 = vmul.f32 %v12405_v12, %v2965_v63  ;;  %v3865_v15 = vmul.f32 %v12405_v12, %v2983_v29  ;;  %v2207_v46 = vunpack.c.2.s8 %v13119_v32  ;;  %v4812_v63 = vld [vmem:[%s14845_s3 + $0x810] sm:$0xff] }
 0x583   :  { %v6579_v38 = vadd.f32 %v6578_v48, %v13019_v26  ;;  %v6707_v52 = vpop.f32.mrf.mxu3  ;;  %v3934_v26 = vmul.f32 %v12249_v49, %v3052_v11  ;;  %v4780_v29 = vld [vmem:[%s14845_s3 + $0x710] sm:$0xff] }
 0x584   :  { %v6332_v18 = vpop.f32.mrf.mxu0  ;;  %v4423_v56 = vpack.c.bf16 %v3865_v15, %v3847_v60  ;;  %v2155_v15 = vunpack.c.3.s8 %v13124_v44 }
 0x585   :  { %v13135_v0 = vadd.f32 %v6707_v52, %v6579_v38  ;;  %v6333_v14 = vadd.f32 %v6332_v18, %v15024_v13  ;;  %v6461_v17 = vpop.f32.mrf.mxu1  ;;  %v3917_v38 = vmul.f32 %v12251_v22, %v3035_v37  ;;  %v15026_v18 = vld [vmem:[#allocation32_spill] sm:$0xff]  ;;  %v4456_v13 = vpack.c.bf16 %v3934_v26, %v3916_v54  ;;  %v4813_v54 = vld [vmem:[%s14845_s3 + $0x818] sm:$0xff] }
 0x586   :  { %v2206_v37 = vunpack.c.2.s8 %v13107_v16  ;;  %v2225_v26 = vunpack.c.3.s8 %v13119_v32  ;;  %v2137_v32 = vunpack.c.2.s8 %v13124_v44  ;;  %v4796_v44 = vld [vmem:[%s14845_s3 + $0x790] sm:$0xff] }
 0x587   :  { %15023 = vst [vmem:[#allocation23_spill] sm:$0xff] %v13135_v0  ;;  %v13138_v61 = vadd.f32 %v6461_v17, %v6333_v14  ;;  %v4422_v14 = vpack.c.bf16 %v3864_v7, %v3846_v23  ;;  %v4457_v17 = vpack.c.bf16 %v3935_v24, %v3917_v38  ;;  %v2136_v23 = vunpack.c.2.s8 %v13112_v39  ;;  %v4828_v38 = vld [vmem:[%s14845_s3 + $0x890] sm:$0xff]  ;;  %v4829_v24 = vld [vmem:[%s14845_s3 + $0x898] sm:$0xff] }
 0x588   :  { %v4971_v7 = vpack.c.bf16 %v4813_v54, %v4812_v63 }
 0x589   :  { %v3000_v54 = vcvt.s32.f32 %v2136_v23 }
 0x58a   :  { %v6580_v48 = vpop.f32.mrf.mxu2  ;;  %7056 = vmatpush.bf16.msra.mxu2 %v4971_v7 }
 0x58b   :  { %v6581_v4 = vadd.f32 %v6580_v48, %v13062_v53  ;;  %v6709_v43 = vpop.f32.mrf.mxu3  ;;  %v2224_v53 = vunpack.c.3.s8 %v13107_v16  ;;  %v2154_v16 = vunpack.c.3.s8 %v13112_v39  ;;  %v4781_v48 = vld [vmem:[%s14845_s3 + $0x718] sm:$0xff]  ;;  %v4979_v39 = vpack.c.bf16 %v4829_v24, %v4828_v38 }
 0x58c   :  { %v6335_v27 = vpop.f32.mrf.mxu0 }
 0x58d   :  { %v13149_v52 = vadd.f32 %v6709_v43, %v6581_v4  ;;  %v6336_v3 = vadd.f32 %v6335_v27, %v15026_v18  ;;  %v6464_v11 = vpop.f32.mrf.mxu1  ;;  %v4955_v4 = vpack.c.bf16 %v4781_v48, %v4780_v29  ;;  %7185 = vmatpush.bf16.msra.mxu3 %v4979_v39 }
 0x58f   :  { %15025 = vst [vmem:[#allocation24_spill] sm:$0xff] %v13149_v52  ;;  %v13152_v8 = vadd.f32 %v6464_v11, %v6336_v3  ;;  %6374 = vmatmul.bf16.gmra.mxu0 %v4456_v13  ;;  %6622 = vmatmul.bf16.gmra.mxu2 %v4422_v14  ;;  %v3070_v3 = vcvt.s32.f32 %v2206_v37  ;;  %v3088_v11 = vcvt.s32.f32 %v2224_v53  ;;  %v3071_v13 = vcvt.s32.f32 %v2207_v46 }
 0x590   :  { %6503 = vmatmul.bf16.gmra.mxu1 %v4457_v17  ;;  %6751 = vmatmul.bf16.gmra.mxu3 %v4423_v56  ;;  %v15028_v17 = vld [vmem:[#allocation33_spill] sm:$0xff]  ;;  %v3018_v52 = vcvt.s32.f32 %v2154_v16  ;;  %v3089_v37 = vcvt.s32.f32 %v2225_v26  ;;  %v3001_v53 = vcvt.s32.f32 %v2137_v32  ;;  %v3019_v46 = vcvt.s32.f32 %v2155_v15 }
 0x591   :  { %6798 = vmatpush.bf16.msrb.mxu0 %v4955_v4  ;;  %v3952_v48 = vmul.f32 %v12249_v49, %v3070_v3  ;;  %v3970_v23 = vmul.f32 %v12249_v49, %v3088_v11  ;;  %v3882_v16 = vmul.f32 %v12403_v10, %v3000_v54 }
 0x592   :  { %v6583_v60 = vpop.f32.mrf.mxu2  ;;  %v3900_v38 = vmul.f32 %v12403_v10, %v3018_v52  ;;  %v3971_v4 = vmul.f32 %v12251_v22, %v3089_v37  ;;  %v3883_v26 = vmul.f32 %v12405_v12, %v3001_v53  ;;  %v3901_v32 = vmul.f32 %v12405_v12, %v3019_v46 }
 0x593   :  { %v6584_v43 = vadd.f32 %v6583_v60, %v13076_v1  ;;  %v6712_v27 = vpop.f32.mrf.mxu3  ;;  %v4797_v1 = vld [vmem:[%s14845_s3 + $0x798] sm:$0xff]  ;;  %v3953_v60 = vmul.f32 %v12251_v22, %v3071_v13  ;;  %v13207_v13 = vld [vmem:[%s14847_s4 + $0x5f0] sm:$0xff] }
 0x594   :  { %v6337_v18 = vpop.f32.mrf.mxu0  ;;  %v4963_v29 = vpack.c.bf16 %v4797_v1, %v4796_v44  ;;  %v4440_v52 = vpack.c.bf16 %v3900_v38, %v3882_v16  ;;  %v13219_v44 = vld [vmem:[%s14847_s4 + $0x5f8] sm:$0xff]  ;;  %v2242_v37 = vunpack.c.0.s8 %v13207_v13  ;;  %v2260_v53 = vunpack.c.1.s8 %v13207_v13 }
 0x595   :  { %v13181_v14 = vadd.f32 %v6712_v27, %v6584_v43  ;;  %v6338_v56 = vadd.f32 %v6337_v18, %v15028_v17  ;;  %v6466_v63 = vpop.f32.mrf.mxu1  ;;  %v15030_v18 = vld [vmem:[#allocation34_spill] sm:$0xff]  ;;  %v4474_v17 = vpack.c.bf16 %v3970_v23, %v3952_v48  ;;  %v13224_v1 = vld [vmem:[%s14847_s4 + $0x578] sm:$0xff]  ;;  %v2243_v23 = vunpack.c.0.s8 %v13219_v44 }
 0x596   :  { %6927 = vmatpush.bf16.msrb.mxu1 %v4963_v29  ;;  %v2261_v16 = vunpack.c.1.s8 %v13219_v44  ;;  %v2173_v38 = vunpack.c.0.s8 %v13224_v1 }
 0x597   :  { %15027 = vst [vmem:[#allocation25_spill] sm:$0xff] %v13181_v14  ;;  %v13190_v7 = vadd.f32 %v6466_v63, %v6338_v56  ;;  %v4475_v56 = vpack.c.bf16 %v3971_v4, %v3953_v60  ;;  %v4441_v63 = vpack.c.bf16 %v3901_v32, %v3883_v26  ;;  %v3106_v32 = vcvt.s32.f32 %v2242_v37 }
 0x599   :  { %v3988_v14 = vmul.f32 %v12249_v49, %v3106_v32 }
 0x59a   :  { %v6585_v24 = vpop.f32.mrf.mxu2 }
 0x59b   :  { %v6586_v15 = vadd.f32 %v6585_v24, %v13090_v31  ;;  %v6714_v39 = vpop.f32.mrf.mxu3  ;;  %v13212_v31 = vld [vmem:[%s14847_s4 + $0x570] sm:$0xff]  ;;  %v2191_v24 = vunpack.c.1.s8 %v13224_v1 }
 0x59c   :  { %v6340_v43 = vpop.f32.mrf.mxu0  ;;  %v2172_v46 = vunpack.c.0.s8 %v13212_v31  ;;  %v2190_v29 = vunpack.c.1.s8 %v13212_v31 }
 0x59d   :  { %v13201_v27 = vadd.f32 %v6714_v39, %v6586_v15  ;;  %v6341_v3 = vadd.f32 %v6340_v43, %v15030_v18  ;;  %v6469_v11 = vpop.f32.mrf.mxu1  ;;  %v3124_v15 = vcvt.s32.f32 %v2260_v53 }
 0x59f   :  { %15029 = vst [vmem:[#allocation26_spill] sm:$0xff] %v13201_v27  ;;  %v13214_v54 = vadd.f32 %v6469_v11, %v6341_v3  ;;  %6379 = vmatmul.bf16.gmra.mxu0 %v4474_v17  ;;  %6627 = vmatmul.bf16.gmra.mxu2 %v4440_v52  ;;  %v3036_v3 = vcvt.s32.f32 %v2172_v46  ;;  %v3054_v11 = vcvt.s32.f32 %v2190_v29  ;;  %v3107_v17 = vcvt.s32.f32 %v2243_v23 }
 0x5a0   :  { %6508 = vmatmul.bf16.gmra.mxu1 %v4475_v56  ;;  %6756 = vmatmul.bf16.gmra.mxu3 %v4441_v63  ;;  %v3125_v52 = vcvt.s32.f32 %v2261_v16  ;;  %v3037_v56 = vcvt.s32.f32 %v2173_v38  ;;  %v3055_v63 = vcvt.s32.f32 %v2191_v24  ;;  %v15032_v16 = vld [vmem:[#allocation7_spill] sm:$0xff] }
 0x5a1   :  { %v3918_v37 = vmul.f32 %v12403_v10, %v3036_v3  ;;  %v3936_v53 = vmul.f32 %v12403_v10, %v3054_v11  ;;  %v968_v38 = vsub.f32 0.0, %v15032_v16  ;;  %v2208_v16 = vunpack.c.2.s8 %v13212_v31 }
 0x5a2   :  { %v6588_v48 = vpop.f32.mrf.mxu2  ;;  %v4007_v46 = vmul.f32 %v12251_v22, %v3125_v52  ;;  %v3919_v29 = vmul.f32 %v12405_v12, %v3037_v56  ;;  %v3937_v23 = vmul.f32 %v12405_v12, %v3055_v63 }
 0x5a3   :  { %v6589_v60 = vadd.f32 %v6588_v48, %v13114_v25  ;;  %v6717_v4 = vpop.f32.mrf.mxu3  ;;  %v4006_v25 = vmul.f32 %v12249_v49, %v3124_v15  ;;  %v4458_v11 = vpack.c.bf16 %v3936_v53, %v3918_v37  ;;  %v1000_v56 = vmul.f32 1.442695, %v968_v38 }
 0x5a4   :  { %v6342_v26 = vpop.f32.mrf.mxu0  ;;  %v4459_v52 = vpack.c.bf16 %v3937_v23, %v3919_v29  ;;  %v2297_v37 = vunpack.c.3.s8 %v13219_v44  ;;  %v2209_v53 = vunpack.c.2.s8 %v13224_v1 }
 0x5a5   :  { %v13235_v39 = vadd.f32 %v6717_v4, %v6589_v60  ;;  %v6343_v43 = vadd.f32 %v6342_v26, %v12139_v41  ;;  %v6471_v18 = vpop.f32.mrf.mxu1  ;;  %v3989_v41 = vmul.f32 %v12251_v22, %v3107_v17  ;;  %v15033_v4 = vld [vmem:[#allocation8_spill] sm:$0xff]  ;;  %v4492_v3 = vpack.c.bf16 %v4006_v25, %v3988_v14 }
 0x5a6   :  { %v969_v26 = vsub.f32 0.0, %v15033_v4  ;;  %v2279_v25 = vunpack.c.2.s8 %v13219_v44  ;;  %8331 = vpow2.f32 %v1000_v56 }
 0x5a7   :  { %15031 = vst [vmem:[#allocation27_spill] sm:$0xff] %v13235_v39  ;;  %v13238_v27 = vadd.f32 %v6471_v18, %v6343_v43  ;;  %v4493_v17 = vpack.c.bf16 %v4007_v46, %v3989_v41  ;;  %v2227_v41 = vunpack.c.3.s8 %v13224_v1 }
 0x5a8   :  { %v1002_v63 = vmul.f32 1.442695, %v969_v26  ;;  %v3072_v26 = vcvt.s32.f32 %v2208_v16  ;;  %v3143_v44 = vcvt.s32.f32 %v2279_v25 }
 0x5aa   :  { %v6590_v48 = vpop.f32.mrf.mxu2  ;;  %8333 = vpow2.f32 %v1002_v63 }
 0x5ab   :  { %v6591_v24 = vadd.f32 %v6590_v48, %v13138_v61  ;;  %v6719_v60 = vpop.f32.mrf.mxu3  ;;  %v2278_v61 = vunpack.c.2.s8 %v13207_v13  ;;  %v2296_v48 = vunpack.c.3.s8 %v13207_v13 }
 0x5ac   :  { %v6345_v32 = vpop.f32.mrf.mxu0 }
 0x5ad   :  { %v13251_v15 = vadd.f32 %v6719_v60, %v6591_v24  ;;  %v6346_v43 = vadd.f32 %v6345_v32, %v12158_v50  ;;  %v6474_v18 = vpop.f32.mrf.mxu1  ;;  %v2226_v50 = vunpack.c.3.s8 %v13212_v31  ;;  %v3142_v13 = vcvt.s32.f32 %v2278_v61  ;;  %v15036_v31 = vld [vmem:[#allocation3_spill] sm:$0xff] }
 0x5ae   :  { %v3160_v38 = vcvt.s32.f32 %v2296_v48  ;;  %v4025_v48 = vmul.f32 %v12251_v22, %v3143_v44  ;;  %v13302_v44 = vld [vmem:[%s14847_s4 + $0x600] sm:$0xff] }
 0x5af   :  { %15034 = vst [vmem:[#allocation28_spill] sm:$0xff] %v13251_v15  ;;  %v13254_v39 = vadd.f32 %v6474_v18, %v6346_v43  ;;  %6384 = vmatmul.bf16.gmra.mxu0 %v4492_v3  ;;  %6632 = vmatmul.bf16.gmra.mxu2 %v4458_v11  ;;  %v3090_v32 = vcvt.s32.f32 %v2226_v50  ;;  %v3161_v43 = vcvt.s32.f32 %v2297_v37  ;;  %v3073_v18 = vcvt.s32.f32 %v2209_v53  ;;  %v8332_v11 = vpop.eup %8331 }
 0x5b0   :  { %6513 = vmatmul.bf16.gmra.mxu1 %v4493_v17  ;;  %6761 = vmatmul.bf16.gmra.mxu3 %v4459_v52  ;;  %v3091_v3 = vcvt.s32.f32 %v2227_v41  ;;  %v4042_v17 = vmul.f32 %v12249_v49, %v3160_v38  ;;  %v3954_v52 = vmul.f32 %v12403_v10, %v3072_v26  ;;  %v8334_v63 = vpop.eup %8333  ;;  %v13279_v53 = vadd.f32 1.0, %v8332_v11  ;;  %v13284_v41 = vld [vmem:[%s14846_s2 + $0x10] sm:$0x3]  ;;  %v13312_v11 = vld [vmem:[%s14847_s4 + $0x608] sm:$0xff] }
 0x5b1   :  { %v3972_v56 = vmul.f32 %v12403_v10, %v3090_v32  ;;  %v4043_v16 = vmul.f32 %v12251_v22, %v3161_v43  ;;  %v3955_v50 = vmul.f32 %v12405_v12, %v3073_v18  ;;  %v13304_v43 = vadd.f32 1.0, %v8334_v63  ;;  %v4811_v63 = vld [vmem:[%s14845_s3 + $0x808] sm:$0xff] }
 0x5b2   :  { %v6593_v14 = vpop.f32.mrf.mxu2  ;;  %v696_v18 = vperm.slane %v13284_v41, 0  ;;  %8335 = vrcp.f32 %v13279_v53  ;;  %vm1241_vm9 = vweird.f32 %v13279_v53 }
 0x5b3   :  { %v6594_v46 = vadd.f32 %v6593_v14, %v13152_v8  ;;  %v6722_v29 = vpop.f32.mrf.mxu3  ;;  %v4024_v8 = vmul.f32 %v12249_v49, %v3142_v13  ;;  %v3973_v14 = vmul.f32 %v12405_v12, %v3091_v3  ;;  %v4511_v26 = vpack.c.bf16 %v4043_v16, %v4025_v48 }
 0x5b4   :  { %v6347_v23 = vpop.f32.mrf.mxu0  ;;  %v2244_v16 = vunpack.c.0.s8 %v13302_v44  ;;  %8337 = vrcp.f32 %v13304_v43  ;;  %vm1256_vm11 = vweird.f32 %v13304_v43 }
 0x5b5   :  { %v13265_v24 = vadd.f32 %v6722_v29, %v6594_v46  ;;  %v6348_v60 = vadd.f32 %v6347_v23, %v15036_v31  ;;  %v6476_v4 = vpop.f32.mrf.mxu1  ;;  %v15038_v23 = vld [vmem:[#allocation4_spill] sm:$0xff]  ;;  %v4510_v31 = vpack.c.bf16 %v4042_v17, %v4024_v8  ;;  %v4477_v32 = vpack.c.bf16 %v3973_v14, %v3955_v50 }
 0x5b6   :  { %v2262_v50 = vunpack.c.1.s8 %v13302_v44 }
 0x5b7   :  { %15035 = vst [vmem:[#allocation29_spill] sm:$0xff] %v13265_v24  ;;  %v13268_v1 = vadd.f32 %v6476_v4, %v6348_v60  ;;  %v4476_v60 = vpack.c.bf16 %v3972_v56, %v3954_v52  ;;  %v13297_v4 = vld [vmem:[%s14847_s4 + $0x688] sm:$0xff]  ;;  %v4810_v56 = vld [vmem:[%s14845_s3 + $0x800] sm:$0xff] }
 0x5b8   :  { %v2315_v52 = vunpack.c.0.s8 %v13297_v4  ;;  %v2333_v48 = vunpack.c.1.s8 %v13297_v4  ;;  %v4970_v14 = vpack.c.bf16 %v4811_v63, %v4810_v56  ;;  %v15039_v63 = vld [vmem:[#allocation9_spill] sm:$0xff]  ;;  %v3126_v9 = vcvt.s32.f32 %v2262_v50 }
 0x5ba   :  { %v6595_v61 = vpop.f32.mrf.mxu2  ;;  %7057 = vmatpush.bf16.msra.mxu2 %v4970_v14  ;;  %v3179_v47 = vcvt.s32.f32 %v2315_v52 }
 0x5bb   :  { %v6596_v25 = vadd.f32 %v6595_v61, %v13190_v7  ;;  %v6724_v37 = vpop.f32.mrf.mxu3  ;;  %v13292_v7 = vld [vmem:[%s14847_s4 + $0x680] sm:$0xff] }
 0x5bc   :  { %v6350_v46 = vpop.f32.mrf.mxu0  ;;  %v2314_v8 = vunpack.c.0.s8 %v13292_v7  ;;  %v2332_v17 = vunpack.c.1.s8 %v13292_v7  ;;  %v4778_v61 = vld [vmem:[%s14845_s3 + $0x700] sm:$0xff] }
 0x5bd   :  { %v13286_v29 = vadd.f32 %v6724_v37, %v6596_v25  ;;  %v6351_v13 = vadd.f32 %v6350_v46, %v15038_v23  ;;  %v6479_v38 = vpop.f32.mrf.mxu1  ;;  %v4779_v25 = vld [vmem:[%s14845_s3 + $0x708] sm:$0xff]  ;;  %v4826_v37 = vld [vmem:[%s14845_s3 + $0x880] sm:$0xff] }
 0x5be   :  { %v4827_v46 = vld [vmem:[%s14845_s3 + $0x888] sm:$0xff]  ;;  %v3178_v15 = vcvt.s32.f32 %v2314_v8  ;;  %v3196_v0 = vcvt.s32.f32 %v2332_v17  ;;  %v3197_v8 = vcvt.s32.f32 %v2333_v48 }
 0x5bf   :  { %15037 = vst [vmem:[#allocation30_spill] sm:$0xff] %v13286_v29  ;;  %v13307_v3 = vadd.f32 %v6479_v38, %v6351_v13  ;;  %6389 = vmatmul.bf16.gmra.mxu0 %v4510_v31  ;;  %6637 = vmatmul.bf16.gmra.mxu2 %v4476_v60  ;;  %v2245_v13 = vunpack.c.0.s8 %v13312_v11  ;;  %v2263_v38 = vunpack.c.1.s8 %v13312_v11  ;;  %v4954_v31 = vpack.c.bf16 %v4779_v25, %v4778_v61  ;;  %v15040_v61 = vld [vmem:[#allocation11_spill] sm:$0xff] }
 0x5c0   :  { %6518 = vmatmul.bf16.gmra.mxu1 %v4511_v26  ;;  %6766 = vmatmul.bf16.gmra.mxu3 %v4477_v32  ;;  %v4978_v60 = vpack.c.bf16 %v4827_v46, %v4826_v37  ;;  %v697_v26 = vperm.slane %v13284_v41, 1  ;;  %v938_v29 = vadd.f32 %v15039_v63, %v696_v18  ;;  %v3108_v46 = vcvt.s32.f32 %v2244_v16  ;;  %v4795_v41 = vld [vmem:[%s14845_s3 + $0x788] sm:$0xff]  ;;  %v13354_v18 = vpop.eup %8335 }
 0x5c1   :  { %6799 = vmatpush.bf16.msrb.mxu0 %v4954_v31  ;;  %v3109_v17 = vcvt.s32.f32 %v2245_v13  ;;  %v3127_v52 = vcvt.s32.f32 %v2263_v38  ;;  %v13359_v50 = vpop.eup %8337  ;;  %v4008_v63 = vmul.f32 %v12403_v10, %v3126_v9  ;;  %v4061_v13 = vmul.f32 %v12251_v22, %v3179_v47 }
 0x5c2   :  { %v6598_v23 = vpop.f32.mrf.mxu2  ;;  %7186 = vmatpush.bf16.msra.mxu3 %v4978_v60  ;;  %v970_v16 = vsub.f32 0.0, %v938_v29  ;;  %v4060_v60 = vmul.f32 %v12249_v49, %v3178_v15  ;;  %v4079_v38 = vmul.f32 %v12251_v22, %v3197_v8  ;;  %v1252_v15 = vmul.f32 %v13359_v50, %v13304_v43 }
 0x5c3   :  { %v6599_v32 = vadd.f32 %v6598_v23, %v13214_v54  ;;  %v6727_v56 = vpop.f32.mrf.mxu3  ;;  %v4794_v54 = vld [vmem:[%s14845_s3 + $0x780] sm:$0xff]  ;;  %v4009_v29 = vmul.f32 %v12405_v12, %v3127_v52  ;;  %vm1242_vm10 = vweird.f32 %v13354_v18  ;;  %vm1257_vm12 = vweird.f32 %v13359_v50 }
 0x5c4   :  { %v6352_v24 = vpop.f32.mrf.mxu0  ;;  %v4962_v14 = vpack.c.bf16 %v4795_v41, %v4794_v54  ;;  %v15041_v23 = vld [vmem:[#allocation10_spill] sm:$0xff]  ;;  %v1004_v9 = vmul.f32 1.442695, %v970_v16  ;;  %v4529_v52 = vpack.c.bf16 %v4079_v38, %v4061_v13  ;;  %v2350_v16 = vunpack.c.2.s8 %v13292_v7  ;;  %vm13411_vm13 = vmor %vm1241_vm9, %vm1242_vm10 }
 0x5c5   :  { %v13345_v45 = vadd.f32 %v6727_v56, %v6599_v32  ;;  %v6353_v25 = vadd.f32 %v6352_v24, %v15040_v61  ;;  %v6481_v37 = vpop.f32.mrf.mxu1  ;;  %v951_v31 = vadd.f32 %v15041_v23, %v697_v26  ;;  %v4078_v32 = vmul.f32 %v12249_v49, %v3196_v0  ;;  %vm13425_vm15 = vmor %vm1256_vm11, %vm1257_vm12 }
 0x5c6   :  { %6928 = vmatpush.bf16.msrb.mxu1 %v4962_v14  ;;  %v3990_v56 = vmul.f32 %v12403_v10, %v3108_v46  ;;  %v3991_v26 = vmul.f32 %v12405_v12, %v3109_v17  ;;  %v1237_v0 = vmul.f32 %v13354_v18, %v13279_v53  ;;  %8339 = vpow2.f32 %v1004_v9 }
 0x5c7   :  { %v13357_v24 = vadd.f32 %v6481_v37, %v6353_v25  ;;  %v971_v61 = vsub.f32 0.0, %v951_v31  ;;  %v4528_v8 = vpack.c.bf16 %v4078_v32, %v4060_v60  ;;  %v2298_v60 = vunpack.c.3.s8 %v13302_v44 }
 0x5c8   :  { %v4494_v17 = vpack.c.bf16 %v4008_v63, %v3990_v56  ;;  %v4495_v14 = vpack.c.bf16 %v4009_v29, %v3991_v26  ;;  %v1238_v31 = vsub.f32 1.0, %v1237_v0  ;;  %v2351_v56 = vunpack.c.2.s8 %v13297_v4 }
 0x5c9   :  { %v1006_v23 = vmul.f32 1.442695, %v971_v61  ;;  %v2369_v63 = vunpack.c.3.s8 %v13297_v4  ;;  %v2281_v13 = vunpack.c.2.s8 %v13312_v11  ;;  %v2299_v38 = vunpack.c.3.s8 %v13312_v11 }
 0x5ca   :  { %v6600_v48 = vpop.f32.mrf.mxu2  ;;  %v1245_v26 = vand.u32 2147483647, %v13279_v53  ;;  %vm7644_vm9 = vcmask 400384  }
 0x5cb   :  { %v6601_v25 = vadd.f32 %v6600_v48, %v13238_v27  ;;  %v6729_v37 = vpop.f32.mrf.mxu3  ;;  %v1253_v48 = vsub.f32 1.0, %v1252_v15  ;;  %8341 = vpow2.f32 %v1006_v23  ;;  %v3214_v15 = vcvt.s32.f32 %v2350_v16 }
 0x5cc   :  { %v6355_v46 = vpop.f32.mrf.mxu0  ;;  %v1260_v23 = vand.u32 2147483647, %v13304_v43  ;;  %v1262_v16 = vand.u32 2147483648, %v13304_v43  ;;  %vm13419_vm14 = vcmp.eq.f32.partialorder %v1245_v26, 8.507059e+37 }
 0x5cd   :  { %v13374_v54 = vadd.f32 %v6729_v37, %v6601_v25  ;;  %v6356_v47 = vadd.f32 %v6355_v46, %v12312_v40  ;;  %v6484_v41 = vpop.f32.mrf.mxu1  ;;  %v2368_v25 = vunpack.c.3.s8 %v13292_v7  ;;  %v2280_v40 = vunpack.c.2.s8 %v13302_v44 }
 0x5ce   :  { %v1247_v7 = vand.u32 2147483648, %v13279_v53  ;;  %v1239_v37 = vmul.f32 %v13354_v18, %v1238_v31  ;;  %v1254_v44 = vmul.f32 %v13359_v50, %v1253_v48  ;;  %vm13430_vm0 = vcmp.eq.f32.partialorder %v1260_v23, 8.507059e+37 }
 0x5cf   :  { %v13377_v27 = vadd.f32 %v6484_v41, %v6356_v47  ;;  %6394 = vmatmul.bf16.gmra.mxu0 %v4528_v8  ;;  %6642 = vmatmul.bf16.gmra.mxu2 %v4494_v17  ;;  %v3232_v9 = vcvt.s32.f32 %v2368_v25  ;;  %v3144_v47 = vcvt.s32.f32 %v2280_v40  ;;  %v3162_v41 = vcvt.s32.f32 %v2298_v60 }
 0x5d0   :  { %6523 = vmatmul.bf16.gmra.mxu1 %v4529_v52  ;;  %6771 = vmatmul.bf16.gmra.mxu3 %v4495_v14  ;;  %v3215_v8 = vcvt.s32.f32 %v2351_v56  ;;  %v3233_v17 = vcvt.s32.f32 %v2369_v63  ;;  %v3145_v52 = vcvt.s32.f32 %v2281_v13  ;;  %v3163_v14 = vcvt.s32.f32 %v2299_v38 }
 0x5d1   :  { %v1240_v48 = vadd.f32 %v13354_v18, %v1239_v37  ;;  %v4096_v40 = vmul.f32 %v12249_v49, %v3214_v15  ;;  %v4114_v60 = vmul.f32 %v12249_v49, %v3232_v9  ;;  %v4044_v56 = vmul.f32 %v12403_v10, %v3162_v41 }
 0x5d2   :  { %v6603_v32 = vpop.f32.mrf.mxu2  ;;  %v4097_v38 = vmul.f32 %v12251_v22, %v3215_v8  ;;  %v4045_v37 = vmul.f32 %v12405_v12, %v3163_v14  ;;  %v1248_v15 = vor.u32 1.1754944e-38, %v1247_v7  ;;  %v1263_v9 = vor.u32 1.1754944e-38, %v1262_v16 }
 0x5d3   :  { %v6604_v29 = vadd.f32 %v6603_v32, %v13254_v39  ;;  %v6732_v61 = vpop.f32.mrf.mxu3  ;;  %v8340_v39 = vpop.eup %8339  ;;  %v4026_v32 = vmul.f32 %v12403_v10, %v3144_v47  ;;  %v4546_v41 = vpack.c.bf16 %v4114_v60, %v4096_v40  ;;  %v1244_v7 = vsel %vm13411_vm13, %v13354_v18, %v1240_v48  ;;  %v13462_v18 = vld [vmem:[%s14847_s4 + $0x698] sm:$0xff] }
 0x5d4   :  { %v6357_v0 = vpop.f32.mrf.mxu0  ;;  %v8342_v25 = vpop.eup %8341  ;;  %v1249_v16 = vsel %vm13419_vm14, %v1248_v15, %v1244_v7  ;;  %v2335_v63 = vunpack.c.1.s8 %v13462_v18 }
 0x5d5   :  { %v13393_v4 = vadd.f32 %v6732_v61, %v6604_v29  ;;  %v6358_v46 = vadd.f32 %v6357_v0, %v12359_v30  ;;  %v6486_v11 = vpop.f32.mrf.mxu1  ;;  %v1255_v30 = vadd.f32 %v13359_v50, %v1254_v44  ;;  %v4115_v29 = vmul.f32 %v12251_v22, %v3233_v17 }
 0x5d6   :  { %v4027_v61 = vmul.f32 %v12405_v12, %v3145_v52  ;;  %v4512_v8 = vpack.c.bf16 %v4044_v56, %v4026_v32  ;;  %v2317_v56 = vunpack.c.0.s8 %v13462_v18 }
 0x5d7   :  { %v13399_v31 = vadd.f32 %v6486_v11, %v6358_v46  ;;  %v13434_v46 = vadd.f32 1.0, %v8340_v39  ;;  %v1259_v17 = vsel %vm13425_vm15, %v13359_v50, %v1255_v30  ;;  %v4547_v52 = vpack.c.bf16 %v4115_v29, %v4097_v38  ;;  %v13467_v50 = vld [vmem:[%s14847_s4 + $0x78] sm:$0xff] }
 0x5d8   :  { %v4513_v14 = vpack.c.bf16 %v4045_v37, %v4027_v61  ;;  %v13455_v39 = vadd.f32 1.0, %v8342_v25  ;;  %v1264_v25 = vsel %vm13430_vm0, %v1263_v9, %v1259_v17  ;;  %v1545_v38 = vunpack.c.1.s8 %v13467_v50 }
 0x5d9   :  { %8343 = vrcp.f32 %v13434_v46  ;;  %v13484_v37 = vperm.slane %v1249_v16, 0  ;;  %v13486_v49 = vperm.slane %v1264_v25, 0  ;;  %vm1271_vm1 = vweird.f32 %v13434_v46 }
 0x5da   :  { %v6605_v13 = vpop.f32.mrf.mxu2  ;;  %8345 = vrcp.f32 %v13455_v39  ;;  %v2409_v7 = vcvt.s32.f32 %v1545_v38  ;;  %vm1286_vm3 = vweird.f32 %v13455_v39 }
 0x5db   :  { %v6606_v44 = vadd.f32 %v6605_v13, %v13268_v1  ;;  %v6734_v0 = vpop.f32.mrf.mxu3  ;;  %v13442_v1 = vld [vmem:[%s14847_s4 + $0x690] sm:$0xff]  ;;  %v1527_v13 = vunpack.c.0.s8 %v13467_v50 }
 0x5dc   :  { %v6360_v26 = vpop.f32.mrf.mxu0  ;;  %v2316_v48 = vunpack.c.0.s8 %v13442_v1  ;;  %v2334_v30 = vunpack.c.1.s8 %v13442_v1 }
 0x5dd   :  { %v13436_v11 = vadd.f32 %v6734_v0, %v6606_v44  ;;  %v6361_v43 = vadd.f32 %v6360_v26, %v12407_v33  ;;  %v6489_v47 = vpop.f32.mrf.mxu1  ;;  %v13453_v33 = vld [vmem:[%s14847_s4 + $0x70] sm:$0xff] }
 0x5de   :  { %v1526_v40 = vunpack.c.0.s8 %v13453_v33  ;;  %v1544_v60 = vunpack.c.1.s8 %v13453_v33  ;;  %v3180_v44 = vcvt.s32.f32 %v2316_v48  ;;  %v3198_v0 = vcvt.s32.f32 %v2334_v30 }
 0x5df   :  { %v13457_v23 = vadd.f32 %v6489_v47, %v6361_v43  ;;  %6399 = vmatmul.bf16.gmra.mxu0 %v4546_v41  ;;  %6647 = vmatmul.bf16.gmra.mxu2 %v4512_v8  ;;  %v13491_v47 = vpop.eup %8343  ;;  %v3181_v41 = vcvt.s32.f32 %v2317_v56  ;;  %v3199_v8 = vcvt.s32.f32 %v2335_v63 }
 0x5e0   :  { %6528 = vmatmul.bf16.gmra.mxu1 %v4547_v52  ;;  %6776 = vmatmul.bf16.gmra.mxu3 %v4513_v14  ;;  %v2390_v26 = vcvt.s32.f32 %v1526_v40  ;;  %v2408_v43 = vcvt.s32.f32 %v1544_v60  ;;  %v13495_v52 = vpop.eup %8345  ;;  %v4062_v14 = vmul.f32 %v12403_v10, %v3180_v44  ;;  %v4080_v48 = vmul.f32 %v12403_v10, %v3198_v0 }
 0x5e1   :  { %v4063_v25 = vmul.f32 %v12405_v12, %v3181_v41  ;;  %v4081_v40 = vmul.f32 %v12405_v12, %v3199_v8  ;;  %v1282_v38 = vmul.f32 %v13495_v52, %v13455_v39  ;;  %vm1272_vm2 = vweird.f32 %v13491_v47 }
 0x5e2   :  { %v6608_v32 = vpop.f32.mrf.mxu2  ;;  %v3272_v30 = vmul.f32 %v13484_v37, %v2390_v26  ;;  %vm1287_vm4 = vweird.f32 %v13495_v52  ;;  %vm13545_vm5 = vmor %vm1271_vm1, %vm1272_vm2 }
 0x5e3   :  { %v6609_v29 = vadd.f32 %v6608_v32, %v13307_v3  ;;  %v6737_v61 = vpop.f32.mrf.mxu3  ;;  %v2391_v3 = vcvt.s32.f32 %v1527_v13  ;;  %v3291_v32 = vmul.f32 %v13486_v49, %v2409_v7  ;;  %v1267_v13 = vmul.f32 %v13491_v47, %v13434_v46  ;;  %vm13559_vm6 = vmor %vm1286_vm3, %vm1287_vm4 }
 0x5e4   :  { %v6362_v53 = vpop.f32.mrf.mxu0  ;;  %v4531_v26 = vpack.c.bf16 %v4081_v40, %v4063_v25  ;;  %v1283_v8 = vsub.f32 1.0, %v1282_v38  ;;  %v2370_v7 = vunpack.c.3.s8 %v13442_v1  ;;  %v1581_v25 = vunpack.c.3.s8 %v13467_v50 }
 0x5e5   :  { %v13488_v15 = vadd.f32 %v6737_v61, %v6609_v29  ;;  %v6363_v22 = vadd.f32 %v6362_v53, %v12421_v58  ;;  %v6491_v9 = vpop.f32.mrf.mxu1  ;;  %v3290_v58 = vmul.f32 %v13484_v37, %v2408_v43  ;;  %v3273_v60 = vmul.f32 %v13486_v49, %v2391_v3  ;;  %v15050_v53 = vld [vmem:[#allocation2_spill] sm:$0xff] }
 0x5e6   :  { %v2352_v3 = vunpack.c.2.s8 %v13442_v1  ;;  %v1275_v40 = vand.u32 2147483647, %v13434_v46 }
 0x5e7   :  { %v13493_v17 = vadd.f32 %v6491_v9, %v6363_v22  ;;  %v4530_v22 = vpack.c.bf16 %v4080_v48, %v4062_v14  ;;  %v4136_v9 = vpack.c.bf16 %v3290_v58, %v3272_v30  ;;  %v4137_v43 = vpack.c.bf16 %v3291_v32, %v3273_v60 }
 0x5e8   :  { %v2353_v48 = vunpack.c.2.s8 %v13462_v18  ;;  %v2371_v30 = vunpack.c.3.s8 %v13462_v18  ;;  %v1563_v58 = vunpack.c.2.s8 %v13467_v50  ;;  %v1284_v32 = vmul.f32 %v13495_v52, %v1283_v8 }
 0x5e9   :  { %v3234_v18 = vcvt.s32.f32 %v2370_v7  ;;  %vm13567_vm7 = vcmp.eq.f32.partialorder %v1275_v40, 8.507059e+37 }
 0x5ea   :  { %v6610_v16 = vpop.f32.mrf.mxu2  ;;  %v1285_v7 = vadd.f32 %v13495_v52, %v1284_v32 }
 0x5eb   :  { %v6611_v56 = vadd.f32 %v6610_v16, %v13357_v24  ;;  %v6739_v63 = vpop.f32.mrf.mxu3  ;;  %v1268_v24 = vsub.f32 1.0, %v1267_v13  ;;  %v1562_v16 = vunpack.c.2.s8 %v13453_v33  ;;  %v3216_v13 = vcvt.s32.f32 %v2352_v3 }
 0x5ec   :  { %v6365_v29 = vpop.f32.mrf.mxu0  ;;  %v1289_v40 = vsel %vm13559_vm6, %v13495_v52, %v1285_v7 }
 0x5ed   :  { %v13510_v61 = vadd.f32 %v6739_v63, %v6611_v56  ;;  %v6366_v44 = vadd.f32 %v6365_v29, %v15050_v53  ;;  %v6494_v0 = vpop.f32.mrf.mxu1  ;;  %v1580_v56 = vunpack.c.3.s8 %v13453_v33  ;;  %v1269_v33 = vmul.f32 %v13491_v47, %v1268_v24  ;;  %v15051_v29 = vld [vmem:[#allocation12_spill] sm:$0xff] }
 0x5ee   :  { %v1290_v24 = vand.u32 2147483647, %v13455_v39 }
 0x5ef   :  { %v13513_v41 = vadd.f32 %v6494_v0, %v6366_v44  ;;  %6652 = vmatmul.bf16.gmra.mxu2 %v4530_v22  ;;  %6800 = vmatmul.bf16.vlgmr.msrb.gmra.mxu0 %v4136_v9  ;;  %v2426_v44 = vcvt.s32.f32 %v1562_v16  ;;  %v2444_v0 = vcvt.s32.f32 %v1580_v56  ;;  %v3217_v22 = vcvt.s32.f32 %v2353_v48 }
 0x5f0   :  { %6781 = vmatmul.bf16.gmra.mxu3 %v4531_v26  ;;  %6929 = vmatmul.bf16.vlgmr.msrb.gmra.mxu1 %v4137_v43  ;;  %v3235_v9 = vcvt.s32.f32 %v2371_v30  ;;  %v2427_v26 = vcvt.s32.f32 %v1563_v58  ;;  %v2445_v43 = vcvt.s32.f32 %v1581_v25  ;;  %v1270_v3 = vadd.f32 %v13491_v47, %v1269_v33 }
 0x5f1   :  { %v1292_v16 = vand.u32 2147483648, %v13455_v39  ;;  %v4116_v48 = vmul.f32 %v12403_v10, %v3234_v18  ;;  %v3308_v30 = vmul.f32 %v13484_v37, %v2426_v44  ;;  %v3326_v58 = vmul.f32 %v13484_v37, %v2444_v0 }
 0x5f2   :  { %v6613_v14 = vpop.f32.mrf.mxu2  ;;  %v3309_v33 = vmul.f32 %v13486_v49, %v2427_v26  ;;  %vm1291_vm8 = vcmp.eq.f32.partialorder %v1290_v24, 8.507059e+37 }
 0x5f3   :  { %v6614_v1 = vadd.f32 %v6613_v14, %v13377_v27  ;;  %v6742_v60 = vpop.f32.mrf.mxu3  ;;  %v1277_v27 = vand.u32 2147483648, %v13434_v46  ;;  %v4098_v14 = vmul.f32 %v12403_v10, %v3216_v13  ;;  %v3327_v46 = vmul.f32 %v13486_v49, %v2445_v43  ;;  %v13592_v43 = vld [vmem:[%s14847_s4 + $0x108] sm:$0xff] }
 0x5f4   :  { %v6367_v63 = vpop.f32.mrf.mxu0  ;;  %v1274_v13 = vsel %vm13545_vm5, %v13491_v47, %v1270_v3  ;;  %v13582_v47 = vld [vmem:[%s14847_s4 + $0x80] sm:$0xff] }
 0x5f5   :  { %v13529_v38 = vadd.f32 %v6742_v60, %v6614_v1  ;;  %v6368_v50 = vadd.f32 %v6367_v63, %v15051_v29  ;;  %v6496_v53 = vpop.f32.mrf.mxu1  ;;  %v4099_v1 = vmul.f32 %v12405_v12, %v3217_v22  ;;  %v4117_v60 = vmul.f32 %v12405_v12, %v3235_v9 }
 0x5f6   :  { %v1278_v12 = vor.u32 1.1754944e-38, %v1277_v27  ;;  %v1293_v29 = vor.u32 1.1754944e-38, %v1292_v16  ;;  %v4548_v0 = vpack.c.bf16 %v4116_v48, %v4098_v14  ;;  %v4154_v22 = vpack.c.bf16 %v3326_v58, %v3308_v30  ;;  %v13597_v27 = vld [vmem:[%s14847_s4 + $0x88] sm:$0xff] }
 0x5f7   :  { %v13535_v8 = vadd.f32 %v6496_v53, %v6368_v50  ;;  %v4549_v9 = vpack.c.bf16 %v4117_v60, %v4099_v1  ;;  %v1528_v7 = vunpack.c.0.s8 %v13582_v47  ;;  %v1546_v56 = vunpack.c.1.s8 %v13582_v47 }
 0x5f8   :  { %v1279_v52 = vsel %vm13567_vm7, %v1278_v12, %v1274_v13  ;;  %v1294_v16 = vsel %vm1291_vm8, %v1293_v29, %v1289_v40  ;;  %v1599_v48 = vunpack.c.0.s8 %v13592_v43  ;;  %v1617_v30 = vunpack.c.1.s8 %v13592_v43 }
 0x5f9   :  { %v1529_v58 = vunpack.c.0.s8 %v13597_v27  ;;  %v13609_v1 = vperm.slane %v1279_v52, 0  ;;  %v2392_v13 = vcvt.s32.f32 %v1528_v7  ;;  %v8352_v40 = vmov 0  }
 0x5fa   :  { %v6615_v25 = vpop.f32.mrf.mxu2  ;;  %8272 = vset.pattern.permute.xlu0 %v8352_v40  ;;  %8273 = vset.pattern.permute.xlu1 %v8352_v40 }
 0x5fb   :  { %v6616_v10 = vadd.f32 %v6615_v25, %v13399_v31  ;;  %v6744_v63 = vpop.f32.mrf.mxu3  ;;  %v13577_v31 = vld [vmem:[%s14847_s4 + $0x100] sm:$0xff]  ;;  %v1547_v25 = vunpack.c.1.s8 %v13597_v27  ;;  %8274 = vset.pattern.permute.xlu2 %v8352_v40  ;;  %v3274_v52 = vmul.f32 %v13609_v1, %v2392_v13  ;;  %v1583_v40 = vunpack.c.3.s8 %v13597_v27 }
 0x5fc   :  { %v6370_v50 = vpop.f32.mrf.mxu0  ;;  %v1598_v24 = vunpack.c.0.s8 %v13577_v31  ;;  %v1616_v3 = vunpack.c.1.s8 %v13577_v31 }
 0x5fd   :  { %v13571_v53 = vadd.f32 %v6744_v63, %v6616_v10  ;;  %v6371_v39 = vadd.f32 %v6370_v50, %v12501_v35  ;;  %v6499_v44 = vpop.f32.mrf.mxu1  ;;  %v4155_v35 = vpack.c.bf16 %v3327_v46, %v3309_v33  ;;  %v13612_v46 = vperm.slane %v1294_v16, 0 }
 0x5fe   :  { %v2462_v10 = vcvt.s32.f32 %v1598_v24  ;;  %v2480_v63 = vcvt.s32.f32 %v1616_v3  ;;  %v2410_v50 = vcvt.s32.f32 %v1546_v56 }
 0x5ff   :  { %v13587_v26 = vadd.f32 %v6499_v44, %v6371_v39  ;;  %6657 = vmatmul.bf16.gmra.mxu2 %v4548_v0  ;;  %6805 = vmatmul.bf16.gmra.mxu0 %v4154_v22  ;;  %v7308_v39 = vld [vmem:[%s14848_s5] sm:$0xff]  ;;  %v2463_v44 = vcvt.s32.f32 %v1599_v48  ;;  %v2481_v0 = vcvt.s32.f32 %v1617_v30  ;;  %v2411_v22 = vcvt.s32.f32 %v1547_v25 }
 0x600   :  { %6786 = vmatmul.bf16.gmra.mxu3 %v4549_v9  ;;  %6934 = vmatmul.bf16.gmra.mxu1 %v4155_v35  ;;  %v3344_v35 = vmul.f32 %v13484_v37, %v2462_v10  ;;  %v3292_v24 = vmul.f32 %v13609_v1, %v2410_v50  ;;  %v1652_v50 = vunpack.c.3.s8 %v13577_v31 }
 0x601   :  { %7358 = vperm.xlu0 %8272, %v7308_v39   ;;  %v3345_v7 = vmul.f32 %v13486_v49, %v2463_v44  ;;  %v3363_v16 = vmul.f32 %v13486_v49, %v2481_v0  ;;  %v1582_v39 = vunpack.c.3.s8 %v13582_v47  ;;  %v1635_v0 = vunpack.c.2.s8 %v13592_v43 }
 0x602   :  { %v6618_v14 = vpop.f32.mrf.mxu2  ;;  %v4138_v10 = vpack.c.bf16 %v3292_v24, %v3274_v52 }
 0x603   :  { %v6619_v60 = vadd.f32 %v6618_v14, %v13457_v23  ;;  %v6747_v33 = vpop.f32.mrf.mxu3  ;;  %v2393_v23 = vcvt.s32.f32 %v1529_v58  ;;  %v3293_v14 = vmul.f32 %v13612_v46, %v2411_v22  ;;  %v1565_v22 = vunpack.c.2.s8 %v13597_v27 }
 0x604   :  { %v6372_v32 = vpop.f32.mrf.mxu0 }
 0x605   :  { %v13614_v18 = vadd.f32 %v6747_v33, %v6619_v60  ;;  %v6373_v12 = vadd.f32 %v6372_v32, %v12521_v28  ;;  %v6501_v29 = vpop.f32.mrf.mxu1  ;;  %v3362_v28 = vmul.f32 %v13484_v37, %v2480_v63  ;;  %v3275_v56 = vmul.f32 %v13612_v46, %v2393_v23 }
 0x606   :  { %v4173_v63 = vpack.c.bf16 %v3363_v16, %v3345_v7  ;;  %v1653_v23 = vunpack.c.3.s8 %v13592_v43  ;;  %v7310_v43 = vld [vmem:[%s14848_s5 + $0x10] sm:$0xff]  ;;  %v2429_v27 = vcvt.s32.f32 %v1565_v22 }
 0x607   :  { %v13620_v9 = vadd.f32 %v6501_v29, %v6373_v12  ;;  %v4172_v32 = vpack.c.bf16 %v3362_v28, %v3344_v35  ;;  %v4139_v13 = vpack.c.bf16 %v3293_v14, %v3275_v56  ;;  %v7309_v12 = vld [vmem:[%s14848_s5 + $0x8] sm:$0xff]  ;;  %v2446_v56 = vcvt.s32.f32 %v1582_v39  ;;  %7368 = vperm.xlu1 %8273, %v7310_v43  }
 0x608   :  { %v2499_v14 = vcvt.s32.f32 %v1635_v0 }
 0x609   :  { %7363 = vperm.xlu0 %8272, %v7309_v12  }
 0x60a   :  { %v6620_v3 = vpop.f32.mrf.mxu2 }
 0x60b   :  { %v6621_v48 = vadd.f32 %v6620_v3, %v13493_v17  ;;  %v6749_v30 = vpop.f32.mrf.mxu3  ;;  %v1634_v17 = vunpack.c.2.s8 %v13577_v31  ;;  %v2516_v31 = vcvt.s32.f32 %v1652_v50 }
 0x60c   :  { %v6375_v58 = vpop.f32.mrf.mxu0 }
 0x60d   :  { %v13631_v25 = vadd.f32 %v6749_v30, %v6621_v48  ;;  %v6376_v60 = vadd.f32 %v6375_v58, %v12535_v2  ;;  %v6504_v33 = vpop.f32.mrf.mxu1  ;;  %v1564_v2 = vunpack.c.2.s8 %v13582_v47  ;;  %v2498_v24 = vcvt.s32.f32 %v1634_v17 }
 0x60e   :  { %v2517_v48 = vcvt.s32.f32 %v1653_v23  ;;  %v2447_v30 = vcvt.s32.f32 %v1583_v40  ;;  %v13671_v40 = vld [vmem:[%s14847_s4 + $0x190] sm:$0xff] }
 0x60f   :  { %v13637_v29 = vadd.f32 %v6504_v33, %v6376_v60  ;;  %6810 = vmatmul.bf16.gmra.mxu0 %v4172_v32  ;;  %7058 = vmatmul.bf16.vlgmr.msra.gmra.mxu2 %v4138_v10  ;;  %v2428_v16 = vcvt.s32.f32 %v1564_v2  ;;  %v3380_v58 = vmul.f32 %v13484_v37, %v2498_v24  ;;  %v3398_v60 = vmul.f32 %v13484_v37, %v2516_v31  ;;  %v13686_v24 = vld [vmem:[%s14847_s4 + $0x198] sm:$0xff] }
 0x610   :  { %6939 = vmatmul.bf16.gmra.mxu1 %v4173_v63  ;;  %7187 = vmatmul.bf16.vlgmr.msra.gmra.mxu3 %v4139_v13  ;;  %v3328_v33 = vmul.f32 %v13609_v1, %v2446_v56  ;;  %v3381_v10 = vmul.f32 %v13486_v49, %v2499_v14  ;;  %v3399_v63 = vmul.f32 %v13486_v49, %v2517_v48  ;;  %v13691_v31 = vld [vmem:[%s14847_s4 + $0x118] sm:$0xff]  ;;  %v1671_v14 = vunpack.c.0.s8 %v13686_v24 }
 0x611   :  { %v3311_v13 = vmul.f32 %v13612_v46, %v2429_v27  ;;  %v3329_v12 = vmul.f32 %v13612_v46, %v2447_v30  ;;  %v4190_v23 = vpack.c.bf16 %v3398_v60, %v3380_v58  ;;  %v1689_v48 = vunpack.c.1.s8 %v13686_v24 }
 0x612   :  { %v6623_v44 = vpop.f32.mrf.mxu2  ;;  %v1601_v27 = vunpack.c.0.s8 %v13691_v31  ;;  %v1619_v30 = vunpack.c.1.s8 %v13691_v31 }
 0x613   :  { %v6624_v35 = vadd.f32 %v6623_v44, %v13513_v41  ;;  %v6752_v28 = vpop.f32.mrf.mxu3 }
 0x614   :  { %v6377_v52 = vpop.f32.mrf.mxu0 }
 0x615   :  { %v13648_v3 = vadd.f32 %v6752_v28, %v6624_v35  ;;  %v6378_v47 = vadd.f32 %v6377_v52, %v12549_v34  ;;  %v6506_v7 = vpop.f32.mrf.mxu1  ;;  %v3310_v34 = vmul.f32 %v13609_v1, %v2428_v16  ;;  %v7311_v35 = vld [vmem:[%s14848_s5 + $0x18] sm:$0xff]  ;;  %v4191_v28 = vpack.c.bf16 %v3399_v63, %v3381_v10  ;;  %v13679_v52 = vld [vmem:[%s14847_s4 + $0x110] sm:$0xff] }
 0x616   :  { %7373 = vperm.xlu1 %8273, %v7311_v35   ;;  %v1600_v16 = vunpack.c.0.s8 %v13679_v52  ;;  %v1618_v56 = vunpack.c.1.s8 %v13679_v52  ;;  %v15058_v63 = vld [vmem:[#allocation5_spill] sm:$0xff] }
 0x617   :  { %v13654_v41 = vadd.f32 %v6506_v7, %v6378_v47  ;;  %v4156_v22 = vpack.c.bf16 %v3328_v33, %v3310_v34  ;;  %v1670_v47 = vunpack.c.0.s8 %v13671_v40  ;;  %v1688_v7 = vunpack.c.1.s8 %v13671_v40 }
 0x619   :  { %v2534_v33 = vcvt.s32.f32 %v1670_v47 }
 0x61a   :  { %v6625_v32 = vpop.f32.mrf.mxu2 }
 0x61b   :  { %v6626_v17 = vadd.f32 %v6625_v32, %v13535_v8  ;;  %v6754_v50 = vpop.f32.mrf.mxu3  ;;  %v4157_v8 = vpack.c.bf16 %v3329_v12, %v3311_v13  ;;  %v2552_v32 = vcvt.s32.f32 %v1688_v7  ;;  %v3416_v35 = vmul.f32 %v13484_v37, %v2534_v33 }
 0x61c   :  { %v6380_v2 = vpop.f32.mrf.mxu0 }
 0x61d   :  { %v13665_v39 = vadd.f32 %v6754_v50, %v6626_v17  ;;  %v6381_v44 = vadd.f32 %v6380_v2, %v12583_v59  ;;  %v6509_v0 = vpop.f32.mrf.mxu1  ;;  %v2464_v17 = vcvt.s32.f32 %v1600_v16  ;;  %v2482_v50 = vcvt.s32.f32 %v1618_v56 }
 0x61e   :  { %v2535_v2 = vcvt.s32.f32 %v1671_v14 }
 0x61f   :  { %v13681_v59 = vadd.f32 %v6509_v0, %v6381_v44  ;;  %6815 = vmatmul.bf16.gmra.mxu0 %v4190_v23  ;;  %7063 = vmatmul.bf16.gmra.mxu2 %v4156_v22  ;;  %v2553_v44 = vcvt.s32.f32 %v1689_v48  ;;  %v2465_v0 = vcvt.s32.f32 %v1601_v27  ;;  %v2483_v23 = vcvt.s32.f32 %v1619_v30 }
 0x620   :  { %6944 = vmatmul.bf16.gmra.mxu1 %v4191_v28  ;;  %7192 = vmatmul.bf16.gmra.mxu3 %v4157_v8  ;;  %v3346_v28 = vmul.f32 %v13609_v1, %v2464_v17  ;;  %v3364_v8 = vmul.f32 %v13609_v1, %v2482_v50  ;;  %v3417_v7 = vmul.f32 %v13486_v49, %v2535_v2  ;;  %v1636_v17 = vunpack.c.2.s8 %v13679_v52 }
 0x621   :  { %v3435_v16 = vmul.f32 %v13486_v49, %v2553_v44  ;;  %v3347_v56 = vmul.f32 %v13612_v46, %v2465_v0  ;;  %v1654_v50 = vunpack.c.3.s8 %v13679_v52  ;;  %v1707_v2 = vunpack.c.2.s8 %v13686_v24 }
 0x622   :  { %v6628_v43 = vpop.f32.mrf.mxu2  ;;  %v4174_v33 = vpack.c.bf16 %v3364_v8, %v3346_v28  ;;  %v1725_v44 = vunpack.c.3.s8 %v13686_v24  ;;  %v1637_v0 = vunpack.c.2.s8 %v13691_v31  ;;  %v7314_v24 = vld [vmem:[%s14848_s5 + $0x30] sm:$0xff] }
 0x623   :  { %v6629_v58 = vadd.f32 %v6628_v43, %v13587_v26  ;;  %v6757_v60 = vpop.f32.mrf.mxu3  ;;  %v3434_v26 = vmul.f32 %v13484_v37, %v2552_v32  ;;  %v3365_v43 = vmul.f32 %v13612_v46, %v2483_v23  ;;  %v4209_v32 = vpack.c.bf16 %v3435_v16, %v3417_v7  ;;  %v15059_v7 = vld [vmem:[#allocation6_spill] sm:$0xff]  ;;  %7388 = vperm.xlu0 %8272, %v7314_v24  }
 0x624   :  { %v6382_v34 = vpop.f32.mrf.mxu0  ;;  %v1655_v23 = vunpack.c.3.s8 %v13691_v31  ;;  %v2501_v31 = vcvt.s32.f32 %v1637_v0 }
 0x625   :  { %v13702_v10 = vadd.f32 %v6757_v60, %v6629_v58  ;;  %v6383_v13 = vadd.f32 %v6382_v34, %v15058_v63  ;;  %v6511_v12 = vpop.f32.mrf.mxu1  ;;  %v4208_v34 = vpack.c.bf16 %v3434_v26, %v3416_v35  ;;  %v4175_v63 = vpack.c.bf16 %v3365_v43, %v3347_v56 }
 0x626   :  { %v2500_v56 = vcvt.s32.f32 %v1636_v17  ;;  %v2518_v43 = vcvt.s32.f32 %v1654_v50 }
 0x627   :  { %v13705_v22 = vadd.f32 %v6511_v12, %v6383_v13  ;;  %v1706_v12 = vunpack.c.2.s8 %v13671_v40 }
 0x629   :  { %v2570_v8 = vcvt.s32.f32 %v1706_v12 }
 0x62a   :  { %v6630_v47 = vpop.f32.mrf.mxu2 }
 0x62b   :  { %v6631_v14 = vadd.f32 %v6630_v47, %v13620_v9  ;;  %v6759_v48 = vpop.f32.mrf.mxu3  ;;  %v1724_v9 = vunpack.c.3.s8 %v13671_v40 }
 0x62c   :  { %v6385_v27 = vpop.f32.mrf.mxu0 }
 0x62d   :  { %v13716_v30 = vadd.f32 %v6759_v48, %v6631_v14  ;;  %v6386_v58 = vadd.f32 %v6385_v27, %v12629_v57  ;;  %v6514_v60 = vpop.f32.mrf.mxu1  ;;  %v2588_v47 = vcvt.s32.f32 %v1724_v9  ;;  %v2571_v14 = vcvt.s32.f32 %v1707_v2 }
 0x62e   :  { %v2589_v48 = vcvt.s32.f32 %v1725_v44  ;;  %v2519_v27 = vcvt.s32.f32 %v1655_v23  ;;  %v3383_v9 = vmul.f32 %v13612_v46, %v2501_v31 }
 0x62f   :  { %v13719_v13 = vadd.f32 %v6514_v60, %v6386_v58  ;;  %6820 = vmatmul.bf16.gmra.mxu0 %v4208_v34  ;;  %7068 = vmatmul.bf16.gmra.mxu2 %v4174_v33  ;;  %v3452_v58 = vmul.f32 %v13484_v37, %v2570_v8  ;;  %v3470_v60 = vmul.f32 %v13484_v37, %v2588_v47  ;;  %v7312_v8 = vld [vmem:[%s14848_s5 + $0x20] sm:$0xff] }
 0x630   :  { %6949 = vmatmul.bf16.gmra.mxu1 %v4209_v32  ;;  %7197 = vmatmul.bf16.gmra.mxu3 %v4175_v63  ;;  %v3382_v34 = vmul.f32 %v13609_v1, %v2500_v56  ;;  %v3400_v33 = vmul.f32 %v13609_v1, %v2518_v43  ;;  %v3453_v63 = vmul.f32 %v13486_v49, %v2571_v14  ;;  %v13776_v56 = vld [vmem:[%s14847_s4 + $0x1a8] sm:$0xff] }
 0x631   :  { %v3471_v12 = vmul.f32 %v13486_v49, %v2589_v48  ;;  %v3401_v17 = vmul.f32 %v13612_v46, %v2519_v27  ;;  %7378 = vperm.xlu2 %8274, %v7312_v8  }
 0x632   :  { %v6633_v57 = vpop.f32.mrf.mxu2 }
 0x633   :  { %v6634_v35 = vadd.f32 %v6633_v57, %v13637_v29  ;;  %v6762_v26 = vpop.f32.mrf.mxu3  ;;  %v4227_v47 = vpack.c.bf16 %v3471_v12, %v3453_v63 }
 0x634   :  { %v6387_v28 = vpop.f32.mrf.mxu0 }
 0x635   :  { %v13730_v40 = vadd.f32 %v6762_v26, %v6634_v35  ;;  %v6388_v16 = vadd.f32 %v6387_v28, %v15059_v7  ;;  %v6516_v52 = vpop.f32.mrf.mxu1  ;;  %v4226_v35 = vpack.c.bf16 %v3470_v60, %v3452_v58  ;;  %v4192_v26 = vpack.c.bf16 %v3400_v33, %v3382_v34  ;;  %v13753_v28 = vld [vmem:[%s14847_s4 + $0x220] sm:$0xff] }
 0x636   :  { %v4193_v7 = vpack.c.bf16 %v3401_v17, %v3383_v9  ;;  %v1742_v43 = vunpack.c.0.s8 %v13753_v28  ;;  %v1760_v24 = vunpack.c.1.s8 %v13753_v28  ;;  %v1673_v60 = vunpack.c.0.s8 %v13776_v56 }
 0x637   :  { %v13736_v29 = vadd.f32 %v6516_v52, %v6388_v16  ;;  %v13771_v52 = vld [vmem:[%s14847_s4 + $0x228] sm:$0xff]  ;;  %v1691_v34 = vunpack.c.1.s8 %v13776_v56 }
 0x638   :  { %v1743_v27 = vunpack.c.0.s8 %v13771_v52  ;;  %v1761_v58 = vunpack.c.1.s8 %v13771_v52  ;;  %v2606_v12 = vcvt.s32.f32 %v1742_v43  ;;  %v2624_v9 = vcvt.s32.f32 %v1760_v24 }
 0x639   :  { %v2537_v8 = vcvt.s32.f32 %v1673_v60 }
 0x63a   :  { %v6635_v32 = vpop.f32.mrf.mxu2 }
 0x63b   :  { %v6636_v50 = vadd.f32 %v6635_v32, %v13654_v41  ;;  %v6764_v57 = vpop.f32.mrf.mxu3  ;;  %v7315_v41 = vld [vmem:[%s14848_s5 + $0x38] sm:$0xff] }
 0x63c   :  { %v6390_v2 = vpop.f32.mrf.mxu0  ;;  %7393 = vperm.xlu1 %8273, %v7315_v41   ;;  %v2555_v41 = vcvt.s32.f32 %v1691_v34 }
 0x63d   :  { %v13747_v44 = vadd.f32 %v6764_v57, %v6636_v50  ;;  %v6391_v0 = vadd.f32 %v6390_v2, %v12683_v42  ;;  %v6519_v23 = vpop.f32.mrf.mxu1  ;;  %v13764_v42 = vld [vmem:[%s14847_s4 + $0x1a0] sm:$0xff] }
 0x63e   :  { %v1672_v14 = vunpack.c.0.s8 %v13764_v42  ;;  %v1690_v48 = vunpack.c.1.s8 %v13764_v42 }
 0x63f   :  { %v13766_v16 = vadd.f32 %v6519_v23, %v6391_v0  ;;  %6825 = vmatmul.bf16.gmra.mxu0 %v4226_v35  ;;  %7073 = vmatmul.bf16.gmra.mxu2 %v4192_v26  ;;  %v7313_v23 = vld [vmem:[%s14848_s5 + $0x28] sm:$0xff]  ;;  %v2607_v35 = vcvt.s32.f32 %v1743_v27  ;;  %v2625_v26 = vcvt.s32.f32 %v1761_v58  ;;  %v3437_v27 = vmul.f32 %v13612_v46, %v2555_v41 }
 0x640   :  { %6954 = vmatmul.bf16.gmra.mxu1 %v4227_v47  ;;  %7202 = vmatmul.bf16.gmra.mxu3 %v4193_v7  ;;  %v2536_v2 = vcvt.s32.f32 %v1672_v14  ;;  %v2554_v0 = vcvt.s32.f32 %v1690_v48  ;;  %v3488_v47 = vmul.f32 %v13484_v37, %v2606_v12  ;;  %v3506_v7 = vmul.f32 %v13484_v37, %v2624_v9 }
 0x641   :  { %7383 = vperm.xlu2 %8274, %v7313_v23   ;;  %v3489_v14 = vmul.f32 %v13486_v49, %v2607_v35  ;;  %v3507_v48 = vmul.f32 %v13486_v49, %v2625_v26  ;;  %v1796_v35 = vunpack.c.3.s8 %v13753_v28  ;;  %v1708_v26 = vunpack.c.2.s8 %v13764_v42 }
 0x642   :  { %v6638_v31 = vpop.f32.mrf.mxu2  ;;  %v3436_v43 = vmul.f32 %v13609_v1, %v2554_v0  ;;  %v4244_v9 = vpack.c.bf16 %v3506_v7, %v3488_v47  ;;  %v1779_v47 = vunpack.c.2.s8 %v13771_v52  ;;  %v1797_v7 = vunpack.c.3.s8 %v13771_v52  ;;  %v7318_v52 = vld [vmem:[%s14848_s5 + $0x50] sm:$0xff] }
 0x643   :  { %v6639_v33 = vadd.f32 %v6638_v31, %v13681_v59  ;;  %v6767_v32 = vpop.f32.mrf.mxu3  ;;  %v3419_v31 = vmul.f32 %v13612_v46, %v2537_v8  ;;  %v1726_v8 = vunpack.c.3.s8 %v13764_v42 }
 0x644   :  { %v6392_v63 = vpop.f32.mrf.mxu0  ;;  %7408 = vperm.xlu1 %8273, %v7318_v52  }
 0x645   :  { %v13787_v17 = vadd.f32 %v6767_v32, %v6639_v33  ;;  %v6393_v50 = vadd.f32 %v6392_v63, %v12697_v20  ;;  %v6521_v57 = vpop.f32.mrf.mxu1  ;;  %v3418_v20 = vmul.f32 %v13609_v1, %v2536_v2  ;;  %v15060_v32 = vld [vmem:[#allocation13_spill] sm:$0xff]  ;;  %v4245_v2 = vpack.c.bf16 %v3507_v48, %v3489_v14 }
 0x646   :  { %v4211_v0 = vpack.c.bf16 %v3437_v27, %v3419_v31  ;;  %v2660_v27 = vcvt.s32.f32 %v1796_v35 }
 0x647   :  { %v13793_v59 = vadd.f32 %v6521_v57, %v6393_v50  ;;  %v4210_v50 = vpack.c.bf16 %v3436_v43, %v3418_v20  ;;  %v7317_v57 = vld [vmem:[%s14848_s5 + $0x48] sm:$0xff]  ;;  %v1709_v20 = vunpack.c.2.s8 %v13776_v56  ;;  %v1727_v43 = vunpack.c.3.s8 %v13776_v56 }
 0x648   :  { %7403 = vperm.xlu0 %8272, %v7317_v57   ;;  %v3542_v57 = vmul.f32 %v13484_v37, %v2660_v27  ;;  %v13844_v27 = vld [vmem:[%s14847_s4 + $0x2b0] sm:$0xff] }
 0x649   :  { %v2573_v56 = vcvt.s32.f32 %v1709_v20  ;;  %v1814_v52 = vunpack.c.0.s8 %v13844_v27 }
 0x64a   :  { %v6640_v24 = vpop.f32.mrf.mxu2 }
 0x64b   :  { %v6641_v58 = vadd.f32 %v6640_v24, %v13705_v22  ;;  %v6769_v60 = vpop.f32.mrf.mxu3  ;;  %v1778_v22 = vunpack.c.2.s8 %v13753_v28 }
 0x64c   :  { %v6395_v34 = vpop.f32.mrf.mxu0 }
 0x64d   :  { %v13804_v33 = vadd.f32 %v6769_v60, %v6641_v58  ;;  %v6396_v63 = vadd.f32 %v6395_v34, %v15060_v32  ;;  %v6524_v12 = vpop.f32.mrf.mxu1  ;;  %v2642_v31 = vcvt.s32.f32 %v1778_v22  ;;  %v15061_v58 = vld [vmem:[#allocation14_spill] sm:$0xff]  ;;  %v2572_v34 = vcvt.s32.f32 %v1708_v26 }
 0x64e   :  { %v2590_v32 = vcvt.s32.f32 %v1726_v8  ;;  %v3455_v8 = vmul.f32 %v13612_v46, %v2573_v56 }
 0x64f   :  { %v13810_v23 = vadd.f32 %v6524_v12, %v6396_v63  ;;  %6830 = vmatmul.bf16.gmra.mxu0 %v4244_v9  ;;  %7078 = vmatmul.bf16.gmra.mxu2 %v4210_v50  ;;  %v2643_v63 = vcvt.s32.f32 %v1779_v47  ;;  %v2661_v12 = vcvt.s32.f32 %v1797_v7  ;;  %v2591_v9 = vcvt.s32.f32 %v1727_v43 }
 0x650   :  { %6959 = vmatmul.bf16.gmra.mxu1 %v4245_v2  ;;  %7207 = vmatmul.bf16.gmra.mxu3 %v4211_v0  ;;  %v3524_v50 = vmul.f32 %v13484_v37, %v2642_v31  ;;  %v3454_v2 = vmul.f32 %v13609_v1, %v2572_v34  ;;  %v3472_v0 = vmul.f32 %v13609_v1, %v2590_v32  ;;  %v13859_v34 = vld [vmem:[%s14847_s4 + $0x2b8] sm:$0xff] }
 0x651   :  { %v3525_v35 = vmul.f32 %v13486_v49, %v2643_v63  ;;  %v3543_v26 = vmul.f32 %v13486_v49, %v2661_v12  ;;  %v13864_v32 = vld [vmem:[%s14847_s4 + $0x238] sm:$0xff]  ;;  %v1832_v63 = vunpack.c.1.s8 %v13844_v27 }
 0x652   :  { %v6643_v41 = vpop.f32.mrf.mxu2  ;;  %v4228_v31 = vpack.c.bf16 %v3472_v0, %v3454_v2  ;;  %v1745_v2 = vunpack.c.0.s8 %v13864_v32  ;;  %v1763_v0 = vunpack.c.1.s8 %v13864_v32 }
 0x653   :  { %v6644_v24 = vadd.f32 %v6643_v41, %v13719_v13  ;;  %v6772_v14 = vpop.f32.mrf.mxu3  ;;  %v3473_v41 = vmul.f32 %v13612_v46, %v2591_v9 }
 0x654   :  { %v6397_v48 = vpop.f32.mrf.mxu0 }
 0x655   :  { %v13821_v28 = vadd.f32 %v6772_v14, %v6644_v24  ;;  %v6398_v60 = vadd.f32 %v6397_v48, %v15061_v58  ;;  %v6526_v42 = vpop.f32.mrf.mxu1  ;;  %v4262_v48 = vpack.c.bf16 %v3542_v57, %v3524_v50  ;;  %v7316_v58 = vld [vmem:[%s14848_s5 + $0x40] sm:$0xff]  ;;  %v1815_v50 = vunpack.c.0.s8 %v13859_v34 }
 0x656   :  { %7398 = vperm.xlu2 %8274, %v7316_v58   ;;  %v1833_v57 = vunpack.c.1.s8 %v13859_v34 }
 0x657   :  { %v13827_v13 = vadd.f32 %v6526_v42, %v6398_v60  ;;  %v4263_v60 = vpack.c.bf16 %v3543_v26, %v3525_v35  ;;  %v13852_v42 = vld [vmem:[%s14847_s4 + $0x230] sm:$0xff] }
 0x658   :  { %v1744_v12 = vunpack.c.0.s8 %v13852_v42  ;;  %v1762_v56 = vunpack.c.1.s8 %v13852_v42  ;;  %v2697_v58 = vcvt.s32.f32 %v1833_v57 }
 0x65a   :  { %v6645_v22 = vpop.f32.mrf.mxu2 }
 0x65b   :  { %v6646_v47 = vadd.f32 %v6645_v22, %v13736_v29  ;;  %v6774_v7 = vpop.f32.mrf.mxu3  ;;  %v4229_v29 = vpack.c.bf16 %v3473_v41, %v3455_v8  ;;  %v2678_v8 = vcvt.s32.f32 %v1814_v52  ;;  %v2696_v41 = vcvt.s32.f32 %v1832_v63 }
 0x65c   :  { %v6400_v20 = vpop.f32.mrf.mxu0 }
 0x65d   :  { %v13838_v43 = vadd.f32 %v6774_v7, %v6646_v47  ;;  %v6401_v24 = vadd.f32 %v6400_v20, %v12777_v55  ;;  %v6529_v14 = vpop.f32.mrf.mxu1  ;;  %v3560_v52 = vmul.f32 %v13484_v37, %v2678_v8  ;;  %v3578_v63 = vmul.f32 %v13484_v37, %v2696_v41 }
 0x65f   :  { %15062 = vst [vmem:[#allocation31_spill] sm:$0xff] %v13838_v43  ;;  %v13854_v55 = vadd.f32 %v6529_v14, %v6401_v24  ;;  %6835 = vmatmul.bf16.gmra.mxu0 %v4262_v48  ;;  %7083 = vmatmul.bf16.gmra.mxu2 %v4228_v31  ;;  %v2608_v24 = vcvt.s32.f32 %v1744_v12  ;;  %v2626_v14 = vcvt.s32.f32 %v1762_v56  ;;  %v7320_v48 = vld [vmem:[%s14848_s5 + $0x60] sm:$0xff]  ;;  %v2679_v31 = vcvt.s32.f32 %v1815_v50 }
 0x660   :  { %6964 = vmatmul.bf16.gmra.mxu1 %v4263_v60  ;;  %7212 = vmatmul.bf16.gmra.mxu3 %v4229_v29  ;;  %v2609_v60 = vcvt.s32.f32 %v1745_v2  ;;  %v2627_v29 = vcvt.s32.f32 %v1763_v0  ;;  %v4280_v41 = vpack.c.bf16 %v3578_v63, %v3560_v52  ;;  %v1869_v52 = vunpack.c.3.s8 %v13859_v34 }
 0x661   :  { %7418 = vperm.xlu0 %8272, %v7320_v48   ;;  %v3508_v12 = vmul.f32 %v13609_v1, %v2626_v14  ;;  %v1868_v48 = vunpack.c.3.s8 %v13844_v27  ;;  %v1781_v63 = vunpack.c.2.s8 %v13864_v32 }
 0x662   :  { %v6648_v9 = vpop.f32.mrf.mxu2  ;;  %v3491_v50 = vmul.f32 %v13612_v46, %v2609_v60  ;;  %v3509_v57 = vmul.f32 %v13612_v46, %v2627_v29  ;;  %v1851_v29 = vunpack.c.2.s8 %v13859_v34  ;;  %v7319_v34 = vld [vmem:[%s14848_s5 + $0x58] sm:$0xff] }
 0x663   :  { %v6649_v22 = vadd.f32 %v6648_v9, %v13766_v16  ;;  %v6777_v35 = vpop.f32.mrf.mxu3  ;;  %v3561_v9 = vmul.f32 %v13486_v49, %v2679_v31  ;;  %v1780_v31 = vunpack.c.2.s8 %v13852_v42  ;;  %7413 = vperm.xlu2 %8274, %v7319_v34   ;;  %v13945_v34 = vld [vmem:[%s14847_s4 + $0x2c0] sm:$0xff] }
 0x664   :  { %v6402_v26 = vpop.f32.mrf.mxu0  ;;  %v4247_v14 = vpack.c.bf16 %v3509_v57, %v3491_v50 }
 0x665   :  { %v13875_v47 = vadd.f32 %v6777_v35, %v6649_v22  ;;  %v6403_v7 = vadd.f32 %v6402_v26, %v12797_v21  ;;  %v6531_v20 = vpop.f32.mrf.mxu1  ;;  %v3490_v21 = vmul.f32 %v13609_v1, %v2608_v24  ;;  %v3579_v22 = vmul.f32 %v13486_v49, %v2697_v58 }
 0x666   :  { %v1798_v58 = vunpack.c.3.s8 %v13852_v42  ;;  %v2732_v42 = vcvt.s32.f32 %v1868_v48  ;;  %v2644_v57 = vcvt.s32.f32 %v1780_v31 }
 0x667   :  { %15063 = vst [vmem:[#allocation32_spill] sm:$0xff] %v13875_v47  ;;  %v13881_v16 = vadd.f32 %v6531_v20, %v6403_v7  ;;  %v4246_v7 = vpack.c.bf16 %v3508_v12, %v3490_v21  ;;  %v7321_v20 = vld [vmem:[%s14848_s5 + $0x68] sm:$0xff]  ;;  %v4281_v24 = vpack.c.bf16 %v3579_v22, %v3561_v9  ;;  %v1799_v21 = vunpack.c.3.s8 %v13864_v32 }
 0x668   :  { %7423 = vperm.xlu1 %8273, %v7321_v20   ;;  %v2645_v32 = vcvt.s32.f32 %v1781_v63  ;;  %v3614_v20 = vmul.f32 %v13484_v37, %v2732_v42  ;;  %v13937_v42 = vld [vmem:[%s14847_s4 + $0x340] sm:$0xff] }
 0x66a   :  { %v6650_v56 = vpop.f32.mrf.mxu2 }
 0x66b   :  { %v6651_v2 = vadd.f32 %v6650_v56, %v13793_v59  ;;  %v6779_v0 = vpop.f32.mrf.mxu3  ;;  %v1850_v59 = vunpack.c.2.s8 %v13844_v27 }
 0x66c   :  { %v13892_v35 = vpop.f32.mrf.mxu0 }
 0x66d   :  { %v13894_v26 = vadd.f32 %v6779_v0, %v6651_v2  ;;  %v13896_v8 = vpop.f32.mrf.mxu1  ;;  %v2714_v22 = vcvt.s32.f32 %v1850_v59  ;;  %v2662_v2 = vcvt.s32.f32 %v1798_v58  ;;  %v2715_v0 = vcvt.s32.f32 %v1851_v29 }
 0x66e   :  { %v3527_v58 = vmul.f32 %v13612_v46, %v2645_v32  ;;  %v1886_v32 = vunpack.c.0.s8 %v13937_v42 }
 0x66f   :  { %15064 = vst [vmem:[#allocation33_spill] sm:$0xff] %v13894_v26  ;;  %6840 = vmatmul.bf16.gmra.mxu0 %v4280_v41  ;;  %7088 = vmatmul.bf16.gmra.mxu2 %v4246_v7  ;;  %v2733_v41 = vcvt.s32.f32 %v1869_v52  ;;  %v2663_v7 = vcvt.s32.f32 %v1799_v21  ;;  %v3597_v48 = vmul.f32 %v13486_v49, %v2715_v0  ;;  %v13950_v0 = vld [vmem:[%s14847_s4 + $0x348] sm:$0xff] }
 0x670   :  { %6969 = vmatmul.bf16.gmra.mxu1 %v4281_v24  ;;  %7217 = vmatmul.bf16.gmra.mxu3 %v4247_v14  ;;  %v3526_v24 = vmul.f32 %v13609_v1, %v2644_v57  ;;  %v3544_v14 = vmul.f32 %v13609_v1, %v2662_v2  ;;  %v7323_v57 = vld [vmem:[%s14848_s5 + $0x78] sm:$0xff] }
 0x671   :  { %v3615_v31 = vmul.f32 %v13486_v49, %v2733_v41  ;;  %7433 = vperm.xlu0 %8272, %v7323_v57   ;;  %v13955_v41 = vld [vmem:[%s14847_s4 + $0x2c8] sm:$0xff] }
 0x672   :  { %v6653_v60 = vpop.f32.mrf.mxu2 }
 0x673   :  { %v6654_v12 = vadd.f32 %v6653_v60, %v13810_v23  ;;  %v6782_v56 = vpop.f32.mrf.mxu3  ;;  %v3596_v23 = vmul.f32 %v13484_v37, %v2714_v22  ;;  %v3545_v60 = vmul.f32 %v13612_v46, %v2663_v7  ;;  %v4264_v22 = vpack.c.bf16 %v3544_v14, %v3526_v24 }
 0x674   :  { %v13910_v9 = vpop.f32.mrf.mxu0  ;;  %v4299_v2 = vpack.c.bf16 %v3615_v31, %v3597_v48  ;;  %v1904_v7 = vunpack.c.1.s8 %v13937_v42  ;;  %v1887_v14 = vunpack.c.0.s8 %v13950_v0  ;;  %v1817_v48 = vunpack.c.0.s8 %v13955_v41 }
 0x675   :  { %v13912_v27 = vadd.f32 %v6782_v56, %v6654_v12  ;;  %v13914_v50 = vpop.f32.mrf.mxu1  ;;  %v4298_v56 = vpack.c.bf16 %v3614_v20, %v3596_v23  ;;  %v1816_v23 = vunpack.c.0.s8 %v13945_v34  ;;  %v1834_v20 = vunpack.c.1.s8 %v13945_v34 }
 0x676   :  { %v1835_v31 = vunpack.c.1.s8 %v13955_v41  ;;  %v2768_v57 = vcvt.s32.f32 %v1904_v7  ;;  %v2681_v47 = vcvt.s32.f32 %v1817_v48 }
 0x677   :  { %15065 = vst [vmem:[#allocation34_spill] sm:$0xff] %v13912_v27  ;;  %v2751_v27 = vcvt.s32.f32 %v1887_v14 }
 0x678   :  { %v2699_v43 = vcvt.s32.f32 %v1835_v31  ;;  %v6802_v31 = vadd.f32 %v13892_v35, %v12811_v62  ;;  %v1940_v62 = vunpack.c.3.s8 %v13937_v42  ;;  %v1923_v35 = vunpack.c.2.s8 %v13950_v0 }
 0x67a   :  { %v6655_v59 = vpop.f32.mrf.mxu2  ;;  %v3581_v14 = vmul.f32 %v13612_v46, %v2699_v43 }
 0x67b   :  { %v6656_v29 = vadd.f32 %v6655_v59, %v13827_v13  ;;  %v6784_v52 = vpop.f32.mrf.mxu3  ;;  %v4265_v13 = vpack.c.bf16 %v3545_v60, %v3527_v58  ;;  %v1905_v59 = vunpack.c.1.s8 %v13950_v0 }
 0x67c   :  { %v13928_v63 = vpop.f32.mrf.mxu0 }
 0x67d   :  { %v13930_v21 = vadd.f32 %v6784_v52, %v6656_v29  ;;  %v13932_v12 = vpop.f32.mrf.mxu1  ;;  %v2750_v52 = vcvt.s32.f32 %v1886_v32  ;;  %v2769_v26 = vcvt.s32.f32 %v1905_v59  ;;  %v3650_v32 = vmul.f32 %v13484_v37, %v2768_v57 }
 0x67f   :  { %15066 = vst [vmem:[#allocation7_spill] sm:$0xff] %v13930_v21  ;;  %6845 = vmatmul.bf16.gmra.mxu0 %v4298_v56  ;;  %7093 = vmatmul.bf16.gmra.mxu2 %v4264_v22  ;;  %v7324_v21 = vld [vmem:[%s14848_s5 + $0x80] sm:$0xff] }
 0x680   :  { %6974 = vmatmul.bf16.gmra.mxu1 %v4299_v2  ;;  %7222 = vmatmul.bf16.gmra.mxu3 %v4265_v13  ;;  %v2680_v2 = vcvt.s32.f32 %v1816_v23  ;;  %v2698_v13 = vcvt.s32.f32 %v1834_v20  ;;  %v3633_v23 = vmul.f32 %v13486_v49, %v2751_v27  ;;  %v3651_v20 = vmul.f32 %v13486_v49, %v2769_v26 }
 0x681   :  { %7438 = vperm.xlu1 %8273, %v7324_v21  }
 0x682   :  { %v6658_v24 = vpop.f32.mrf.mxu2  ;;  %v4317_v26 = vpack.c.bf16 %v3651_v20, %v3633_v23  ;;  %v1853_v23 = vunpack.c.2.s8 %v13955_v41  ;;  %v1871_v20 = vunpack.c.3.s8 %v13955_v41 }
 0x683   :  { %v6659_v58 = vadd.f32 %v6658_v24, %v13854_v55  ;;  %v6787_v60 = vpop.f32.mrf.mxu3  ;;  %v3632_v55 = vmul.f32 %v13484_v37, %v2750_v52  ;;  %v3562_v24 = vmul.f32 %v13609_v1, %v2680_v2 }
 0x684   :  { %v13966_v29 = vpop.f32.mrf.mxu0 }
 0x685   :  { %v13968_v56 = vadd.f32 %v6787_v60, %v6659_v58  ;;  %v13970_v22 = vpop.f32.mrf.mxu1  ;;  %v3580_v58 = vmul.f32 %v13609_v1, %v2698_v13  ;;  %v3563_v60 = vmul.f32 %v13612_v46, %v2681_v47  ;;  %v4316_v2 = vpack.c.bf16 %v3650_v32, %v3632_v55  ;;  %v7322_v47 = vld [vmem:[%s14848_s5 + $0x70] sm:$0xff] }
 0x686   :  { %7428 = vperm.xlu2 %8274, %v7322_v47   ;;  %v6931_v13 = vadd.f32 %v13896_v8, %v6802_v31  ;;  %v1852_v55 = vunpack.c.2.s8 %v13945_v34  ;;  %v1870_v32 = vunpack.c.3.s8 %v13945_v34  ;;  %v6804_v8 = vadd.f32 %v13910_v9, %v12825_v19 }
 0x687   :  { %v4282_v27 = vpack.c.bf16 %v3580_v58, %v3562_v24  ;;  %v4283_v43 = vpack.c.bf16 %v3581_v14, %v3563_v60  ;;  %v7359_v58 = vpop.permute.xlu0 %7358 }
 0x688   :  { %v2734_v47 = vcvt.s32.f32 %v1870_v32 }
 0x68a   :  { %v6660_v7 = vpop.f32.mrf.mxu2 }
 0x68b   :  { %v6661_v59 = vadd.f32 %v6660_v7, %v13881_v16  ;;  %v6789_v21 = vpop.f32.mrf.mxu3  ;;  %v1922_v16 = vunpack.c.2.s8 %v13937_v42  ;;  %v1941_v7 = vunpack.c.3.s8 %v13950_v0  ;;  %v7326_v0 = vld [vmem:[%s14848_s5 + $0x90] sm:$0xff] }
 0x68c   :  { %v13984_v48 = vpop.f32.mrf.mxu0  ;;  %7448 = vperm.xlu0 %8272, %v7326_v0  }
 0x68d   :  { %v13988_v52 = vadd.f32 %v6789_v21, %v6661_v59  ;;  %v13990_v57 = vpop.f32.mrf.mxu1  ;;  %v2786_v42 = vcvt.s32.f32 %v1922_v16  ;;  %v2804_v21 = vcvt.s32.f32 %v1940_v62  ;;  %v2805_v41 = vcvt.s32.f32 %v1941_v7 }
 0x68f   :  { %15067 = vst [vmem:[#allocation8_spill] sm:$0xff] %v13988_v52  ;;  %6850 = vmatmul.bf16.gmra.mxu0 %v4316_v2  ;;  %7098 = vmatmul.bf16.gmra.mxu2 %v4282_v27  ;;  %v2787_v2 = vcvt.s32.f32 %v1923_v35  ;;  %v2716_v27 = vcvt.s32.f32 %v1852_v55  ;;  %v3668_v62 = vmul.f32 %v13484_v37, %v2786_v42  ;;  %v6933_v35 = vadd.f32 %v13914_v50, %v6804_v8 }
 0x690   :  { %6979 = vmatmul.bf16.gmra.mxu1 %v4317_v26  ;;  %7227 = vmatmul.bf16.gmra.mxu3 %v4283_v43  ;;  %v2717_v26 = vcvt.s32.f32 %v1853_v23  ;;  %v2735_v43 = vcvt.s32.f32 %v1871_v20  ;;  %v3686_v19 = vmul.f32 %v13484_v37, %v2804_v21 }
 0x691   :  { %v3598_v9 = vmul.f32 %v13609_v1, %v2716_v27  ;;  %v3669_v32 = vmul.f32 %v13486_v49, %v2787_v2  ;;  %v14035_v2 = vld [vmem:[%s14847_s4 + $0x3d0] sm:$0xff]  ;;  %v7327_v27 = vld [vmem:[%s14848_s5 + $0x98] sm:$0xff] }
 0x692   :  { %v7059_v24 = vpop.f32.mrf.mxu2  ;;  %v3617_v50 = vmul.f32 %v13612_v46, %v2735_v43  ;;  %v4334_v8 = vpack.c.bf16 %v3686_v19, %v3668_v62  ;;  %7453 = vperm.xlu1 %8273, %v7327_v27   ;;  %v1958_v43 = vunpack.c.0.s8 %v14035_v2 }
 0x693   :  { %v7060_v60 = vadd.f32 %v7059_v24, %v6931_v13  ;;  %v7188_v14 = vpop.f32.mrf.mxu3  ;;  %v3616_v13 = vmul.f32 %v13609_v1, %v2734_v47  ;;  %v3687_v24 = vmul.f32 %v13486_v49, %v2805_v41  ;;  %v14048_v41 = vld [vmem:[%s14847_s4 + $0x3d8] sm:$0xff] }
 0x694   :  { %v14004_v59 = vpop.f32.mrf.mxu0 }
 0x695   :  { %v7189_v31 = vadd.f32 %v7188_v14, %v7060_v60  ;;  %v14008_v34 = vpop.f32.mrf.mxu1  ;;  %v7364_v60 = vpop.permute.xlu0 %7363  ;;  %v6807_v14 = vadd.f32 %v13928_v63, %v12859_v51  ;;  %v4335_v47 = vpack.c.bf16 %v3687_v24, %v3669_v32  ;;  %v14043_v51 = vld [vmem:[%s14847_s4 + $0x350] sm:$0xff]  ;;  %v1977_v32 = vunpack.c.1.s8 %v14048_v41 }
 0x696   :  { %v1906_v19 = vunpack.c.1.s8 %v14043_v51 }
 0x697   :  { %v7596_v16 = vmul.f32 %v7359_v58, %v7189_v31  ;;  %v3599_v58 = vmul.f32 %v13612_v46, %v2717_v26  ;;  %v4300_v31 = vpack.c.bf16 %v3616_v13, %v3598_v9  ;;  %v14053_v26 = vld [vmem:[%s14847_s4 + $0x358] sm:$0xff]  ;;  %v6936_v62 = vadd.f32 %v13932_v12, %v6807_v14  ;;  %v7369_v13 = vpop.permute.xlu1 %7368 }
 0x698   :  { %v1889_v24 = vunpack.c.0.s8 %v14053_v26  ;;  %v6809_v14 = vadd.f32 %v13966_v29, %v12873_v6  ;;  %v2770_v27 = vcvt.s32.f32 %v1906_v19 }
 0x699   :  { %7645 = vst.msk [vmem:[%s14849_s6] sm:$0xff] %vm7644_vm9, %v7596_v16  ;;  %v4301_v0 = vpack.c.bf16 %v3617_v50, %v3599_v58  ;;  %v1976_v16 = vunpack.c.1.s8 %v14035_v2  ;;  %v1907_v58 = vunpack.c.1.s8 %v14053_v26 }
 0x69a   :  { %v7061_v55 = vpop.f32.mrf.mxu2 }
 0x69b   :  { %v7062_v7 = vadd.f32 %v7061_v55, %v6933_v35  ;;  %v7190_v23 = vpop.f32.mrf.mxu3  ;;  %v1888_v35 = vunpack.c.0.s8 %v14043_v51  ;;  %v1959_v55 = vunpack.c.0.s8 %v14048_v41 }
 0x69c   :  { %v14026_v20 = vpop.f32.mrf.mxu0 }
 0x69d   :  { %v7191_v42 = vadd.f32 %v7190_v23, %v7062_v7  ;;  %v14030_v21 = vpop.f32.mrf.mxu1  ;;  %v2822_v23 = vcvt.s32.f32 %v1958_v43 }
 0x69f   :  { %v7597_v63 = vmul.f32 %v7364_v60, %v7191_v42  ;;  %6855 = vmatmul.bf16.gmra.mxu0 %v4334_v8  ;;  %7103 = vmatmul.bf16.gmra.mxu2 %v4300_v31  ;;  %v2840_v60 = vcvt.s32.f32 %v1976_v16  ;;  %v2752_v31 = vcvt.s32.f32 %v1888_v35  ;;  %v3704_v43 = vmul.f32 %v13484_v37, %v2822_v23 }
 0x6a0   :  { %6984 = vmatmul.bf16.gmra.mxu1 %v4335_v47  ;;  %7232 = vmatmul.bf16.gmra.mxu3 %v4301_v0  ;;  %v7325_v47 = vld [vmem:[%s14848_s5 + $0x88] sm:$0xff]  ;;  %v2823_v0 = vcvt.s32.f32 %v1959_v55  ;;  %v6938_v16 = vadd.f32 %v13970_v22, %v6809_v14  ;;  %v3652_v35 = vmul.f32 %v13609_v1, %v2770_v27 }
 0x6a1   :  { %7646 = vst.msk [vmem:[%s14849_s6 + $0x8] sm:$0xff] %vm7644_vm9, %v7597_v63  ;;  %v2841_v63 = vcvt.s32.f32 %v1977_v32  ;;  %7443 = vperm.xlu2 %8274, %v7325_v47   ;;  %v3722_v6 = vmul.f32 %v13484_v37, %v2840_v60  ;;  %v3634_v29 = vmul.f32 %v13609_v1, %v2752_v31  ;;  %v7329_v31 = vld [vmem:[%s14848_s5 + $0xa8] sm:$0xff] }
 0x6a2   :  { %v7064_v9 = vpop.f32.mrf.mxu2  ;;  %v3705_v55 = vmul.f32 %v13486_v49, %v2823_v0  ;;  %7463 = vperm.xlu0 %8272, %v7329_v31  }
 0x6a3   :  { %v7065_v12 = vadd.f32 %v7064_v9, %v6936_v62  ;;  %v7193_v50 = vpop.f32.mrf.mxu3  ;;  %v2753_v62 = vcvt.s32.f32 %v1889_v24  ;;  %v2771_v9 = vcvt.s32.f32 %v1907_v58  ;;  %v4352_v14 = vpack.c.bf16 %v3722_v6, %v3704_v43 }
 0x6a4   :  { %v14068_v7 = vpop.f32.mrf.mxu0  ;;  %v1995_v6 = vunpack.c.2.s8 %v14048_v41 }
 0x6a5   :  { %v7194_v42 = vadd.f32 %v7193_v50, %v7065_v12  ;;  %v14072_v8 = vpop.f32.mrf.mxu1  ;;  %v3635_v32 = vmul.f32 %v13612_v46, %v2753_v62  ;;  %v3653_v22 = vmul.f32 %v13612_v46, %v2771_v9  ;;  %v6812_v50 = vadd.f32 %v13984_v48, %v12905_v5 }
 0x6a6   :  { %v2012_v5 = vunpack.c.3.s8 %v14035_v2  ;;  %v1924_v62 = vunpack.c.2.s8 %v14043_v51  ;;  %v1942_v9 = vunpack.c.3.s8 %v14043_v51 }
 0x6a7   :  { %v7598_v52 = vmul.f32 %v7369_v13, %v7194_v42  ;;  %v3723_v13 = vmul.f32 %v13486_v49, %v2841_v63  ;;  %v4318_v42 = vpack.c.bf16 %v3652_v35, %v3634_v29  ;;  %v4319_v47 = vpack.c.bf16 %v3653_v22, %v3635_v32 }
 0x6a8   :  { %v1994_v63 = vunpack.c.2.s8 %v14035_v2  ;;  %v6941_v48 = vadd.f32 %v13990_v57, %v6812_v50  ;;  %v2013_v29 = vunpack.c.3.s8 %v14048_v41  ;;  %v1925_v35 = vunpack.c.2.s8 %v14053_v26  ;;  %v7330_v41 = vld [vmem:[%s14848_s5 + $0xb0] sm:$0xff] }
 0x6a9   :  { %7647 = vst.msk [vmem:[%s14849_s6 + $0x10] sm:$0xff] %vm7644_vm9, %v7598_v52  ;;  %v7374_v52 = vpop.permute.xlu1 %7373  ;;  %v4353_v27 = vpack.c.bf16 %v3723_v13, %v3705_v55  ;;  %v1943_v2 = vunpack.c.3.s8 %v14053_v26  ;;  %v2876_v32 = vcvt.s32.f32 %v2012_v5  ;;  %v6814_v22 = vadd.f32 %v14004_v59, %v12925_v36  ;;  %7468 = vperm.xlu1 %8273, %v7330_v41   ;;  %v14161_v41 = vld [vmem:[%s14847_s4 + $0x3e8] sm:$0xff] }
 0x6aa   :  { %v7066_v19 = vpop.f32.mrf.mxu2  ;;  %v2858_v13 = vcvt.s32.f32 %v1994_v63  ;;  %v2859_v50 = vcvt.s32.f32 %v1995_v6  ;;  %v2877_v26 = vcvt.s32.f32 %v2013_v29  ;;  %v15068_v6 = vld [vmem:[#allocation15_spill] sm:$0xff] }
 0x6ab   :  { %v7067_v24 = vadd.f32 %v7066_v19, %v6938_v16  ;;  %v7195_v58 = vpop.f32.mrf.mxu3  ;;  %v7379_v16 = vpop.permute.xlu2 %7378  ;;  %v3758_v36 = vmul.f32 %v13484_v37, %v2876_v32  ;;  %v6817_v29 = vadd.f32 %v14026_v20, %v15068_v6  ;;  %v7328_v32 = vld [vmem:[%s14848_s5 + $0xa0] sm:$0xff] }
 0x6ac   :  { %v14090_v12 = vpop.f32.mrf.mxu0  ;;  %v3740_v31 = vmul.f32 %v13484_v37, %v2858_v13  ;;  %v3741_v63 = vmul.f32 %v13486_v49, %v2859_v50  ;;  %v3759_v5 = vmul.f32 %v13486_v49, %v2877_v26  ;;  %v14143_v13 = vld [vmem:[%s14847_s4 + $0x460] sm:$0xff]  ;;  %7458 = vperm.xlu2 %8274, %v7328_v32  }
 0x6ad   :  { %v7196_v23 = vadd.f32 %v7195_v58, %v7067_v24  ;;  %v14094_v60 = vpop.f32.mrf.mxu1  ;;  %v2788_v58 = vcvt.s32.f32 %v1924_v62  ;;  %v14151_v20 = vld [vmem:[%s14847_s4 + $0x3e0] sm:$0xff]  ;;  %v2030_v50 = vunpack.c.0.s8 %v14143_v13  ;;  %v2048_v26 = vunpack.c.1.s8 %v14143_v13 }
 0x6af   :  { %v7599_v0 = vmul.f32 %v7374_v52, %v7196_v23  ;;  %6860 = vmatmul.bf16.gmra.mxu0 %v4352_v14  ;;  %7108 = vmatmul.bf16.gmra.mxu2 %v4318_v42  ;;  %v2806_v52 = vcvt.s32.f32 %v1942_v9  ;;  %v2789_v23 = vcvt.s32.f32 %v1925_v35  ;;  %v2807_v14 = vcvt.s32.f32 %v1943_v2 }
 0x6b0   :  { %6989 = vmatmul.bf16.gmra.mxu1 %v4353_v27  ;;  %7237 = vmatmul.bf16.gmra.mxu3 %v4319_v47  ;;  %v6943_v27 = vadd.f32 %v14008_v34, %v6814_v22  ;;  %v3670_v59 = vmul.f32 %v13609_v1, %v2788_v58  ;;  %v4371_v22 = vpack.c.bf16 %v3759_v5, %v3741_v63  ;;  %v7389_v5 = vpop.permute.xlu0 %7388 }
 0x6b1   :  { %7648 = vst.msk [vmem:[%s14849_s6 + $0x18] sm:$0xff] %vm7644_vm9, %v7599_v0  ;;  %v3688_v47 = vmul.f32 %v13609_v1, %v2806_v52  ;;  %v3689_v34 = vmul.f32 %v13612_v46, %v2807_v14  ;;  %v14156_v52 = vld [vmem:[%s14847_s4 + $0x468] sm:$0xff]  ;;  %v1960_v14 = vunpack.c.0.s8 %v14151_v20 }
 0x6b2   :  { %v7069_v43 = vpop.f32.mrf.mxu2 }
 0x6b3   :  { %v7070_v57 = vadd.f32 %v7069_v43, %v6941_v48  ;;  %v7198_v19 = vpop.f32.mrf.mxu3  ;;  %v3671_v48 = vmul.f32 %v13612_v46, %v2789_v23  ;;  %v6946_v23 = vadd.f32 %v14030_v21, %v6817_v29  ;;  %v2824_v29 = vcvt.s32.f32 %v1960_v14 }
 0x6b4   :  { %v14112_v55 = vpop.f32.mrf.mxu0 }
 0x6b5   :  { %v7199_v51 = vadd.f32 %v7198_v19, %v7070_v57  ;;  %v14116_v24 = vpop.f32.mrf.mxu1  ;;  %v4370_v57 = vpack.c.bf16 %v3758_v36, %v3740_v31  ;;  %v4336_v19 = vpack.c.bf16 %v3688_v47, %v3670_v59  ;;  %v2049_v36 = vunpack.c.1.s8 %v14156_v52 }
 0x6b6   :  { %v1961_v59 = vunpack.c.0.s8 %v14161_v41  ;;  %v1979_v47 = vunpack.c.1.s8 %v14161_v41 }
 0x6b7   :  { %v7600_v42 = vmul.f32 %v7379_v16, %v7199_v51  ;;  %v7384_v16 = vpop.permute.xlu2 %7383  ;;  %v4337_v51 = vpack.c.bf16 %v3689_v34, %v3671_v48  ;;  %v2894_v48 = vcvt.s32.f32 %v2030_v50  ;;  %v2912_v34 = vcvt.s32.f32 %v2048_v26 }
 0x6b8   :  { %v2913_v32 = vcvt.s32.f32 %v2049_v36 }
 0x6b9   :  { %7649 = vst.msk [vmem:[%s14849_s6 + $0x20] sm:$0xff] %vm7644_vm9, %v7600_v42  ;;  %v1978_v42 = vunpack.c.1.s8 %v14151_v20  ;;  %v3776_v50 = vmul.f32 %v13484_v37, %v2894_v48 }
 0x6ba   :  { %v7071_v0 = vpop.f32.mrf.mxu2 }
 0x6bb   :  { %v7072_v62 = vadd.f32 %v7071_v0, %v6943_v27  ;;  %v7200_v9 = vpop.f32.mrf.mxu3  ;;  %v2031_v27 = vunpack.c.0.s8 %v14156_v52 }
 0x6bc   :  { %v14134_v43 = vpop.f32.mrf.mxu0 }
 0x6bd   :  { %v7201_v35 = vadd.f32 %v7200_v9, %v7072_v62  ;;  %v14138_v2 = vpop.f32.mrf.mxu1  ;;  %v15069_v62 = vld [vmem:[#allocation16_spill] sm:$0xff] }
 0x6be   :  { %v6819_v9 = vadd.f32 %v14068_v7, %v15069_v62  ;;  %v3794_v7 = vmul.f32 %v13484_v37, %v2912_v34 }
 0x6bf   :  { %v7601_v58 = vmul.f32 %v7384_v16, %v7201_v35  ;;  %6865 = vmatmul.bf16.gmra.mxu0 %v4370_v57  ;;  %7113 = vmatmul.bf16.gmra.mxu2 %v4336_v19  ;;  %v2842_v35 = vcvt.s32.f32 %v1978_v42  ;;  %v7332_v57 = vld [vmem:[%s14848_s5 + $0xc0] sm:$0xff]  ;;  %v2895_v19 = vcvt.s32.f32 %v2031_v27  ;;  %v3795_v27 = vmul.f32 %v13486_v49, %v2913_v32 }
 0x6c0   :  { %6994 = vmatmul.bf16.gmra.mxu1 %v4371_v22  ;;  %7242 = vmatmul.bf16.gmra.mxu3 %v4337_v51  ;;  %v2825_v22 = vcvt.s32.f32 %v1961_v59  ;;  %v2843_v51 = vcvt.s32.f32 %v1979_v47  ;;  %v6948_v26 = vadd.f32 %v14072_v8, %v6819_v9  ;;  %v4388_v9 = vpack.c.bf16 %v3794_v7, %v3776_v50 }
 0x6c1   :  { %7650 = vst.msk [vmem:[%s14849_s6 + $0x28] sm:$0xff] %vm7644_vm9, %v7601_v58  ;;  %7478 = vperm.xlu0 %8272, %v7332_v57   ;;  %v3724_v14 = vmul.f32 %v13609_v1, %v2842_v35  ;;  %v2066_v32 = vunpack.c.2.s8 %v14143_v13  ;;  %v2085_v7 = vunpack.c.3.s8 %v14156_v52 }
 0x6c2   :  { %v7074_v31 = vpop.f32.mrf.mxu2  ;;  %v3707_v36 = vmul.f32 %v13612_v46, %v2825_v22  ;;  %v3725_v8 = vmul.f32 %v13612_v46, %v2843_v51  ;;  %v1996_v51 = vunpack.c.2.s8 %v14151_v20 }
 0x6c3   :  { %v7075_v0 = vadd.f32 %v7074_v31, %v6946_v23  ;;  %v7203_v21 = vpop.f32.mrf.mxu3  ;;  %v3706_v23 = vmul.f32 %v13609_v1, %v2824_v29  ;;  %v3777_v31 = vmul.f32 %v13486_v49, %v2895_v19  ;;  %v7333_v29 = vld [vmem:[%s14848_s5 + $0xc8] sm:$0xff] }
 0x6c4   :  { %v14176_v63 = vpop.f32.mrf.mxu0  ;;  %v4355_v57 = vpack.c.bf16 %v3725_v8, %v3707_v36  ;;  %7483 = vperm.xlu1 %8273, %v7333_v29   ;;  %v15071_v8 = vld [vmem:[#allocation18_spill] sm:$0xff] }
 0x6c5   :  { %v7204_v16 = vadd.f32 %v7203_v21, %v7075_v0  ;;  %v14180_v6 = vpop.f32.mrf.mxu1  ;;  %v7394_v21 = vpop.permute.xlu1 %7393  ;;  %v4389_v35 = vpack.c.bf16 %v3795_v27, %v3777_v31  ;;  %v2930_v27 = vcvt.s32.f32 %v2066_v32 }
 0x6c6   :  { %v7399_v31 = vpop.permute.xlu2 %7398 }
 0x6c7   :  { %v7602_v58 = vmul.f32 %v7389_v5, %v7204_v16  ;;  %v15070_v5 = vld [vmem:[#allocation17_spill] sm:$0xff]  ;;  %v4354_v16 = vpack.c.bf16 %v3724_v14, %v3706_v23  ;;  %v1997_v23 = vunpack.c.2.s8 %v14161_v41 }
 0x6c8   :  { %v6822_v48 = vadd.f32 %v14090_v12, %v15070_v5  ;;  %v2084_v12 = vunpack.c.3.s8 %v14143_v13  ;;  %v2015_v13 = vunpack.c.3.s8 %v14161_v41  ;;  %v7336_v41 = vld [vmem:[%s14848_s5 + $0xe0] sm:$0xff] }
 0x6c9   :  { %7651 = vst.msk [vmem:[%s14849_s6 + $0x30] sm:$0xff] %vm7644_vm9, %v7602_v58  ;;  %v2014_v58 = vunpack.c.3.s8 %v14151_v20 }
 0x6ca   :  { %v7076_v42 = vpop.f32.mrf.mxu2  ;;  %v6951_v22 = vadd.f32 %v14094_v60, %v6822_v48  ;;  %v2948_v36 = vcvt.s32.f32 %v2084_v12  ;;  %v7335_v48 = vld [vmem:[%s14848_s5 + $0xd8] sm:$0xff] }
 0x6cb   :  { %v7077_v59 = vadd.f32 %v7076_v42, %v6948_v26  ;;  %v7205_v47 = vpop.f32.mrf.mxu3  ;;  %v2067_v26 = vunpack.c.2.s8 %v14156_v52  ;;  %v2878_v5 = vcvt.s32.f32 %v2014_v58  ;;  %v7331_v52 = vld [vmem:[%s14848_s5 + $0xb8] sm:$0xff]  ;;  %7493 = vperm.xlu0 %8272, %v7335_v48  }
 0x6cc   :  { %v14198_v0 = vpop.f32.mrf.mxu0  ;;  %7473 = vperm.xlu2 %8274, %v7331_v52   ;;  %7498 = vperm.xlu1 %8273, %v7336_v41   ;;  %v7338_v52 = vld [vmem:[%s14848_s5 + $0xf0] sm:$0xff]  ;;  %v14273_v48 = vld [vmem:[%s14847_s4 + $0x4f8] sm:$0xff] }
 0x6cd   :  { %v7206_v34 = vadd.f32 %v7205_v47, %v7077_v59  ;;  %v14202_v62 = vpop.f32.mrf.mxu1  ;;  %v6824_v59 = vadd.f32 %v14112_v55, %v15071_v8  ;;  %v2861_v55 = vcvt.s32.f32 %v1997_v23  ;;  %v3760_v12 = vmul.f32 %v13609_v1, %v2878_v5 }
 0x6cf   :  { %v7603_v19 = vmul.f32 %v7394_v21, %v7206_v34  ;;  %6870 = vmatmul.bf16.gmra.mxu0 %v4388_v9  ;;  %7118 = vmatmul.bf16.gmra.mxu2 %v4354_v16  ;;  %v2860_v21 = vcvt.s32.f32 %v1996_v51  ;;  %v2931_v34 = vcvt.s32.f32 %v2067_v26  ;;  %v2949_v9 = vcvt.s32.f32 %v2085_v7 }
 0x6d0   :  { %6999 = vmatmul.bf16.gmra.mxu1 %v4389_v35  ;;  %7247 = vmatmul.bf16.gmra.mxu3 %v4355_v57  ;;  %v2879_v16 = vcvt.s32.f32 %v2015_v13  ;;  %v3812_v35 = vmul.f32 %v13484_v37, %v2930_v27  ;;  %v6953_v57 = vadd.f32 %v14116_v24, %v6824_v59  ;;  %v7404_v13 = vpop.permute.xlu0 %7403  ;;  %v14257_v59 = vld [vmem:[%s14847_s4 + $0x4f0] sm:$0xff] }
 0x6d1   :  { %7652 = vst.msk [vmem:[%s14849_s6 + $0x38] sm:$0xff] %vm7644_vm9, %v7603_v19  ;;  %v3830_v19 = vmul.f32 %v13484_v37, %v2948_v36  ;;  %v3742_v32 = vmul.f32 %v13609_v1, %v2860_v21  ;;  %v3813_v51 = vmul.f32 %v13486_v49, %v2931_v34  ;;  %v3831_v58 = vmul.f32 %v13486_v49, %v2949_v9  ;;  %v14278_v34 = vld [vmem:[%s14847_s4 + $0x478] sm:$0xff] }
 0x6d2   :  { %v7079_v50 = vpop.f32.mrf.mxu2  ;;  %v3761_v24 = vmul.f32 %v13612_v46, %v2879_v16  ;;  %v2102_v9 = vunpack.c.0.s8 %v14257_v59 }
 0x6d3   :  { %v7080_v14 = vadd.f32 %v7079_v50, %v6951_v22  ;;  %v7208_v60 = vpop.f32.mrf.mxu3  ;;  %v3743_v50 = vmul.f32 %v13612_v46, %v2861_v55  ;;  %v4406_v36 = vpack.c.bf16 %v3830_v19, %v3812_v35  ;;  %v4372_v8 = vpack.c.bf16 %v3760_v12, %v3742_v32  ;;  %7508 = vperm.xlu0 %8272, %v7338_v52  }
 0x6d4   :  { %v14220_v42 = vpop.f32.mrf.mxu0  ;;  %v4407_v21 = vpack.c.bf16 %v3831_v58, %v3813_v51  ;;  %v2120_v55 = vunpack.c.1.s8 %v14257_v59  ;;  %v2103_v19 = vunpack.c.0.s8 %v14273_v48  ;;  %v2121_v32 = vunpack.c.1.s8 %v14273_v48 }
 0x6d5   :  { %v7209_v20 = vadd.f32 %v7208_v60, %v7080_v14  ;;  %v14224_v47 = vpop.f32.mrf.mxu1  ;;  %v15072_v14 = vld [vmem:[#allocation19_spill] sm:$0xff]  ;;  %v4373_v5 = vpack.c.bf16 %v3761_v24, %v3743_v50  ;;  %v2033_v12 = vunpack.c.0.s8 %v14278_v34  ;;  %v7409_v50 = vpop.permute.xlu1 %7408  ;;  %v2966_v24 = vcvt.s32.f32 %v2102_v9 }
 0x6d6   :  { %v6827_v60 = vadd.f32 %v14134_v43, %v15072_v14  ;;  %v14265_v43 = vld [vmem:[%s14847_s4 + $0x470] sm:$0xff] }
 0x6d7   :  { %v7604_v29 = vmul.f32 %v7399_v31, %v7209_v20  ;;  %v7339_v20 = vld [vmem:[%s14848_s5 + $0xf8] sm:$0xff]  ;;  %v2050_v35 = vunpack.c.1.s8 %v14265_v43  ;;  %v2897_v52 = vcvt.s32.f32 %v2033_v12 }
 0x6d8   :  { %7513 = vperm.xlu1 %8273, %v7339_v20   ;;  %v6956_v16 = vadd.f32 %v14138_v2, %v6827_v60  ;;  %v7342_v20 = vld [vmem:[%s14848_s5 + $0x110] sm:$0xff] }
 0x6d9   :  { %7653 = vst.msk [vmem:[%s14849_s6 + $0x40] sm:$0xff] %vm7644_vm9, %v7604_v29  ;;  %v2032_v29 = vunpack.c.0.s8 %v14265_v43 }
 0x6da   :  { %v7081_v22 = vpop.f32.mrf.mxu2 }
 0x6db   :  { %v7082_v26 = vadd.f32 %v7081_v22, %v6953_v57  ;;  %v7210_v7 = vpop.f32.mrf.mxu3  ;;  %v2051_v22 = vunpack.c.1.s8 %v14278_v34 }
 0x6dc   :  { %v14248_v23 = vpop.f32.mrf.mxu0 }
 0x6dd   :  { %v7211_v31 = vadd.f32 %v7210_v7, %v7082_v26  ;;  %v14252_v27 = vpop.f32.mrf.mxu1  ;;  %v2984_v26 = vcvt.s32.f32 %v2120_v55  ;;  %v15073_v7 = vld [vmem:[#allocation20_spill] sm:$0xff]  ;;  %v3848_v55 = vmul.f32 %v13484_v37, %v2966_v24  ;;  %v7414_v24 = vpop.permute.xlu2 %7413 }
 0x6df   :  { %v7605_v41 = vmul.f32 %v7404_v13, %v7211_v31  ;;  %6875 = vmatmul.bf16.gmra.mxu0 %v4406_v36  ;;  %7123 = vmatmul.bf16.gmra.mxu2 %v4372_v8  ;;  %v6829_v13 = vadd.f32 %v14176_v63, %v15073_v7  ;;  %v2896_v31 = vcvt.s32.f32 %v2032_v29  ;;  %v2914_v36 = vcvt.s32.f32 %v2050_v35  ;;  %v7334_v8 = vld [vmem:[%s14848_s5 + $0xd0] sm:$0xff]  ;;  %v7341_v63 = vld [vmem:[%s14848_s5 + $0x108] sm:$0xff] }
 0x6e0   :  { %7004 = vmatmul.bf16.gmra.mxu1 %v4407_v21  ;;  %7252 = vmatmul.bf16.gmra.mxu3 %v4373_v5  ;;  %v2967_v21 = vcvt.s32.f32 %v2103_v19  ;;  %v2985_v5 = vcvt.s32.f32 %v2121_v32 }
 0x6e1   :  { %7654 = vst.msk [vmem:[%s14849_s6 + $0x48] sm:$0xff] %vm7644_vm9, %v7605_v41  ;;  %v2915_v41 = vcvt.s32.f32 %v2051_v22  ;;  %7488 = vperm.xlu2 %8274, %v7334_v8   ;;  %7528 = vperm.xlu1 %8273, %v7342_v20   ;;  %v6958_v29 = vadd.f32 %v14180_v6, %v6829_v13  ;;  %v3778_v35 = vmul.f32 %v13609_v1, %v2896_v31  ;;  %v7337_v8 = vld [vmem:[%s14848_s5 + $0xe8] sm:$0xff] }
 0x6e2   :  { %v7084_v57 = vpop.f32.mrf.mxu2  ;;  %7523 = vperm.xlu0 %8272, %v7341_v63   ;;  %v3849_v32 = vmul.f32 %v13486_v49, %v2967_v21  ;;  %v3867_v12 = vmul.f32 %v13486_v49, %v2985_v5  ;;  %v3779_v22 = vmul.f32 %v13612_v46, %v2897_v52  ;;  %v7345_v20 = vld [vmem:[%s14848_s5 + $0x128] sm:$0xff]  ;;  %v2156_v63 = vunpack.c.3.s8 %v14257_v59 }
 0x6e3   :  { %v7085_v2 = vadd.f32 %v7084_v57, %v6956_v16  ;;  %v7213_v51 = vpop.f32.mrf.mxu3  ;;  %v3866_v16 = vmul.f32 %v13484_v37, %v2984_v26  ;;  %v3796_v57 = vmul.f32 %v13609_v1, %v2914_v36  ;;  %v15074_v26 = vld [vmem:[#allocation21_spill] sm:$0xff] }
 0x6e4   :  { %v14293_v58 = vpop.f32.mrf.mxu0  ;;  %v6832_v7 = vadd.f32 %v14198_v0, %v15074_v26  ;;  %v4425_v21 = vpack.c.bf16 %v3867_v12, %v3849_v32  ;;  %v7344_v0 = vld [vmem:[%s14848_s5 + $0x120] sm:$0xff] }
 0x6e5   :  { %v7214_v14 = vadd.f32 %v7213_v51, %v7085_v2  ;;  %v14297_v60 = vpop.f32.mrf.mxu1  ;;  %v3797_v2 = vmul.f32 %v13612_v46, %v2915_v41  ;;  %v4424_v31 = vpack.c.bf16 %v3866_v16, %v3848_v55  ;;  %v4390_v36 = vpack.c.bf16 %v3796_v57, %v3778_v35 }
 0x6e6   :  { %v2138_v41 = vunpack.c.2.s8 %v14257_v59  ;;  %v2068_v55 = vunpack.c.2.s8 %v14265_v43  ;;  %v2086_v16 = vunpack.c.3.s8 %v14265_v43  ;;  %v2139_v35 = vunpack.c.2.s8 %v14273_v48 }
 0x6e7   :  { %v7606_v9 = vmul.f32 %v7409_v50, %v7214_v14  ;;  %v4391_v5 = vpack.c.bf16 %v3797_v2, %v3779_v22  ;;  %v2157_v57 = vunpack.c.3.s8 %v14273_v48  ;;  %v2087_v59 = vunpack.c.3.s8 %v14278_v34  ;;  %v7419_v22 = vpop.permute.xlu0 %7418  ;;  %v7340_v48 = vld [vmem:[%s14848_s5 + $0x100] sm:$0xff] }
 0x6e8   :  { %v3002_v2 = vcvt.s32.f32 %v2138_v41 }
 0x6e9   :  { %7655 = vst.msk [vmem:[%s14849_s6 + $0x50] sm:$0xff] %vm7644_vm9, %v7606_v9  ;;  %7503 = vperm.xlu2 %8274, %v7337_v8   ;;  %7543 = vperm.xlu1 %8273, %v7345_v20   ;;  %v6961_v9 = vadd.f32 %v14202_v62, %v6832_v7  ;;  %v2932_v7 = vcvt.s32.f32 %v2068_v55  ;;  %v2951_v20 = vcvt.s32.f32 %v2087_v59  ;;  %v7424_v59 = vpop.permute.xlu1 %7423 }
 0x6ea   :  { %v7086_v19 = vpop.f32.mrf.mxu2  ;;  %7538 = vperm.xlu0 %8272, %v7344_v0  }
 0x6eb   :  { %v7087_v6 = vadd.f32 %v7086_v19, %v6958_v29  ;;  %v7215_v51 = vpop.f32.mrf.mxu3  ;;  %v2069_v19 = vunpack.c.2.s8 %v14278_v34  ;;  %v7348_v34 = vld [vmem:[%s14848_s5 + $0x140] sm:$0xff]  ;;  %v3814_v41 = vmul.f32 %v13609_v1, %v2932_v7  ;;  %v7351_v7 = vld [vmem:[%s14848_s5 + $0x158] sm:$0xff] }
 0x6ec   :  { %v14321_v50 = vpop.f32.mrf.mxu0 }
 0x6ed   :  { %v7216_v13 = vadd.f32 %v7215_v51, %v7087_v6  ;;  %v14325_v14 = vpop.f32.mrf.mxu1  ;;  %v3020_v6 = vcvt.s32.f32 %v2156_v63  ;;  %v15075_v51 = vld [vmem:[#allocation22_spill] sm:$0xff]  ;;  %v2933_v8 = vcvt.s32.f32 %v2069_v19 }
 0x6ee   :  { %v6834_v43 = vadd.f32 %v14220_v42, %v15075_v51  ;;  %v7347_v42 = vld [vmem:[%s14848_s5 + $0x138] sm:$0xff] }
 0x6ef   :  { %v7607_v52 = vmul.f32 %v7414_v24, %v7216_v13  ;;  %6880 = vmatmul.bf16.gmra.mxu0 %v4424_v31  ;;  %7128 = vmatmul.bf16.gmra.mxu2 %v4390_v36  ;;  %v2950_v13 = vcvt.s32.f32 %v2086_v16  ;;  %v3003_v31 = vcvt.s32.f32 %v2139_v35  ;;  %v3021_v36 = vcvt.s32.f32 %v2157_v57 }
 0x6f0   :  { %7009 = vmatmul.bf16.gmra.mxu1 %v4425_v21  ;;  %7257 = vmatmul.bf16.gmra.mxu3 %v4391_v5  ;;  %v3884_v5 = vmul.f32 %v13484_v37, %v3002_v2  ;;  %v3902_v0 = vmul.f32 %v13484_v37, %v3020_v6  ;;  %v3833_v35 = vmul.f32 %v13612_v46, %v2951_v20 }
 0x6f1   :  { %7656 = vst.msk [vmem:[%s14849_s6 + $0x58] sm:$0xff] %vm7644_vm9, %v7607_v52  ;;  %7518 = vperm.xlu2 %8274, %v7340_v48   ;;  %7558 = vperm.xlu1 %8273, %v7348_v34   ;;  %v6963_v52 = vadd.f32 %v14224_v47, %v6834_v43  ;;  %v3832_v63 = vmul.f32 %v13609_v1, %v2950_v13  ;;  %v14386_v43 = vld [vmem:[%s14847_s4 + $0x580] sm:$0xff]  ;;  %v7350_v34 = vld [vmem:[%s14848_s5 + $0x150] sm:$0xff] }
 0x6f2   :  { %v7089_v29 = vpop.f32.mrf.mxu2  ;;  %7553 = vperm.xlu0 %8272, %v7347_v42   ;;  %v3885_v55 = vmul.f32 %v13486_v49, %v3003_v31  ;;  %v3903_v16 = vmul.f32 %v13486_v49, %v3021_v36  ;;  %v4442_v6 = vpack.c.bf16 %v3902_v0, %v3884_v5  ;;  %v14397_v48 = vld [vmem:[%s14847_s4 + $0x500] sm:$0xff]  ;;  %v14405_v36 = vld [vmem:[%s14847_s4 + $0x588] sm:$0xff]  ;;  %v2174_v20 = vunpack.c.0.s8 %v14386_v43 }
 0x6f3   :  { %v7090_v62 = vadd.f32 %v7089_v29, %v6961_v9  ;;  %v7218_v32 = vpop.f32.mrf.mxu3  ;;  %v3815_v29 = vmul.f32 %v13612_v46, %v2933_v8  ;;  %v4408_v51 = vpack.c.bf16 %v3832_v63, %v3814_v41  ;;  %v14410_v8 = vld [vmem:[%s14847_s4 + $0x508] sm:$0xff]  ;;  %v2192_v42 = vunpack.c.1.s8 %v14386_v43 }
 0x6f4   :  { %v14349_v12 = vpop.f32.mrf.mxu0  ;;  %v4443_v13 = vpack.c.bf16 %v3903_v16, %v3885_v55  ;;  %v2104_v5 = vunpack.c.0.s8 %v14397_v48  ;;  %v2122_v0 = vunpack.c.1.s8 %v14397_v48  ;;  %v2175_v41 = vunpack.c.0.s8 %v14405_v36 }
 0x6f5   :  { %v7219_v24 = vadd.f32 %v7218_v32, %v7090_v62  ;;  %v14353_v26 = vpop.f32.mrf.mxu1  ;;  %v15076_v62 = vld [vmem:[#allocation23_spill] sm:$0xff]  ;;  %v2193_v63 = vunpack.c.1.s8 %v14405_v36  ;;  %v2123_v55 = vunpack.c.1.s8 %v14410_v8 }
 0x6f6   :  { %v6837_v32 = vadd.f32 %v14248_v23, %v15076_v62  ;;  %v4409_v23 = vpack.c.bf16 %v3833_v35, %v3815_v29  ;;  %v7429_v35 = vpop.permute.xlu2 %7428 }
 0x6f7   :  { %v7608_v21 = vmul.f32 %v7419_v22, %v7219_v24  ;;  %v7343_v24 = vld [vmem:[%s14848_s5 + $0x118] sm:$0xff] }
 0x6f9   :  { %7657 = vst.msk [vmem:[%s14849_s6 + $0x60] sm:$0xff] %vm7644_vm9, %v7608_v21  ;;  %7533 = vperm.xlu2 %8274, %v7343_v24   ;;  %7573 = vperm.xlu1 %8273, %v7351_v7   ;;  %v6966_v21 = vadd.f32 %v14252_v27, %v6837_v32  ;;  %v7346_v24 = vld [vmem:[%s14848_s5 + $0x130] sm:$0xff] }
 0x6fa   :  { %v7091_v9 = vpop.f32.mrf.mxu2  ;;  %7568 = vperm.xlu0 %8272, %v7350_v34   ;;  %v7354_v7 = vld [vmem:[%s14848_s5 + $0x170] sm:$0xff] }
 0x6fb   :  { %v7092_v47 = vadd.f32 %v7091_v9, %v6963_v52  ;;  %v7220_v57 = vpop.f32.mrf.mxu3  ;;  %v2105_v9 = vunpack.c.0.s8 %v14410_v8 }
 0x6fc   :  { %v14377_v19 = vpop.f32.mrf.mxu0 }
 0x6fd   :  { %v7221_v22 = vadd.f32 %v7220_v57, %v7092_v47  ;;  %v14381_v2 = vpop.f32.mrf.mxu1  ;;  %v3038_v47 = vcvt.s32.f32 %v2174_v20  ;;  %v3056_v57 = vcvt.s32.f32 %v2192_v42  ;;  %v2969_v34 = vcvt.s32.f32 %v2105_v9 }
 0x6ff   :  { %v7609_v31 = vmul.f32 %v7424_v59, %v7221_v22  ;;  %6885 = vmatmul.bf16.gmra.mxu0 %v4442_v6  ;;  %7133 = vmatmul.bf16.gmra.mxu2 %v4408_v51  ;;  %v15077_v59 = vld [vmem:[#allocation24_spill] sm:$0xff]  ;;  %v2968_v6 = vcvt.s32.f32 %v2104_v5  ;;  %v2986_v51 = vcvt.s32.f32 %v2122_v0  ;;  %v3920_v42 = vmul.f32 %v13484_v37, %v3038_v47  ;;  %v7434_v47 = vpop.permute.xlu0 %7433 }
 0x700   :  { %7014 = vmatmul.bf16.gmra.mxu1 %v4443_v13  ;;  %7262 = vmatmul.bf16.gmra.mxu3 %v4409_v23  ;;  %v6839_v62 = vadd.f32 %v14293_v58, %v15077_v59  ;;  %v3039_v13 = vcvt.s32.f32 %v2175_v41  ;;  %v3057_v23 = vcvt.s32.f32 %v2193_v63  ;;  %v7353_v58 = vld [vmem:[%s14848_s5 + $0x168] sm:$0xff] }
 0x701   :  { %7658 = vst.msk [vmem:[%s14849_s6 + $0x68] sm:$0xff] %vm7644_vm9, %v7609_v31  ;;  %v2987_v31 = vcvt.s32.f32 %v2123_v55  ;;  %7548 = vperm.xlu2 %8274, %v7346_v24   ;;  %7588 = vperm.xlu1 %8273, %v7354_v7   ;;  %v3850_v0 = vmul.f32 %v13609_v1, %v2968_v6  ;;  %v3851_v55 = vmul.f32 %v13612_v46, %v2969_v34  ;;  %v7349_v24 = vld [vmem:[%s14848_s5 + $0x148] sm:$0xff]  ;;  %v2210_v34 = vunpack.c.2.s8 %v14386_v43 }
 0x702   :  { %v7094_v52 = vpop.f32.mrf.mxu2  ;;  %v6968_v5 = vadd.f32 %v14297_v60, %v6839_v62  ;;  %7583 = vperm.xlu0 %8272, %v7353_v58   ;;  %v3921_v63 = vmul.f32 %v13486_v49, %v3039_v13  ;;  %v3939_v9 = vmul.f32 %v13486_v49, %v3057_v23  ;;  %v2140_v58 = vunpack.c.2.s8 %v14397_v48 }
 0x703   :  { %v7095_v27 = vadd.f32 %v7094_v52, %v6966_v21  ;;  %v7223_v16 = vpop.f32.mrf.mxu3  ;;  %v3938_v21 = vmul.f32 %v13484_v37, %v3056_v57  ;;  %v3868_v52 = vmul.f32 %v13609_v1, %v2986_v51  ;;  %v15078_v57 = vld [vmem:[#allocation25_spill] sm:$0xff] }
 0x704   :  { %v14425_v29 = vpop.f32.mrf.mxu0  ;;  %v6842_v59 = vadd.f32 %v14321_v50, %v15078_v57  ;;  %v4461_v7 = vpack.c.bf16 %v3939_v9, %v3921_v63  ;;  %v2228_v50 = vunpack.c.3.s8 %v14386_v43  ;;  %v2159_v43 = vunpack.c.3.s8 %v14410_v8  ;;  %v7439_v63 = vpop.permute.xlu1 %7438 }
 0x705   :  { %v7224_v32 = vadd.f32 %v7223_v16, %v7095_v27  ;;  %v14429_v22 = vpop.f32.mrf.mxu1  ;;  %v3869_v27 = vmul.f32 %v13612_v46, %v2987_v31  ;;  %v4460_v6 = vpack.c.bf16 %v3938_v21, %v3920_v42  ;;  %v4426_v51 = vpack.c.bf16 %v3868_v52, %v3850_v0 }
 0x706   :  { %v6971_v31 = vadd.f32 %v14325_v14, %v6842_v59  ;;  %v2211_v21 = vunpack.c.2.s8 %v14405_v36  ;;  %v2141_v0 = vunpack.c.2.s8 %v14410_v8  ;;  %v3074_v9 = vcvt.s32.f32 %v2210_v34 }
 0x707   :  { %v7610_v20 = vmul.f32 %v7429_v35, %v7224_v32  ;;  %v4427_v13 = vpack.c.bf16 %v3869_v27, %v3851_v55  ;;  %v3092_v55 = vcvt.s32.f32 %v2228_v50  ;;  %v15079_v27 = vld [vmem:[#allocation26_spill] sm:$0xff] }
 0x708   :  { %v3075_v8 = vcvt.s32.f32 %v2211_v21 }
 0x709   :  { %7659 = vst.msk [vmem:[%s14849_s6 + $0x70] sm:$0xff] %vm7644_vm9, %v7610_v20  ;;  %7563 = vperm.xlu2 %8274, %v7349_v24   ;;  %v2158_v20 = vunpack.c.3.s8 %v14397_v48  ;;  %v3956_v24 = vmul.f32 %v13484_v37, %v3074_v9 }
 0x70a   :  { %v7096_v41 = vpop.f32.mrf.mxu2  ;;  %v3957_v50 = vmul.f32 %v13486_v49, %v3075_v8 }
 0x70b   :  { %v7097_v60 = vadd.f32 %v7096_v41, %v6968_v5  ;;  %v7225_v16 = vpop.f32.mrf.mxu3  ;;  %v2229_v5 = vunpack.c.3.s8 %v14405_v36  ;;  %v3022_v57 = vcvt.s32.f32 %v2158_v20  ;;  %v7352_v36 = vld [vmem:[%s14848_s5 + $0x160] sm:$0xff] }
 0x70c   :  { %v14453_v35 = vpop.f32.mrf.mxu0 }
 0x70d   :  { %v7226_v62 = vadd.f32 %v7225_v16, %v7097_v60  ;;  %v14457_v32 = vpop.f32.mrf.mxu1  ;;  %v6844_v60 = vadd.f32 %v14349_v12, %v15079_v27  ;;  %v3093_v59 = vcvt.s32.f32 %v2229_v5  ;;  %v3974_v12 = vmul.f32 %v13484_v37, %v3092_v55  ;;  %v7444_v5 = vpop.permute.xlu2 %7443  ;;  %v14506_v55 = vld [vmem:[%s14847_s4 + $0x610] sm:$0xff]  ;;  %v7355_v27 = vld [vmem:[%s14848_s5 + $0x178] sm:$0xff] }
 0x70e   :  { %v2246_v8 = vunpack.c.0.s8 %v14506_v55 }
 0x70f   :  { %v7611_v23 = vmul.f32 %v7434_v47, %v7226_v62  ;;  %6890 = vmatmul.bf16.gmra.mxu0 %v4460_v6  ;;  %7138 = vmatmul.bf16.gmra.mxu2 %v4426_v51  ;;  %v3004_v47 = vcvt.s32.f32 %v2140_v58  ;;  %v3005_v62 = vcvt.s32.f32 %v2141_v0  ;;  %v3023_v6 = vcvt.s32.f32 %v2159_v43  ;;  %v15080_v0 = vld [vmem:[#allocation27_spill] sm:$0xff] }
 0x710   :  { %7019 = vmatmul.bf16.gmra.mxu1 %v4461_v7  ;;  %7267 = vmatmul.bf16.gmra.mxu3 %v4427_v13  ;;  %v6973_v7 = vadd.f32 %v14353_v26, %v6844_v60  ;;  %v6847_v43 = vadd.f32 %v14377_v19, %v15080_v0  ;;  %v14514_v19 = vld [vmem:[%s14847_s4 + $0x590] sm:$0xff] }
 0x711   :  { %7660 = vst.msk [vmem:[%s14849_s6 + $0x78] sm:$0xff] %vm7644_vm9, %v7611_v23  ;;  %7578 = vperm.xlu2 %8274, %v7352_v36   ;;  %v3886_v13 = vmul.f32 %v13609_v1, %v3004_v47  ;;  %v3904_v23 = vmul.f32 %v13609_v1, %v3022_v57  ;;  %v3887_v58 = vmul.f32 %v13612_v46, %v3005_v62  ;;  %v14519_v57 = vld [vmem:[%s14847_s4 + $0x618] sm:$0xff] }
 0x712   :  { %v7099_v42 = vpop.f32.mrf.mxu2  ;;  %v3905_v26 = vmul.f32 %v13612_v46, %v3023_v6  ;;  %v14524_v36 = vld [vmem:[%s14847_s4 + $0x598] sm:$0xff]  ;;  %v6976_v62 = vadd.f32 %v14381_v2, %v6847_v43  ;;  %v2176_v6 = vunpack.c.0.s8 %v14514_v19 }
 0x713   :  { %v7100_v52 = vadd.f32 %v7099_v42, %v6971_v31  ;;  %v7228_v14 = vpop.f32.mrf.mxu3  ;;  %v3975_v31 = vmul.f32 %v13486_v49, %v3093_v59  ;;  %v4444_v9 = vpack.c.bf16 %v3904_v23, %v3886_v13  ;;  %v2264_v59 = vunpack.c.1.s8 %v14506_v55 }
 0x714   :  { %v14475_v41 = vpop.f32.mrf.mxu0  ;;  %v2177_v13 = vunpack.c.0.s8 %v14524_v36  ;;  %v2195_v23 = vunpack.c.1.s8 %v14524_v36  ;;  %v3040_v43 = vcvt.s32.f32 %v2176_v6 }
 0x715   :  { %v7229_v48 = vadd.f32 %v7228_v14, %v7100_v52  ;;  %v14479_v16 = vpop.f32.mrf.mxu1  ;;  %v4479_v60 = vpack.c.bf16 %v3975_v31, %v3957_v50  ;;  %v7449_v31 = vpop.permute.xlu0 %7448 }
 0x717   :  { %v7612_v51 = vmul.f32 %v7439_v63, %v7229_v48  ;;  %v4478_v63 = vpack.c.bf16 %v3974_v12, %v3956_v24  ;;  %v4445_v48 = vpack.c.bf16 %v3905_v26, %v3887_v58  ;;  %v2265_v12 = vunpack.c.1.s8 %v14519_v57 }
 0x718   :  { %v3110_v58 = vcvt.s32.f32 %v2246_v8  ;;  %v3128_v26 = vcvt.s32.f32 %v2264_v59  ;;  %v3922_v8 = vmul.f32 %v13609_v1, %v3040_v43 }
 0x719   :  { %7661 = vst.msk [vmem:[%s14849_s6 + $0x80] sm:$0xff] %vm7644_vm9, %v7612_v51  ;;  %7593 = vperm.xlu2 %8274, %v7355_v27   ;;  %v2194_v51 = vunpack.c.1.s8 %v14514_v19  ;;  %v3041_v27 = vcvt.s32.f32 %v2177_v13 }
 0x71a   :  { %v7101_v34 = vpop.f32.mrf.mxu2 }
 0x71b   :  { %v7102_v20 = vadd.f32 %v7101_v34, %v6973_v7  ;;  %v7230_v42 = vpop.f32.mrf.mxu3  ;;  %v2247_v7 = vunpack.c.0.s8 %v14519_v57 }
 0x71c   :  { %v14497_v21 = vpop.f32.mrf.mxu0 }
 0x71d   :  { %v7231_v52 = vadd.f32 %v7230_v42, %v7102_v20  ;;  %v14501_v14 = vpop.f32.mrf.mxu1  ;;  %v15081_v20 = vld [vmem:[#allocation28_spill] sm:$0xff] }
 0x71e   :  { %v6849_v42 = vadd.f32 %v14425_v29, %v15081_v20  ;;  %v4010_v29 = vmul.f32 %v13484_v37, %v3128_v26 }
 0x71f   :  { %v7613_v47 = vmul.f32 %v7444_v5, %v7231_v52  ;;  %6895 = vmatmul.bf16.gmra.mxu0 %v4478_v63  ;;  %7143 = vmatmul.bf16.gmra.mxu2 %v4444_v9  ;;  %v3058_v52 = vcvt.s32.f32 %v2194_v51  ;;  %v3111_v63 = vcvt.s32.f32 %v2247_v7  ;;  %v3129_v9 = vcvt.s32.f32 %v2265_v12 }
 0x720   :  { %7024 = vmatmul.bf16.gmra.mxu1 %v4479_v60  ;;  %7272 = vmatmul.bf16.gmra.mxu3 %v4445_v48  ;;  %v3059_v60 = vcvt.s32.f32 %v2195_v23  ;;  %v3923_v7 = vmul.f32 %v13612_v46, %v3041_v27 }
 0x721   :  { %7662 = vst.msk [vmem:[%s14849_s6 + $0x88] sm:$0xff] %vm7644_vm9, %v7613_v47  ;;  %v3992_v47 = vmul.f32 %v13484_v37, %v3110_v58  ;;  %v3940_v59 = vmul.f32 %v13609_v1, %v3058_v52  ;;  %v3993_v51 = vmul.f32 %v13486_v49, %v3111_v63  ;;  %v2282_v63 = vunpack.c.2.s8 %v14506_v55 }
 0x722   :  { %v7104_v24 = vpop.f32.mrf.mxu2 }
 0x723   :  { %v7105_v34 = vadd.f32 %v7104_v24, %v6976_v62  ;;  %v7233_v2 = vpop.f32.mrf.mxu3  ;;  %v6978_v62 = vadd.f32 %v14429_v22, %v6849_v42  ;;  %v4011_v24 = vmul.f32 %v13486_v49, %v3129_v9  ;;  %v3941_v22 = vmul.f32 %v13612_v46, %v3059_v60 }
 0x724   :  { %v14539_v50 = vpop.f32.mrf.mxu0  ;;  %v4496_v20 = vpack.c.bf16 %v4010_v29, %v3992_v47  ;;  %v4462_v42 = vpack.c.bf16 %v3940_v59, %v3922_v8  ;;  %v2300_v9 = vunpack.c.3.s8 %v14506_v55  ;;  %v2230_v60 = vunpack.c.3.s8 %v14514_v19 }
 0x725   :  { %v7234_v5 = vadd.f32 %v7233_v2, %v7105_v34  ;;  %v14543_v0 = vpop.f32.mrf.mxu1  ;;  %v7454_v34 = vpop.permute.xlu1 %7453  ;;  %v15082_v2 = vld [vmem:[#allocation29_spill] sm:$0xff]  ;;  %v4463_v43 = vpack.c.bf16 %v3941_v22, %v3923_v7  ;;  %v2283_v47 = vunpack.c.2.s8 %v14519_v57  ;;  %v2213_v29 = vunpack.c.2.s8 %v14524_v36  ;;  %v15083_v7 = vld [vmem:[#allocation30_spill] sm:$0xff] }
 0x726   :  { %v2231_v55 = vunpack.c.3.s8 %v14524_v36  ;;  %v6854_v22 = vadd.f32 %v14475_v41, %v15083_v7  ;;  %v14610_v7 = vld [vmem:[%s14847_s4 + $0x620] sm:$0xff] }
 0x727   :  { %v7614_v48 = vmul.f32 %v7449_v31, %v7234_v5  ;;  %v6852_v31 = vadd.f32 %v14453_v35, %v15082_v2  ;;  %v4497_v5 = vpack.c.bf16 %v4011_v24, %v3993_v51  ;;  %v2212_v35 = vunpack.c.2.s8 %v14514_v19 }
 0x728   :  { %v3146_v51 = vcvt.s32.f32 %v2282_v63  ;;  %v3164_v24 = vcvt.s32.f32 %v2300_v9 }
 0x729   :  { %7663 = vst.msk [vmem:[%s14849_s6 + $0x90] sm:$0xff] %vm7644_vm9, %v7614_v48  ;;  %v6981_v27 = vadd.f32 %v14457_v32, %v6852_v31  ;;  %v3077_v31 = vcvt.s32.f32 %v2213_v29 }
 0x72a   :  { %v7106_v6 = vpop.f32.mrf.mxu2  ;;  %v4046_v41 = vmul.f32 %v13484_v37, %v3164_v24 }
 0x72b   :  { %v7107_v12 = vadd.f32 %v7106_v6, %v6978_v62  ;;  %v7235_v13 = vpop.f32.mrf.mxu3  ;;  %v2301_v62 = vunpack.c.3.s8 %v14519_v57  ;;  %v7459_v6 = vpop.permute.xlu2 %7458  ;;  %v3147_v57 = vcvt.s32.f32 %v2283_v47 }
 0x72c   :  { %v14558_v23 = vpop.f32.mrf.mxu0  ;;  %v7464_v47 = vpop.permute.xlu0 %7463 }
 0x72d   :  { %v7236_v58 = vadd.f32 %v7235_v13, %v7107_v12  ;;  %v14562_v26 = vpop.f32.mrf.mxu1  ;;  %v3076_v13 = vcvt.s32.f32 %v2212_v35  ;;  %v3165_v2 = vcvt.s32.f32 %v2301_v62  ;;  %v4029_v63 = vmul.f32 %v13486_v49, %v3147_v57 }
 0x72e   :  { %v6857_v62 = vadd.f32 %v14497_v21, %v13345_v45  ;;  %v14615_v45 = vld [vmem:[%s14847_s4 + $0x6a8] sm:$0xff]  ;;  %v2248_v57 = vunpack.c.0.s8 %v14610_v7 }
 0x72f   :  { %v7615_v52 = vmul.f32 %v7454_v34, %v7236_v58  ;;  %6900 = vmatmul.bf16.gmra.mxu0 %v4496_v20  ;;  %7148 = vmatmul.bf16.gmra.mxu2 %v4462_v42  ;;  %v3094_v34 = vcvt.s32.f32 %v2230_v60  ;;  %v3095_v58 = vcvt.s32.f32 %v2231_v55  ;;  %v4028_v20 = vmul.f32 %v13484_v37, %v3146_v51  ;;  %v14620_v21 = vld [vmem:[%s14847_s4 + $0x628] sm:$0xff] }
 0x730   :  { %7029 = vmatmul.bf16.gmra.mxu1 %v4497_v5  ;;  %7277 = vmatmul.bf16.gmra.mxu3 %v4463_v43  ;;  %v6983_v42 = vadd.f32 %v14479_v16, %v6854_v22  ;;  %v3958_v5 = vmul.f32 %v13609_v1, %v3076_v13  ;;  %v4047_v9 = vmul.f32 %v13486_v49, %v3165_v2  ;;  %v2266_v2 = vunpack.c.1.s8 %v14610_v7 }
 0x731   :  { %7664 = vst.msk [vmem:[%s14849_s6 + $0x98] sm:$0xff] %vm7644_vm9, %v7615_v52  ;;  %v3976_v43 = vmul.f32 %v13609_v1, %v3094_v34  ;;  %v3977_v16 = vmul.f32 %v13612_v46, %v3095_v58  ;;  %v6986_v34 = vadd.f32 %v14501_v14, %v6857_v62  ;;  %v2319_v58 = vunpack.c.0.s8 %v14615_v45 }
 0x732   :  { %v7109_v48 = vpop.f32.mrf.mxu2  ;;  %v4515_v51 = vpack.c.bf16 %v4047_v9, %v4029_v63  ;;  %v6859_v9 = vadd.f32 %v14539_v50, %v13374_v54 }
 0x733   :  { %v7110_v8 = vadd.f32 %v7109_v48, %v6981_v27  ;;  %v7238_v32 = vpop.f32.mrf.mxu3  ;;  %v3959_v27 = vmul.f32 %v13612_v46, %v3077_v31 }
 0x734   :  { %v14577_v59 = vpop.f32.mrf.mxu0 }
 0x735   :  { %v7239_v19 = vadd.f32 %v7238_v32, %v7110_v8  ;;  %v14581_v12 = vpop.f32.mrf.mxu1  ;;  %v4514_v8 = vpack.c.bf16 %v4046_v41, %v4028_v20  ;;  %v4480_v32 = vpack.c.bf16 %v3976_v43, %v3958_v5  ;;  %v4481_v24 = vpack.c.bf16 %v3977_v16, %v3959_v27  ;;  %v7469_v43 = vpop.permute.xlu1 %7468 }
 0x736   :  { %v2249_v20 = vunpack.c.0.s8 %v14620_v21 }
 0x737   :  { %v7616_v36 = vmul.f32 %v7459_v6, %v7239_v19  ;;  %v14605_v6 = vld [vmem:[%s14847_s4 + $0x6a0] sm:$0xff] }
 0x738   :  { %v2318_v19 = vunpack.c.0.s8 %v14605_v6  ;;  %v2336_v13 = vunpack.c.1.s8 %v14605_v6 }
 0x739   :  { %7665 = vst.msk [vmem:[%s14849_s6 + $0xa0] sm:$0xff] %vm7644_vm9, %v7616_v36  ;;  %v2337_v36 = vunpack.c.1.s8 %v14615_v45 }
 0x73a   :  { %v7111_v52 = vpop.f32.mrf.mxu2  ;;  %v3200_v63 = vcvt.s32.f32 %v2336_v13 }
 0x73b   :  { %v7112_v35 = vadd.f32 %v7111_v52, %v6983_v42  ;;  %v7240_v60 = vpop.f32.mrf.mxu3  ;;  %v2267_v42 = vunpack.c.1.s8 %v14620_v21  ;;  %v3182_v52 = vcvt.s32.f32 %v2318_v19  ;;  %v3201_v62 = vcvt.s32.f32 %v2337_v36  ;;  %v7474_v36 = vpop.permute.xlu2 %7473 }
 0x73c   :  { %v14596_v48 = vpop.f32.mrf.mxu0  ;;  %v4082_v54 = vmul.f32 %v13484_v37, %v3200_v63 }
 0x73d   :  { %v7241_v29 = vadd.f32 %v7240_v60, %v7112_v35  ;;  %v14600_v55 = vpop.f32.mrf.mxu1  ;;  %v3112_v35 = vcvt.s32.f32 %v2248_v57  ;;  %v3130_v60 = vcvt.s32.f32 %v2266_v2 }
 0x73f   :  { %v7617_v22 = vmul.f32 %v7464_v47, %v7241_v29  ;;  %6905 = vmatmul.bf16.gmra.mxu0 %v4514_v8  ;;  %7153 = vmatmul.bf16.gmra.mxu2 %v4480_v32  ;;  %v3183_v47 = vcvt.s32.f32 %v2319_v58  ;;  %v3113_v29 = vcvt.s32.f32 %v2249_v20  ;;  %v3131_v8 = vcvt.s32.f32 %v2267_v42 }
 0x740   :  { %7034 = vmatmul.bf16.gmra.mxu1 %v4515_v51  ;;  %7282 = vmatmul.bf16.gmra.mxu3 %v4481_v24  ;;  %v4064_v51 = vmul.f32 %v13484_v37, %v3182_v52  ;;  %v6988_v24 = vadd.f32 %v14543_v0, %v6859_v9  ;;  %v3994_v50 = vmul.f32 %v13609_v1, %v3112_v35  ;;  %v2372_v35 = vunpack.c.3.s8 %v14605_v6 }
 0x741   :  { %7666 = vst.msk [vmem:[%s14849_s6 + $0xa8] sm:$0xff] %vm7644_vm9, %v7617_v22  ;;  %v4012_v22 = vmul.f32 %v13609_v1, %v3130_v60  ;;  %v4065_v13 = vmul.f32 %v13486_v49, %v3183_v47  ;;  %v3995_v57 = vmul.f32 %v13612_v46, %v3113_v29  ;;  %v4013_v0 = vmul.f32 %v13612_v46, %v3131_v8 }
 0x742   :  { %v7114_v31 = vpop.f32.mrf.mxu2  ;;  %v6862_v20 = vadd.f32 %v14558_v23, %v13393_v4  ;;  %v2284_v4 = vunpack.c.2.s8 %v14610_v7  ;;  %v2302_v23 = vunpack.c.3.s8 %v14610_v7  ;;  %v2373_v29 = vunpack.c.3.s8 %v14615_v45 }
 0x743   :  { %v7115_v41 = vadd.f32 %v7114_v31, %v6986_v34  ;;  %v7243_v14 = vpop.f32.mrf.mxu3  ;;  %v4083_v34 = vmul.f32 %v13486_v49, %v3201_v62  ;;  %v4499_v63 = vpack.c.bf16 %v4013_v0, %v3995_v57  ;;  %v2355_v62 = vunpack.c.2.s8 %v14615_v45 }
 0x744   :  { %v14635_v5 = vpop.f32.mrf.mxu0  ;;  %v6991_v60 = vadd.f32 %v14562_v26, %v6862_v20  ;;  %v2285_v8 = vunpack.c.2.s8 %v14620_v21  ;;  %v3237_v57 = vcvt.s32.f32 %v2373_v29 }
 0x745   :  { %v7244_v27 = vadd.f32 %v7243_v14, %v7115_v41  ;;  %v14639_v16 = vpop.f32.mrf.mxu1  ;;  %v4532_v14 = vpack.c.bf16 %v4082_v54, %v4064_v51  ;;  %v4533_v52 = vpack.c.bf16 %v4083_v34, %v4065_v13  ;;  %v3148_v13 = vcvt.s32.f32 %v2284_v4 }
 0x746   :  { %v3166_v34 = vcvt.s32.f32 %v2302_v23  ;;  %v3219_v45 = vcvt.s32.f32 %v2355_v62  ;;  %v3149_v0 = vcvt.s32.f32 %v2285_v8 }
 0x747   :  { %v7618_v32 = vmul.f32 %v7469_v43, %v7244_v27  ;;  %v4498_v43 = vpack.c.bf16 %v4012_v22, %v3994_v50  ;;  %v2354_v27 = vunpack.c.2.s8 %v14605_v6  ;;  %v2303_v6 = vunpack.c.3.s8 %v14620_v21 }
 0x748   :  { %v3236_v50 = vcvt.s32.f32 %v2372_v35  ;;  %v6864_v22 = vadd.f32 %v14577_v59, %v13436_v11  ;;  %v4030_v59 = vmul.f32 %v13609_v1, %v3148_v13  ;;  %v4048_v20 = vmul.f32 %v13609_v1, %v3166_v34  ;;  %v7484_v35 = vpop.permute.xlu1 %7483 }
 0x749   :  { %7667 = vst.msk [vmem:[%s14849_s6 + $0xb0] sm:$0xff] %vm7644_vm9, %v7618_v32  ;;  %v3218_v54 = vcvt.s32.f32 %v2354_v27  ;;  %v6869_v13 = vadd.f32 %v14635_v5, %v13510_v61 }
 0x74a   :  { %v7116_v19 = vpop.f32.mrf.mxu2  ;;  %v4118_v11 = vmul.f32 %v13484_v37, %v3236_v50  ;;  %v4516_v23 = vpack.c.bf16 %v4048_v20, %v4030_v59 }
 0x74b   :  { %v7117_v2 = vadd.f32 %v7116_v19, %v6988_v24  ;;  %v7245_v31 = vpop.f32.mrf.mxu3  ;;  %v7479_v24 = vpop.permute.xlu0 %7478 }
 0x74c   :  { %v14654_v58 = vpop.f32.mrf.mxu0 }
 0x74d   :  { %v7246_v42 = vadd.f32 %v7245_v31, %v7117_v2  ;;  %v14658_v41 = vpop.f32.mrf.mxu1  ;;  %v3167_v2 = vcvt.s32.f32 %v2303_v6  ;;  %v4100_v31 = vmul.f32 %v13484_v37, %v3218_v54  ;;  %v6867_v37 = vadd.f32 %v14596_v48, %v13488_v15  ;;  %v1511_v6 = vld [vmem:[%s14847_s4 + $0x6b8] sm:$0xff] }
 0x74e   :  { %v2339_v54 = vunpack.c.1.s8 %v1511_v6 }
 0x74f   :  { %v7619_v9 = vmul.f32 %v7474_v36, %v7246_v42  ;;  %6910 = vmatmul.bf16.gmra.mxu0 %v4532_v14  ;;  %7158 = vmatmul.bf16.gmra.mxu2 %v4498_v43  ;;  %v6993_v36 = vadd.f32 %v14581_v12, %v6864_v22  ;;  %v4101_v14 = vmul.f32 %v13486_v49, %v3219_v45 }
 0x750   :  { %7039 = vmatmul.bf16.gmra.mxu1 %v4533_v52  ;;  %7287 = vmatmul.bf16.gmra.mxu3 %v4499_v63  ;;  %v4119_v43 = vmul.f32 %v13486_v49, %v3237_v57  ;;  %v4031_v52 = vmul.f32 %v13612_v46, %v3149_v0  ;;  %v4049_v12 = vmul.f32 %v13612_v46, %v3167_v2  ;;  %v1510_v49 = vld [vmem:[%s14847_s4 + $0x6b0] sm:$0xff]  ;;  %v7489_v57 = vpop.permute.xlu2 %7488  ;;  %v3203_v2 = vcvt.s32.f32 %v2339_v54 }
 0x751   :  { %7668 = vst.msk [vmem:[%s14849_s6 + $0xb8] sm:$0xff] %vm7644_vm9, %v7619_v9  ;;  %v4550_v4 = vpack.c.bf16 %v4118_v11, %v4100_v31  ;;  %v6996_v15 = vadd.f32 %v14600_v55, %v6867_v37  ;;  %v2320_v48 = vunpack.c.0.s8 %v1510_v49 }
 0x752   :  { %v7119_v47 = vpop.f32.mrf.mxu2  ;;  %v4551_v62 = vpack.c.bf16 %v4119_v43, %v4101_v14  ;;  %v4517_v29 = vpack.c.bf16 %v4049_v12, %v4031_v52  ;;  %v4085_v20 = vmul.f32 %v13612_v46, %v3203_v2 }
 0x753   :  { %v7120_v32 = vadd.f32 %v7119_v47, %v6991_v60  ;;  %v7248_v26 = vpop.f32.mrf.mxu3  ;;  %v3184_v45 = vcvt.s32.f32 %v2320_v48 }
 0x754   :  { %v14673_v51 = vpop.f32.mrf.mxu0 }
 0x755   :  { %v7249_v7 = vadd.f32 %v7248_v26, %v7120_v32  ;;  %v14677_v19 = vpop.f32.mrf.mxu1  ;;  %v2338_v32 = vunpack.c.1.s8 %v1510_v49  ;;  %v4066_v11 = vmul.f32 %v13609_v1, %v3184_v45 }
 0x757   :  { %v7620_v21 = vmul.f32 %v7479_v24, %v7249_v7  ;;  %v2321_v24 = vunpack.c.0.s8 %v1511_v6  ;;  %v3202_v55 = vcvt.s32.f32 %v2338_v32 }
 0x759   :  { %7669 = vst.msk [vmem:[%s14849_s6 + $0xc0] sm:$0xff] %vm7644_vm9, %v7620_v21  ;;  %v3185_v0 = vcvt.s32.f32 %v2321_v24  ;;  %v4084_v61 = vmul.f32 %v13609_v1, %v3202_v55 }
 0x75a   :  { %v7121_v42 = vpop.f32.mrf.mxu2 }
 0x75b   :  { %v7122_v63 = vadd.f32 %v7121_v42, %v6993_v36  ;;  %v7250_v9 = vpop.f32.mrf.mxu3  ;;  %v6998_v36 = vadd.f32 %v14639_v16, %v6869_v13  ;;  %v4067_v59 = vmul.f32 %v13612_v46, %v3185_v0  ;;  %v6872_v16 = vadd.f32 %v14654_v58, %v13529_v38 }
 0x75c   :  { %v14692_v27 = vpop.f32.mrf.mxu0  ;;  %v4534_v12 = vpack.c.bf16 %v4084_v61, %v4066_v11  ;;  %v2375_v38 = vunpack.c.3.s8 %v1511_v6 }
 0x75d   :  { %v7251_v60 = vadd.f32 %v7250_v9, %v7122_v63  ;;  %v14696_v47 = vpop.f32.mrf.mxu1  ;;  %v7494_v63 = vpop.permute.xlu0 %7493  ;;  %v4535_v9 = vpack.c.bf16 %v4085_v20, %v4067_v59  ;;  %v7001_v37 = vadd.f32 %v14658_v41, %v6872_v16 }
 0x75e   :  { %v7499_v41 = vpop.permute.xlu1 %7498 }
 0x75f   :  { %v7621_v8 = vmul.f32 %v7484_v35, %v7251_v60  ;;  %6915 = vmatmul.bf16.gmra.mxu0 %v4550_v4  ;;  %7163 = vmatmul.bf16.gmra.mxu2 %v4516_v23  ;;  %v2356_v60 = vunpack.c.2.s8 %v1510_v49  ;;  %v2374_v4 = vunpack.c.3.s8 %v1510_v49 }
 0x760   :  { %7044 = vmatmul.bf16.gmra.mxu1 %v4551_v62  ;;  %7292 = vmatmul.bf16.gmra.mxu3 %v4517_v29  ;;  %v2357_v29 = vunpack.c.2.s8 %v1511_v6 }
 0x761   :  { %7670 = vst.msk [vmem:[%s14849_s6 + $0xc8] sm:$0xff] %vm7644_vm9, %v7621_v8  ;;  %v3220_v32 = vcvt.s32.f32 %v2356_v60 }
 0x762   :  { %v7124_v26 = vpop.f32.mrf.mxu2  ;;  %v3221_v54 = vcvt.s32.f32 %v2357_v29 }
 0x763   :  { %v7125_v50 = vadd.f32 %v7124_v26, %v6996_v15  ;;  %v7253_v22 = vpop.f32.mrf.mxu3  ;;  %v6874_v15 = vadd.f32 %v14673_v51, %v13571_v53  ;;  %v3238_v26 = vcvt.s32.f32 %v2374_v4  ;;  %v4102_v49 = vmul.f32 %v13609_v1, %v3220_v32 }
 0x764   :  { %v14709_v7 = vpop.f32.mrf.mxu0  ;;  %v4103_v51 = vmul.f32 %v13612_v46, %v3221_v54 }
 0x765   :  { %v7254_v34 = vadd.f32 %v7253_v22, %v7125_v50  ;;  %v14713_v31 = vpop.f32.mrf.mxu1  ;;  %v3239_v50 = vcvt.s32.f32 %v2375_v38  ;;  %v7003_v13 = vadd.f32 %v14677_v19, %v6874_v15  ;;  %v4120_v6 = vmul.f32 %v13609_v1, %v3238_v26  ;;  %v7509_v20 = vpop.permute.xlu0 %7508 }
 0x766   :  { %v6877_v19 = vadd.f32 %v14692_v27, %v13614_v18  ;;  %v6879_v18 = vadd.f32 %v14709_v7, %v13631_v25  ;;  %v7514_v25 = vpop.permute.xlu1 %7513 }
 0x767   :  { %v7622_v21 = vmul.f32 %v7489_v57, %v7254_v34  ;;  %v4121_v34 = vmul.f32 %v13612_v46, %v3239_v50  ;;  %v4552_v2 = vpack.c.bf16 %v4120_v6, %v4102_v49 }
 0x768   :  { %v7006_v1 = vadd.f32 %v14696_v47, %v6877_v19  ;;  %v7008_v16 = vadd.f32 %v14713_v31, %v6879_v18 }
 0x769   :  { %7671 = vst.msk [vmem:[%s14849_s6 + $0xd0] sm:$0xff] %vm7644_vm9, %v7622_v21  ;;  %v7504_v21 = vpop.permute.xlu2 %7503 }
 0x76a   :  { %v7126_v5 = vpop.f32.mrf.mxu2 }
 0x76b   :  { %v7127_v42 = vadd.f32 %v7126_v5, %v6998_v36  ;;  %v7255_v14 = vpop.f32.mrf.mxu3  ;;  %v4553_v36 = vpack.c.bf16 %v4121_v34, %v4103_v51 }
 0x76c   :  { %v14724_v43 = vpop.f32.mrf.mxu0 }
 0x76d   :  { %v7256_v52 = vadd.f32 %v7255_v14, %v7127_v42  ;;  %v7010_v23 = vpop.f32.mrf.mxu1  ;;  %v7524_v54 = vpop.permute.xlu0 %7523 }
 0x76e   :  { %v7529_v34 = vpop.permute.xlu1 %7528 }
 0x76f   :  { %v7623_v35 = vmul.f32 %v7494_v63, %v7256_v52  ;;  %7168 = vmatmul.bf16.gmra.mxu2 %v4534_v12 }
 0x770   :  { %7297 = vmatmul.bf16.gmra.mxu3 %v4535_v9  ;;  %v6882_v9 = vadd.f32 %v14724_v43, %v13648_v3 }
 0x771   :  { %7672 = vst.msk [vmem:[%s14849_s6 + $0xd8] sm:$0xff] %vm7644_vm9, %v7623_v35 }
 0x772   :  { %v7129_v62 = vpop.f32.mrf.mxu2  ;;  %v7011_v60 = vadd.f32 %v7010_v23, %v6882_v9 }
 0x773   :  { %v7130_v58 = vadd.f32 %v7129_v62, %v7001_v37  ;;  %v7258_v8 = vpop.f32.mrf.mxu3 }
 0x774   :  { %v6883_v24 = vpop.f32.mrf.mxu0 }
 0x775   :  { %v7259_v48 = vadd.f32 %v7258_v8, %v7130_v58  ;;  %v7012_v57 = vpop.f32.mrf.mxu1  ;;  %v6884_v38 = vadd.f32 %v6883_v24, %v13665_v39  ;;  %v7519_v8 = vpop.permute.xlu2 %7518 }
 0x777   :  { %v7624_v22 = vmul.f32 %v7499_v41, %v7259_v48  ;;  %v7013_v3 = vadd.f32 %v7012_v57, %v6884_v38 }
 0x779   :  { %7673 = vst.msk [vmem:[%s14849_s6 + $0xe0] sm:$0xff] %vm7644_vm9, %v7624_v22 }
 0x77a   :  { %v7131_v53 = vpop.f32.mrf.mxu2 }
 0x77b   :  { %v7132_v45 = vadd.f32 %v7131_v53, %v7003_v13  ;;  %v7260_v55 = vpop.f32.mrf.mxu3 }
 0x77c   :  { %v6886_v61 = vpop.f32.mrf.mxu0 }
 0x77d   :  { %v7261_v0 = vadd.f32 %v7260_v55, %v7132_v45  ;;  %v7015_v42 = vpop.f32.mrf.mxu1  ;;  %v6887_v26 = vadd.f32 %v6886_v61, %v13702_v10 }
 0x77f   :  { %v7625_v11 = vmul.f32 %v7504_v21, %v7261_v0  ;;  %7173 = vmatmul.bf16.gmra.mxu2 %v4552_v2  ;;  %v7016_v39 = vadd.f32 %v7015_v42, %v6887_v26 }
 0x780   :  { %7302 = vmatmul.bf16.gmra.mxu3 %v4553_v36  ;;  %v7534_v36 = vpop.permute.xlu2 %7533 }
 0x781   :  { %7674 = vst.msk [vmem:[%s14849_s6 + $0xe8] sm:$0xff] %vm7644_vm9, %v7625_v11 }
 0x782   :  { %v7134_v46 = vpop.f32.mrf.mxu2 }
 0x783   :  { %v7135_v5 = vadd.f32 %v7134_v46, %v7006_v1  ;;  %v7263_v59 = vpop.f32.mrf.mxu3 }
 0x784   :  { %v6888_v47 = vpop.f32.mrf.mxu0 }
 0x785   :  { %v7264_v27 = vadd.f32 %v7263_v59, %v7135_v5  ;;  %v7017_v37 = vpop.f32.mrf.mxu1  ;;  %v6889_v53 = vadd.f32 %v6888_v47, %v13716_v30 }
 0x787   :  { %v7626_v14 = vmul.f32 %v7509_v20, %v7264_v27  ;;  %v7018_v55 = vadd.f32 %v7017_v37, %v6889_v53  ;;  %v7539_v20 = vpop.permute.xlu0 %7538 }
 0x789   :  { %7675 = vst.msk [vmem:[%s14849_s6 + $0xf0] sm:$0xff] %vm7644_vm9, %v7626_v14 }
 0x78a   :  { %v7136_v52 = vpop.f32.mrf.mxu2 }
 0x78b   :  { %v7137_v12 = vadd.f32 %v7136_v52, %v7008_v16  ;;  %v7265_v63 = vpop.f32.mrf.mxu3 }
 0x78c   :  { %v6891_v29 = vpop.f32.mrf.mxu0 }
 0x78d   :  { %v7266_v35 = vadd.f32 %v7265_v63, %v7137_v12  ;;  %v7020_v43 = vpop.f32.mrf.mxu1  ;;  %v6892_v2 = vadd.f32 %v6891_v29, %v13730_v40  ;;  %v7549_v29 = vpop.permute.xlu2 %7548 }
 0x78f   :  { %v7627_v7 = vmul.f32 %v7514_v25, %v7266_v35  ;;  %v7021_v30 = vadd.f32 %v7020_v43, %v6892_v2  ;;  %v7544_v35 = vpop.permute.xlu1 %7543 }
 0x791   :  { %7676 = vst.msk [vmem:[%s14849_s6 + $0xf8] sm:$0xff] %vm7644_vm9, %v7627_v7 }
 0x792   :  { %v7139_v31 = vpop.f32.mrf.mxu2 }
 0x793   :  { %v7140_v4 = vadd.f32 %v7139_v31, %v7011_v60  ;;  %v7268_v62 = vpop.f32.mrf.mxu3 }
 0x794   :  { %v6893_v50 = vpop.f32.mrf.mxu0 }
 0x795   :  { %v7269_v58 = vadd.f32 %v7268_v62, %v7140_v4  ;;  %v7022_v6 = vpop.f32.mrf.mxu1  ;;  %v6894_v18 = vadd.f32 %v6893_v50, %v13747_v44 }
 0x797   :  { %v7628_v15 = vmul.f32 %v7519_v8, %v7269_v58  ;;  %v7023_v14 = vadd.f32 %v7022_v6, %v6894_v18 }
 0x799   :  { %7677 = vst.msk [vmem:[%s14849_s6 + $0x100] sm:$0xff] %vm7644_vm9, %v7628_v15 }
 0x79a   :  { %v7141_v23 = vpop.f32.mrf.mxu2 }
 0x79b   :  { %v7142_v48 = vadd.f32 %v7141_v23, %v7013_v3  ;;  %v7270_v32 = vpop.f32.mrf.mxu3 }
 0x79c   :  { %v6896_v10 = vpop.f32.mrf.mxu0 }
 0x79d   :  { %v7271_v41 = vadd.f32 %v7270_v32, %v7142_v48  ;;  %v7025_v11 = vpop.f32.mrf.mxu1  ;;  %v6897_v63 = vadd.f32 %v6896_v10, %v13787_v17  ;;  %v7554_v32 = vpop.permute.xlu0 %7553 }
 0x79f   :  { %v7629_v22 = vmul.f32 %v7524_v54, %v7271_v41  ;;  %v7026_v44 = vadd.f32 %v7025_v11, %v6897_v63 }
 0x7a1   :  { %7678 = vst.msk [vmem:[%s14849_s6 + $0x108] sm:$0xff] %vm7644_vm9, %v7629_v22 }
 0x7a2   :  { %v7144_v24 = vpop.f32.mrf.mxu2 }
 0x7a3   :  { %v7145_v13 = vadd.f32 %v7144_v24, %v7016_v39  ;;  %v7273_v49 = vpop.f32.mrf.mxu3  ;;  %v15084_v39 = vld [vmem:[#allocation31_spill] sm:$0xff] }
 0x7a4   :  { %v6898_v1 = vpop.f32.mrf.mxu0 }
 0x7a5   :  { %v7274_v51 = vadd.f32 %v7273_v49, %v7145_v13  ;;  %v7027_v40 = vpop.f32.mrf.mxu1  ;;  %v6899_v4 = vadd.f32 %v6898_v1, %v13804_v33  ;;  %v7559_v49 = vpop.permute.xlu1 %7558 }
 0x7a6   :  { %v7569_v18 = vpop.permute.xlu0 %7568 }
 0x7a7   :  { %v7630_v45 = vmul.f32 %v7529_v34, %v7274_v51  ;;  %v7028_v17 = vadd.f32 %v7027_v40, %v6899_v4 }
 0x7a9   :  { %7679 = vst.msk [vmem:[%s14849_s6 + $0x110] sm:$0xff] %vm7644_vm9, %v7630_v45 }
 0x7aa   :  { %v7146_v57 = vpop.f32.mrf.mxu2 }
 0x7ab   :  { %v7147_v19 = vadd.f32 %v7146_v57, %v7018_v55  ;;  %v7275_v0 = vpop.f32.mrf.mxu3  ;;  %v15085_v55 = vld [vmem:[#allocation32_spill] sm:$0xff] }
 0x7ac   :  { %v6901_v12 = vpop.f32.mrf.mxu0 }
 0x7ad   :  { %v7276_v21 = vadd.f32 %v7275_v0, %v7147_v19  ;;  %v7030_v7 = vpop.f32.mrf.mxu1  ;;  %v6902_v23 = vadd.f32 %v6901_v12, %v13821_v28  ;;  %v7564_v0 = vpop.permute.xlu2 %7563 }
 0x7ae   :  { %v7574_v63 = vpop.permute.xlu1 %7573 }
 0x7af   :  { %v7631_v61 = vmul.f32 %v7534_v36, %v7276_v21  ;;  %v7031_v41 = vadd.f32 %v7030_v7, %v6902_v23 }
 0x7b1   :  { %7680 = vst.msk [vmem:[%s14849_s6 + $0x118] sm:$0xff] %vm7644_vm9, %v7631_v61 }
 0x7b2   :  { %v7149_v46 = vpop.f32.mrf.mxu2 }
 0x7b3   :  { %v7150_v5 = vadd.f32 %v7149_v46, %v7021_v30  ;;  %v7278_v59 = vpop.f32.mrf.mxu3  ;;  %v15086_v46 = vld [vmem:[#allocation33_spill] sm:$0xff] }
 0x7b4   :  { %v6903_v38 = vpop.f32.mrf.mxu0 }
 0x7b5   :  { %v7279_v27 = vadd.f32 %v7278_v59, %v7150_v5  ;;  %v7032_v43 = vpop.f32.mrf.mxu1  ;;  %v6904_v24 = vadd.f32 %v6903_v38, %v15084_v39  ;;  %v15089_v39 = vld [vmem:[#allocation8_spill] sm:$0xff] }
 0x7b7   :  { %v7632_v42 = vmul.f32 %v7539_v20, %v7279_v27  ;;  %v7033_v28 = vadd.f32 %v7032_v43, %v6904_v24 }
 0x7b9   :  { %7681 = vst.msk [vmem:[%s14849_s6 + $0x120] sm:$0xff] %vm7644_vm9, %v7632_v42 }
 0x7ba   :  { %v7151_v16 = vpop.f32.mrf.mxu2 }
 0x7bb   :  { %v7152_v47 = vadd.f32 %v7151_v16, %v7023_v14  ;;  %v7280_v52 = vpop.f32.mrf.mxu3 }
 0x7bc   :  { %v6906_v33 = vpop.f32.mrf.mxu0 }
 0x7bd   :  { %v7281_v9 = vadd.f32 %v7280_v52, %v7152_v47  ;;  %v7035_v6 = vpop.f32.mrf.mxu1  ;;  %v6907_v57 = vadd.f32 %v6906_v33, %v15085_v55  ;;  %v15087_v47 = vld [vmem:[#allocation34_spill] sm:$0xff] }
 0x7bf   :  { %v7633_v25 = vmul.f32 %v7544_v35, %v7281_v9  ;;  %v7036_v36 = vadd.f32 %v7035_v6, %v6907_v57 }
 0x7c1   :  { %7682 = vst.msk [vmem:[%s14849_s6 + $0x128] sm:$0xff] %vm7644_vm9, %v7633_v25 }
 0x7c2   :  { %v7154_v37 = vpop.f32.mrf.mxu2 }
 0x7c3   :  { %v7155_v60 = vadd.f32 %v7154_v37, %v7026_v44  ;;  %v7283_v31 = vpop.f32.mrf.mxu3 }
 0x7c4   :  { %v6908_v51 = vpop.f32.mrf.mxu0 }
 0x7c5   :  { %v7284_v62 = vadd.f32 %v7283_v31, %v7155_v60  ;;  %v7037_v21 = vpop.f32.mrf.mxu1  ;;  %v6909_v5 = vadd.f32 %v6908_v51, %v15086_v46  ;;  %v15088_v31 = vld [vmem:[#allocation7_spill] sm:$0xff] }
 0x7c7   :  { %v7634_v58 = vmul.f32 %v7549_v29, %v7284_v62  ;;  %v7038_v20 = vadd.f32 %v7037_v21, %v6909_v5  ;;  %v7579_v29 = vpop.permute.xlu2 %7578 }
 0x7c9   :  { %7683 = vst.msk [vmem:[%s14849_s6 + $0x130] sm:$0xff] %vm7644_vm9, %v7634_v58 }
 0x7ca   :  { %v7156_v8 = vpop.f32.mrf.mxu2 }
 0x7cb   :  { %v7157_v15 = vadd.f32 %v7156_v8, %v7028_v17  ;;  %v7285_v3 = vpop.f32.mrf.mxu3 }
 0x7cc   :  { %v6911_v1 = vpop.f32.mrf.mxu0 }
 0x7cd   :  { %v7286_v48 = vadd.f32 %v7285_v3, %v7157_v15  ;;  %v7040_v42 = vpop.f32.mrf.mxu1  ;;  %v6912_v52 = vadd.f32 %v6911_v1, %v15087_v47 }
 0x7cf   :  { %v7635_v26 = vmul.f32 %v7554_v32, %v7286_v48  ;;  %v7041_v25 = vadd.f32 %v7040_v42, %v6912_v52  ;;  %v7584_v48 = vpop.permute.xlu0 %7583 }
 0x7d1   :  { %7684 = vst.msk [vmem:[%s14849_s6 + $0x138] sm:$0xff] %vm7644_vm9, %v7635_v26 }
 0x7d2   :  { %v7159_v54 = vpop.f32.mrf.mxu2 }
 0x7d3   :  { %v7160_v50 = vadd.f32 %v7159_v54, %v7031_v41  ;;  %v7288_v22 = vpop.f32.mrf.mxu3 }
 0x7d4   :  { %v6913_v9 = vpop.f32.mrf.mxu0 }
 0x7d5   :  { %v7289_v13 = vadd.f32 %v7288_v22, %v7160_v50  ;;  %v7042_v60 = vpop.f32.mrf.mxu1  ;;  %v6914_v4 = vadd.f32 %v6913_v9, %v15088_v31 }
 0x7d7   :  { %v7636_v53 = vmul.f32 %v7559_v49, %v7289_v13  ;;  %v7043_v17 = vadd.f32 %v7042_v60, %v6914_v4  ;;  %v7589_v49 = vpop.permute.xlu1 %7588 }
 0x7d9   :  { %7685 = vst.msk [vmem:[%s14849_s6 + $0x140] sm:$0xff] %vm7644_vm9, %v7636_v53 }
 0x7da   :  { %v7161_v34 = vpop.f32.mrf.mxu2 }
 0x7db   :  { %v7162_v45 = vadd.f32 %v7161_v34, %v7033_v28  ;;  %v7290_v10 = vpop.f32.mrf.mxu3 }
 0x7dc   :  { %v6916_v58 = vpop.f32.mrf.mxu0 }
 0x7dd   :  { %v7291_v19 = vadd.f32 %v7290_v10, %v7162_v45  ;;  %v6917_v43 = vadd.f32 %v6916_v58, %v13968_v56  ;;  %v7045_v32 = vpop.f32.mrf.mxu1  ;;  %v7594_v10 = vpop.permute.xlu2 %7593 }
 0x7df   :  { %v7637_v2 = vmul.f32 %v7564_v0, %v7291_v19  ;;  %v7046_v33 = vadd.f32 %v7045_v32, %v6917_v43 }
 0x7e1   :  { %7686 = vst.msk [vmem:[%s14849_s6 + $0x148] sm:$0xff] %vm7644_vm9, %v7637_v2 }
 0x7e2   :  { %v7164_v11 = vpop.f32.mrf.mxu2 }
 0x7e3   :  { %v7165_v61 = vadd.f32 %v7164_v11, %v7036_v36  ;;  %v7293_v30 = vpop.f32.mrf.mxu3 }
 0x7e4   :  { %v6918_v41 = vpop.f32.mrf.mxu0 }
 0x7e5   :  { %v7294_v59 = vadd.f32 %v7293_v30, %v7165_v61  ;;  %v6919_v24 = vadd.f32 %v6918_v41, %v15089_v39  ;;  %v7047_v56 = vpop.f32.mrf.mxu1 }
 0x7e7   :  { %v7638_v27 = vmul.f32 %v7569_v18, %v7294_v59  ;;  %v7048_v53 = vadd.f32 %v7047_v56, %v6919_v24 }
 0x7e9   :  { %7687 = vst.msk [vmem:[%s14849_s6 + $0x150] sm:$0xff] %vm7644_vm9, %v7638_v27 }
 0x7ea   :  { %v7166_v40 = vpop.f32.mrf.mxu2 }
 0x7eb   :  { %v7167_v14 = vadd.f32 %v7166_v40, %v7038_v20  ;;  %v7295_v16 = vpop.f32.mrf.mxu3 }
 0x7ed   :  { %v7296_v12 = vadd.f32 %v7295_v16, %v7167_v14 }
 0x7ef   :  { %v7639_v35 = vmul.f32 %v7574_v63, %v7296_v12 }
 0x7f1   :  { %7688 = vst.msk [vmem:[%s14849_s6 + $0x158] sm:$0xff] %vm7644_vm9, %v7639_v35 }
 0x7f2   :  { %v7169_v44 = vpop.f32.mrf.mxu2 }
 0x7f3   :  { %v7170_v7 = vadd.f32 %v7169_v44, %v7041_v25  ;;  %v7298_v37 = vpop.f32.mrf.mxu3 }
 0x7f5   :  { %v7299_v62 = vadd.f32 %v7298_v37, %v7170_v7 }
 0x7f7   :  { %v7640_v38 = vmul.f32 %v7579_v29, %v7299_v62 }
 0x7f9   :  { %7689 = vst.msk [vmem:[%s14849_s6 + $0x160] sm:$0xff] %vm7644_vm9, %v7640_v38 }
 0x7fa   :  { %v7171_v8 = vpop.f32.mrf.mxu2 }
 0x7fb   :  { %v7172_v15 = vadd.f32 %v7171_v8, %v7043_v17  ;;  %v7300_v3 = vpop.f32.mrf.mxu3 }
 0x7fd   :  { %v7301_v23 = vadd.f32 %v7300_v3, %v7172_v15 }
 0x7ff   :  { %v7641_v26 = vmul.f32 %v7584_v48, %v7301_v23 }
 0x801   :  { %7690 = vst.msk [vmem:[%s14849_s6 + $0x168] sm:$0xff] %vm7644_vm9, %v7641_v26 }
 0x802   :  { %v7174_v54 = vpop.f32.mrf.mxu2 }
 0x803   :  { %v7175_v50 = vadd.f32 %v7174_v54, %v7046_v33  ;;  %v7303_v22 = vpop.f32.mrf.mxu3 }
 0x805   :  { %v7304_v13 = vadd.f32 %v7303_v22, %v7175_v50 }
 0x807   :  { %v7642_v6 = vmul.f32 %v7589_v49, %v7304_v13 }
 0x809   :  { %7691 = vst.msk [vmem:[%s14849_s6 + $0x170] sm:$0xff] %vm7644_vm9, %v7642_v6 }
 0x80a   :  { %v7176_v28 = vpop.f32.mrf.mxu2 }
 0x80b   :  { %v7177_v51 = vadd.f32 %v7176_v28, %v7048_v53  ;;  %v7305_v34 = vpop.f32.mrf.mxu3 }
 0x80d   :  { %v7306_v45 = vadd.f32 %v7305_v34, %v7177_v51 }
 0x80f   :  { %v7643_v55 = vmul.f32 %v7594_v10, %v7306_v45 }
 0x811   :  { %7692 = vst.msk [vmem:[%s14849_s6 + $0x178] sm:$0xff] %vm7644_vm9, %v7643_v55 }

</bundles_post_ra>
